<compile_context>
chip_gen: v7x
topology: tpu7x:2x2x1
jax: 0.10.0
libtpu: 0.0.40
codegen_flags: <defaults>
</compile_context>

<pallas_src>
import functools

import jax
import jax.numpy as jnp
from jax.experimental import pallas as pl
from jax.experimental.pallas import tpu as pltpu

EPS = 1e-5
LANE = 128                   # channel padding target (TPU lane width)
MXU_DTYPE = jnp.bfloat16     # matmul input dtype (f32 accumulation)
ACT_DTYPE = jnp.bfloat16     # HBM dtype of inter-kernel activations


def _round_up(x, m):
    return (x + m - 1) // m * m


def _compiler_params():
    # Batch grid axis is embarrassingly parallel.  64 MiB scoped VMEM is a
    # budget (not a reservation): fine on v5e/v6e (128 MiB physical) and v7x
    # (64 MiB physical) since the per-step footprint here is ~2-10 MiB.
    return pltpu.CompilerParams(
        dimension_semantics=("parallel",),
        vmem_limit_bytes=64 * 1024 * 1024,
    )


def _col_mask(m, wp, w_real):
    """(m, 1) bool: True on rows whose column j = r % wp is a real pixel."""
    col = jax.lax.broadcasted_iota(jnp.int32, (m, 1), 0) % wp
    return col < w_real


# ---------------------------------------------------------------------------
# Pallas kernels
# ---------------------------------------------------------------------------
def _conv3x3_kernel(x_ref, scale_ref, shift_ref, w_ref, b_ref,
                    y_ref, stats_ref, pad_scr, slab_scr, acc_scr,
                    *, m, wp, hpwp, w_real, fuse_bn_relu, inv_count):
    """(optional fused BN+ReLU) -> 3x3 'same' conv (+bias) for one image,
    fused per-image BN partial statistics.

    x_ref    : (1, m, Cin_p)        bf16  activation, m-row layout
    scale_ref: (1, Cin_p)           f32   BN1 scale  (unused if not fused)
    shift_ref: (1, Cin_p)           f32   BN1 shift  (unused if not fused)
    w_ref    : (3, 3*Cin_p, Cout_p) bf16  kh-major, kw-concat-along-K weights
    b_ref    : (1, Cout_p)          f32
    y_ref    : (1, m, Cout_p)       bf16  conv+bias output (garbage cols kept)
    stats_ref: (1, 2, Cout_p)       f32   [sum, centered sum-of-squares]
    pad_scr  : (hpwp, Cin_p)        f32   zero-padded implicit-im2col source
    slab_scr : (m, 3*Cin_p)         bf16  K-packed slab (3 kw taps)
    acc_scr  : (m, Cout_p)          f32   accumulator
    with m = H*(W+2), wp = W+2, hpwp = (H+3)*wp.
    """
    cin_p = pad_scr.shape[1]

    # ---- prologue: optional BN1+ReLU of the incoming activation, then place
    # it into the zero-padded, row-flattened layout inside VMEM. ----
    a = x_ref[0].astype(jnp.float32)
    if fuse_bn_relu:
        a = jnp.maximum(a * scale_ref[...] + shift_ref[...], 0.0)
        a = jnp.where(_col_mask(m, wp, w_real), a, 0.0)   # zero garbage cols
    # Zero only the pad borders (top wp+1 rows, bottom 2*wp-1 rows); the
    # interior is fully overwritten every step.  (Done every step because the
    # scratch is per-core under megacore sharding.)
    pad_scr[pl.ds(0, wp + 1), :] = jnp.zeros((wp + 1, cin_p), jnp.float32)
    pad_scr[pl.ds(wp + 1 + m, hpwp - wp - 1 - m), :] = jnp.zeros(
        (hpwp - wp - 1 - m, cin_p), jnp.float32)
    pad_scr[pl.ds(wp + 1, m), :] = a

    # ---- implicit im2col + 3 K-packed MXU dots (K = 3*Cin_p). ----
    # Filter tap (kh, kw) == contiguous window of m rows starting at kh*wp+kw.
    for kh in range(3):
        for kw in range(3):
            win = pad_scr[pl.ds(kh * wp + kw, m), :]
            slab_scr[:, kw * cin_p:(kw + 1) * cin_p] = win.astype(MXU_DTYPE)
        part = jnp.dot(slab_scr[...], w_ref[kh],
                       preferred_element_type=jnp.float32)
        if kh == 0:
            acc_scr[...] = part + b_ref[...]      # bias folded into first write
        else:
            acc_scr[...] += part

    y = acc_scr[...]
    y_ref[0] = y.astype(y_ref.dtype)

    # ---- fused per-image BN partials.  Centered sum-of-squares (numerically
    # robust); garbage columns excluded via in-kernel iota mask. ----
    valid = _col_mask(m, wp, w_real)
    yv = jnp.where(valid, y, 0.0)
    s = jnp.sum(yv, axis=0, keepdims=True)                 # per-image sum
    d = jnp.where(valid, y - s * inv_count, 0.0)           # y - per-image mean
    stats_ref[0, 0:1, :] = s
    stats_ref[0, 1:2, :] = jnp.sum(d * d, axis=0, keepdims=True)


def _bn_skip_relu_kernel(y_ref, x_ref, scale_ref, shift_ref, out_ref):
    """Second BN (precomputed global scale/shift) + identity skip + ReLU."""
    out_ref[0] = jnp.maximum(
        y_ref[0].astype(jnp.float32) * scale_ref[...] + shift_ref[...]
        + x_ref[0].astype(jnp.float32), 0.0)


# ---------------------------------------------------------------------------
# pallas_call wrappers (grid over the batch, one image == one M-tile)
# ---------------------------------------------------------------------------
def _conv3x3(x, scale, shift, w3, b, *, H, W, fuse_bn_relu):
    N, m, cin_p = x.shape
    cout_p = w3.shape[2]
    wp = W + 2
    hpwp = (H + 3) * wp
    assert m == H * wp
    kernel = functools.partial(
        _conv3x3_kernel, m=m, wp=wp, hpwp=hpwp, w_real=W,
        fuse_bn_relu=fuse_bn_relu, inv_count=1.0 / float(H * W))
    return pl.pallas_call(
        kernel,
        grid=(N,),
        in_specs=[
            pl.BlockSpec((1, m, cin_p), lambda n: (n, 0, 0)),
            pl.BlockSpec((1, cin_p), lambda n: (0, 0)),               # resident
            pl.BlockSpec((1, cin_p), lambda n: (0, 0)),               # resident
            pl.BlockSpec((3, 3 * cin_p, cout_p), lambda n: (0, 0, 0)),  # resident
            pl.BlockSpec((1, cout_p), lambda n: (0, 0)),              # resident
        ],
        out_specs=(
            pl.BlockSpec((1, m, cout_p), lambda n: (n, 0, 0)),
            pl.BlockSpec((1, 2, cout_p), lambda n: (n, 0, 0)),
        ),
        out_shape=(
            jax.ShapeDtypeStruct((N, m, cout_p), ACT_DTYPE),
            jax.ShapeDtypeStruct((N, 2, cout_p), jnp.float32),
        ),
        scratch_shapes=[
            pltpu.VMEM((hpwp, cin_p), jnp.float32),      # padded im2col source
            pltpu.VMEM((m, 3 * cin_p), MXU_DTYPE),       # K-packed slab
            pltpu.VMEM((m, cout_p), jnp.float32),        # accumulator
        ],
        compiler_params=_compiler_params(),
    )(x, scale, shift, w3, b)


def _bn_skip_relu(y, x, scale, shift):
    N, m, cp = y.shape
    return pl.pallas_call(
        _bn_skip_relu_kernel,
        grid=(N,),
        in_specs=[
            pl.BlockSpec((1, m, cp), lambda n: (n, 0, 0)),
            pl.BlockSpec((1, m, cp), lambda n: (n, 0, 0)),
            pl.BlockSpec((1, cp), lambda n: (0, 0)),                  # resident
            pl.BlockSpec((1, cp), lambda n: (0, 0)),                  # resident
        ],
        out_specs=pl.BlockSpec((1, m, cp), lambda n: (n, 0, 0)),
        out_shape=jax.ShapeDtypeStruct((N, m, cp), jnp.float32),
        compiler_params=_compiler_params(),
    )(y, x, scale, shift)


# ---------------------------------------------------------------------------
# Parameter prep / tiny per-channel glue (plain JAX on (C,)-vectors)
# ---------------------------------------------------------------------------
def _prep_conv_weight(w_oihw, cin_p, cout_p):
    # torch (O, I, 3, 3) -> (3, 3*Cin_p, Cout_p) bf16, kh-major, the 3 kw taps
    # concatenated along K (matches the in-kernel slab layout).  Zero-padded
    # channels multiply zero-padded inputs, so results are exact.
    o, i = w_oihw.shape[0], w_oihw.shape[1]
    w = jnp.transpose(w_oihw, (2, 3, 1, 0))                  # (kh, kw, I, O)
    w = jnp.pad(w, ((0, 0), (0, 0), (0, cin_p - i), (0, cout_p - o)))
    w = w.reshape(3, 3 * cin_p, cout_p)
    return w.astype(MXU_DTYPE)


def _pad_vec(v, cp):
    return jnp.pad(v.astype(jnp.float32), (0, cp - v.shape[0]))


def _bn_affine_from_stats(stats, gamma_p, beta_p, hw, n_images):
    # stats: (N, 2, Cp) = per-image [sum, centered sum-of-squares].  Combine
    # with Chan's parallel formula to get GLOBAL batch mean / biased variance,
    # then fold gamma * rsqrt(var+eps) into one per-channel scale/shift.
    s_n = stats[:, 0, :]
    ss_n = stats[:, 1, :]
    count = float(n_images * hw)
    mean = jnp.sum(s_n, axis=0) / count
    mu_n = s_n / float(hw)
    var = (jnp.sum(ss_n, axis=0)
           + float(hw) * jnp.sum(jnp.square(mu_n - mean), axis=0)) / count
    var = jnp.maximum(var, 0.0)
    scale = gamma_p * jax.lax.rsqrt(var + EPS)
    shift = beta_p - mean * scale
    cp = scale.shape[0]
    return scale.reshape(1, cp), shift.reshape(1, cp)


# ---------------------------------------------------------------------------
# BasicBlock parameters + forward
# ---------------------------------------------------------------------------
def init_basic_block_params(key, in_channels, out_channels):
    k1, k2, k3, k4 = jax.random.split(key, 4)
    # kaiming_normal_: std = sqrt(2 / fan_in), fan_in = in_ch * 3 * 3
    std1 = (2.0 / (in_channels * 9)) ** 0.5
    std2 = (2.0 / (out_channels * 9)) ** 0.5
    return {
        "conv1_w": jax.random.normal(k1, (out_channels, in_channels, 3, 3), jnp.float32) * std1,
        "conv1_b": jax.random.uniform(k2, (out_channels,), jnp.float32, -0.1, 0.1),
        "conv2_w": jax.random.normal(k3, (out_channels, out_channels, 3, 3), jnp.float32) * std2,
        "conv2_b": jax.random.uniform(k4, (out_channels,), jnp.float32, -0.1, 0.1),
        "bn1_gamma": jnp.ones((out_channels,), jnp.float32),
        "bn1_beta": jnp.zeros((out_channels,), jnp.float32),
        "bn2_gamma": jnp.ones((out_channels,), jnp.float32),
        "bn2_beta": jnp.zeros((out_channels,), jnp.float32),
    }


def basic_block_forward(params, x_nchw):
    x = jnp.transpose(x_nchw, (0, 2, 3, 1)).astype(jnp.float32)  # NCHW -> NHWC
    N, H, W, c_in = x.shape
    c_out = params["conv1_w"].shape[0]
    assert c_in == c_out, "identity skip path needs in_channels == out_channels"

    cin_p = _round_up(c_in, LANE)
    cout_p = _round_up(c_out, LANE)
    wp = W + 2
    m = H * wp
    hw = H * W

    # Activation "m-row" layout: (N, H*(W+2), Cin_p) bf16; the two extra zero
    # columns per image row become the conv's left/right padding when the
    # kernel re-pads into its VMEM scratch.  Serves as conv1 input AND as the
    # identity-skip source (aligned whole-block reads everywhere).
    xr = jnp.pad(x, ((0, 0), (0, 0), (0, 2), (0, cin_p - c_in)))
    xr = xr.reshape(N, m, cin_p).astype(ACT_DTYPE)

    w1 = _prep_conv_weight(params["conv1_w"], cin_p, cout_p)
    b1 = _pad_vec(params["conv1_b"], cout_p).reshape(1, cout_p)
    w2 = _prep_conv_weight(params["conv2_w"], cout_p, cout_p)
    b2 = _pad_vec(params["conv2_b"], cout_p).reshape(1, cout_p)
    g1, be1 = _pad_vec(params["bn1_gamma"], cout_p), _pad_vec(params["bn1_beta"], cout_p)
    g2, be2 = _pad_vec(params["bn2_gamma"], cout_p), _pad_vec(params["bn2_beta"], cout_p)

    dummy = jnp.zeros((1, cin_p), jnp.float32)   # unused scale/shift for conv1

    # conv1 (+bias, fused per-image BN1 partial stats)
    y1, st1 = _conv3x3(xr, dummy, dummy, w1, b1, H=H, W=W, fuse_bn_relu=False)
    scale1, shift1 = _bn_affine_from_stats(st1, g1, be1, hw, N)
    # conv2 with BN1-apply + ReLU fused into its prologue (no a1 HBM round-trip)
    y2, st2 = _conv3x3(y1, scale1, shift1, w2, b2, H=H, W=W, fuse_bn_relu=True)
    scale2, shift2 = _bn_affine_from_stats(st2, g2, be2, hw, N)
    # BN2 + identity skip + output ReLU (fused)
    out_flat = _bn_skip_relu(y2, xr, scale2, shift2)

    out = out_flat.reshape(N, H, wp, cout_p)[:, :, :W, :c_out]
    return jnp.transpose(out, (0, 3, 1, 2))  # NHWC -> NCHW


# ---------------------------------------------------------------------------
# Pure-JAX reference (mirrors torch semantics; bf16 conv inputs / f32 accum,
# f32 BN with batch stats / biased variance / eps=1e-5)
# ---------------------------------------------------------------------------
def _ref_forward(params, x_nchw):
    def conv(x, w, b):
        y = jax.lax.conv_general_dilated(
            x.astype(jnp.bfloat16), w.astype(jnp.bfloat16),
            window_strides=(1, 1), padding=((1, 1), (1, 1)),
            dimension_numbers=("NCHW", "OIHW", "NCHW"),
            preferred_element_type=jnp.float32)
        return y + b[None, :, None, None]

    def bn(y, g, be):
        mean = jnp.mean(y, axis=(0, 2, 3), keepdims=True)
        var = jnp.mean((y - mean) ** 2, axis=(0, 2, 3), keepdims=True)
        return (y - mean) * jax.lax.rsqrt(var + EPS) * g[None, :, None, None] \
            + be[None, :, None, None]

    x = x_nchw.astype(jnp.float32)
    h = jnp.maximum(bn(conv(x, params["conv1_w"], params["conv1_b"]),
                       params["bn1_gamma"], params["bn1_beta"]), 0.0)
    h = bn(conv(h, params["conv2_w"], params["conv2_b"]),
           params["bn2_gamma"], params["bn2_beta"])
    return jnp.maximum(h + x, 0.0)


if __name__ == "__main__":
    key = jax.random.PRNGKey(0)
    k_x, k_p = jax.random.split(key)

    N, C_in, H, W = 2, 4, 16, 16
    C_out = 4  # identity skip path (stride=1) requires C_out == C_in

    x = jax.random.normal(k_x, (N, C_in, H, W), jnp.float32)
    params = init_basic_block_params(k_p, C_in, C_out)

    out = jax.jit(basic_block_forward)(params, x)
    out = jax.block_until_ready(out)
    assert out.shape == (N, C_out, H, W)

    ref = _ref_forward(params, x)
    max_err = float(jnp.max(jnp.abs(out - ref)))
    # Tolerance covers bf16 MXU inputs and bf16 HBM intermediates (y1, y2,
    # skip) vs. the f32-skip reference; observed mismatch is typically <= 1e-2.
    assert jnp.allclose(out, ref, atol=3e-2, rtol=3e-2), max_err

    print("KERNEL_OK")
</pallas_src>

<mosaic_0001>
module attributes {stable_mosaic.version = 11 : i64} {
  func.func @_conv3x3_kernel(%arg0: i32, %arg1: memref<1x288x128xbf16, #tpu.memory_space<vmem>>, %arg2: memref<1x128xf32, #tpu.memory_space<vmem>>, %arg3: memref<1x128xf32, #tpu.memory_space<vmem>>, %arg4: memref<3x384x128xbf16, #tpu.memory_space<vmem>>, %arg5: memref<1x128xf32, #tpu.memory_space<vmem>>, %arg6: memref<1x288x128xbf16, #tpu.memory_space<vmem>>, %arg7: memref<1x2x128xf32, #tpu.memory_space<vmem>>, %arg8: memref<342x128xf32, #tpu.memory_space<vmem>>, %arg9: memref<288x384xbf16, #tpu.memory_space<vmem>>, %arg10: memref<288x128xf32, #tpu.memory_space<vmem>>) attributes {dimension_semantics = [#tpu.dimension_semantics<parallel>], iteration_bounds = array<i64: 2>, scalar_prefetch = 0 : i64, scratch_operands = 3 : i64, tpu.core_type = #tpu.core_type<tc>, window_params = [{transform_indices = @transform_0, window_bounds = array<i64: 1, 288, 128>}, {pipeline_mode = #tpu.pipeline_mode<synchronous>, transform_indices = @transform_1, window_bounds = array<i64: 1, 128>}, {pipeline_mode = #tpu.pipeline_mode<synchronous>, transform_indices = @transform_2, window_bounds = array<i64: 1, 128>}, {pipeline_mode = #tpu.pipeline_mode<synchronous>, transform_indices = @transform_3, window_bounds = array<i64: 3, 384, 128>}, {pipeline_mode = #tpu.pipeline_mode<synchronous>, transform_indices = @transform_4, window_bounds = array<i64: 1, 128>}, {transform_indices = @transform_5, window_bounds = array<i64: 1, 288, 128>}, {transform_indices = @transform_6, window_bounds = array<i64: 1, 2, 128>}]} {
    %c0 = arith.constant 0 : index
    %c0_0 = arith.constant 0 : index
    %c0_1 = arith.constant 0 : index
    %0 = vector.load %arg1[%c0, %c0_0, %c0_1] : memref<1x288x128xbf16, #tpu.memory_space<vmem>>, vector<1x288x128xbf16>
    %1 = vector.shape_cast %0 : vector<1x288x128xbf16> to vector<288x128xbf16>
    %2 = arith.extf %1 : vector<288x128xbf16> to vector<288x128xf32>
    %cst = arith.constant 0.000000e+00 : f32
    %3 = vector.broadcast %cst : f32 to vector<19x128xf32>
    %c0_2 = arith.constant 0 : index
    %c0_3 = arith.constant 0 : index
    %4 = vector.load %arg8[%c0_2, %c0_3] : memref<342x128xf32, #tpu.memory_space<vmem>>, vector<19x128xf32>
    tpu.vector_store %arg8[%c0_2, %c0_3], %3 {strides = array<i32>} : memref<342x128xf32, #tpu.memory_space<vmem>>, vector<19x128xf32>,
    %cst_4 = arith.constant 0.000000e+00 : f32
    %5 = vector.broadcast %cst_4 : f32 to vector<35x128xf32>
    %c307 = arith.constant 307 : index
    %c0_5 = arith.constant 0 : index
    %6 = vector.load %arg8[%c307, %c0_5] : memref<342x128xf32, #tpu.memory_space<vmem>>, vector<35x128xf32>
    tpu.vector_store %arg8[%c307, %c0_5], %5 {strides = array<i32>} : memref<342x128xf32, #tpu.memory_space<vmem>>, vector<35x128xf32>,
    %c19 = arith.constant 19 : index
    %c0_6 = arith.constant 0 : index
    %7 = vector.load %arg8[%c19, %c0_6] : memref<342x128xf32, #tpu.memory_space<vmem>>, vector<288x128xf32>
    tpu.vector_store %arg8[%c19, %c0_6], %2 {strides = array<i32>} : memref<342x128xf32, #tpu.memory_space<vmem>>, vector<288x128xf32>,
    %c0_7 = arith.constant 0 : index
    %c0_8 = arith.constant 0 : index
    %8 = vector.load %arg8[%c0_7, %c0_8] : memref<342x128xf32, #tpu.memory_space<vmem>>, vector<288x128xf32>
    %9 = arith.truncf %8 : vector<288x128xf32> to vector<288x128xbf16>
    %c0_9 = arith.constant 0 : index
    %c0_10 = arith.constant 0 : index
    %10 = vector.load %arg9[%c0_9, %c0_10] : memref<288x384xbf16, #tpu.memory_space<vmem>>, vector<288x128xbf16>
    tpu.vector_store %arg9[%c0_9, %c0_10], %9 {strides = array<i32>} : memref<288x384xbf16, #tpu.memory_space<vmem>>, vector<288x128xbf16>,
    %c1 = arith.constant 1 : index
    %c0_11 = arith.constant 0 : index
    %11 = vector.load %arg8[%c1, %c0_11] : memref<342x128xf32, #tpu.memory_space<vmem>>, vector<288x128xf32>
    %12 = arith.truncf %11 : vector<288x128xf32> to vector<288x128xbf16>
    %c0_12 = arith.constant 0 : index
    %c128 = arith.constant 128 : index
    %13 = vector.load %arg9[%c0_12, %c128] : memref<288x384xbf16, #tpu.memory_space<vmem>>, vector<288x128xbf16>
    tpu.vector_store %arg9[%c0_12, %c128], %12 {strides = array<i32>} : memref<288x384xbf16, #tpu.memory_space<vmem>>, vector<288x128xbf16>,
    %c2 = arith.constant 2 : index
    %c0_13 = arith.constant 0 : index
    %14 = vector.load %arg8[%c2, %c0_13] : memref<342x128xf32, #tpu.memory_space<vmem>>, vector<288x128xf32>
    %15 = arith.truncf %14 : vector<288x128xf32> to vector<288x128xbf16>
    %c0_14 = arith.constant 0 : index
    %c256 = arith.constant 256 : index
    %16 = vector.load %arg9[%c0_14, %c256] : memref<288x384xbf16, #tpu.memory_space<vmem>>, vector<288x128xbf16>
    tpu.vector_store %arg9[%c0_14, %c256], %15 {strides = array<i32>} : memref<288x384xbf16, #tpu.memory_space<vmem>>, vector<288x128xbf16>,
    %c0_15 = arith.constant 0 : index
    %c0_16 = arith.constant 0 : index
    %17 = vector.load %arg9[%c0_15, %c0_16] : memref<288x384xbf16, #tpu.memory_space<vmem>>, vector<288x384xbf16>
    %c0_17 = arith.constant 0 : index
    %c0_18 = arith.constant 0 : index
    %c0_19 = arith.constant 0 : index
    %18 = vector.load %arg4[%c0_17, %c0_18, %c0_19] : memref<3x384x128xbf16, #tpu.memory_space<vmem>>, vector<1x384x128xbf16>
    %19 = vector.shape_cast %18 : vector<1x384x128xbf16> to vector<384x128xbf16>
    %cst_20 = arith.constant dense<0.000000e+00> : vector<288x128xf32>
    %20 = tpu.matmul %17, %19, %cst_20 {dimension_numbers = #tpu.dot_dimension_numbers<[1], [0], [0], [1], [0, 0, 1, 1], [], []>} : vector<288x384xbf16>, vector<384x128xbf16>, vector<288x128xf32> -> vector<288x128xf32>
    %c0_21 = arith.constant 0 : index
    %c0_22 = arith.constant 0 : index
    %21 = vector.load %arg5[%c0_21, %c0_22] : memref<1x128xf32, #tpu.memory_space<vmem>>, vector<1x128xf32>
    %22 = vector.broadcast %21 : vector<1x128xf32> to vector<288x128xf32>
    %23 = arith.addf %20, %22 : vector<288x128xf32>
    %c0_23 = arith.constant 0 : index
    %c0_24 = arith.constant 0 : index
    %24 = vector.load %arg10[%c0_23, %c0_24] : memref<288x128xf32, #tpu.memory_space<vmem>>, vector<288x128xf32>
    tpu.vector_store %arg10[%c0_23, %c0_24], %23 {strides = array<i32>} : memref<288x128xf32, #tpu.memory_space<vmem>>, vector<288x128xf32>,
    %c18 = arith.constant 18 : index
    %c0_25 = arith.constant 0 : index
    %25 = vector.load %arg8[%c18, %c0_25] : memref<342x128xf32, #tpu.memory_space<vmem>>, vector<288x128xf32>
    %26 = arith.truncf %25 : vector<288x128xf32> to vector<288x128xbf16>
    %c0_26 = arith.constant 0 : index
    %c0_27 = arith.constant 0 : index
    %27 = vector.load %arg9[%c0_26, %c0_27] : memref<288x384xbf16, #tpu.memory_space<vmem>>, vector<288x128xbf16>
    tpu.vector_store %arg9[%c0_26, %c0_27], %26 {strides = array<i32>} : memref<288x384xbf16, #tpu.memory_space<vmem>>, vector<288x128xbf16>,
    %c19_28 = arith.constant 19 : index
    %c0_29 = arith.constant 0 : index
    %28 = vector.load %arg8[%c19_28, %c0_29] : memref<342x128xf32, #tpu.memory_space<vmem>>, vector<288x128xf32>
    %29 = arith.truncf %28 : vector<288x128xf32> to vector<288x128xbf16>
    %c0_30 = arith.constant 0 : index
    %c128_31 = arith.constant 128 : index
    %30 = vector.load %arg9[%c0_30, %c128_31] : memref<288x384xbf16, #tpu.memory_space<vmem>>, vector<288x128xbf16>
    tpu.vector_store %arg9[%c0_30, %c128_31], %29 {strides = array<i32>} : memref<288x384xbf16, #tpu.memory_space<vmem>>, vector<288x128xbf16>,
    %c20 = arith.constant 20 : index
    %c0_32 = arith.constant 0 : index
    %31 = vector.load %arg8[%c20, %c0_32] : memref<342x128xf32, #tpu.memory_space<vmem>>, vector<288x128xf32>
    %32 = arith.truncf %31 : vector<288x128xf32> to vector<288x128xbf16>
    %c0_33 = arith.constant 0 : index
    %c256_34 = arith.constant 256 : index
    %33 = vector.load %arg9[%c0_33, %c256_34] : memref<288x384xbf16, #tpu.memory_space<vmem>>, vector<288x128xbf16>
    tpu.vector_store %arg9[%c0_33, %c256_34], %32 {strides = array<i32>} : memref<288x384xbf16, #tpu.memory_space<vmem>>, vector<288x128xbf16>,
    %c0_35 = arith.constant 0 : index
    %c0_36 = arith.constant 0 : index
    %34 = vector.load %arg9[%c0_35, %c0_36] : memref<288x384xbf16, #tpu.memory_space<vmem>>, vector<288x384xbf16>
    %c1_37 = arith.constant 1 : index
    %c0_38 = arith.constant 0 : index
    %c0_39 = arith.constant 0 : index
    %35 = vector.load %arg4[%c1_37, %c0_38, %c0_39] : memref<3x384x128xbf16, #tpu.memory_space<vmem>>, vector<1x384x128xbf16>
    %36 = vector.shape_cast %35 : vector<1x384x128xbf16> to vector<384x128xbf16>
    %cst_40 = arith.constant dense<0.000000e+00> : vector<288x128xf32>
    %37 = tpu.matmul %34, %36, %cst_40 {dimension_numbers = #tpu.dot_dimension_numbers<[1], [0], [0], [1], [0, 0, 1, 1], [], []>} : vector<288x384xbf16>, vector<384x128xbf16>, vector<288x128xf32> -> vector<288x128xf32>
    %c0_41 = arith.constant 0 : index
    %c0_42 = arith.constant 0 : index
    %38 = vector.load %arg10[%c0_41, %c0_42] : memref<288x128xf32, #tpu.memory_space<vmem>>, vector<288x128xf32>
    %39 = arith.addf %38, %37 : vector<288x128xf32>
    %c0_43 = arith.constant 0 : index
    %c0_44 = arith.constant 0 : index
    %40 = vector.load %arg10[%c0_43, %c0_44] : memref<288x128xf32, #tpu.memory_space<vmem>>, vector<288x128xf32>
    tpu.vector_store %arg10[%c0_43, %c0_44], %39 {strides = array<i32>} : memref<288x128xf32, #tpu.memory_space<vmem>>, vector<288x128xf32>,
    %c36 = arith.constant 36 : index
    %c0_45 = arith.constant 0 : index
    %41 = vector.load %arg8[%c36, %c0_45] : memref<342x128xf32, #tpu.memory_space<vmem>>, vector<288x128xf32>
    %42 = arith.truncf %41 : vector<288x128xf32> to vector<288x128xbf16>
    %c0_46 = arith.constant 0 : index
    %c0_47 = arith.constant 0 : index
    %43 = vector.load %arg9[%c0_46, %c0_47] : memref<288x384xbf16, #tpu.memory_space<vmem>>, vector<288x128xbf16>
    tpu.vector_store %arg9[%c0_46, %c0_47], %42 {strides = array<i32>} : memref<288x384xbf16, #tpu.memory_space<vmem>>, vector<288x128xbf16>,
    %c37 = arith.constant 37 : index
    %c0_48 = arith.constant 0 : index
    %44 = vector.load %arg8[%c37, %c0_48] : memref<342x128xf32, #tpu.memory_space<vmem>>, vector<288x128xf32>
    %45 = arith.truncf %44 : vector<288x128xf32> to vector<288x128xbf16>
    %c0_49 = arith.constant 0 : index
    %c128_50 = arith.constant 128 : index
    %46 = vector.load %arg9[%c0_49, %c128_50] : memref<288x384xbf16, #tpu.memory_space<vmem>>, vector<288x128xbf16>
    tpu.vector_store %arg9[%c0_49, %c128_50], %45 {strides = array<i32>} : memref<288x384xbf16, #tpu.memory_space<vmem>>, vector<288x128xbf16>,
    %c38 = arith.constant 38 : index
    %c0_51 = arith.constant 0 : index
    %47 = vector.load %arg8[%c38, %c0_51] : memref<342x128xf32, #tpu.memory_space<vmem>>, vector<288x128xf32>
    %48 = arith.truncf %47 : vector<288x128xf32> to vector<288x128xbf16>
    %c0_52 = arith.constant 0 : index
    %c256_53 = arith.constant 256 : index
    %49 = vector.load %arg9[%c0_52, %c256_53] : memref<288x384xbf16, #tpu.memory_space<vmem>>, vector<288x128xbf16>
    tpu.vector_store %arg9[%c0_52, %c256_53], %48 {strides = array<i32>} : memref<288x384xbf16, #tpu.memory_space<vmem>>, vector<288x128xbf16>,
    %c0_54 = arith.constant 0 : index
    %c0_55 = arith.constant 0 : index
    %50 = vector.load %arg9[%c0_54, %c0_55] : memref<288x384xbf16, #tpu.memory_space<vmem>>, vector<288x384xbf16>
    %c2_56 = arith.constant 2 : index
    %c0_57 = arith.constant 0 : index
    %c0_58 = arith.constant 0 : index
    %51 = vector.load %arg4[%c2_56, %c0_57, %c0_58] : memref<3x384x128xbf16, #tpu.memory_space<vmem>>, vector<1x384x128xbf16>
    %52 = vector.shape_cast %51 : vector<1x384x128xbf16> to vector<384x128xbf16>
    %cst_59 = arith.constant dense<0.000000e+00> : vector<288x128xf32>
    %53 = tpu.matmul %50, %52, %cst_59 {dimension_numbers = #tpu.dot_dimension_numbers<[1], [0], [0], [1], [0, 0, 1, 1], [], []>} : vector<288x384xbf16>, vector<384x128xbf16>, vector<288x128xf32> -> vector<288x128xf32>
    %c0_60 = arith.constant 0 : index
    %c0_61 = arith.constant 0 : index
    %54 = vector.load %arg10[%c0_60, %c0_61] : memref<288x128xf32, #tpu.memory_space<vmem>>, vector<288x128xf32>
    %55 = arith.addf %54, %53 : vector<288x128xf32>
    %c0_62 = arith.constant 0 : index
    %c0_63 = arith.constant 0 : index
    %56 = vector.load %arg10[%c0_62, %c0_63] : memref<288x128xf32, #tpu.memory_space<vmem>>, vector<288x128xf32>
    tpu.vector_store %arg10[%c0_62, %c0_63], %55 {strides = array<i32>} : memref<288x128xf32, #tpu.memory_space<vmem>>, vector<288x128xf32>,
    %c0_64 = arith.constant 0 : index
    %c0_65 = arith.constant 0 : index
    %57 = vector.load %arg10[%c0_64, %c0_65] : memref<288x128xf32, #tpu.memory_space<vmem>>, vector<288x128xf32>
    %58 = arith.truncf %57 : vector<288x128xf32> to vector<288x128xbf16>
    %c0_66 = arith.constant 0 : index
    %c0_67 = arith.constant 0 : index
    %c0_68 = arith.constant 0 : index
    %59 = vector.load %arg6[%c0_66, %c0_67, %c0_68] : memref<1x288x128xbf16, #tpu.memory_space<vmem>>, vector<1x288x128xbf16>
    %60 = vector.shape_cast %59 : vector<1x288x128xbf16> to vector<288x128xbf16>
    %61 = vector.shape_cast %58 : vector<288x128xbf16> to vector<1x288x128xbf16>
    tpu.vector_store %arg6[%c0_66, %c0_67, %c0_68], %61 {strides = array<i32>} : memref<1x288x128xbf16, #tpu.memory_space<vmem>>, vector<1x288x128xbf16>,
    %62 = tpu.iota {dimensions = array<i32: 0>} : vector<288x1xi32>
    %c18_i32 = arith.constant 18 : i32
    %c0_i32 = arith.constant 0 : i32
    %63 = arith.cmpi eq, %c18_i32, %c0_i32 : i32
    %c1_i32 = arith.constant 1 : i32
    %64 = arith.select %63, %c1_i32, %c18_i32 : i32
    %65 = vector.broadcast %64 : i32 to vector<288x1xi32>
    %66 = arith.remsi %62, %65 : vector<288x1xi32>
    %c0_i32_69 = arith.constant 0 : i32
    %67 = vector.broadcast %c0_i32_69 : i32 to vector<288x1xi32>
    %68 = arith.cmpi ne, %66, %67 : vector<288x1xi32>
    %c0_i32_70 = arith.constant 0 : i32
    %69 = vector.broadcast %c0_i32_70 : i32 to vector<288x1xi32>
    %70 = arith.cmpi slt, %66, %69 : vector<288x1xi32>
    %c0_i32_71 = arith.constant 0 : i32
    %71 = arith.cmpi slt, %64, %c0_i32_71 : i32
    %72 = vector.broadcast %71 : i1 to vector<288x1xi1>
    %73 = vector.broadcast %72 : vector<288x1xi1> to vector<288x1xi1>
    %74 = arith.xori %70, %73 : vector<288x1xi1>
    %75 = arith.andi %74, %68 : vector<288x1xi1>
    %76 = vector.broadcast %64 : i32 to vector<288x1xi32>
    %77 = arith.addi %66, %76 : vector<288x1xi32>
    %78 = arith.select %75, %77, %66 : vector<288x1xi1>, vector<288x1xi32>
    %c16_i32 = arith.constant 16 : i32
    %79 = vector.broadcast %c16_i32 : i32 to vector<288x1xi32>
    %80 = arith.cmpi slt, %78, %79 : vector<288x1xi32>
    %cst_72 = arith.constant 0.000000e+00 : f32
    %81 = vector.shape_cast %80 : vector<288x1xi1> to vector<288x1xi1>
    %82 = vector.broadcast %81 : vector<288x1xi1> to vector<288x128xi1>
    %83 = vector.broadcast %cst_72 : f32 to vector<288x128xf32>
    %84 = arith.select %82, %57, %83 : vector<288x128xi1>, vector<288x128xf32>
    %cst_73 = arith.constant dense<0.000000e+00> : vector<128xf32>
    %85 = vector.multi_reduction <add>, %84, %cst_73 [0] : vector<288x128xf32> to vector<128xf32>
    %86 = vector.shape_cast %85 : vector<128xf32> to vector<1x128xf32>
    %cst_74 = arith.constant 3.906250e-03 : f32
    %87 = vector.broadcast %cst_74 : f32 to vector<1x128xf32>
    %88 = arith.mulf %86, %87 : vector<1x128xf32>
    %89 = vector.broadcast %88 : vector<1x128xf32> to vector<288x128xf32>
    %90 = arith.subf %57, %89 : vector<288x128xf32>
    %cst_75 = arith.constant 0.000000e+00 : f32
    %91 = vector.shape_cast %80 : vector<288x1xi1> to vector<288x1xi1>
    %92 = vector.broadcast %91 : vector<288x1xi1> to vector<288x128xi1>
    %93 = vector.broadcast %cst_75 : f32 to vector<288x128xf32>
    %94 = arith.select %92, %90, %93 : vector<288x128xi1>, vector<288x128xf32>
    %c0_76 = arith.constant 0 : index
    %c0_77 = arith.constant 0 : index
    %c0_78 = arith.constant 0 : index
    %95 = vector.load %arg7[%c0_76, %c0_77, %c0_78] : memref<1x2x128xf32, #tpu.memory_space<vmem>>, vector<1x1x128xf32>
    %96 = vector.shape_cast %95 : vector<1x1x128xf32> to vector<1x128xf32>
    %97 = vector.shape_cast %86 : vector<1x128xf32> to vector<1x1x128xf32>
    tpu.vector_store %arg7[%c0_76, %c0_77, %c0_78], %97 {strides = array<i32>} : memref<1x2x128xf32, #tpu.memory_space<vmem>>, vector<1x1x128xf32>,
    %98 = arith.mulf %94, %94 : vector<288x128xf32>
    %cst_79 = arith.constant dense<0.000000e+00> : vector<128xf32>
    %99 = vector.multi_reduction <add>, %98, %cst_79 [0] : vector<288x128xf32> to vector<128xf32>
    %100 = vector.shape_cast %99 : vector<128xf32> to vector<1x128xf32>
    %c0_80 = arith.constant 0 : index
    %c1_81 = arith.constant 1 : index
    %c0_82 = arith.constant 0 : index
    %101 = vector.load %arg7[%c0_80, %c1_81, %c0_82] : memref<1x2x128xf32, #tpu.memory_space<vmem>>, vector<1x1x128xf32>
    %102 = vector.shape_cast %101 : vector<1x1x128xf32> to vector<1x128xf32>
    %103 = vector.shape_cast %100 : vector<1x128xf32> to vector<1x1x128xf32>
    tpu.vector_store %arg7[%c0_80, %c1_81, %c0_82], %103 {strides = array<i32>} : memref<1x2x128xf32, #tpu.memory_space<vmem>>, vector<1x1x128xf32>,
    return
  }
  func.func @transform_0(%arg0: i32) -> (i32, i32, i32) {
    %c0_i32 = arith.constant 0 : i32
    %c0_i32_0 = arith.constant 0 : i32
    %c0_i32_1 = arith.constant 0 : i32
    return %arg0, %c0_i32, %c0_i32_0 : i32, i32, i32
  }
  func.func @transform_1(%arg0: i32) -> (i32, i32) {
    %c0_i32 = arith.constant 0 : i32
    %c0_i32_0 = arith.constant 0 : i32
    %c0_i32_1 = arith.constant 0 : i32
    return %c0_i32, %c0_i32_0 : i32, i32
  }
  func.func @transform_2(%arg0: i32) -> (i32, i32) {
    %c0_i32 = arith.constant 0 : i32
    %c0_i32_0 = arith.constant 0 : i32
    %c0_i32_1 = arith.constant 0 : i32
    return %c0_i32, %c0_i32_0 : i32, i32
  }
  func.func @transform_3(%arg0: i32) -> (i32, i32, i32) {
    %c0_i32 = arith.constant 0 : i32
    %c0_i32_0 = arith.constant 0 : i32
    %c0_i32_1 = arith.constant 0 : i32
    %c0_i32_2 = arith.constant 0 : i32
    return %c0_i32, %c0_i32_0, %c0_i32_1 : i32, i32, i32
  }
  func.func @transform_4(%arg0: i32) -> (i32, i32) {
    %c0_i32 = arith.constant 0 : i32
    %c0_i32_0 = arith.constant 0 : i32
    %c0_i32_1 = arith.constant 0 : i32
    return %c0_i32, %c0_i32_0 : i32, i32
  }
  func.func @transform_5(%arg0: i32) -> (i32, i32, i32) {
    %c0_i32 = arith.constant 0 : i32
    %c0_i32_0 = arith.constant 0 : i32
    %c0_i32_1 = arith.constant 0 : i32
    return %arg0, %c0_i32, %c0_i32_0 : i32, i32, i32
  }
  func.func @transform_6(%arg0: i32) -> (i32, i32, i32) {
    %c0_i32 = arith.constant 0 : i32
    %c0_i32_0 = arith.constant 0 : i32
    %c0_i32_1 = arith.constant 0 : i32
    return %arg0, %c0_i32, %c0_i32_0 : i32, i32, i32
  }
}

module attributes {stable_mosaic.version = 11 : i64} {
  func.func @_conv3x3_kernel(%arg0: i32, %arg1: memref<1x288x128xbf16, #tpu.memory_space<vmem>>, %arg2: memref<1x128xf32, #tpu.memory_space<vmem>>, %arg3: memref<1x128xf32, #tpu.memory_space<vmem>>, %arg4: memref<3x384x128xbf16, #tpu.memory_space<vmem>>, %arg5: memref<1x128xf32, #tpu.memory_space<vmem>>, %arg6: memref<1x288x128xbf16, #tpu.memory_space<vmem>>, %arg7: memref<1x2x128xf32, #tpu.memory_space<vmem>>, %arg8: memref<342x128xf32, #tpu.memory_space<vmem>>, %arg9: memref<288x384xbf16, #tpu.memory_space<vmem>>, %arg10: memref<288x128xf32, #tpu.memory_space<vmem>>) attributes {dimension_semantics = [#tpu.dimension_semantics<parallel>], iteration_bounds = array<i64: 2>, scalar_prefetch = 0 : i64, scratch_operands = 3 : i64, tpu.core_type = #tpu.core_type<tc>, window_params = [{transform_indices = @transform_0, window_bounds = array<i64: 1, 288, 128>}, {pipeline_mode = #tpu.pipeline_mode<synchronous>, transform_indices = @transform_1, window_bounds = array<i64: 1, 128>}, {pipeline_mode = #tpu.pipeline_mode<synchronous>, transform_indices = @transform_2, window_bounds = array<i64: 1, 128>}, {pipeline_mode = #tpu.pipeline_mode<synchronous>, transform_indices = @transform_3, window_bounds = array<i64: 3, 384, 128>}, {pipeline_mode = #tpu.pipeline_mode<synchronous>, transform_indices = @transform_4, window_bounds = array<i64: 1, 128>}, {transform_indices = @transform_5, window_bounds = array<i64: 1, 288, 128>}, {transform_indices = @transform_6, window_bounds = array<i64: 1, 2, 128>}]} {
    %c0 = arith.constant 0 : index
    %c0_0 = arith.constant 0 : index
    %c0_1 = arith.constant 0 : index
    %0 = vector.load %arg1[%c0, %c0_0, %c0_1] : memref<1x288x128xbf16, #tpu.memory_space<vmem>>, vector<1x288x128xbf16>
    %1 = vector.shape_cast %0 : vector<1x288x128xbf16> to vector<288x128xbf16>
    %2 = arith.extf %1 : vector<288x128xbf16> to vector<288x128xf32>
    %c0_2 = arith.constant 0 : index
    %c0_3 = arith.constant 0 : index
    %3 = vector.load %arg2[%c0_2, %c0_3] : memref<1x128xf32, #tpu.memory_space<vmem>>, vector<1x128xf32>
    %4 = vector.broadcast %3 : vector<1x128xf32> to vector<288x128xf32>
    %5 = arith.mulf %2, %4 : vector<288x128xf32>
    %c0_4 = arith.constant 0 : index
    %c0_5 = arith.constant 0 : index
    %6 = vector.load %arg3[%c0_4, %c0_5] : memref<1x128xf32, #tpu.memory_space<vmem>>, vector<1x128xf32>
    %7 = vector.broadcast %6 : vector<1x128xf32> to vector<288x128xf32>
    %8 = arith.addf %5, %7 : vector<288x128xf32>
    %cst = arith.constant 0.000000e+00 : f32
    %9 = vector.broadcast %cst : f32 to vector<288x128xf32>
    %10 = arith.maximumf %8, %9 : vector<288x128xf32>
    %11 = tpu.iota {dimensions = array<i32: 0>} : vector<288x1xi32>
    %c18_i32 = arith.constant 18 : i32
    %c0_i32 = arith.constant 0 : i32
    %12 = arith.cmpi eq, %c18_i32, %c0_i32 : i32
    %c1_i32 = arith.constant 1 : i32
    %13 = arith.select %12, %c1_i32, %c18_i32 : i32
    %14 = vector.broadcast %13 : i32 to vector<288x1xi32>
    %15 = arith.remsi %11, %14 : vector<288x1xi32>
    %c0_i32_6 = arith.constant 0 : i32
    %16 = vector.broadcast %c0_i32_6 : i32 to vector<288x1xi32>
    %17 = arith.cmpi ne, %15, %16 : vector<288x1xi32>
    %c0_i32_7 = arith.constant 0 : i32
    %18 = vector.broadcast %c0_i32_7 : i32 to vector<288x1xi32>
    %19 = arith.cmpi slt, %15, %18 : vector<288x1xi32>
    %c0_i32_8 = arith.constant 0 : i32
    %20 = arith.cmpi slt, %13, %c0_i32_8 : i32
    %21 = vector.broadcast %20 : i1 to vector<288x1xi1>
    %22 = vector.broadcast %21 : vector<288x1xi1> to vector<288x1xi1>
    %23 = arith.xori %19, %22 : vector<288x1xi1>
    %24 = arith.andi %23, %17 : vector<288x1xi1>
    %25 = vector.broadcast %13 : i32 to vector<288x1xi32>
    %26 = arith.addi %15, %25 : vector<288x1xi32>
    %27 = arith.select %24, %26, %15 : vector<288x1xi1>, vector<288x1xi32>
    %c16_i32 = arith.constant 16 : i32
    %28 = vector.broadcast %c16_i32 : i32 to vector<288x1xi32>
    %29 = arith.cmpi slt, %27, %28 : vector<288x1xi32>
    %cst_9 = arith.constant 0.000000e+00 : f32
    %30 = vector.shape_cast %29 : vector<288x1xi1> to vector<288x1xi1>
    %31 = vector.broadcast %30 : vector<288x1xi1> to vector<288x128xi1>
    %32 = vector.broadcast %cst_9 : f32 to vector<288x128xf32>
    %33 = arith.select %31, %10, %32 : vector<288x128xi1>, vector<288x128xf32>
    %cst_10 = arith.constant 0.000000e+00 : f32
    %34 = vector.broadcast %cst_10 : f32 to vector<19x128xf32>
    %c0_11 = arith.constant 0 : index
    %c0_12 = arith.constant 0 : index
    %35 = vector.load %arg8[%c0_11, %c0_12] : memref<342x128xf32, #tpu.memory_space<vmem>>, vector<19x128xf32>
    tpu.vector_store %arg8[%c0_11, %c0_12], %34 {strides = array<i32>} : memref<342x128xf32, #tpu.memory_space<vmem>>, vector<19x128xf32>,
    %cst_13 = arith.constant 0.000000e+00 : f32
    %36 = vector.broadcast %cst_13 : f32 to vector<35x128xf32>
    %c307 = arith.constant 307 : index
    %c0_14 = arith.constant 0 : index
    %37 = vector.load %arg8[%c307, %c0_14] : memref<342x128xf32, #tpu.memory_space<vmem>>, vector<35x128xf32>
    tpu.vector_store %arg8[%c307, %c0_14], %36 {strides = array<i32>} : memref<342x128xf32, #tpu.memory_space<vmem>>, vector<35x128xf32>,
    %c19 = arith.constant 19 : index
    %c0_15 = arith.constant 0 : index
    %38 = vector.load %arg8[%c19, %c0_15] : memref<342x128xf32, #tpu.memory_space<vmem>>, vector<288x128xf32>
    tpu.vector_store %arg8[%c19, %c0_15], %33 {strides = array<i32>} : memref<342x128xf32, #tpu.memory_space<vmem>>, vector<288x128xf32>,
    %c0_16 = arith.constant 0 : index
    %c0_17 = arith.constant 0 : index
    %39 = vector.load %arg8[%c0_16, %c0_17] : memref<342x128xf32, #tpu.memory_space<vmem>>, vector<288x128xf32>
    %40 = arith.truncf %39 : vector<288x128xf32> to vector<288x128xbf16>
    %c0_18 = arith.constant 0 : index
    %c0_19 = arith.constant 0 : index
    %41 = vector.load %arg9[%c0_18, %c0_19] : memref<288x384xbf16, #tpu.memory_space<vmem>>, vector<288x128xbf16>
    tpu.vector_store %arg9[%c0_18, %c0_19], %40 {strides = array<i32>} : memref<288x384xbf16, #tpu.memory_space<vmem>>, vector<288x128xbf16>,
    %c1 = arith.constant 1 : index
    %c0_20 = arith.constant 0 : index
    %42 = vector.load %arg8[%c1, %c0_20] : memref<342x128xf32, #tpu.memory_space<vmem>>, vector<288x128xf32>
    %43 = arith.truncf %42 : vector<288x128xf32> to vector<288x128xbf16>
    %c0_21 = arith.constant 0 : index
    %c128 = arith.constant 128 : index
    %44 = vector.load %arg9[%c0_21, %c128] : memref<288x384xbf16, #tpu.memory_space<vmem>>, vector<288x128xbf16>
    tpu.vector_store %arg9[%c0_21, %c128], %43 {strides = array<i32>} : memref<288x384xbf16, #tpu.memory_space<vmem>>, vector<288x128xbf16>,
    %c2 = arith.constant 2 : index
    %c0_22 = arith.constant 0 : index
    %45 = vector.load %arg8[%c2, %c0_22] : memref<342x128xf32, #tpu.memory_space<vmem>>, vector<288x128xf32>
    %46 = arith.truncf %45 : vector<288x128xf32> to vector<288x128xbf16>
    %c0_23 = arith.constant 0 : index
    %c256 = arith.constant 256 : index
    %47 = vector.load %arg9[%c0_23, %c256] : memref<288x384xbf16, #tpu.memory_space<vmem>>, vector<288x128xbf16>
    tpu.vector_store %arg9[%c0_23, %c256], %46 {strides = array<i32>} : memref<288x384xbf16, #tpu.memory_space<vmem>>, vector<288x128xbf16>,
    %c0_24 = arith.constant 0 : index
    %c0_25 = arith.constant 0 : index
    %48 = vector.load %arg9[%c0_24, %c0_25] : memref<288x384xbf16, #tpu.memory_space<vmem>>, vector<288x384xbf16>
    %c0_26 = arith.constant 0 : index
    %c0_27 = arith.constant 0 : index
    %c0_28 = arith.constant 0 : index
    %49 = vector.load %arg4[%c0_26, %c0_27, %c0_28] : memref<3x384x128xbf16, #tpu.memory_space<vmem>>, vector<1x384x128xbf16>
    %50 = vector.shape_cast %49 : vector<1x384x128xbf16> to vector<384x128xbf16>
    %cst_29 = arith.constant dense<0.000000e+00> : vector<288x128xf32>
    %51 = tpu.matmul %48, %50, %cst_29 {dimension_numbers = #tpu.dot_dimension_numbers<[1], [0], [0], [1], [0, 0, 1, 1], [], []>} : vector<288x384xbf16>, vector<384x128xbf16>, vector<288x128xf32> -> vector<288x128xf32>
    %c0_30 = arith.constant 0 : index
    %c0_31 = arith.constant 0 : index
    %52 = vector.load %arg5[%c0_30, %c0_31] : memref<1x128xf32, #tpu.memory_space<vmem>>, vector<1x128xf32>
    %53 = vector.broadcast %52 : vector<1x128xf32> to vector<288x128xf32>
    %54 = arith.addf %51, %53 : vector<288x128xf32>
    %c0_32 = arith.constant 0 : index
    %c0_33 = arith.constant 0 : index
    %55 = vector.load %arg10[%c0_32, %c0_33] : memref<288x128xf32, #tpu.memory_space<vmem>>, vector<288x128xf32>
    tpu.vector_store %arg10[%c0_32, %c0_33], %54 {strides = array<i32>} : memref<288x128xf32, #tpu.memory_space<vmem>>, vector<288x128xf32>,
    %c18 = arith.constant 18 : index
    %c0_34 = arith.constant 0 : index
    %56 = vector.load %arg8[%c18, %c0_34] : memref<342x128xf32, #tpu.memory_space<vmem>>, vector<288x128xf32>
    %57 = arith.truncf %56 : vector<288x128xf32> to vector<288x128xbf16>
    %c0_35 = arith.constant 0 : index
    %c0_36 = arith.constant 0 : index
    %58 = vector.load %arg9[%c0_35, %c0_36] : memref<288x384xbf16, #tpu.memory_space<vmem>>, vector<288x128xbf16>
    tpu.vector_store %arg9[%c0_35, %c0_36], %57 {strides = array<i32>} : memref<288x384xbf16, #tpu.memory_space<vmem>>, vector<288x128xbf16>,
    %c19_37 = arith.constant 19 : index
    %c0_38 = arith.constant 0 : index
    %59 = vector.load %arg8[%c19_37, %c0_38] : memref<342x128xf32, #tpu.memory_space<vmem>>, vector<288x128xf32>
    %60 = arith.truncf %59 : vector<288x128xf32> to vector<288x128xbf16>
    %c0_39 = arith.constant 0 : index
    %c128_40 = arith.constant 128 : index
    %61 = vector.load %arg9[%c0_39, %c128_40] : memref<288x384xbf16, #tpu.memory_space<vmem>>, vector<288x128xbf16>
    tpu.vector_store %arg9[%c0_39, %c128_40], %60 {strides = array<i32>} : memref<288x384xbf16, #tpu.memory_space<vmem>>, vector<288x128xbf16>,
    %c20 = arith.constant 20 : index
    %c0_41 = arith.constant 0 : index
    %62 = vector.load %arg8[%c20, %c0_41] : memref<342x128xf32, #tpu.memory_space<vmem>>, vector<288x128xf32>
    %63 = arith.truncf %62 : vector<288x128xf32> to vector<288x128xbf16>
    %c0_42 = arith.constant 0 : index
    %c256_43 = arith.constant 256 : index
    %64 = vector.load %arg9[%c0_42, %c256_43] : memref<288x384xbf16, #tpu.memory_space<vmem>>, vector<288x128xbf16>
    tpu.vector_store %arg9[%c0_42, %c256_43], %63 {strides = array<i32>} : memref<288x384xbf16, #tpu.memory_space<vmem>>, vector<288x128xbf16>,
    %c0_44 = arith.constant 0 : index
    %c0_45 = arith.constant 0 : index
    %65 = vector.load %arg9[%c0_44, %c0_45] : memref<288x384xbf16, #tpu.memory_space<vmem>>, vector<288x384xbf16>
    %c1_46 = arith.constant 1 : index
    %c0_47 = arith.constant 0 : index
    %c0_48 = arith.constant 0 : index
    %66 = vector.load %arg4[%c1_46, %c0_47, %c0_48] : memref<3x384x128xbf16, #tpu.memory_space<vmem>>, vector<1x384x128xbf16>
    %67 = vector.shape_cast %66 : vector<1x384x128xbf16> to vector<384x128xbf16>
    %cst_49 = arith.constant dense<0.000000e+00> : vector<288x128xf32>
    %68 = tpu.matmul %65, %67, %cst_49 {dimension_numbers = #tpu.dot_dimension_numbers<[1], [0], [0], [1], [0, 0, 1, 1], [], []>} : vector<288x384xbf16>, vector<384x128xbf16>, vector<288x128xf32> -> vector<288x128xf32>
    %c0_50 = arith.constant 0 : index
    %c0_51 = arith.constant 0 : index
    %69 = vector.load %arg10[%c0_50, %c0_51] : memref<288x128xf32, #tpu.memory_space<vmem>>, vector<288x128xf32>
    %70 = arith.addf %69, %68 : vector<288x128xf32>
    %c0_52 = arith.constant 0 : index
    %c0_53 = arith.constant 0 : index
    %71 = vector.load %arg10[%c0_52, %c0_53] : memref<288x128xf32, #tpu.memory_space<vmem>>, vector<288x128xf32>
    tpu.vector_store %arg10[%c0_52, %c0_53], %70 {strides = array<i32>} : memref<288x128xf32, #tpu.memory_space<vmem>>, vector<288x128xf32>,
    %c36 = arith.constant 36 : index
    %c0_54 = arith.constant 0 : index
    %72 = vector.load %arg8[%c36, %c0_54] : memref<342x128xf32, #tpu.memory_space<vmem>>, vector<288x128xf32>
    %73 = arith.truncf %72 : vector<288x128xf32> to vector<288x128xbf16>
    %c0_55 = arith.constant 0 : index
    %c0_56 = arith.constant 0 : index
    %74 = vector.load %arg9[%c0_55, %c0_56] : memref<288x384xbf16, #tpu.memory_space<vmem>>, vector<288x128xbf16>
    tpu.vector_store %arg9[%c0_55, %c0_56], %73 {strides = array<i32>} : memref<288x384xbf16, #tpu.memory_space<vmem>>, vector<288x128xbf16>,
    %c37 = arith.constant 37 : index
    %c0_57 = arith.constant 0 : index
    %75 = vector.load %arg8[%c37, %c0_57] : memref<342x128xf32, #tpu.memory_space<vmem>>, vector<288x128xf32>
    %76 = arith.truncf %75 : vector<288x128xf32> to vector<288x128xbf16>
    %c0_58 = arith.constant 0 : index
    %c128_59 = arith.constant 128 : index
    %77 = vector.load %arg9[%c0_58, %c128_59] : memref<288x384xbf16, #tpu.memory_space<vmem>>, vector<288x128xbf16>
    tpu.vector_store %arg9[%c0_58, %c128_59], %76 {strides = array<i32>} : memref<288x384xbf16, #tpu.memory_space<vmem>>, vector<288x128xbf16>,
    %c38 = arith.constant 38 : index
    %c0_60 = arith.constant 0 : index
    %78 = vector.load %arg8[%c38, %c0_60] : memref<342x128xf32, #tpu.memory_space<vmem>>, vector<288x128xf32>
    %79 = arith.truncf %78 : vector<288x128xf32> to vector<288x128xbf16>
    %c0_61 = arith.constant 0 : index
    %c256_62 = arith.constant 256 : index
    %80 = vector.load %arg9[%c0_61, %c256_62] : memref<288x384xbf16, #tpu.memory_space<vmem>>, vector<288x128xbf16>
    tpu.vector_store %arg9[%c0_61, %c256_62], %79 {strides = array<i32>} : memref<288x384xbf16, #tpu.memory_space<vmem>>, vector<288x128xbf16>,
    %c0_63 = arith.constant 0 : index
    %c0_64 = arith.constant 0 : index
    %81 = vector.load %arg9[%c0_63, %c0_64] : memref<288x384xbf16, #tpu.memory_space<vmem>>, vector<288x384xbf16>
    %c2_65 = arith.constant 2 : index
    %c0_66 = arith.constant 0 : index
    %c0_67 = arith.constant 0 : index
    %82 = vector.load %arg4[%c2_65, %c0_66, %c0_67] : memref<3x384x128xbf16, #tpu.memory_space<vmem>>, vector<1x384x128xbf16>
    %83 = vector.shape_cast %82 : vector<1x384x128xbf16> to vector<384x128xbf16>
    %cst_68 = arith.constant dense<0.000000e+00> : vector<288x128xf32>
    %84 = tpu.matmul %81, %83, %cst_68 {dimension_numbers = #tpu.dot_dimension_numbers<[1], [0], [0], [1], [0, 0, 1, 1], [], []>} : vector<288x384xbf16>, vector<384x128xbf16>, vector<288x128xf32> -> vector<288x128xf32>
    %c0_69 = arith.constant 0 : index
    %c0_70 = arith.constant 0 : index
    %85 = vector.load %arg10[%c0_69, %c0_70] : memref<288x128xf32, #tpu.memory_space<vmem>>, vector<288x128xf32>
    %86 = arith.addf %85, %84 : vector<288x128xf32>
    %c0_71 = arith.constant 0 : index
    %c0_72 = arith.constant 0 : index
    %87 = vector.load %arg10[%c0_71, %c0_72] : memref<288x128xf32, #tpu.memory_space<vmem>>, vector<288x128xf32>
    tpu.vector_store %arg10[%c0_71, %c0_72], %86 {strides = array<i32>} : memref<288x128xf32, #tpu.memory_space<vmem>>, vector<288x128xf32>,
    %c0_73 = arith.constant 0 : index
    %c0_74 = arith.constant 0 : index
    %88 = vector.load %arg10[%c0_73, %c0_74] : memref<288x128xf32, #tpu.memory_space<vmem>>, vector<288x128xf32>
    %89 = arith.truncf %88 : vector<288x128xf32> to vector<288x128xbf16>
    %c0_75 = arith.constant 0 : index
    %c0_76 = arith.constant 0 : index
    %c0_77 = arith.constant 0 : index
    %90 = vector.load %arg6[%c0_75, %c0_76, %c0_77] : memref<1x288x128xbf16, #tpu.memory_space<vmem>>, vector<1x288x128xbf16>
    %91 = vector.shape_cast %90 : vector<1x288x128xbf16> to vector<288x128xbf16>
    %92 = vector.shape_cast %89 : vector<288x128xbf16> to vector<1x288x128xbf16>
    tpu.vector_store %arg6[%c0_75, %c0_76, %c0_77], %92 {strides = array<i32>} : memref<1x288x128xbf16, #tpu.memory_space<vmem>>, vector<1x288x128xbf16>,
    %93 = tpu.iota {dimensions = array<i32: 0>} : vector<288x1xi32>
    %c18_i32_78 = arith.constant 18 : i32
    %c0_i32_79 = arith.constant 0 : i32
    %94 = arith.cmpi eq, %c18_i32_78, %c0_i32_79 : i32
    %c1_i32_80 = arith.constant 1 : i32
    %95 = arith.select %94, %c1_i32_80, %c18_i32_78 : i32
    %96 = vector.broadcast %95 : i32 to vector<288x1xi32>
    %97 = arith.remsi %93, %96 : vector<288x1xi32>
    %c0_i32_81 = arith.constant 0 : i32
    %98 = vector.broadcast %c0_i32_81 : i32 to vector<288x1xi32>
    %99 = arith.cmpi ne, %97, %98 : vector<288x1xi32>
    %c0_i32_82 = arith.constant 0 : i32
    %100 = vector.broadcast %c0_i32_82 : i32 to vector<288x1xi32>
    %101 = arith.cmpi slt, %97, %100 : vector<288x1xi32>
    %c0_i32_83 = arith.constant 0 : i32
    %102 = arith.cmpi slt, %95, %c0_i32_83 : i32
    %103 = vector.broadcast %102 : i1 to vector<288x1xi1>
    %104 = vector.broadcast %103 : vector<288x1xi1> to vector<288x1xi1>
    %105 = arith.xori %101, %104 : vector<288x1xi1>
    %106 = arith.andi %105, %99 : vector<288x1xi1>
    %107 = vector.broadcast %95 : i32 to vector<288x1xi32>
    %108 = arith.addi %97, %107 : vector<288x1xi32>
    %109 = arith.select %106, %108, %97 : vector<288x1xi1>, vector<288x1xi32>
    %c16_i32_84 = arith.constant 16 : i32
    %110 = vector.broadcast %c16_i32_84 : i32 to vector<288x1xi32>
    %111 = arith.cmpi slt, %109, %110 : vector<288x1xi32>
    %cst_85 = arith.constant 0.000000e+00 : f32
    %112 = vector.shape_cast %111 : vector<288x1xi1> to vector<288x1xi1>
    %113 = vector.broadcast %112 : vector<288x1xi1> to vector<288x128xi1>
    %114 = vector.broadcast %cst_85 : f32 to vector<288x128xf32>
    %115 = arith.select %113, %88, %114 : vector<288x128xi1>, vector<288x128xf32>
    %cst_86 = arith.constant dense<0.000000e+00> : vector<128xf32>
    %116 = vector.multi_reduction <add>, %115, %cst_86 [0] : vector<288x128xf32> to vector<128xf32>
    %117 = vector.shape_cast %116 : vector<128xf32> to vector<1x128xf32>
    %cst_87 = arith.constant 3.906250e-03 : f32
    %118 = vector.broadcast %cst_87 : f32 to vector<1x128xf32>
    %119 = arith.mulf %117, %118 : vector<1x128xf32>
    %120 = vector.broadcast %119 : vector<1x128xf32> to vector<288x128xf32>
    %121 = arith.subf %88, %120 : vector<288x128xf32>
    %cst_88 = arith.constant 0.000000e+00 : f32
    %122 = vector.shape_cast %111 : vector<288x1xi1> to vector<288x1xi1>
    %123 = vector.broadcast %122 : vector<288x1xi1> to vector<288x128xi1>
    %124 = vector.broadcast %cst_88 : f32 to vector<288x128xf32>
    %125 = arith.select %123, %121, %124 : vector<288x128xi1>, vector<288x128xf32>
    %c0_89 = arith.constant 0 : index
    %c0_90 = arith.constant 0 : index
    %c0_91 = arith.constant 0 : index
    %126 = vector.load %arg7[%c0_89, %c0_90, %c0_91] : memref<1x2x128xf32, #tpu.memory_space<vmem>>, vector<1x1x128xf32>
    %127 = vector.shape_cast %126 : vector<1x1x128xf32> to vector<1x128xf32>
    %128 = vector.shape_cast %117 : vector<1x128xf32> to vector<1x1x128xf32>
    tpu.vector_store %arg7[%c0_89, %c0_90, %c0_91], %128 {strides = array<i32>} : memref<1x2x128xf32, #tpu.memory_space<vmem>>, vector<1x1x128xf32>,
    %129 = arith.mulf %125, %125 : vector<288x128xf32>
    %cst_92 = arith.constant dense<0.000000e+00> : vector<128xf32>
    %130 = vector.multi_reduction <add>, %129, %cst_92 [0] : vector<288x128xf32> to vector<128xf32>
    %131 = vector.shape_cast %130 : vector<128xf32> to vector<1x128xf32>
    %c0_93 = arith.constant 0 : index
    %c1_94 = arith.constant 1 : index
    %c0_95 = arith.constant 0 : index
    %132 = vector.load %arg7[%c0_93, %c1_94, %c0_95] : memref<1x2x128xf32, #tpu.memory_space<vmem>>, vector<1x1x128xf32>
    %133 = vector.shape_cast %132 : vector<1x1x128xf32> to vector<1x128xf32>
    %134 = vector.shape_cast %131 : vector<1x128xf32> to vector<1x1x128xf32>
    tpu.vector_store %arg7[%c0_93, %c1_94, %c0_95], %134 {strides = array<i32>} : memref<1x2x128xf32, #tpu.memory_space<vmem>>, vector<1x1x128xf32>,
    return
  }
  func.func @transform_0(%arg0: i32) -> (i32, i32, i32) {
    %c0_i32 = arith.constant 0 : i32
    %c0_i32_0 = arith.constant 0 : i32
    %c0_i32_1 = arith.constant 0 : i32
    return %arg0, %c0_i32, %c0_i32_0 : i32, i32, i32
  }
  func.func @transform_1(%arg0: i32) -> (i32, i32) {
    %c0_i32 = arith.constant 0 : i32
    %c0_i32_0 = arith.constant 0 : i32
    %c0_i32_1 = arith.constant 0 : i32
    return %c0_i32, %c0_i32_0 : i32, i32
  }
  func.func @transform_2(%arg0: i32) -> (i32, i32) {
    %c0_i32 = arith.constant 0 : i32
    %c0_i32_0 = arith.constant 0 : i32
    %c0_i32_1 = arith.constant 0 : i32
    return %c0_i32, %c0_i32_0 : i32, i32
  }
  func.func @transform_3(%arg0: i32) -> (i32, i32, i32) {
    %c0_i32 = arith.constant 0 : i32
    %c0_i32_0 = arith.constant 0 : i32
    %c0_i32_1 = arith.constant 0 : i32
    %c0_i32_2 = arith.constant 0 : i32
    return %c0_i32, %c0_i32_0, %c0_i32_1 : i32, i32, i32
  }
  func.func @transform_4(%arg0: i32) -> (i32, i32) {
    %c0_i32 = arith.constant 0 : i32
    %c0_i32_0 = arith.constant 0 : i32
    %c0_i32_1 = arith.constant 0 : i32
    return %c0_i32, %c0_i32_0 : i32, i32
  }
  func.func @transform_5(%arg0: i32) -> (i32, i32, i32) {
    %c0_i32 = arith.constant 0 : i32
    %c0_i32_0 = arith.constant 0 : i32
    %c0_i32_1 = arith.constant 0 : i32
    return %arg0, %c0_i32, %c0_i32_0 : i32, i32, i32
  }
  func.func @transform_6(%arg0: i32) -> (i32, i32, i32) {
    %c0_i32 = arith.constant 0 : i32
    %c0_i32_0 = arith.constant 0 : i32
    %c0_i32_1 = arith.constant 0 : i32
    return %arg0, %c0_i32, %c0_i32_0 : i32, i32, i32
  }
}

module attributes {stable_mosaic.version = 11 : i64} {
  func.func @_bn_skip_relu_kernel(%arg0: i32, %arg1: memref<1x288x128xbf16, #tpu.memory_space<vmem>>, %arg2: memref<1x288x128xbf16, #tpu.memory_space<vmem>>, %arg3: memref<1x128xf32, #tpu.memory_space<vmem>>, %arg4: memref<1x128xf32, #tpu.memory_space<vmem>>, %arg5: memref<1x288x128xf32, #tpu.memory_space<vmem>>) attributes {dimension_semantics = [#tpu.dimension_semantics<parallel>], iteration_bounds = array<i64: 2>, scalar_prefetch = 0 : i64, scratch_operands = 0 : i64, tpu.core_type = #tpu.core_type<tc>, window_params = [{transform_indices = @transform_0, window_bounds = array<i64: 1, 288, 128>}, {transform_indices = @transform_1, window_bounds = array<i64: 1, 288, 128>}, {pipeline_mode = #tpu.pipeline_mode<synchronous>, transform_indices = @transform_2, window_bounds = array<i64: 1, 128>}, {pipeline_mode = #tpu.pipeline_mode<synchronous>, transform_indices = @transform_3, window_bounds = array<i64: 1, 128>}, {transform_indices = @transform_4, window_bounds = array<i64: 1, 288, 128>}]} {
    %c0 = arith.constant 0 : index
    %c0_0 = arith.constant 0 : index
    %c0_1 = arith.constant 0 : index
    %0 = vector.load %arg1[%c0, %c0_0, %c0_1] : memref<1x288x128xbf16, #tpu.memory_space<vmem>>, vector<1x288x128xbf16>
    %1 = vector.shape_cast %0 : vector<1x288x128xbf16> to vector<288x128xbf16>
    %2 = arith.extf %1 : vector<288x128xbf16> to vector<288x128xf32>
    %c0_2 = arith.constant 0 : index
    %c0_3 = arith.constant 0 : index
    %3 = vector.load %arg3[%c0_2, %c0_3] : memref<1x128xf32, #tpu.memory_space<vmem>>, vector<1x128xf32>
    %4 = vector.broadcast %3 : vector<1x128xf32> to vector<288x128xf32>
    %5 = arith.mulf %2, %4 : vector<288x128xf32>
    %c0_4 = arith.constant 0 : index
    %c0_5 = arith.constant 0 : index
    %6 = vector.load %arg4[%c0_4, %c0_5] : memref<1x128xf32, #tpu.memory_space<vmem>>, vector<1x128xf32>
    %7 = vector.broadcast %6 : vector<1x128xf32> to vector<288x128xf32>
    %8 = arith.addf %5, %7 : vector<288x128xf32>
    %c0_6 = arith.constant 0 : index
    %c0_7 = arith.constant 0 : index
    %c0_8 = arith.constant 0 : index
    %9 = vector.load %arg2[%c0_6, %c0_7, %c0_8] : memref<1x288x128xbf16, #tpu.memory_space<vmem>>, vector<1x288x128xbf16>
    %10 = vector.shape_cast %9 : vector<1x288x128xbf16> to vector<288x128xbf16>
    %11 = arith.extf %10 : vector<288x128xbf16> to vector<288x128xf32>
    %12 = arith.addf %8, %11 : vector<288x128xf32>
    %cst = arith.constant 0.000000e+00 : f32
    %13 = vector.broadcast %cst : f32 to vector<288x128xf32>
    %14 = arith.maximumf %12, %13 : vector<288x128xf32>
    %c0_9 = arith.constant 0 : index
    %c0_10 = arith.constant 0 : index
    %c0_11 = arith.constant 0 : index
    %15 = vector.load %arg5[%c0_9, %c0_10, %c0_11] : memref<1x288x128xf32, #tpu.memory_space<vmem>>, vector<1x288x128xf32>
    %16 = vector.shape_cast %15 : vector<1x288x128xf32> to vector<288x128xf32>
    %17 = vector.shape_cast %14 : vector<288x128xf32> to vector<1x288x128xf32>
    tpu.vector_store %arg5[%c0_9, %c0_10, %c0_11], %17 {strides = array<i32>} : memref<1x288x128xf32, #tpu.memory_space<vmem>>, vector<1x288x128xf32>,
    return
  }
  func.func @transform_0(%arg0: i32) -> (i32, i32, i32) {
    %c0_i32 = arith.constant 0 : i32
    %c0_i32_0 = arith.constant 0 : i32
    %c0_i32_1 = arith.constant 0 : i32
    return %arg0, %c0_i32, %c0_i32_0 : i32, i32, i32
  }
  func.func @transform_1(%arg0: i32) -> (i32, i32, i32) {
    %c0_i32 = arith.constant 0 : i32
    %c0_i32_0 = arith.constant 0 : i32
    %c0_i32_1 = arith.constant 0 : i32
    return %arg0, %c0_i32, %c0_i32_0 : i32, i32, i32
  }
  func.func @transform_2(%arg0: i32) -> (i32, i32) {
    %c0_i32 = arith.constant 0 : i32
    %c0_i32_0 = arith.constant 0 : i32
    %c0_i32_1 = arith.constant 0 : i32
    return %c0_i32, %c0_i32_0 : i32, i32
  }
  func.func @transform_3(%arg0: i32) -> (i32, i32) {
    %c0_i32 = arith.constant 0 : i32
    %c0_i32_0 = arith.constant 0 : i32
    %c0_i32_1 = arith.constant 0 : i32
    return %c0_i32, %c0_i32_0 : i32, i32
  }
  func.func @transform_4(%arg0: i32) -> (i32, i32, i32) {
    %c0_i32 = arith.constant 0 : i32
    %c0_i32_0 = arith.constant 0 : i32
    %c0_i32_1 = arith.constant 0 : i32
    return %arg0, %c0_i32, %c0_i32_0 : i32, i32, i32
  }
}

</mosaic_0001>

<bundles_post_ra>
// kernel: basic_block_forward.5
= control target key start
LH: loop header
LB: loop body
LE: loop exit
PB: predicated region body
PF: predicated region fallthrough
CT: control target
= control target key end

     0   :  { %s1703_s0 = inlined_call_operand.hbm [shape: bf16[2,288,128], index: 0, kind: input, shape index: {}]   ;;  %s1704_s1 = inlined_call_operand.hbm [shape: bf16[2,288,128], index: 1, kind: input, shape index: {}]   ;;  %s1705_s2 = inlined_call_operand.hbm [shape: f32[1,128], index: 2, kind: input, shape index: {}]   ;;  %s1706_s3 = inlined_call_operand.hbm [shape: f32[1,128], index: 3, kind: input, shape index: {}]   ;;  %s1707_s4 = inlined_call_operand.hbm [shape: f32[2,288,128], index: 4, kind: output, shape index: {}]  }
   0x1   :  { %1713 = sst [smem:[#allocation16_spill]] %s1703_s0 }
   0x2   :  { %9 = vsyncpa [#allocation3], 0 }
   0x3   :  { %11 = vsyncpa [#allocation3 + $0x1], 0 }
   0x4   :  { %12 = vsyncpa [#allocation6], 0 }
   0x5   :  { %14 = vsyncpa [#allocation6 + $0x1], 0 }
   0x6   :  { %15 = vsyncpa [#allocation9], 0 }
   0x7   :  { %16 = vsyncpa [#allocation4], 0 }
   0x8   :  { %18 = vsyncpa [#allocation4 + $0x1], 0  ;;  %s1254_s15 = smov 0   ;;  %s1256_s16 = smov 0  }
   0x9   :  { %s1258_s17 = smov 0   ;;  %s1260_s18 = smov 0  }
   0xa LB: > { %s1275_s19 = sadd.s32 4294967295, %s1218_s18   ;;  %s748_s20 = sadd.s32 4294967294, %s1218_s18   ;;  %s1218_s18 = sphi %s1260_s18, %s1736_s18   ;;  %s1214_s17 = sphi %s1258_s17, %s1735_s17   ;;  %s1210_s16 = sphi %s1256_s16, %s1734_s16   ;;  %s1206_s15 = sphi %s1254_s15, %s1733_s15  }
   0xb   : > { %s1279_s21 = sadd.s32 1, %s1218_s18   ;;  %s31_s22 = sadd.s32 1, %s1214_s17 }
   0xc   : > { %s28_s23 = ssub.s32 %s1218_s18, %s1279_s21  ;;  %p38_p0 = scmp.ne.s32.totalorder %s1214_s17, %s1210_s16 }
   0xd   : > { %p29_p1 = scmp.eq.s32.totalorder %s28_s23, 0  ;;  %p39_p2 = scmp.eq.s32.totalorder %s1218_s18, 0 }
   0xe   : > { %p44_p3 = scmp.ne.s32.totalorder %s1210_s16, %s1206_s15  ;;  %p1708_p4 = scmp.eq.s32.totalorder %s1275_s19, 0 }
   0xf   : > { %s1291_s24 = scalar_select %p29_p1, %s1214_s17, %s31_s22  }
  0x10   : > { %p1293_p5 = por %p39_p2, %p38_p0  ;;  %p1299_p6 = por %p1708_p4, %p44_p3 }
  0x11   : > { %p136_p7 = scmp.eq.s32.totalorder %s1275_s19, 1  ;;  %p142_p8 = scmp.eq.s32.totalorder %s748_s20, 1 }
  0x12   : > { %s1715_s26 = scalar_select %p1299_p6, 1, 0 }
  0x13   : > { %p749_p9 = scmp.ge.s32.totalorder %s1218_s18, 1  ;;  %p149_p10 = scmp.lt.s32.totalorder %s1218_s18, 3 }
  0x14   : > { %p1306_p11 = por %p136_p7, %p38_p0  ;;  %p1310_p12 = por %p142_p8, %p44_p3 }
  0x15   : > { %p1314_p13 = pnand %p749_p9, %p149_p10  ;;  %s1220_s30 = smov [#allocation7]  }
  0x16   : > { %s1716_s27 = scalar_select %p1306_p11, 1, 0 }
  0x17   : > { %s1717_s28 = scalar_select %p1310_p12, 1, 0 }
  0x18   : > { %s1718_s29 = scalar_select %p1314_p13, 1, 0 }
  0x19   : > { %p962_p2 = pneg %p1314_p13  ;;  %s162_s5 = sshll.u32 %s1220_s30, 4  ;;  %s163_s5 = int_to_ptr.vmem [resolvable:$true] %s162_s5 }
  0x1a   : > { %p982_p4 = scmp.lt.s32.totalorder %s1218_s18, 2  ;;  %p1719_p0 = scmp.eq.s32.totalorder %s1275_s19, 0 }
  0x1b   : > { %s1221_s8 = smov [#allocation8]   ;;  %s1024_s12 = scalar_lea.hbm %s1705_s2, 16 }
  0x1c   : > { %p1324_p7 = pnand %p962_p2, %p1719_p0  ;;  %p1330_p3 = pnand %p982_p4, %p1293_p5 }
  0x1d   : > { %s173_s9 = sshll.u32 %s1221_s8, 4  ;;  %p1025_p8 = scmp.ne.s32.totalorder %s1705_s2, %s1024_s12  ;;  %s1334_s9 = int_to_ptr.vmem [resolvable:$true] %s173_s9 }
  0x1e   : > { %s1721_s7 = scalar_select %p1330_p3, 1, 0 }
  0x1f   : > { %p1026_p9 = pneg %p1324_p7  ;;  %p1031_p10 = scmp.lt.u32.totalorder %s1024_s12, %s1705_s2 }
  0x21   : > { %p1027_p4 = pnand %p1026_p9, %p1025_p8 }
  0x23   : > { %p1028_p5 = pneg %p1027_p4 }
  0x25   : > { %p1033_p2 = pnand %p1031_p10, %p1028_p5 }
  0x27   : > { %1036 = shalt.err (!%p1033_p2)
}
  0x28   : > { %s1037_s23 = scalar_lea.vmem %s163_s5, 16  ;;  %s1044_s25 = scalar_lea.vmem %s163_s5, 32 }
  0x29   : > { %p1038_p0 = scmp.ne.s32.totalorder %s163_s5, %s1037_s23  ;;  %p1045_p11 = scmp.lt.s32.totalorder %s163_s5, %s163_s5 }
  0x2a   : > { %p1046_p6 = scmp.lt.s32.totalorder %s1044_s25, %s1037_s23 }
  0x2b   : > { %p1040_p1 = pnand %p1038_p0, %p1026_p9 }
  0x2c   : > { %p1047_p13 = por %p1046_p6, %p1045_p11 }
  0x2d   : > { %p1041_p12 = pneg %p1040_p1 }
  0x2f   : > { %p1048_p3 = pnand %p1047_p13, %p1041_p12 }
  0x31   : > { %1051 = shalt.err (!%p1048_p3)
}
  0x32   : > { %965 = dma.hbm_to_vmem [thread:$0]  (!%p1324_p7), %s1705_s2, 16, %s163_s5, [#allocation6]  }
  0x33   : > { %s184_s10 = sand.u32 1, %s1214_s17   ;;  %s1052_s13 = scalar_lea.hbm %s1706_s3, 16 }
  0x34   : > { %p1053_p1 = scmp.ne.s32.totalorder %s1706_s3, %s1052_s13  ;;  %p1059_p12 = scmp.lt.u32.totalorder %s1052_s13, %s1706_s3 }
  0x36   : > { %p1055_p6 = pnand %p1053_p1, %p1026_p9 }
  0x38   : > { %p1056_p11 = pneg %p1055_p6 }
  0x3a   : > { %p1061_p13 = pnand %p1059_p12, %p1056_p11 }
  0x3c   : > { %1064 = shalt.err (!%p1061_p13)
}
  0x3d   : > { %s1065_s5 = scalar_lea.vmem %s1334_s9, 16  ;;  %s1072_s25 = scalar_lea.vmem %s1334_s9, 32 }
  0x3e   : > { %p1066_p3 = scmp.ne.s32.totalorder %s1334_s9, %s1065_s5  ;;  %p1073_p5 = scmp.lt.s32.totalorder %s1334_s9, %s1334_s9 }
  0x3f   : > { %p1074_p10 = scmp.lt.s32.totalorder %s1072_s25, %s1065_s5 }
  0x40   : > { %p1068_p8 = pnand %p1066_p3, %p1026_p9 }
  0x41   : > { %p1075_p2 = por %p1074_p10, %p1073_p5 }
  0x42   : > { %p1069_p4 = pneg %p1068_p8 }
  0x44   : > { %p1076_p0 = pnand %p1075_p2, %p1069_p4 }
  0x46   : > { %1079 = shalt.err (!%p1076_p0)
}
  0x47   : > { %968 = dma.hbm_to_vmem [thread:$0]  (!%p1324_p7), %s1706_s3, 16, %s1334_s9, [#allocation9]  }
  0x48   : > { %s1385_s11 = smul.u32 144, %s184_s10  ;;  %s1722_s0 = sld [smem:[#allocation16_spill]] }
  0x49   : > { %s942_s12 = smul.u32 2304, %s1218_s18  ;;  %s205_s23 = sand.u32 1, %s1218_s18  }
  0x4a   : > { %s188_s6 = scalar_lea.vmem [#allocation2], %s1385_s11  ;;  %s1399_s9 = scalar_lea.sflag [#allocation3], %s184_s10 }
  0x4b   : > { %s195_s22 = sshll.u32 %s188_s6, 4  ;;  %p1723_p9 = scmp.ne.s32.totalorder %s1721_s7, 0  ;;  %s1396_s22 = int_to_ptr.vmem [resolvable:$true] %s195_s22 }
  0x4d   : > { %p1082_p1 = pneg %p1723_p9 }
  0x4e   : > { %s1393_s20 = scalar_lea.hbm %s1722_s0, %s942_s12  ;;  %s1085_s8 = scalar_lea.hbm %s1722_s0, 4608 }
  0x4f   : > { %s1080_s5 = scalar_lea.hbm %s1393_s20, 2304  ;;  %p1086_p12 = scmp.lt.u32.totalorder %s1393_s20, %s1722_s0 }
  0x50   : > { %p1081_p7 = scmp.ne.s32.totalorder %s1393_s20, %s1080_s5  ;;  %p1087_p13 = scmp.lt.u32.totalorder %s1085_s8, %s1080_s5 }
  0x51   : > { %p1089_p8 = scmp.lt.u32.totalorder %s1080_s5, %s1393_s20 }
  0x52   : > { %p1083_p6 = pnand %p1082_p1, %p1081_p7  ;;  %p1088_p3 = por %p1087_p13, %p1086_p12 }
  0x54   : > { %p1084_p11 = pneg %p1083_p6  ;;  %p1090_p4 = por %p1089_p8, %p1088_p3 }
  0x56   : > { %p1091_p5 = pnand %p1090_p4, %p1084_p11 }
  0x58   : > { %1094 = shalt.err (!%p1091_p5)
}
  0x59   : > { %s1095_s10 = scalar_lea.vmem %s1396_s22, 2304  ;;  %s1222_s6 = smov [#allocation2]  }
  0x5a   : > { %p1096_p10 = scmp.ne.s32.totalorder %s1396_s22, %s1095_s10  ;;  %s1100_s25 = sshll.u32 %s1222_s6, 4  ;;  %s1101_s25 = int_to_ptr.vmem [resolvable:$false] %s1100_s25 }
  0x5b   : > { %s1102_s30 = scalar_lea.vmem %s1101_s25, 4608  ;;  %p1103_p7 = scmp.lt.s32.totalorder %s1396_s22, %s1101_s25 }
  0x5c   : > { %p1098_p2 = pnand %p1096_p10, %p1082_p1  ;;  %p1104_p6 = scmp.lt.s32.totalorder %s1102_s30, %s1095_s10 }
  0x5e   : > { %p1099_p0 = pneg %p1098_p2  ;;  %p1105_p12 = por %p1104_p6, %p1103_p7 }
  0x60   : > { %p1106_p13 = pnand %p1105_p12, %p1099_p0 }
  0x62   : > { %1109 = shalt.err (!%p1106_p13)
}
  0x63   : > { %s1223_s5 = smov 64   ;;  %s1224_s8 = smov 4  }
  0x64   : > { %972 = dma.hbm_to_vmem [thread:$0]  (!%p1723_p9), %s1393_s20, 2304, %s1396_s22, %s1399_s9, %s1223_s5, %s1223_s5, %s1224_s8  }
  0x65   : > { %s1435_s10 = scalar_lea.hbm %s1704_s1, %s942_s12  ;;  %s209_s6 = scalar_lea.vmem [#allocation5], %s1385_s11 }
  0x66   : > { %s216_s25 = sshll.u32 %s209_s6, 4  ;;  %s1442_s30 = scalar_lea.sflag [#allocation6], %s205_s23  ;;  %s1438_s25 = int_to_ptr.vmem [resolvable:$true] %s216_s25 }
  0x67   : > { %s1110_s0 = scalar_lea.hbm %s1435_s10, 2304  ;;  %s1115_s22 = scalar_lea.hbm %s1704_s1, 4608 }
  0x68   : > { %p1111_p11 = scmp.ne.s32.totalorder %s1435_s10, %s1110_s0  ;;  %p1116_p4 = scmp.lt.u32.totalorder %s1435_s10, %s1704_s1 }
  0x69   : > { %p1117_p5 = scmp.lt.u32.totalorder %s1115_s22, %s1110_s0  ;;  %p1119_p2 = scmp.lt.u32.totalorder %s1110_s0, %s1435_s10 }
  0x6a   : > { %p1113_p3 = pnand %p1111_p11, %p1082_p1 }
  0x6b   : > { %p1118_p10 = por %p1117_p5, %p1116_p4 }
  0x6c   : > { %p1114_p8 = pneg %p1113_p3 }
  0x6d   : > { %p1120_p0 = por %p1119_p2, %p1118_p10 }
  0x6f   : > { %p1121_p7 = pnand %p1120_p0, %p1114_p8 }
  0x71   : > { %1124 = shalt.err (!%p1121_p7)
}
  0x72   : > { %s1125_s11 = scalar_lea.vmem %s1438_s25, 2304  ;;  %s1225_s23 = smov [#allocation5]  }
  0x73   : > { %p1126_p6 = scmp.ne.s32.totalorder %s1438_s25, %s1125_s11  ;;  %s1130_s14 = sshll.u32 %s1225_s23, 4  ;;  %s1131_s14 = int_to_ptr.vmem [resolvable:$false] %s1130_s14 }
  0x74   : > { %s1132_s6 = scalar_lea.vmem %s1131_s14, 4608  ;;  %p1133_p11 = scmp.lt.s32.totalorder %s1438_s25, %s1131_s14 }
  0x75   : > { %p1128_p12 = pnand %p1126_p6, %p1082_p1  ;;  %p1134_p3 = scmp.lt.s32.totalorder %s1132_s6, %s1125_s11 }
  0x77   : > { %p1129_p13 = pneg %p1128_p12  ;;  %p1135_p4 = por %p1134_p3, %p1133_p11 }
  0x79   : > { %p1136_p5 = pnand %p1135_p4, %p1129_p13 }
  0x7b   : > { %1139 = shalt.err (!%p1136_p5)
}
  0x7c   : > { %975 = dma.hbm_to_vmem [thread:$0]  (!%p1723_p9), %s1435_s10, 2304, %s1438_s25, %s1442_s30, %s1223_s5, %s1223_s5, %s1224_s8  }
  0x7d   : > { %p1724_p1 = scmp.ne.s32.totalorder %s1718_s29, 0 }
  0x7e   : > { %s1474_s0 = sand.u32 (!%p1724_p1), 1, %s1210_s16   ;;  %p1725_p8 = scmp.ne.s32.totalorder (!%p1724_p1), %s1715_s26, 0 }
  0x7f   : > { %228 = sbr.rel (%p1724_p1) target bundleno = 218 (0xda), region = 36  ;;  %s231_s12 = scalar_lea.sflag (!%p1724_p1), [#allocation3], %s1474_s0 }
  0x80   : > { %s945_s20 = smul.u32 (!%p1724_p1), 144, %s1474_s0 }
  0x82   : > { %s1478_s22 = scalar_lea.vmem (!%p1724_p1), [#allocation2], %s945_s20 }
  0x86   : > { %1185 = dma.done.wait (%p1725_p8), %s231_s12, 2304  }
  0x87   : > { %1187 = vsyncadd (%p1725_p8), %s231_s12, 4294964992  ;;  %s239_s7 = sand.u32 1, %s1275_s19   ;;  %s1485_s5 = scalar_lea.vmem [#allocation5], %s945_s20 }
  0x88   : > { %s240_s29 = scalar_lea.sflag [#allocation6], %s239_s7 }
  0x89   : > { %1189 = dma.done.wait (%p1725_p8), %s240_s29, 2304  }
  0x8a   : > { %1191 = vsyncadd (%p1725_p8), %s240_s29, 4294964992  ;;  %p1726_p9 = scmp.eq.s32.totalorder %s1275_s19, 0 }
  0x8c   : > { %1193 = dma.done.wait (%p1726_p9), [#allocation6], 16   ;;  %p1727_p10 = pmov %p1726_p9 }
  0x8d   : > { %p1728_p2 = pmov %p1726_p9 }
  0x8e   : > { %1195 = vsyncadd (%p1727_p10), [#allocation6], 4294967280 }
  0x8f   : > { %1197 = dma.done.wait (%p1728_p2), [#allocation9], 16   ;;  %p1729_p0 = pmov %p1728_p2 }
  0x90   : > { %v764_v0 = vld [vmem:[%s1478_s22] sm:$0xff]   ;;  %v907_v5 = vld [vmem:[%s1478_s22 + $0x8] sm:$0xff]   ;;  %v908_v12 = vld [vmem:[%s1478_s22 + $0x10] sm:$0xff]   ;;  %s946_s26 = smul.u32 288, %s1474_s0  ;;  %p1730_p6 = scmp.ne.s32.totalorder %s1716_s27, 0 }
  0x91   : > { %1199 = vsyncadd (%p1729_p0), [#allocation9], 4294967280  ;;  %v1500_v1 = vld [vmem:[#allocation7] ss:$0 sm:$0xff]  ;;  %v765_v2 = vunpack.c.l.bf16 %v764_v0  ;;  %v766_v4 = vunpack.c.h.bf16 %v764_v0  ;;  %v924_v6 = vld [vmem:[%s1485_s5 + $0x8] sm:$0xff]   ;;  %v769_v10 = vunpack.c.l.bf16 %v907_v5  ;;  %v770_v16 = vunpack.c.h.bf16 %v907_v5  ;;  %s947_s10 = smul.u32 4608, %s1275_s19 }
  0x92   : > { %v836_v3 = vld [vmem:[%s1485_s5] sm:$0xff]   ;;  %v841_v11 = vunpack.c.l.bf16 %v924_v6  ;;  %v925_v13 = vld [vmem:[%s1485_s5 + $0x10] sm:$0xff]   ;;  %v842_v17 = vunpack.c.h.bf16 %v924_v6  ;;  %v909_v18 = vld [vmem:[%s1478_s22 + $0x18] sm:$0xff]   ;;  %v773_v20 = vunpack.c.l.bf16 %v908_v12  ;;  %v774_v22 = vunpack.c.h.bf16 %v908_v12  ;;  %s1530_s8 = scalar_lea.vmem [#allocation10], %s946_s26  ;;  %s620_s19 = scalar_lea.sflag [#allocation4], %s1474_s0 }
  0x93   : > { %v1505_v7 = vld [vmem:[#allocation8] ss:$0 sm:$0xff]  ;;  %v837_v8 = vunpack.c.l.bf16 %v836_v3  ;;  %v838_v9 = vunpack.c.h.bf16 %v836_v3  ;;  %v360_v14 = vmul.f32 %v765_v2, %v1500_v1  ;;  %v361_v15 = vmul.f32 %v766_v4, %v1500_v1  ;;  %v926_v23 = vld [vmem:[%s1485_s5 + $0x18] sm:$0xff]   ;;  %v911_v54 = vld [vmem:[%s1478_s22 + $0x28] sm:$0xff]   ;;  %s633_s25 = sshll.u32 %s1530_s8, 4  ;;  %s1655_s13 = scalar_lea.hbm %s1707_s4, %s947_s10  ;;  %s1657_s25 = int_to_ptr.vmem [resolvable:$true] %s633_s25 }
  0x94   : > { %v362_v19 = vmul.f32 %v769_v10, %v1500_v1  ;;  %v845_v21 = vunpack.c.l.bf16 %v925_v13  ;;  %v363_v26 = vmul.f32 %v770_v16, %v1500_v1  ;;  %v846_v27 = vunpack.c.h.bf16 %v925_v13  ;;  %v910_v40 = vld [vmem:[%s1478_s22 + $0x20] sm:$0xff]   ;;  %v928_v55 = vld [vmem:[%s1485_s5 + $0x28] sm:$0xff]   ;;  %v912_v0 = vld [vmem:[%s1478_s22 + $0x30] sm:$0xff]   ;;  %s1140_s11 = scalar_lea.vmem %s1657_s25, 4608  ;;  %s1226_s23 = smov [#allocation10]  }
  0x95   : > { %v403_v24 = vadd.f32 %v1505_v7, %v360_v14  ;;  %v404_v25 = vadd.f32 %v1505_v7, %v361_v15  ;;  %v364_v29 = vmul.f32 %v773_v20, %v1500_v1  ;;  %v365_v30 = vmul.f32 %v774_v22, %v1500_v1  ;;  %v927_v45 = vld [vmem:[%s1485_s5 + $0x20] sm:$0xff]   ;;  %v929_v2 = vld [vmem:[%s1485_s5 + $0x30] sm:$0xff]   ;;  %v913_v16 = vld [vmem:[%s1478_s22 + $0x38] sm:$0xff]   ;;  %p1141_p7 = scmp.ne.s32.totalorder %s1657_s25, %s1140_s11  ;;  %s1144_s14 = sshll.u32 %s1226_s23, 4  ;;  %s1145_s14 = int_to_ptr.vmem [resolvable:$false] %s1144_s14 }
  0x96   : > { %v405_v28 = vadd.f32 %v1505_v7, %v362_v19  ;;  %v777_v31 = vunpack.c.l.bf16 %v909_v18  ;;  %v406_v34 = vadd.f32 %v1505_v7, %v363_v26  ;;  %v849_v35 = vunpack.c.l.bf16 %v926_v23  ;;  %s1146_s6 = scalar_lea.vmem %s1145_s14, 9216  ;;  %p1147_p11 = scmp.lt.s32.totalorder %s1657_s25, %s1145_s14 }
  0x97   : > { %v511_v32 = vadd.f32 %v837_v8, %v403_v24  ;;  %v512_v33 = vadd.f32 %v838_v9, %v404_v25  ;;  %v407_v37 = vadd.f32 %v1505_v7, %v364_v29  ;;  %v408_v38 = vadd.f32 %v1505_v7, %v365_v30  ;;  %p1142_p12 = pnand %p1141_p7, %p1730_p6  ;;  %p1148_p3 = scmp.lt.s32.totalorder %s1146_s6, %s1140_s11 }
  0x98   : > { %v513_v36 = vadd.f32 %v841_v11, %v405_v28  ;;  %v366_v39 = vmul.f32 %v777_v31, %v1500_v1  ;;  %v514_v43 = vadd.f32 %v842_v17, %v406_v34  ;;  %v778_v44 = vunpack.c.h.bf16 %v909_v18  ;;  %v914_v34 = vld [vmem:[%s1478_s22 + $0x40] sm:$0xff]  }
  0x99   : > { %v547_v41 = vmax.f32 %v511_v32, 0.0  ;;  %v548_v42 = vmax.f32 %v512_v33, 0.0  ;;  %v515_v47 = vadd.f32 %v845_v21, %v407_v37  ;;  %v516_v48 = vadd.f32 %v846_v27, %v408_v38  ;;  %v930_v21 = vld [vmem:[%s1485_s5 + $0x38] sm:$0xff]   ;;  %p1143_p13 = pneg %p1142_p12  ;;  %p1149_p4 = por %p1148_p3, %p1147_p11 }
  0x9a   : > { %v549_v46 = vmax.f32 %v513_v36, 0.0  ;;  %v409_v49 = vadd.f32 %v1505_v7, %v366_v39  ;;  %v550_v50 = vmax.f32 %v514_v43, 0.0  ;;  %v367_v51 = vmul.f32 %v778_v44, %v1500_v1  ;;  %v931_v39 = vld [vmem:[%s1485_s5 + $0x40] sm:$0xff]  }
  0x9b   : > { %583 = vst [vmem:[%s1530_s8] sm:$0xff] %v547_v41  ;;  %584 = vst [vmem:[%s1530_s8 + $0x8] sm:$0xff] %v548_v42  ;;  %v850_v52 = vunpack.c.h.bf16 %v926_v23  ;;  %v781_v53 = vunpack.c.l.bf16 %v910_v40  ;;  %v551_v56 = vmax.f32 %v515_v47, 0.0  ;;  %v552_v57 = vmax.f32 %v516_v48, 0.0  ;;  %v915_v48 = vld [vmem:[%s1478_s22 + $0x48] sm:$0xff]   ;;  %p1150_p5 = pnand %p1149_p4, %p1143_p13 }
  0x9c   : > { %585 = vst [vmem:[%s1530_s8 + $0x10] sm:$0xff] %v549_v46  ;;  %v517_v58 = vadd.f32 %v849_v35, %v409_v49  ;;  %v853_v59 = vunpack.c.l.bf16 %v927_v45  ;;  %586 = vst [vmem:[%s1530_s8 + $0x18] sm:$0xff] %v550_v50  ;;  %v410_v60 = vadd.f32 %v1505_v7, %v367_v51  ;;  %v782_v62 = vunpack.c.h.bf16 %v910_v40  ;;  %v932_v49 = vld [vmem:[%s1485_s5 + $0x48] sm:$0xff]  }
  0x9d   : > { %v368_v61 = vmul.f32 %v781_v53, %v1500_v1  ;;  %v854_v63 = vunpack.c.h.bf16 %v927_v45  ;;  %587 = vst [vmem:[%s1530_s8 + $0x20] sm:$0xff] %v551_v56  ;;  %588 = vst [vmem:[%s1530_s8 + $0x28] sm:$0xff] %v552_v57  ;;  %v785_v4 = vunpack.c.l.bf16 %v911_v54  ;;  %v857_v5 = vunpack.c.l.bf16 %v928_v55 }
  0x9e   : > { %v553_v3 = vmax.f32 %v517_v58, 0.0  ;;  %v786_v6 = vunpack.c.h.bf16 %v911_v54  ;;  %v518_v8 = vadd.f32 %v850_v52, %v410_v60  ;;  %v369_v10 = vmul.f32 %v782_v62, %v1500_v1  ;;  %v916_v58 = vld [vmem:[%s1478_s22 + $0x50] sm:$0xff]  }
  0x9f   : > { %v411_v9 = vadd.f32 %v1505_v7, %v368_v61  ;;  %v858_v11 = vunpack.c.h.bf16 %v928_v55  ;;  %v370_v12 = vmul.f32 %v785_v4, %v1500_v1  ;;  %v789_v14 = vunpack.c.l.bf16 %v912_v0 }
  0xa0   : > { %589 = vst [vmem:[%s1530_s8 + $0x30] sm:$0xff] %v553_v3  ;;  %v371_v13 = vmul.f32 %v786_v6, %v1500_v1  ;;  %v861_v15 = vunpack.c.l.bf16 %v929_v2  ;;  %v554_v17 = vmax.f32 %v518_v8, 0.0  ;;  %v412_v19 = vadd.f32 %v1505_v7, %v369_v10  ;;  %v917_v10 = vld [vmem:[%s1478_s22 + $0x58] sm:$0xff]  }
  0xa1   : > { %v519_v18 = vadd.f32 %v853_v59, %v411_v9  ;;  %v790_v20 = vunpack.c.h.bf16 %v912_v0  ;;  %v413_v22 = vadd.f32 %v1505_v7, %v370_v12  ;;  %v372_v24 = vmul.f32 %v789_v14, %v1500_v1 }
  0xa2   : > { %v414_v23 = vadd.f32 %v1505_v7, %v371_v13  ;;  %v862_v25 = vunpack.c.h.bf16 %v929_v2  ;;  %590 = vst [vmem:[%s1530_s8 + $0x38] sm:$0xff] %v554_v17  ;;  %v520_v27 = vadd.f32 %v854_v63, %v412_v19  ;;  %v793_v29 = vunpack.c.l.bf16 %v913_v16  ;;  %v933_v63 = vld [vmem:[%s1485_s5 + $0x50] sm:$0xff]   ;;  %v934_v19 = vld [vmem:[%s1485_s5 + $0x58] sm:$0xff]  }
  0xa3   : > { %v555_v26 = vmax.f32 %v519_v18, 0.0  ;;  %v373_v28 = vmul.f32 %v790_v20, %v1500_v1  ;;  %v521_v30 = vadd.f32 %v857_v5, %v413_v22  ;;  %v415_v32 = vadd.f32 %v1505_v7, %v372_v24 }
  0xa4   : > { %v522_v31 = vadd.f32 %v858_v11, %v414_v23  ;;  %v865_v33 = vunpack.c.l.bf16 %v930_v21  ;;  %v556_v35 = vmax.f32 %v520_v27, 0.0  ;;  %v374_v37 = vmul.f32 %v793_v29, %v1500_v1 }
  0xa5   : > { %591 = vst [vmem:[%s1530_s8 + $0x40] sm:$0xff] %v555_v26  ;;  %v416_v36 = vadd.f32 %v1505_v7, %v373_v28  ;;  %v794_v38 = vunpack.c.h.bf16 %v913_v16  ;;  %v557_v40 = vmax.f32 %v521_v30, 0.0  ;;  %v523_v42 = vadd.f32 %v861_v15, %v415_v32  ;;  %v918_v28 = vld [vmem:[%s1478_s22 + $0x60] sm:$0xff]  }
  0xa6   : > { %v558_v41 = vmax.f32 %v522_v31, 0.0  ;;  %v866_v43 = vunpack.c.h.bf16 %v930_v21  ;;  %592 = vst [vmem:[%s1530_s8 + $0x48] sm:$0xff] %v556_v35  ;;  %v417_v45 = vadd.f32 %v1505_v7, %v374_v37  ;;  %v797_v47 = vunpack.c.l.bf16 %v914_v34 }
  0xa7   : > { %v524_v44 = vadd.f32 %v862_v25, %v416_v36  ;;  %v375_v46 = vmul.f32 %v794_v38, %v1500_v1  ;;  %593 = vst [vmem:[%s1530_s8 + $0x50] sm:$0xff] %v557_v40  ;;  %v559_v50 = vmax.f32 %v523_v42, 0.0  ;;  %v869_v51 = vunpack.c.l.bf16 %v931_v39  ;;  %v919_v42 = vld [vmem:[%s1478_s22 + $0x68] sm:$0xff]  }
  0xa8   : > { %594 = vst [vmem:[%s1530_s8 + $0x58] sm:$0xff] %v558_v41  ;;  %v798_v52 = vunpack.c.h.bf16 %v914_v34  ;;  %v870_v53 = vunpack.c.h.bf16 %v931_v39  ;;  %v525_v55 = vadd.f32 %v865_v33, %v417_v45  ;;  %v376_v57 = vmul.f32 %v797_v47, %v1500_v1  ;;  %v935_v33 = vld [vmem:[%s1485_s5 + $0x60] sm:$0xff]  }
  0xa9   : > { %v560_v54 = vmax.f32 %v524_v44, 0.0  ;;  %v418_v56 = vadd.f32 %v1505_v7, %v375_v46  ;;  %595 = vst [vmem:[%s1530_s8 + $0x60] sm:$0xff] %v559_v50  ;;  %v801_v60 = vunpack.c.l.bf16 %v915_v48  ;;  %v873_v61 = vunpack.c.l.bf16 %v932_v49 }
  0xaa   : > { %v377_v59 = vmul.f32 %v798_v52, %v1500_v1  ;;  %v802_v62 = vunpack.c.h.bf16 %v915_v48  ;;  %v561_v0 = vmax.f32 %v525_v55, 0.0  ;;  %v419_v3 = vadd.f32 %v1505_v7, %v376_v57  ;;  %v920_v52 = vld [vmem:[%s1478_s22 + $0x70] sm:$0xff]  }
  0xab   : > { %596 = vst [vmem:[%s1530_s8 + $0x68] sm:$0xff] %v560_v54  ;;  %v526_v2 = vadd.f32 %v866_v43, %v418_v56  ;;  %v874_v4 = vunpack.c.h.bf16 %v932_v49  ;;  %v378_v6 = vmul.f32 %v801_v60, %v1500_v1  ;;  %v805_v9 = vunpack.c.l.bf16 %v916_v58  ;;  %v936_v43 = vld [vmem:[%s1485_s5 + $0x68] sm:$0xff]   ;;  %v937_v57 = vld [vmem:[%s1485_s5 + $0x70] sm:$0xff]  }
  0xac   : > { %v420_v5 = vadd.f32 %v1505_v7, %v377_v59  ;;  %v379_v8 = vmul.f32 %v802_v62, %v1500_v1  ;;  %597 = vst [vmem:[%s1530_s8 + $0x70] sm:$0xff] %v561_v0  ;;  %v527_v12 = vadd.f32 %v869_v51, %v419_v3  ;;  %v877_v13 = vunpack.c.l.bf16 %v933_v63  ;;  %v921_v3 = vld [vmem:[%s1478_s22 + $0x78] sm:$0xff]  }
  0xad   : > { %v562_v11 = vmax.f32 %v526_v2, 0.0  ;;  %v806_v14 = vunpack.c.h.bf16 %v916_v58  ;;  %v421_v16 = vadd.f32 %v1505_v7, %v378_v6  ;;  %v380_v18 = vmul.f32 %v805_v9, %v1500_v1 }
  0xae   : > { %v528_v15 = vadd.f32 %v870_v53, %v420_v5  ;;  %v422_v17 = vadd.f32 %v1505_v7, %v379_v8  ;;  %v563_v20 = vmax.f32 %v527_v12, 0.0  ;;  %v878_v22 = vunpack.c.h.bf16 %v933_v63 }
  0xaf   : > { %598 = vst [vmem:[%s1530_s8 + $0x78] sm:$0xff] %v562_v11  ;;  %v381_v21 = vmul.f32 %v806_v14, %v1500_v1  ;;  %v809_v23 = vunpack.c.l.bf16 %v917_v10  ;;  %v529_v25 = vadd.f32 %v873_v61, %v421_v16  ;;  %v423_v27 = vadd.f32 %v1505_v7, %v380_v18 }
  0xb0   : > { %v564_v24 = vmax.f32 %v528_v15, 0.0  ;;  %v530_v26 = vadd.f32 %v874_v4, %v422_v17  ;;  %599 = vst [vmem:[%s1530_s8 + $0x80] sm:$0xff] %v563_v20  ;;  %v881_v31 = vunpack.c.l.bf16 %v934_v19  ;;  %v810_v32 = vunpack.c.h.bf16 %v917_v10 }
  0xb1   : > { %v424_v29 = vadd.f32 %v1505_v7, %v381_v21  ;;  %v382_v30 = vmul.f32 %v809_v23, %v1500_v1  ;;  %v565_v34 = vmax.f32 %v529_v25, 0.0  ;;  %v531_v36 = vadd.f32 %v877_v13, %v423_v27  ;;  %v938_v13 = vld [vmem:[%s1485_s5 + $0x78] sm:$0xff]   ;;  %v939_v27 = vld [vmem:[%s1485_s5 + $0x80] sm:$0xff]  }
  0xb2   : > { %600 = vst [vmem:[%s1530_s8 + $0x88] sm:$0xff] %v564_v24  ;;  %v566_v35 = vmax.f32 %v530_v26, 0.0  ;;  %v882_v37 = vunpack.c.h.bf16 %v934_v19  ;;  %v383_v40 = vmul.f32 %v810_v32, %v1500_v1  ;;  %v813_v41 = vunpack.c.l.bf16 %v918_v28 }
  0xb3   : > { %v532_v38 = vadd.f32 %v878_v22, %v424_v29  ;;  %v425_v39 = vadd.f32 %v1505_v7, %v382_v30  ;;  %601 = vst [vmem:[%s1530_s8 + $0x90] sm:$0xff] %v565_v34  ;;  %v567_v44 = vmax.f32 %v531_v36, 0.0  ;;  %v885_v45 = vunpack.c.l.bf16 %v935_v33  ;;  %v922_v22 = vld [vmem:[%s1478_s22 + $0x80] sm:$0xff]   ;;  %v923_v36 = vld [vmem:[%s1478_s22 + $0x88] sm:$0xff]  }
  0xb4   : > { %602 = vst [vmem:[%s1530_s8 + $0x98] sm:$0xff] %v566_v35  ;;  %v814_v46 = vunpack.c.h.bf16 %v918_v28  ;;  %v886_v47 = vunpack.c.h.bf16 %v935_v33  ;;  %v426_v50 = vadd.f32 %v1505_v7, %v383_v40  ;;  %v384_v51 = vmul.f32 %v813_v41, %v1500_v1  ;;  %v940_v40 = vld [vmem:[%s1485_s5 + $0x88] sm:$0xff]  }
  0xb5   : > { %v568_v48 = vmax.f32 %v532_v38, 0.0  ;;  %v533_v49 = vadd.f32 %v881_v31, %v425_v39  ;;  %603 = vst [vmem:[%s1530_s8 + $0xa0] sm:$0xff] %v567_v44  ;;  %v817_v54 = vunpack.c.l.bf16 %v919_v42  ;;  %v889_v55 = vunpack.c.l.bf16 %v936_v43 }
  0xb6   : > { %v385_v53 = vmul.f32 %v814_v46, %v1500_v1  ;;  %v818_v56 = vunpack.c.h.bf16 %v919_v42  ;;  %v534_v59 = vadd.f32 %v882_v37, %v426_v50  ;;  %v427_v60 = vadd.f32 %v1505_v7, %v384_v51 }
  0xb7   : > { %604 = vst [vmem:[%s1530_s8 + $0xa8] sm:$0xff] %v568_v48  ;;  %v569_v58 = vmax.f32 %v533_v49, 0.0  ;;  %v890_v61 = vunpack.c.h.bf16 %v936_v43  ;;  %v386_v63 = vmul.f32 %v817_v54, %v1500_v1  ;;  %v821_v2 = vunpack.c.l.bf16 %v920_v52 }
  0xb8   : > { %v428_v62 = vadd.f32 %v1505_v7, %v385_v53  ;;  %v387_v0 = vmul.f32 %v818_v56, %v1500_v1  ;;  %v570_v4 = vmax.f32 %v534_v59, 0.0  ;;  %v535_v5 = vadd.f32 %v885_v45, %v427_v60 }
  0xb9   : > { %605 = vst [vmem:[%s1530_s8 + $0xb0] sm:$0xff] %v569_v58  ;;  %v893_v6 = vunpack.c.l.bf16 %v937_v57  ;;  %v822_v8 = vunpack.c.h.bf16 %v920_v52  ;;  %v429_v10 = vadd.f32 %v1505_v7, %v386_v63  ;;  %v388_v12 = vmul.f32 %v821_v2, %v1500_v1 }
  0xba   : > { %v536_v9 = vadd.f32 %v886_v47, %v428_v62  ;;  %v430_v11 = vadd.f32 %v1505_v7, %v387_v0  ;;  %606 = vst [vmem:[%s1530_s8 + $0xb8] sm:$0xff] %v570_v4  ;;  %v571_v14 = vmax.f32 %v535_v5, 0.0  ;;  %v894_v16 = vunpack.c.h.bf16 %v937_v57 }
  0xbb   : > { %v389_v15 = vmul.f32 %v822_v8, %v1500_v1  ;;  %v825_v17 = vunpack.c.l.bf16 %v921_v3  ;;  %v537_v19 = vadd.f32 %v889_v55, %v429_v10  ;;  %v431_v21 = vadd.f32 %v1505_v7, %v388_v12 }
  0xbc   : > { %v572_v18 = vmax.f32 %v536_v9, 0.0  ;;  %v538_v20 = vadd.f32 %v890_v61, %v430_v11  ;;  %607 = vst [vmem:[%s1530_s8 + $0xc0] sm:$0xff] %v571_v14  ;;  %v897_v25 = vunpack.c.l.bf16 %v938_v13  ;;  %v826_v26 = vunpack.c.h.bf16 %v921_v3 }
  0xbd   : > { %v432_v23 = vadd.f32 %v1505_v7, %v389_v15  ;;  %v390_v24 = vmul.f32 %v825_v17, %v1500_v1  ;;  %v573_v28 = vmax.f32 %v537_v19, 0.0  ;;  %v539_v30 = vadd.f32 %v893_v6, %v431_v21 }
  0xbe   : > { %608 = vst [vmem:[%s1530_s8 + $0xc8] sm:$0xff] %v572_v18  ;;  %v574_v29 = vmax.f32 %v538_v20, 0.0  ;;  %v898_v31 = vunpack.c.h.bf16 %v938_v13  ;;  %v391_v34 = vmul.f32 %v826_v26, %v1500_v1  ;;  %v829_v35 = vunpack.c.l.bf16 %v922_v22 }
  0xbf   : > { %v540_v32 = vadd.f32 %v894_v16, %v432_v23  ;;  %v433_v33 = vadd.f32 %v1505_v7, %v390_v24  ;;  %609 = vst [vmem:[%s1530_s8 + $0xd0] sm:$0xff] %v573_v28  ;;  %v575_v37 = vmax.f32 %v539_v30, 0.0  ;;  %v901_v38 = vunpack.c.l.bf16 %v939_v27 }
  0xc0   : > { %610 = vst [vmem:[%s1530_s8 + $0xd8] sm:$0xff] %v574_v29  ;;  %v830_v39 = vunpack.c.h.bf16 %v922_v22  ;;  %v434_v43 = vadd.f32 %v1505_v7, %v391_v34  ;;  %v392_v44 = vmul.f32 %v829_v35, %v1500_v1  ;;  %v902_v46 = vunpack.c.h.bf16 %v939_v27 }
  0xc1   : > { %v576_v41 = vmax.f32 %v540_v32, 0.0  ;;  %v541_v42 = vadd.f32 %v897_v25, %v433_v33  ;;  %611 = vst [vmem:[%s1530_s8 + $0xe0] sm:$0xff] %v575_v37  ;;  %v833_v47 = vunpack.c.l.bf16 %v923_v36  ;;  %v834_v48 = vunpack.c.h.bf16 %v923_v36 }
  0xc2   : > { %v393_v45 = vmul.f32 %v830_v39, %v1500_v1  ;;  %v542_v50 = vadd.f32 %v898_v31, %v434_v43  ;;  %v435_v51 = vadd.f32 %v1505_v7, %v392_v44  ;;  %v905_v52 = vunpack.c.l.bf16 %v940_v40 }
  0xc3   : > { %612 = vst [vmem:[%s1530_s8 + $0xe8] sm:$0xff] %v576_v41  ;;  %v577_v49 = vmax.f32 %v541_v42, 0.0  ;;  %v394_v54 = vmul.f32 %v833_v47, %v1500_v1  ;;  %v395_v55 = vmul.f32 %v834_v48, %v1500_v1  ;;  %v906_v56 = vunpack.c.h.bf16 %v940_v40 }
  0xc4   : > { %v436_v53 = vadd.f32 %v1505_v7, %v393_v45  ;;  %v578_v57 = vmax.f32 %v542_v50, 0.0  ;;  %v543_v58 = vadd.f32 %v901_v38, %v435_v51 }
  0xc5   : > { %613 = vst [vmem:[%s1530_s8 + $0xf0] sm:$0xff] %v577_v49  ;;  %v437_v60 = vadd.f32 %v1505_v7, %v394_v54  ;;  %v438_v61 = vadd.f32 %v1505_v7, %v395_v55 }
  0xc6   : > { %v544_v59 = vadd.f32 %v902_v46, %v436_v53  ;;  %614 = vst [vmem:[%s1530_s8 + $0xf8] sm:$0xff] %v578_v57  ;;  %v579_v62 = vmax.f32 %v543_v58, 0.0 }
  0xc7   : > { %v545_v1 = vadd.f32 %v905_v52, %v437_v60  ;;  %v546_v0 = vadd.f32 %v906_v56, %v438_v61 }
  0xc8   : > { %v580_v63 = vmax.f32 %v544_v59, 0.0  ;;  %615 = vst [vmem:[%s1530_s8 + $0x100] sm:$0xff] %v579_v62 }
  0xc9   : > { %v581_v2 = vmax.f32 %v545_v1, 0.0  ;;  %v582_v3 = vmax.f32 %v546_v0, 0.0 }
  0xca   : > { %616 = vst [vmem:[%s1530_s8 + $0x108] sm:$0xff] %v580_v63 }
  0xcb   : > { %617 = vst [vmem:[%s1530_s8 + $0x110] sm:$0xff] %v581_v2  ;;  %618 = vst [vmem:[%s1530_s8 + $0x118] sm:$0xff] %v582_v3 }
  0xcc   : > { %1153 = shalt.err (!%p1150_p5)
}
  0xcd   : > { %s1154_s20 = scalar_lea.hbm %s1655_s13, 4608  ;;  %s1158_s7 = scalar_lea.hbm %s1707_s4, 9216 }
  0xce   : > { %p1155_p1 = scmp.ne.s32.totalorder %s1655_s13, %s1154_s20  ;;  %p1159_p10 = scmp.lt.u32.totalorder %s1655_s13, %s1707_s4 }
  0xcf   : > { %p1160_p2 = scmp.lt.u32.totalorder %s1158_s7, %s1154_s20  ;;  %p1162_p7 = scmp.lt.u32.totalorder %s1154_s20, %s1655_s13 }
  0xd0   : > { %p1156_p8 = pnand %p1155_p1, %p1730_p6 }
  0xd1   : > { %p1161_p0 = por %p1160_p2, %p1159_p10 }
  0xd2   : > { %p1157_p9 = pneg %p1156_p8 }
  0xd3   : > { %p1163_p12 = por %p1162_p7, %p1161_p0 }
  0xd5   : > { %p1164_p13 = pnand %p1163_p12, %p1157_p9 }
  0xd7   : > { %1167 = shalt.err (!%p1164_p13)
}
  0xd8   : > { %s1227_s26 = smov 128   ;;  %s1228_s8 = smov 8  }
  0xd9   : > { %960 = dma.vmem_to_hbm [thread:$0]  (%p1730_p6), %s1657_s25, 4608, %s1655_s13, %s620_s19, %s1227_s26, %s1227_s26, %s1228_s8  }
  0xda PF: > { %s648_s10 = sand.u32 1, %s1206_s15   ;;  %p1731_p11 = scmp.ne.s32.totalorder %s1717_s28, 0 }
  0xdb   : > { %p1732_p3 = scmp.ge.s32.totalorder %s1218_s18, 2  ;;  %s649_s30 = scalar_lea.sflag [#allocation4], %s648_s10 }
  0xdd   : > { %p977_p4 = pnand %p1732_p3, %p1731_p11 }
  0xdf   : > { %1201 = dma.done.wait (!%p977_p4), %s649_s30, 4608  }
  0xe0   : > { %1203 = vsyncadd (!%p977_p4), %s649_s30, 4294962688  ;;  %p21_p5 = scmp.ge.s32.totalorder %s1279_s21, 4   ;;  %s1733_s15 = smov %s1210_s16 }
  0xe1   : > { %s1734_s16 = smov %s1214_s17  ;;  %s1735_s17 = smov %s1291_s24 }
  0xe2   : > { %s1736_s18 = smov %s1279_s21  ;;  %23 = sbr.rel (!%p21_p5) target bundleno = 10 (0xa), region = 102 }
  0xe9   :  { %654 = vsyncpa [#allocation3], 1 }
  0xea   :  { %656 = vsyncpa [#allocation3 + $0x1], 1 }
  0xeb   :  { %657 = vsyncpa [#allocation6], 1 }
  0xec   :  { %659 = vsyncpa [#allocation6 + $0x1], 1 }
  0xed   :  { %660 = vsyncpa [#allocation9], 1 }
  0xee   :  { %661 = vsyncpa [#allocation4], 1 }
  0xef   :  { %663 = vsyncpa [#allocation4 + $0x1], 1 }

// kernel: basic_block_forward.4
= control target key start
LH: loop header
LB: loop body
LE: loop exit
PB: predicated region body
PF: predicated region fallthrough
CT: control target
= control target key end

     0   :  { %12 = vsyncpa [#allocation6], 0  ;;  %s8143_s0 = inlined_call_operand.hbm [shape: bf16[2,288,128], index: 0, kind: input, shape index: {}]   ;;  %s8144_s1 = inlined_call_operand.hbm [shape: f32[1,128], index: 1, kind: input, shape index: {}]   ;;  %s8145_s2 = inlined_call_operand.hbm [shape: f32[1,128], index: 2, kind: input, shape index: {}]   ;;  %s8146_s3 = inlined_call_operand.hbm [shape: bf16[3,384,128], index: 3, kind: input, shape index: {}]   ;;  %s8147_s4 = inlined_call_operand.hbm [shape: f32[1,128], index: 4, kind: input, shape index: {}]   ;;  %s8148_s5 = inlined_call_operand.hbm [shape: bf16[2,288,128], index: 5, kind: output, shape index: {0}]   ;;  %s8149_s6 = inlined_call_operand.hbm [shape: f32[2,2,128], index: 6, kind: output, shape index: {1}]  }
   0x1   :  { %14 = vsyncpa [#allocation6 + $0x1], 0 }
   0x2   :  { %15 = vsyncpa [#allocation9], 0 }
   0x3   :  { %16 = vsyncpa [#allocation12], 0 }
   0x4   :  { %17 = vsyncpa [#allocation7], 0 }
   0x5   :  { %19 = vsyncpa [#allocation7 + $0x1], 0 }
   0x6   :  { %20 = vsyncpa [#allocation16], 0 }
   0x7   :  { %22 = vsyncpa [#allocation16 + $0x1], 0  ;;  %s5842_s21 = smov 0   ;;  %s5844_s22 = smov 0  }
   0x8   :  { %s5846_s23 = smov 0   ;;  %s5848_s24 = smov 0  }
   0x9 LB: > { %s5863_s25 = sadd.s32 4294967295, %s5790_s24   ;;  %s4658_s26 = sadd.s32 4294967294, %s5790_s24   ;;  %s5790_s24 = sphi %s5848_s24, %s8614_s24   ;;  %s5786_s23 = sphi %s5846_s23, %s8613_s23   ;;  %s5782_s22 = sphi %s5844_s22, %s8612_s22   ;;  %s5778_s21 = sphi %s5842_s21, %s8611_s21  }
   0xa   : > { %p48_p0 = scmp.ne.s32.totalorder %s5782_s22, %s5778_s21  ;;  %p8150_p1 = scmp.eq.s32.totalorder %s5863_s25, 0 }
   0xb   : > { %p162_p3 = scmp.eq.s32.totalorder %s4658_s26, 1  ;;  %p4659_p5 = scmp.ge.s32.totalorder %s5790_s24, 1 }
   0xc   : > { %p5872_p4 = por %p8150_p1, %p48_p0  ;;  %p195_p7 = scmp.lt.s32.totalorder %s5790_s24, 3 }
   0xd   : > { %p5877_p6 = por %p162_p3, %p48_p0  ;;  %s5792_s30 = smov [#allocation8]  }
   0xe   : > { %s8298_s27 = scalar_select %p5872_p4, 1, 0 }
   0xf   : > { %s8299_s28 = scalar_select %p5877_p6, 1, 0 }
  0x10   : > { %p5882_p8 = pnand %p4659_p5, %p195_p7  ;;  %s208_s7 = sshll.u32 %s5792_s30, 4  ;;  %s209_s7 = int_to_ptr.vmem [resolvable:$true] %s208_s7 }
  0x11   : > { %s5793_s8 = smov [#allocation11]   ;;  %s5794_s11 = smov [#allocation10]  }
  0x12   : > { %s8300_s29 = scalar_select %p5882_p8, 1, 0 }
  0x13   : > { %p5368_p10 = pneg %p5882_p8  ;;  %s229_s9 = sshll.u32 %s5793_s8, 4  ;;  %s5895_s9 = int_to_ptr.vmem [resolvable:$true] %s229_s9 }
  0x14   : > { %s5897_s12 = sshll.u32 %s5794_s11, 4  ;;  %s5542_s15 = scalar_lea.hbm %s8144_s1, 16  ;;  %s220_s12 = int_to_ptr.vmem [resolvable:$true] %s5897_s12 }
  0x15   : > { %p5891_p11 = pnand %p5368_p10, %p8150_p1  ;;  %p5543_p12 = scmp.ne.s32.totalorder %s8144_s1, %s5542_s15 }
  0x16   : > { %p5549_p5 = scmp.lt.u32.totalorder %s5542_s15, %s8144_s1 }
  0x17   : > { %p5907_p13 = pneg %p5891_p11 }
  0x19   : > { %p5545_p0 = pnand %p5907_p13, %p5543_p12 }
  0x1b   : > { %p5546_p3 = pneg %p5545_p0 }
  0x1d   : > { %p5551_p7 = pnand %p5549_p5, %p5546_p3 }
  0x1f   : > { %5554 = shalt.err (!%p5551_p7)
}
  0x20   : > { %s5555_s26 = scalar_lea.vmem %s209_s7, 16  ;;  %s5562_s30 = scalar_lea.vmem %s209_s7, 32 }
  0x21   : > { %p5556_p10 = scmp.ne.s32.totalorder %s209_s7, %s5555_s26  ;;  %p5563_p2 = scmp.lt.s32.totalorder %s209_s7, %s209_s7 }
  0x22   : > { %p5564_p6 = scmp.lt.s32.totalorder %s5562_s30, %s5555_s26 }
  0x23   : > { %p5558_p9 = pnand %p5556_p10, %p5907_p13 }
  0x24   : > { %p5565_p4 = por %p5564_p6, %p5563_p2 }
  0x25   : > { %p5559_p1 = pneg %p5558_p9 }
  0x27   : > { %p5566_p8 = pnand %p5565_p4, %p5559_p1 }
  0x29   : > { %5569 = shalt.err (!%p5566_p8)
}
  0x2a   : > { %5371 = dma.hbm_to_vmem [thread:$0]  (!%p5891_p11), %s8144_s1, 16, %s209_s7, [#allocation9]  }
  0x2b   : > { %s5570_s15 = scalar_lea.hbm %s8146_s3, 9216 }
  0x2c   : > { %p5571_p9 = scmp.ne.s32.totalorder %s8146_s3, %s5570_s15  ;;  %p5577_p1 = scmp.lt.u32.totalorder %s5570_s15, %s8146_s3 }
  0x2e   : > { %p5573_p12 = pnand %p5571_p9, %p5907_p13 }
  0x30   : > { %p5574_p2 = pneg %p5573_p12 }
  0x32   : > { %p5579_p4 = pnand %p5577_p1, %p5574_p2 }
  0x34   : > { %5582 = shalt.err (!%p5579_p4)
}
  0x35   : > { %s5583_s7 = scalar_lea.vmem %s5895_s9, 9216  ;;  %p5591_p3 = scmp.lt.s32.totalorder %s5895_s9, %s5895_s9 }
  0x36   : > { %p5584_p6 = scmp.ne.s32.totalorder %s5895_s9, %s5583_s7  ;;  %p5592_p5 = scmp.lt.s32.totalorder %s5583_s7, %s5583_s7 }
  0x38   : > { %p5586_p8 = pnand %p5584_p6, %p5907_p13  ;;  %p5593_p7 = por %p5592_p5, %p5591_p3 }
  0x3a   : > { %p5587_p0 = pneg %p5586_p8 }
  0x3c   : > { %p5594_p10 = pnand %p5593_p7, %p5587_p0 }
  0x3e   : > { %5597 = shalt.err (!%p5594_p10)
}
  0x3f   : > { %s8153_s26 = smov 64   ;;  %s8154_s30 = smov 4  }
  0x40   : > { %5377 = dma.hbm_to_vmem [thread:$0]  (!%p5891_p11), %s8146_s3, 9216, %s5895_s9, [#allocation12], %s8153_s26, %s8153_s26, %s8154_s30  }
  0x41   : > { %s5598_s15 = scalar_lea.hbm %s8145_s2, 16 }
  0x42   : > { %p5599_p9 = scmp.ne.s32.totalorder %s8145_s2, %s5598_s15  ;;  %p5605_p1 = scmp.lt.u32.totalorder %s5598_s15, %s8145_s2 }
  0x44   : > { %p5601_p12 = pnand %p5599_p9, %p5907_p13 }
  0x46   : > { %p5602_p2 = pneg %p5601_p12 }
  0x48   : > { %p5607_p4 = pnand %p5605_p1, %p5602_p2 }
  0x4a   : > { %5610 = shalt.err (!%p5607_p4)
}
  0x4b   : > { %s5611_s7 = scalar_lea.vmem %s220_s12, 16  ;;  %s5618_s9 = scalar_lea.vmem %s220_s12, 32 }
  0x4c   : > { %p5612_p6 = scmp.ne.s32.totalorder %s220_s12, %s5611_s7  ;;  %p5619_p3 = scmp.lt.s32.totalorder %s220_s12, %s220_s12 }
  0x4d   : > { %p5620_p5 = scmp.lt.s32.totalorder %s5618_s9, %s5611_s7 }
  0x4e   : > { %p5614_p8 = pnand %p5612_p6, %p5907_p13 }
  0x4f   : > { %p5621_p7 = por %p5620_p5, %p5619_p3 }
  0x50   : > { %p5615_p0 = pneg %p5614_p8 }
  0x52   : > { %p5622_p10 = pnand %p5621_p7, %p5615_p0 }
  0x54   : > { %5625 = shalt.err (!%p5622_p10)
}
  0x55   : > { %5374 = dma.hbm_to_vmem [thread:$0]  (!%p5891_p11), %s8145_s2, 16, %s220_s12, [#allocation9]  }
  0x56   : > { %s5797_s13 = smov [#allocation13]   ;;  %s5626_s17 = scalar_lea.hbm %s8147_s4, 16 }
  0x57   : > { %s243_s14 = sshll.u32 %s5797_s13, 4  ;;  %p5627_p9 = scmp.ne.s32.totalorder %s8147_s4, %s5626_s17  ;;  %s244_s14 = int_to_ptr.vmem [resolvable:$true] %s243_s14 }
  0x58   : > { %p5633_p1 = scmp.lt.u32.totalorder %s5626_s17, %s8147_s4 }
  0x59   : > { %p5629_p12 = pnand %p5627_p9, %p5907_p13 }
  0x5b   : > { %p5630_p2 = pneg %p5629_p12 }
  0x5d   : > { %p5635_p4 = pnand %p5633_p1, %p5630_p2 }
  0x5f   : > { %5638 = shalt.err (!%p5635_p4)
}
  0x60   : > { %s5639_s12 = scalar_lea.vmem %s244_s14, 16  ;;  %s5646_s8 = scalar_lea.vmem %s244_s14, 32 }
  0x61   : > { %p5640_p6 = scmp.ne.s32.totalorder %s244_s14, %s5639_s12  ;;  %p5647_p3 = scmp.lt.s32.totalorder %s244_s14, %s244_s14 }
  0x62   : > { %p5648_p5 = scmp.lt.s32.totalorder %s5646_s8, %s5639_s12 }
  0x63   : > { %p5642_p8 = pnand %p5640_p6, %p5907_p13 }
  0x64   : > { %p5649_p7 = por %p5648_p5, %p5647_p3 }
  0x65   : > { %p5643_p0 = pneg %p5642_p8 }
  0x67   : > { %p5650_p10 = pnand %p5649_p7, %p5643_p0 }
  0x69   : > { %5653 = shalt.err (!%p5650_p10)
}
  0x6a   : > { %5380 = dma.hbm_to_vmem [thread:$0]  (!%p5891_p11), %s8147_s4, 16, %s244_s14, [#allocation12]  }
  0x6b   : > { %s5987_s18 = sadd.s32 1, %s5790_s24   ;;  %s35_s15 = sadd.s32 1, %s5786_s23 }
  0x6c   : > { %s32_s10 = ssub.s32 %s5790_s24, %s5987_s18  ;;  %p42_p13 = scmp.ne.s32.totalorder %s5786_s23, %s5782_s22 }
  0x6d   : > { %p33_p9 = scmp.eq.s32.totalorder %s32_s10, 0  ;;  %p43_p12 = scmp.eq.s32.totalorder %s5790_s24, 0 }
  0x6e   : > { %p8303_p2 = scmp.eq.s32.totalorder %s5863_s25, 1  ;;  %p5396_p4 = scmp.lt.s32.totalorder %s5790_s24, 2 }
  0x6f   : > { %s6003_s17 = scalar_select %p33_p9, %s5786_s23, %s35_s15  }
  0x70   : > { %p5997_p1 = por %p8303_p2, %p42_p13  ;;  %p44_p6 = por %p43_p12, %p42_p13 }
  0x71   : > { %s254_s19 = sand.u32 1, %s5786_s23   ;;  %s5271_s14 = smul.u32 2304, %s5790_s24 }
  0x72   : > { %s5270_s20 = smul.u32 144, %s254_s19  ;;  %p6007_p11 = pnand %p5396_p4, %p44_p6 }
  0x73   : > { %s6014_s8 = scalar_lea.hbm %s8143_s0, %s5271_s14  ;;  %s6018_s15 = scalar_lea.sflag [#allocation6], %s254_s19 }
  0x74   : > { %s258_s11 = scalar_lea.vmem [#allocation5], %s5270_s20  ;;  %s5654_s10 = scalar_lea.hbm %s6014_s8, 2304 }
  0x75   : > { %s265_s13 = sshll.u32 %s258_s11, 4  ;;  %p5655_p8 = scmp.ne.s32.totalorder %s6014_s8, %s5654_s10  ;;  %s6016_s13 = int_to_ptr.vmem [resolvable:$true] %s265_s13 }
  0x76   : > { %p5656_p0 = pneg %p6007_p11  ;;  %s5659_s12 = scalar_lea.hbm %s8143_s0, 4608 }
  0x77   : > { %p5660_p7 = scmp.lt.u32.totalorder %s6014_s8, %s8143_s0  ;;  %p5661_p10 = scmp.lt.u32.totalorder %s5659_s12, %s5654_s10 }
  0x78   : > { %p5657_p3 = pnand %p5656_p0, %p5655_p8  ;;  %p5663_p9 = scmp.lt.u32.totalorder %s5654_s10, %s6014_s8 }
  0x79   : > { %p5662_p13 = por %p5661_p10, %p5660_p7 }
  0x7a   : > { %p5658_p5 = pneg %p5657_p3 }
  0x7b   : > { %p5664_p12 = por %p5663_p9, %p5662_p13 }
  0x7d   : > { %p5665_p2 = pnand %p5664_p12, %p5658_p5 }
  0x7f   : > { %5668 = shalt.err (!%p5665_p2)
}
  0x80   : > { %s5669_s19 = scalar_lea.vmem %s6016_s13, 2304  ;;  %s5798_s20 = smov [#allocation5]  }
  0x81   : > { %p5670_p4 = scmp.ne.s32.totalorder %s6016_s13, %s5669_s19  ;;  %s5674_s11 = sshll.u32 %s5798_s20, 4  ;;  %s5675_s11 = int_to_ptr.vmem [resolvable:$false] %s5674_s11 }
  0x82   : > { %s5676_s26 = scalar_lea.vmem %s5675_s11, 4608  ;;  %p5677_p3 = scmp.lt.s32.totalorder %s6016_s13, %s5675_s11 }
  0x83   : > { %p5672_p6 = pnand %p5670_p4, %p5656_p0  ;;  %p5678_p7 = scmp.lt.s32.totalorder %s5676_s26, %s5669_s19 }
  0x85   : > { %p5673_p8 = pneg %p5672_p6  ;;  %p5679_p10 = por %p5678_p7, %p5677_p3 }
  0x87   : > { %p5680_p13 = pnand %p5679_p10, %p5673_p8 }
  0x89   : > { %5683 = shalt.err (!%p5680_p13)
}
  0x8a   : > { %s8306_s30 = smov 4   ;;  %s8307_s10 = smov 64  }
  0x8b   : > { %5384 = dma.hbm_to_vmem [thread:$0]  (!%p6007_p11), %s6014_s8, 2304, %s6016_s13, %s6018_s15, %s8307_s10, %s8307_s10, %s8306_s30  }
  0x8c   : > { %p8308_p0 = scmp.ne.s32.totalorder %s8300_s29, 0 }
  0x8e   : > { %277 = sbr.rel (%p8308_p0) target bundleno = 972 (0x3cc), region = 40 }
  0x95   : > { %s6052_s14 = sand.u32 1, %s5782_s22   ;;  %p8309_p5 = scmp.ne.s32.totalorder %s8298_s27, 0 }
  0x96   : > { %s5272_s9 = smul.u32 144, %s6052_s14  ;;  %s280_s12 = scalar_lea.sflag [#allocation6], %s6052_s14 }
  0x98   : > { %s6058_s7 = scalar_lea.vmem [#allocation5], %s5272_s9 }
  0x99   : > { %5757 = dma.done.wait (%p8309_p5), %s280_s12, 2304  }
  0x9a   : > { %5759 = vsyncadd (%p8309_p5), %s280_s12, 4294964992  ;;  %p8310_p11 = scmp.eq.s32.totalorder %s5863_s25, 0 }
  0x9c   : > { %5761 = dma.done.wait (%p8310_p11), [#allocation9], 32   ;;  %p8311_p9 = pmov %p8310_p11 }
  0x9e   : > { %5763 = vsyncadd (%p8311_p9), [#allocation9], 4294967264  ;;  %p8312_p12 = pmov %p8311_p9 }
  0x9f   : > { %p8313_p2 = pmov %p8311_p9 }
  0xa0   : > { %5765 = dma.done.wait (%p8312_p12), [#allocation12], 9232  }
  0xa1   : > { %5767 = vsyncadd (%p8313_p2), [#allocation12], 4294958064  ;;  %v528_v0 = vlaneseq  ;;  %v8189_v1 = vmov 0   ;;  %v5800_v2 = vmov 0.0   ;;  %v5444_v10 = vld [vmem:[#allocation11] sm:$0xff]   ;;  %v5446_v12 = vld [vmem:[#allocation11 + $0x8] sm:$0xff]  }
  0xa2   : > { %1798 = vmatprep.subr.bf16.mxu0 %v8189_v1  ;;  %1285 = vst [vmem:[#allocation2] sm:$0xff] %v5800_v2  ;;  %1286 = vst [vmem:[#allocation2 + $0x8] sm:$0xff] %v5800_v2  ;;  %v6083_v11 = vld [vmem:[#allocation11 + $0x80] sm:$0xff]   ;;  %v6090_v14 = vld [vmem:[#allocation11 + $0x88] sm:$0xff]   ;;  %s7620_s27 = scalar_lea.vmem [#allocation14], %s5272_s9  ;;  %s5345_s29 = smul.u32 2304, %s5863_s25 }
  0xa3   : > { %1287 = vst [vmem:[#allocation2 + $0x10] sm:$0x7] %v5800_v2  ;;  %1288 = vst [vmem:[#allocation2 + $0x133] sm:$0xff] %v5800_v2  ;;  %v6073_v3 = vshrl.u32 %v528_v0, 7  ;;  %1799 = vmatpush1.bf16.msra.mxu0 %v5444_v10  ;;  %5254 = vmatprep.subr.bf16.mxu1 %v6083_v11  ;;  %v6099_v18 = vld [vmem:[#allocation11 + $0x90] sm:$0xff]   ;;  %v6116_v26 = vld [vmem:[#allocation11 + $0x98] sm:$0xff]  }
  0xa4   : > { %1289 = vst [vmem:[#allocation2 + $0x13b] sm:$0xff] %v5800_v2  ;;  %1290 = vst [vmem:[#allocation2 + $0x143] sm:$0xff] %v5800_v2  ;;  %1800 = vmatprep.subr.bf16.mxu0 %v8189_v1  ;;  %5262 = vmatpush3.bf16.msra.mxu1 %v6083_v11  ;;  %v5448_v20 = vld [vmem:[#allocation11 + $0x10] sm:$0xff]   ;;  %v5450_v30 = vld [vmem:[#allocation11 + $0x18] sm:$0xff]   ;;  %v8318_v0 = vmov 0  ;;  %v8321_v10 = vmov 0  ;;  %s7876_s19 = scalar_lea.hbm %s8148_s5, %s5345_s29 }
  0xa5   : > { %v530_v4 = vadd.s32 8, %v6073_v3  ;;  %v531_v5 = vadd.s32 16, %v6073_v3  ;;  %v6086_v13 = vadd.s32 24, %v6073_v3  ;;  %v6096_v17 = vadd.s32 32, %v6073_v3  ;;  %5255 = vmatprep.subr.bf16.mxu1 %v6090_v14  ;;  %v5452_v34 = vld [vmem:[#allocation11 + $0x20] sm:$0xff]   ;;  %v5454_v39 = vld [vmem:[#allocation11 + $0x28] sm:$0xff]  }
  0xa6   : > { %v6103_v22 = vadd.s32 40, %v6073_v3  ;;  %v6106_v23 = vadd.s32 48, %v6073_v3  ;;  %v6110_v24 = vadd.s32 56, %v6073_v3  ;;  %v6113_v25 = vadd.s32 64, %v6073_v3  ;;  %v6132_v35 = vld [vmem:[#allocation11 + $0xa0] sm:$0xff]   ;;  %v6151_v45 = vld [vmem:[#allocation11 + $0xa8] sm:$0xff]  }
  0xa7   : > { %v6077_v6 = vmul.u32.u64.low 3817748708, %v530_v4  ;;  %v6078_v7 = vmul.u32.u64.high 3817748708, %v530_v4, %v6077_v6  ;;  %v6080_v8 = vmul.u32.u64.low 3817748708, %v531_v5  ;;  %v6081_v9 = vmul.u32.u64.high 3817748708, %v531_v5, %v6080_v8  ;;  %1801 = vmatpush1.bf16.msra.mxu0 %v5446_v12  ;;  %v6141_v40 = vld [vmem:[%s6058_s7] sm:$0xff]   ;;  %v4986_v41 = vld [vmem:[%s6058_s7 + $0x8] sm:$0xff]  }
  0xa8   : > { %1802 = vmatprep.subr.bf16.mxu0 %v8189_v1  ;;  %5263 = vmatpush3.bf16.msra.mxu1 %v6090_v14  ;;  %v6119_v29 = vadd.s32 72, %v6073_v3  ;;  %v6122_v31 = vadd.s32 80, %v6073_v3  ;;  %v6126_v32 = vadd.s32 88, %v6073_v3  ;;  %v6129_v33 = vadd.s32 96, %v6073_v3  ;;  %v6144_v42 = vld [vmem:[#allocation8] ss:$0 sm:$0xff] }
  0xa9   : > { %v582_v15 = vshrl.u32 %v6078_v7, 4  ;;  %v593_v16 = vshrl.u32 %v6081_v9, 4  ;;  %5256 = vmatprep.subr.bf16.mxu1 %v6099_v18  ;;  %v6135_v36 = vadd.s32 104, %v6073_v3  ;;  %v4827_v46 = vunpack.c.h.bf16 %v6141_v40  ;;  %v6163_v51 = vld [vmem:[#allocation10] ss:$0 sm:$0xff]  ;;  %v5456_v61 = vld [vmem:[#allocation11 + $0x30] sm:$0xff]  }
  0xaa   : > { %v6147_v43 = vmul.u32.u64.low 3817748708, %v6086_v13  ;;  %v6148_v44 = vmul.u32.u64.high 3817748708, %v6086_v13, %v6147_v43  ;;  %v4830_v47 = vunpack.c.l.bf16 %v4986_v41  ;;  %v4831_v48 = vunpack.c.h.bf16 %v4986_v41  ;;  %v4987_v60 = vld [vmem:[%s6058_s7 + $0x10] sm:$0xff]   ;;  %s4502_s8 = sshll.u32 %s7620_s27, 4  ;;  %s4484_s20 = scalar_lea.sflag [#allocation7], %s6052_s14  ;;  %s7883_s8 = int_to_ptr.vmem [resolvable:$true] %s4502_s8 }
  0xab   : > { %v583_v19 = vmul.u32 18, %v582_v15  ;;  %v594_v21 = vmul.u32 18, %v593_v16  ;;  %1803 = vmatpush1.bf16.msra.mxu0 %v5448_v20  ;;  %v6161_v50 = vadd.s32 112, %v6073_v3  ;;  %v414_v56 = vmul.f32 %v4827_v46, %v6144_v42  ;;  %v4988_v16 = vld [vmem:[%s6058_s7 + $0x18] sm:$0xff]   ;;  %v4989_v46 = vld [vmem:[%s6058_s7 + $0x20] sm:$0xff]   ;;  %s5684_s11 = scalar_lea.vmem %s7883_s8, 2304 }
  0xac   : > { %1804 = vmatprep.subr.bf16.mxu0 %v8189_v1  ;;  %5264 = vmatpush3.bf16.msra.mxu1 %v6099_v18  ;;  %v6174_v54 = vmul.u32.u64.low 3817748708, %v6096_v17  ;;  %v6175_v55 = vmul.u32.u64.high 3817748708, %v6096_v17, %v6174_v54  ;;  %v415_v57 = vmul.f32 %v4830_v47, %v6144_v42  ;;  %v416_v58 = vmul.f32 %v4831_v48, %v6144_v42  ;;  %v5458_v47 = vld [vmem:[#allocation11 + $0x38] sm:$0xff]   ;;  %p5685_p4 = scmp.ne.s32.totalorder %s7883_s8, %s5684_s11  ;;  %s5803_s26 = smov [#allocation14]  }
  0xad   : > { %v584_v27 = vsub.s32 %v530_v4, %v583_v19  ;;  %v595_v28 = vsub.s32 %v531_v5, %v594_v21  ;;  %5257 = vmatprep.subr.bf16.mxu1 %v6116_v26  ;;  %v4826_v62 = vunpack.c.l.bf16 %v6141_v40  ;;  %v604_v63 = vshrl.u32 %v6148_v44, 4  ;;  %v6192_v4 = vld [vmem:[#allocation11 + $0xb0] sm:$0xff]   ;;  %s5688_s30 = sshll.u32 %s5803_s26, 4  ;;  %s5689_s30 = int_to_ptr.vmem [resolvable:$false] %s5688_s30 }
  0xae   : > { %v4834_v2 = vunpack.c.l.bf16 %v4987_v60  ;;  %v457_v5 = vadd.f32 %v6163_v51, %v414_v56  ;;  %v458_v6 = vadd.f32 %v6163_v51, %v415_v57  ;;  %v459_v7 = vadd.f32 %v6163_v51, %v416_v58  ;;  %p5686_p6 = pnand %p5685_p4, %p5997_p1  ;;  %s5690_s10 = scalar_lea.vmem %s5689_s30, 4608 }
  0xaf   : > { %vm962_vm0 = vcmp.ne.s32.totalorder %v584_v27, 0  ;;  %vm963_vm1 = vcmp.ne.s32.totalorder %v595_v28, 0  ;;  %1805 = vmatpush1.bf16.msra.mxu0 %v5450_v30  ;;  %vm998_vm2 = vcmp.lt.s32.totalorder %v584_v27, 0  ;;  %v1070_v37 = vadd.s32 18, %v584_v27  ;;  %p5691_p3 = scmp.lt.s32.totalorder %s7883_s8, %s5689_s30  ;;  %p5692_p7 = scmp.lt.s32.totalorder %s5690_s10, %s5684_s11 }
  0xb0   : > { %1806 = vmatprep.subr.bf16.mxu0 %v8189_v1  ;;  %vm999_vm3 = vcmp.lt.s32.totalorder %v595_v28, 0  ;;  %v1071_v38 = vadd.s32 18, %v595_v28  ;;  %5265 = vmatpush3.bf16.msra.mxu1 %v6116_v26  ;;  %vm6156_vm4 = vmand %vm998_vm2, %vm962_vm0  ;;  %v4835_v8 = vunpack.c.h.bf16 %v4987_v60  ;;  %v605_v9 = vmul.u32 18, %v604_v63  ;;  %p5687_p8 = pneg %p5686_p6 }
  0xb1   : > { %5258 = vmatprep.subr.bf16.mxu1 %v6132_v35  ;;  %vm6167_vm5 = vmand %vm999_vm3, %vm963_vm1  ;;  %v1106_v53 = vsel %vm6156_vm4, %v1070_v37, %v584_v27  ;;  %v417_v12 = vmul.f32 %v4834_v2, %v6144_v42  ;;  %v615_v15 = vshrl.u32 %v6175_v55, 4  ;;  %v493_v19 = vmax.f32 %v457_v5, 0.0  ;;  %p5693_p10 = por %p5692_p7, %p5691_p3 }
  0xb2   : > { %v1107_v59 = vsel %vm6167_vm5, %v1071_v38, %v595_v28  ;;  %vm6187_vm6 = vcmp.lt.s32.totalorder %v1106_v53, 16  ;;  %v494_v20 = vmax.f32 %v458_v6, 0.0  ;;  %v418_v21 = vmul.f32 %v4835_v8, %v6144_v42  ;;  %v6210_v28 = vld [vmem:[#allocation11 + $0xb8] sm:$0xff]  }
  0xb3   : > { %1807 = vmatpush1.bf16.msra.mxu0 %v5452_v34  ;;  %v8319_v0 = vsel %vm6187_vm6, 4294967295, %v8318_v0  ;;  %vm6197_vm7 = vcmp.lt.s32.totalorder %v1107_v59, 16  ;;  %v6207_v27 = vadd.s32 120, %v6073_v3  ;;  %v606_v30 = vsub.s32 %v6086_v13, %v605_v9  ;;  %p5694_p13 = pnand %p5693_p10, %p5687_p8 }
  0xb4   : > { %1808 = vmatprep.subr.bf16.mxu0 %v8189_v1  ;;  %5266 = vmatpush3.bf16.msra.mxu1 %v6132_v35  ;;  %8320 = vst [vmem:[#allocation22_spill] sm:$0xff] %v8319_v0  ;;  %v8322_v10 = vsel %vm6197_vm7, 4294967295, %v8321_v10  ;;  %v460_v34 = vadd.f32 %v6163_v51, %v417_v12  ;;  %v616_v37 = vmul.u32 18, %v615_v15  ;;  %v4838_v38 = vunpack.c.l.bf16 %v4988_v16 }
  0xb5   : > { %5259 = vmatprep.subr.bf16.mxu1 %v6151_v45  ;;  %8323 = vst [vmem:[#allocation23_spill] sm:$0xff] %v8322_v10  ;;  %v1250_v41 = vsel %vm6187_vm6, %v493_v19, 0.0  ;;  %v1251_v43 = vsel %vm6197_vm7, %v494_v20, 0.0  ;;  %v4839_v44 = vunpack.c.h.bf16 %v4988_v16  ;;  %vm964_vm8 = vcmp.ne.s32.totalorder %v606_v30, 0 }
  0xb6   : > { %vm1000_vm9 = vcmp.lt.s32.totalorder %v606_v30, 0  ;;  %v1072_v13 = vadd.s32 18, %v606_v30  ;;  %1294 = vst [vmem:[#allocation2 + $0x1b] sm:$0xff] %v1250_v41  ;;  %1295 = vst [vmem:[#allocation2 + $0x23] sm:$0xff] %v1251_v43  ;;  %v6221_v48 = vadd.f32 %v6163_v51, %v418_v21  ;;  %v496_v49 = vmax.f32 %v460_v34, 0.0 }
  0xb7   : > { %1809 = vmatpush1.bf16.msra.mxu0 %v5454_v39  ;;  %v495_v39 = vmax.f32 %v459_v7, 0.0  ;;  %vm1036_vm10 = vmand %vm1000_vm9, %vm964_vm8  ;;  %v617_v52 = vsub.s32 %v6096_v17, %v616_v37  ;;  %v6226_v53 = vmul.u32.u64.low 3817748708, %v6103_v22  ;;  %v6227_v54 = vmul.u32.u64.high 3817748708, %v6103_v22, %v6226_v53 }
  0xb8   : > { %1810 = vmatprep.subr.bf16.mxu0 %v8189_v1  ;;  %5267 = vmatpush3.bf16.msra.mxu1 %v6151_v45  ;;  %v1108_v55 = vsel %vm1036_vm10, %v1072_v13, %v606_v30  ;;  %v419_v56 = vmul.f32 %v4838_v38, %v6144_v42  ;;  %v420_v57 = vmul.f32 %v4839_v44, %v6144_v42  ;;  %v4842_v58 = vunpack.c.l.bf16 %v4989_v46  ;;  %v5462_v30 = vld [vmem:[#allocation11 + $0x48] sm:$0xff]  }
  0xb9   : > { %5260 = vmatprep.subr.bf16.mxu1 %v6192_v4  ;;  %vm6233_vm11 = vcmp.lt.s32.totalorder %v1108_v55, 16  ;;  %v8324_v59 = vmov 0  ;;  %vm965_vm12 = vcmp.ne.s32.totalorder %v617_v52, 0  ;;  %vm1001_vm13 = vcmp.lt.s32.totalorder %v617_v52, 0  ;;  %v4990_v38 = vld [vmem:[%s6058_s7 + $0x28] sm:$0xff]  }
  0xba   : > { %v8325_v59 = vsel %vm6233_vm11, 4294967295, %v8324_v59  ;;  %v1073_v17 = vadd.s32 18, %v617_v52  ;;  %v1252_v60 = vsel %vm6233_vm11, %v495_v39, 0.0  ;;  %v497_v63 = vmax.f32 %v6221_v48, 0.0  ;;  %vm1037_vm14 = vmand %vm1001_vm13, %vm965_vm12 }
  0xbb   : > { %1811 = vmatpush1.bf16.msra.mxu0 %v5456_v61  ;;  %8326 = vst [vmem:[#allocation24_spill] sm:$0xff] %v8325_v59  ;;  %v5460_v61 = vld [vmem:[#allocation11 + $0x40] sm:$0xff]   ;;  %v6241_v2 = vadd.f32 %v6163_v51, %v419_v56  ;;  %v4843_v5 = vunpack.c.h.bf16 %v4989_v46  ;;  %1296 = vst [vmem:[#allocation2 + $0x2b] sm:$0xff] %v1252_v60  ;;  %v626_v6 = vshrl.u32 %v6227_v54, 4  ;;  %v8327_v12 = vmov 0 }
  0xbc   : > { %1812 = vmatprep.subr.bf16.mxu0 %v8189_v1  ;;  %5268 = vmatpush3.bf16.msra.mxu1 %v6192_v4  ;;  %v1109_v7 = vsel %vm1037_vm14, %v1073_v17, %v617_v52  ;;  %v6246_v8 = vmul.u32.u64.low 3817748708, %v6106_v23  ;;  %v6247_v9 = vmul.u32.u64.high 3817748708, %v6106_v23, %v6246_v8  ;;  %v6255_v15 = vadd.f32 %v6163_v51, %v420_v57  ;;  %v5464_v17 = vld [vmem:[#allocation11 + $0x50] sm:$0xff]  }
  0xbd   : > { %5261 = vmatprep.subr.bf16.mxu1 %v6210_v28  ;;  %vm6250_vm15 = vcmp.lt.s32.totalorder %v1109_v7, 16  ;;  %v498_v16 = vmax.f32 %v6241_v2, 0.0  ;;  %v421_v19 = vmul.f32 %v4842_v58, %v6144_v42  ;;  %v627_v20 = vmul.u32 18, %v626_v6 }
  0xbe   : > { %v8328_v12 = vsel %vm6250_vm15, 4294967295, %v8327_v12  ;;  %v1253_v21 = vsel %vm6250_vm15, %v496_v49, 0.0  ;;  %v6263_v34 = vmul.u32.u64.low 3817748708, %v6110_v24  ;;  %v6264_v37 = vmul.u32.u64.high 3817748708, %v6110_v24, %v6263_v34  ;;  %v1477_v49 = vld [vmem:[#allocation2 + $0x22] sm:$0xff] }
  0xbf   : > { %1813 = vmatpush1.bf16.msra.mxu0 %v5458_v47  ;;  %8329 = vst [vmem:[#allocation25_spill] sm:$0xff] %v8328_v12  ;;  %1297 = vst [vmem:[#allocation2 + $0x33] sm:$0xff] %v1253_v21  ;;  %v422_v39 = vmul.f32 %v4843_v5, %v6144_v42  ;;  %v6269_v41 = vadd.f32 %v6163_v51, %v421_v19  ;;  %v6272_v43 = vmul.u32.u64.low 3817748708, %v6113_v25  ;;  %v6273_v44 = vmul.u32.u64.high 3817748708, %v6113_v25, %v6272_v43  ;;  %v5466_v34 = vld [vmem:[#allocation11 + $0x58] sm:$0xff]  }
  0xc0   : > { %1814 = vmatprep.subr.bf16.mxu0 %v8189_v1  ;;  %5269 = vmatpush3.bf16.msra.mxu1 %v6210_v28  ;;  %v628_v46 = vsub.s32 %v6103_v22, %v627_v20  ;;  %v637_v47 = vshrl.u32 %v6247_v9, 4  ;;  %v6279_v13 = vmul.u32.u64.low 3817748708, %v6119_v29  ;;  %v6280_v48 = vmul.u32.u64.high 3817748708, %v6119_v29, %v6279_v13 }
  0xc1   : > { %2651 = vmatprep.subr.bf16.mxu1 %v8189_v1  ;;  %v499_v52 = vmax.f32 %v6255_v15, 0.0  ;;  %v6284_v53 = vadd.f32 %v6163_v51, %v422_v39  ;;  %v4846_v54 = vunpack.c.l.bf16 %v4990_v38  ;;  %v6289_v55 = vmul.f32 %v4826_v62, %v6144_v42 }
  0xc2   : > { %vm966_vm0 = vcmp.ne.s32.totalorder %v628_v46, 0  ;;  %vm1002_vm1 = vcmp.lt.s32.totalorder %v628_v46, 0  ;;  %v1074_v22 = vadd.s32 18, %v628_v46  ;;  %v638_v56 = vmul.u32 18, %v637_v47  ;;  %v1478_v57 = vld [vmem:[#allocation2 + $0x2a] sm:$0xff] }
  0xc3   : > { %1815 = vmatpush1.bf16.msra.mxu0 %v5460_v61  ;;  %vm1038_vm2 = vmand %vm1002_vm1, %vm966_vm0  ;;  %v648_v58 = vshrl.u32 %v6264_v37, 4  ;;  %v500_v60 = vmax.f32 %v6269_v41, 0.0  ;;  %v659_v61 = vshrl.u32 %v6273_v44, 4  ;;  %v4847_v5 = vunpack.c.h.bf16 %v4990_v38 }
  0xc4   : > { %1816 = vmatprep.subr.bf16.mxu0 %v8189_v1  ;;  %v1511_v6 = vpack.c.bf16 %v1478_v57, %v1477_v49  ;;  %v1110_v7 = vsel %vm1038_vm2, %v1074_v22, %v628_v46  ;;  %v639_v40 = vsub.s32 %v6106_v23, %v638_v56  ;;  %v670_v62 = vshrl.u32 %v6280_v48, 4  ;;  %v4991_v49 = vld [vmem:[%s6058_s7 + $0x30] sm:$0xff]  }
  0xc5   : > { %vm6297_vm3 = vcmp.lt.s32.totalorder %v1110_v7, 16  ;;  %v8330_v8 = vmov 0  ;;  %v649_v9 = vmul.u32 18, %v648_v58  ;;  %v660_v19 = vmul.u32 18, %v659_v61 }
  0xc6   : > { %v8331_v8 = vsel %vm6297_vm3, 4294967295, %v8330_v8  ;;  %v423_v20 = vmul.f32 %v4846_v54, %v6144_v42  ;;  %5118 = vmatprep.mubr.bf16.mxu1 %v1511_v6  ;;  %v1254_v21 = vsel %vm6297_vm3, %v497_v63, 0.0  ;;  %vm967_vm4 = vcmp.ne.s32.totalorder %v639_v40, 0  ;;  %v4992_v6 = vld [vmem:[%s6058_s7 + $0x38] sm:$0xff]  }
  0xc7   : > { %1817 = vmatpush1.bf16.msra.mxu0 %v5462_v30  ;;  %8332 = vst [vmem:[#allocation26_spill] sm:$0xff] %v8331_v8  ;;  %vm1003_vm5 = vcmp.lt.s32.totalorder %v639_v40, 0  ;;  %v1075_v30 = vadd.s32 18, %v639_v40  ;;  %1298 = vst [vmem:[#allocation2 + $0x3b] sm:$0xff] %v1254_v21  ;;  %v650_v23 = vsub.s32 %v6110_v24, %v649_v9  ;;  %v661_v37 = vsub.s32 %v6113_v25, %v660_v19  ;;  %v5468_v25 = vld [vmem:[#allocation11 + $0x60] sm:$0xff]  }
  0xc8   : > { %1818 = vmatprep.subr.bf16.mxu0 %v8189_v1  ;;  %vm1039_vm8 = vmand %vm1003_vm5, %vm967_vm4  ;;  %v671_v38 = vmul.u32 18, %v670_v62  ;;  %v424_v39 = vmul.f32 %v4847_v5, %v6144_v42  ;;  %v501_v44 = vmax.f32 %v6284_v53, 0.0  ;;  %v8333_v47 = vmov 0  ;;  %v1479_v53 = vld [vmem:[#allocation2 + $0x32] sm:$0xff] }
  0xc9   : > { %v1111_v43 = vsel %vm1039_vm8, %v1075_v30, %v639_v40  ;;  %v6310_v63 = vmul.u32.u64.low 3817748708, %v6122_v31  ;;  %v6311_v46 = vmul.u32.u64.high 3817748708, %v6122_v31, %v6310_v63  ;;  %vm968_vm9 = vcmp.ne.s32.totalorder %v650_v23, 0  ;;  %v5461_v40 = vld [vmem:[#allocation11 + $0xc0] sm:$0xff]  }
  0xca   : > { %vm1004_vm10 = vcmp.lt.s32.totalorder %v650_v23, 0  ;;  %v1076_v24 = vadd.s32 18, %v650_v23  ;;  %vm6313_vm12 = vcmp.lt.s32.totalorder %v1111_v43, 16  ;;  %v672_v48 = vsub.s32 %v6119_v29, %v671_v38 }
  0xcb   : > { %1819 = vmatpush1.bf16.msra.mxu0 %v5464_v17  ;;  %v8334_v47 = vsel %vm6313_vm12, 4294967295, %v8333_v47  ;;  %vm1040_vm13 = vmand %vm1004_vm10, %vm968_vm9  ;;  %v1255_v13 = vsel %vm6313_vm12, %v498_v16, 0.0  ;;  %vm969_vm14 = vcmp.ne.s32.totalorder %v661_v37, 0  ;;  %vm1005_vm0 = vcmp.lt.s32.totalorder %v661_v37, 0 }
  0xcc   : > { %1820 = vmatprep.subr.bf16.mxu0 %v8189_v1  ;;  %8335 = vst [vmem:[#allocation27_spill] sm:$0xff] %v8334_v47  ;;  %v1112_v54 = vsel %vm1040_vm13, %v1076_v24, %v650_v23  ;;  %1299 = vst [vmem:[#allocation2 + $0x43] sm:$0xff] %v1255_v13  ;;  %v1077_v56 = vadd.s32 18, %v661_v37  ;;  %v6328_v2 = vadd.f32 %v6163_v51, %v423_v20  ;;  %v8338_v29 = vmov 0 }
  0xcd   : > { %vm6323_vm1 = vmand %vm1005_vm0, %vm969_vm14  ;;  %v6331_v16 = vadd.f32 %v6163_v51, %v424_v39  ;;  %vm6333_vm2 = vcmp.lt.s32.totalorder %v1112_v54, 16  ;;  %vm970_vm4 = vcmp.ne.s32.totalorder %v672_v48, 0  ;;  %vm1006_vm5 = vcmp.lt.s32.totalorder %v672_v48, 0 }
  0xce   : > { %v8339_v29 = vsel %vm6333_vm2, 4294967295, %v8338_v29  ;;  %v1078_v57 = vadd.s32 18, %v672_v48  ;;  %v1256_v58 = vsel %vm6333_vm2, %v499_v52, 0.0  ;;  %vm1042_vm8 = vmand %vm1006_vm5, %vm970_vm4  ;;  %v1113_v17 = vsel %vm6323_vm1, %v1077_v56, %v661_v37  ;;  %v1480_v7 = vld [vmem:[#allocation2 + $0x3a] sm:$0xff] }
  0xcf   : > { %1821 = vmatpush1.bf16.msra.mxu0 %v5466_v34  ;;  %8340 = vst [vmem:[#allocation28_spill] sm:$0xff] %v8339_v29  ;;  %v681_v61 = vshrl.u32 %v6311_v46, 4  ;;  %v4850_v5 = vunpack.c.l.bf16 %v4991_v49  ;;  %1300 = vst [vmem:[#allocation2 + $0x4b] sm:$0xff] %v1256_v58  ;;  %vm6346_vm9 = vcmp.lt.s32.totalorder %v1113_v17, 16  ;;  %v8341_v9 = vmov 0  ;;  %v5470_v34 = vld [vmem:[#allocation11 + $0x68] sm:$0xff]  }
  0xd0   : > { %1822 = vmatprep.subr.bf16.mxu0 %v8189_v1  ;;  %v1114_v62 = vsel %vm1042_vm8, %v1078_v57, %v672_v48  ;;  %v8342_v9 = vsel %vm6346_vm9, 4294967295, %v8341_v9  ;;  %v6351_v15 = vmul.u32.u64.low 3817748708, %v6126_v32  ;;  %v6352_v19 = vmul.u32.u64.high 3817748708, %v6126_v32, %v6351_v15  ;;  %v5463_v46 = vld [vmem:[#allocation11 + $0xc8] sm:$0xff]  }
  0xd1   : > { %8343 = vst [vmem:[#allocation29_spill] sm:$0xff] %v8342_v9  ;;  %v1512_v52 = vpack.c.bf16 %v1480_v7, %v1479_v53  ;;  %vm6354_vm10 = vcmp.lt.s32.totalorder %v1114_v62, 16  ;;  %v8344_v20 = vmov 0  ;;  %v1257_v21 = vsel %vm6346_vm9, %v500_v60, 0.0  ;;  %v5472_v53 = vld [vmem:[#allocation11 + $0x70] sm:$0xff]  }
  0xd2   : > { %v8345_v20 = vsel %vm6354_vm10, 4294967295, %v8344_v20  ;;  %v682_v30 = vmul.u32 18, %v681_v61  ;;  %v1258_v23 = vsel %vm6354_vm10, %v501_v44, 0.0  ;;  %1301 = vst [vmem:[#allocation2 + $0x53] sm:$0xff] %v1257_v21  ;;  %v4851_v37 = vunpack.c.h.bf16 %v4991_v49  ;;  %v4993_v15 = vld [vmem:[%s6058_s7 + $0x40] sm:$0xff]  }
  0xd3   : > { %8346 = vst [vmem:[#allocation30_spill] sm:$0xff] %v8345_v20  ;;  %1823 = vmatpush1.bf16.msra.mxu0 %v5468_v25  ;;  %v425_v38 = vmul.f32 %v4850_v5, %v6144_v42  ;;  %v4854_v39 = vunpack.c.l.bf16 %v4992_v6  ;;  %5119 = vmatmul.mubr.bf16.vlgmr.msra.gmra.mrb[0].mxu1 %v1512_v52  ;;  %1302 = vst [vmem:[#allocation2 + $0x5b] sm:$0xff] %v1258_v23  ;;  %v6368_v43 = vmul.u32.u64.low 3817748708, %v6129_v33  ;;  %v6369_v60 = vmul.u32.u64.high 3817748708, %v6129_v33, %v6368_v43  ;;  %v1481_v48 = vld [vmem:[#allocation2 + $0x42] sm:$0xff] }
  0xd4   : > { %1824 = vmatprep.subr.bf16.mxu0 %v8189_v1  ;;  %v683_v41 = vsub.s32 %v6122_v31, %v682_v30  ;;  %v4855_v63 = vunpack.c.h.bf16 %v4992_v6  ;;  %2652 = vmatpush1.bf16.msra.mxu1 %v5461_v40  ;;  %v502_v44 = vmax.f32 %v6328_v2, 0.0  ;;  %v692_v24 = vshrl.u32 %v6352_v19, 4  ;;  %v5465_v6 = vld [vmem:[#allocation11 + $0xd0] sm:$0xff]  }
  0xd5   : > { %v426_v25 = vmul.f32 %v4851_v37, %v6144_v42  ;;  %v6375_v13 = vadd.f32 %v6163_v51, %v425_v38  ;;  %2653 = vmatprep.subr.bf16.mxu1 %v8189_v1  ;;  %v427_v49 = vmul.f32 %v4854_v39, %v6144_v42  ;;  %v503_v54 = vmax.f32 %v6331_v16, 0.0  ;;  %v5474_v38 = vld [vmem:[#allocation11 + $0x78] sm:$0xff]  }
  0xd6   : > { %vm971_vm13 = vcmp.ne.s32.totalorder %v683_v41, 0  ;;  %vm1007_vm14 = vcmp.lt.s32.totalorder %v683_v41, 0  ;;  %v1079_v31 = vadd.s32 18, %v683_v41  ;;  %v693_v22 = vmul.u32 18, %v692_v24  ;;  %v1482_v57 = vld [vmem:[#allocation2 + $0x4a] sm:$0xff] }
  0xd7   : > { %1825 = vmatpush1.bf16.msra.mxu0 %v5470_v34  ;;  %vm1043_vm0 = vmand %vm1007_vm14, %vm971_vm13  ;;  %v6381_v56 = vadd.f32 %v6163_v51, %v426_v25  ;;  %v428_v2 = vmul.f32 %v4855_v63, %v6144_v42  ;;  %v703_v17 = vshrl.u32 %v6369_v60, 4  ;;  %v1513_v16 = vpack.c.bf16 %v1482_v57, %v1481_v48  ;;  %v1402_v48 = vld [vmem:[#allocation2 + $0x9] sm:$0xff] }
  0xd8   : > { %1826 = vmatprep.subr.bf16.mxu0 %v8189_v1  ;;  %v1115_v58 = vsel %vm1043_vm0, %v1079_v31, %v683_v41  ;;  %v6387_v61 = vmul.u32.u64.low 3817748708, %v6135_v36  ;;  %v6388_v5 = vmul.u32.u64.high 3817748708, %v6135_v36, %v6387_v61  ;;  %2654 = vmatpush1.bf16.msra.mxu1 %v5463_v46  ;;  %v694_v7 = vsub.s32 %v6126_v32, %v693_v22  ;;  %v5467_v41 = vld [vmem:[#allocation11 + $0xd8] sm:$0xff]  }
  0xd9   : > { %vm6391_vm1 = vcmp.lt.s32.totalorder %v1115_v58, 16  ;;  %v8347_v40 = vmov 0  ;;  %v504_v62 = vmax.f32 %v6375_v13, 0.0  ;;  %v1483_v19 = vld [vmem:[#allocation2 + $0x52] sm:$0xff]  ;;  %2655 = vmatprep.subr.bf16.mxu1 %v8189_v1  ;;  %v505_v21 = vmax.f32 %v6381_v56, 0.0  ;;  %5122 = vmatprep.mubr.bf16.mxu1 %v1513_v16  ;;  %v1401_v13 = vld [vmem:[#allocation2 + $0x1] sm:$0xff] }
  0xda   : > { %v8348_v40 = vsel %vm6391_vm1, 4294967295, %v8347_v40  ;;  %v1259_v52 = vsel %vm6391_vm1, %v502_v44, 0.0  ;;  %v704_v30 = vmul.u32 18, %v703_v17  ;;  %v6402_v34 = vadd.f32 %v6163_v51, %v427_v49  ;;  %v1484_v32 = vld [vmem:[#allocation2 + $0x5a] sm:$0xff] }
  0xdb   : > { %8349 = vst [vmem:[#allocation31_spill] sm:$0xff] %v8348_v40  ;;  %1827 = vmatpush1.bf16.msra.mxu0 %v5472_v53  ;;  %vm972_vm4 = vcmp.ne.s32.totalorder %v694_v7, 0  ;;  %vm1008_vm5 = vcmp.lt.s32.totalorder %v694_v7, 0  ;;  %v1080_v23 = vadd.s32 18, %v694_v7  ;;  %1303 = vst [vmem:[#allocation2 + $0x63] sm:$0xff] %v1259_v52  ;;  %v6405_v37 = vadd.f32 %v6163_v51, %v428_v2  ;;  %v5469_v16 = vld [vmem:[#allocation11 + $0xe0] sm:$0xff]  }
  0xdc   : > { %1828 = vmatprep.subr.bf16.mxu0 %v8189_v1  ;;  %v1514_v39 = vpack.c.bf16 %v1484_v32, %v1483_v19  ;;  %vm1044_vm8 = vmand %vm1008_vm5, %vm972_vm4  ;;  %v705_v43 = vsub.s32 %v6129_v33, %v704_v30  ;;  %v714_v60 = vshrl.u32 %v6388_v5, 4  ;;  %v4858_v63 = vunpack.c.l.bf16 %v4993_v15  ;;  %2656 = vmatpush1.bf16.msra.mxu1 %v5465_v6 }
  0xdd   : > { %v1116_v46 = vsel %vm1044_vm8, %v1080_v23, %v694_v7  ;;  %v6411_v44 = vmul.u32.u64.low 3817748708, %v6161_v50  ;;  %v6412_v24 = vmul.u32.u64.high 3817748708, %v6161_v50, %v6411_v44  ;;  %v4859_v25 = vunpack.c.h.bf16 %v4993_v15  ;;  %2657 = vmatprep.subr.bf16.mxu1 %v8189_v1 }
  0xde   : > { %5123 = vmatmul.mubr.bf16.gmra.mrb[4].mxu1 %v1514_v39  ;;  %vm6415_vm13 = vcmp.lt.s32.totalorder %v1116_v46, 16  ;;  %v8350_v31 = vmov 0  ;;  %v715_v33 = vmul.u32 18, %v714_v60  ;;  %vm973_vm14 = vcmp.ne.s32.totalorder %v705_v43, 0 }
  0xdf   : > { %v8351_v31 = vsel %vm6415_vm13, 4294967295, %v8350_v31  ;;  %vm1009_vm0 = vcmp.lt.s32.totalorder %v705_v43, 0  ;;  %v1260_v49 = vsel %vm6415_vm13, %v503_v54, 0.0  ;;  %v1081_v22 = vadd.s32 18, %v705_v43  ;;  %1829 = vmatpush1.bf16.msra.mxu0 %v5474_v38 }
  0xe0   : > { %8352 = vst [vmem:[#allocation32_spill] sm:$0xff] %v8351_v31  ;;  %vm6421_vm4 = vmand %vm1009_vm0, %vm973_vm14  ;;  %v6426_v2 = vmul.u32.u64.low 3817748708, %v6207_v27  ;;  %v6427_v57 = vmul.u32.u64.high 3817748708, %v6207_v27, %v6426_v2  ;;  %v716_v58 = vsub.s32 %v6135_v36, %v715_v33  ;;  %v429_v17 = vmul.f32 %v4858_v63, %v6144_v42  ;;  %5098 = vmatprep.subr.bf16.mxu0 %v6083_v11  ;;  %2658 = vmatpush1.bf16.msra.mxu1 %v5467_v41 }
  0xe1   : > { %1304 = vst [vmem:[#allocation2 + $0x6b] sm:$0xff] %v1260_v49  ;;  %v430_v61 = vmul.f32 %v4859_v25, %v6144_v42  ;;  %v6433_v5 = vadd.s32 128, %v6073_v3  ;;  %v1117_v54 = vsel %vm6421_vm4, %v1081_v22, %v705_v43  ;;  %v725_v6 = vshrl.u32 %v6412_v24, 4  ;;  %2659 = vmatprep.subr.bf16.mxu1 %v8189_v1 }
  0xe2   : > { %v6440_v7 = vadd.s32 136, %v6073_v3  ;;  %v1437_v36 = vpack.c.bf16 %v1402_v48, %v1401_v13  ;;  %vm974_vm5 = vcmp.ne.s32.totalorder %v716_v58, 0  ;;  %vm1010_vm8 = vcmp.lt.s32.totalorder %v716_v58, 0  ;;  %v1485_v63 = vld [vmem:[#allocation2 + $0x62] sm:$0xff] }
  0xe3   : > { %v1082_v15 = vadd.s32 18, %v716_v58  ;;  %vm6442_vm14 = vcmp.lt.s32.totalorder %v1117_v54, 16  ;;  %v8355_v19 = vmov 0  ;;  %vm1046_vm0 = vmand %vm1010_vm8, %vm974_vm5  ;;  %v506_v30 = vmax.f32 %v6402_v34, 0.0  ;;  %v5471_v34 = vld [vmem:[#allocation11 + $0xe8] sm:$0xff]  }
  0xe4   : > { %v8356_v19 = vsel %vm6442_vm14, 4294967295, %v8355_v19  ;;  %v1261_v52 = vsel %vm6442_vm14, %v504_v62, 0.0  ;;  %v726_v32 = vmul.u32 18, %v725_v6  ;;  %v736_v23 = vshrl.u32 %v6427_v57, 4  ;;  %1830 = vmatprep.mubr.bf16.mxu0 %v1437_v36  ;;  %2660 = vmatpush1.bf16.msra.mxu1 %v5469_v16  ;;  %v4995_v16 = vld [vmem:[%s6058_s7 + $0x50] sm:$0xff]  }
  0xe5   : > { %8357 = vst [vmem:[#allocation33_spill] sm:$0xff] %v8356_v19  ;;  %v1118_v38 = vsel %vm1046_vm0, %v1082_v15, %v716_v58  ;;  %1305 = vst [vmem:[#allocation2 + $0x73] sm:$0xff] %v1261_v52  ;;  %v507_v39 = vmax.f32 %v6405_v37, 0.0  ;;  %v6453_v41 = vmul.u32.u64.low 3817748708, %v6433_v5  ;;  %v6454_v43 = vmul.u32.u64.high 3817748708, %v6433_v5, %v6453_v41  ;;  %v4994_v37 = vld [vmem:[%s6058_s7 + $0x48] sm:$0xff]   ;;  %2661 = vmatprep.subr.bf16.mxu1 %v8189_v1 }
  0xe6   : > { %v5801_v60 = vmov 0.0|0.0   ;;  %vm6456_vm4 = vcmp.lt.s32.totalorder %v1118_v38, 16  ;;  %v8358_v62 = vmov 0  ;;  %v727_v46 = vsub.s32 %v6161_v50, %v726_v32  ;;  %v5473_v58 = vld [vmem:[#allocation11 + $0xf0] sm:$0xff]  }
  0xe7   : > { %1831 = vmatmul.mubr.bf16.vlgmr.msra.gmra.mrb[0].mxu0 %v5801_v60  ;;  %v8359_v62 = vsel %vm6456_vm4, 4294967295, %v8358_v62  ;;  %v737_v44 = vmul.u32 18, %v736_v23  ;;  %v6462_v24 = vadd.f32 %v6163_v51, %v429_v17  ;;  %v1262_v25 = vsel %vm6456_vm4, %v505_v21, 0.0 }
  0xe8   : > { %8360 = vst [vmem:[#allocation34_spill] sm:$0xff] %v8359_v62  ;;  %5099 = vmatpush3.bf16.msra.mxu0 %v6083_v11  ;;  %v6472_v13 = vadd.f32 %v6163_v51, %v430_v61  ;;  %v6475_v48 = vmul.u32.u64.low 3817748708, %v6440_v7  ;;  %v6476_v50 = vmul.u32.u64.high 3817748708, %v6440_v7, %v6475_v48  ;;  %v1486_v33 = vld [vmem:[#allocation2 + $0x6a] sm:$0xff]  ;;  %1306 = vst [vmem:[#allocation2 + $0x7b] sm:$0xff] %v1262_v25  ;;  %vm975_vm5 = vcmp.ne.s32.totalorder %v727_v46, 0  ;;  %2662 = vmatpush1.bf16.msra.mxu1 %v5471_v34 }
  0xe9   : > { %5100 = vmatprep.subr.bf16.mxu0 %v6090_v14  ;;  %v738_v11 = vsub.s32 %v6207_v27, %v737_v44  ;;  %vm1011_vm8 = vcmp.lt.s32.totalorder %v727_v46, 0  ;;  %v1083_v56 = vadd.s32 18, %v727_v46  ;;  %v1515_v49 = vpack.c.bf16 %v1486_v33, %v1485_v63  ;;  %2663 = vmatprep.subr.bf16.mxu1 %v8189_v1 }
  0xea   : > { %vm1047_vm0 = vmand %vm1011_vm8, %vm975_vm5  ;;  %v747_v21 = vshrl.u32 %v6454_v43, 4  ;;  %v4862_v53 = vunpack.c.l.bf16 %v4994_v37  ;;  %v4863_v22 = vunpack.c.h.bf16 %v4994_v37  ;;  %v8361_v27 = vmov 0 }
  0xeb   : > { %vm976_vm4 = vcmp.ne.s32.totalorder %v738_v11, 0  ;;  %vm1012_vm14 = vcmp.lt.s32.totalorder %v738_v11, 0  ;;  %v1084_v2 = vadd.s32 18, %v738_v11  ;;  %v1119_v57 = vsel %vm1047_vm0, %v1083_v56, %v727_v46  ;;  %5126 = vmatprep.mubr.bf16.mxu1 %v1515_v49 }
  0xec   : > { %5101 = vmatpush3.bf16.msra.mxu0 %v6090_v14  ;;  %vm1048_vm13 = vmand %vm1012_vm14, %vm976_vm4  ;;  %vm6482_vm1 = vcmp.lt.s32.totalorder %v1119_v57, 16  ;;  %v508_v17 = vmax.f32 %v6462_v24, 0.0  ;;  %v748_v61 = vmul.u32 18, %v747_v21  ;;  %v758_v54 = vshrl.u32 %v6476_v50, 4  ;;  %v1487_v52 = vld [vmem:[#allocation2 + $0x72] sm:$0xff]  ;;  %2664 = vmatpush1.bf16.msra.mxu1 %v5473_v58 }
  0xed   : > { %v8362_v27 = vsel %vm6482_vm1, 4294967295, %v8361_v27  ;;  %v1120_v6 = vsel %vm1048_vm13, %v1084_v2, %v738_v11  ;;  %v1263_v36 = vsel %vm6482_vm1, %v506_v30, 0.0  ;;  %v431_v14 = vmul.f32 %v4862_v53, %v6144_v42  ;;  %5102 = vmatprep.subr.bf16.mxu0 %v6099_v18  ;;  %2665 = vmatprep.subr.bf16.mxu1 %v8189_v1  ;;  %v5476_v11 = vld [vmem:[#allocation11 + $0x100] sm:$0xff]  }
  0xee   : > { %8363 = vst [vmem:[#allocation35_spill] sm:$0xff] %v8362_v27  ;;  %v432_v15 = vmul.f32 %v4863_v22, %v6144_v42  ;;  %vm6495_vm14 = vcmp.lt.s32.totalorder %v1120_v6, 16  ;;  %v8364_v32 = vmov 0  ;;  %1307 = vst [vmem:[#allocation2 + $0x83] sm:$0xff] %v1263_v36  ;;  %v509_v23 = vmax.f32 %v6472_v13, 0.0  ;;  %v4996_v22 = vld [vmem:[%s6058_s7 + $0x58] sm:$0xff]  }
  0xef   : > { %v8365_v32 = vsel %vm6495_vm14, 4294967295, %v8364_v32  ;;  %v749_v38 = vsub.s32 %v6433_v5, %v748_v61  ;;  %v759_v41 = vmul.u32 18, %v758_v54  ;;  %v1264_v30 = vsel %vm6495_vm14, %v507_v39, 0.0  ;;  %v1488_v34 = vld [vmem:[#allocation2 + $0x7a] sm:$0xff] }
  0xf0   : > { %8366 = vst [vmem:[#allocation36_spill] sm:$0xff] %v8365_v32  ;;  %v6504_v43 = vadd.s32 144, %v6073_v3  ;;  %v6507_v60 = vadd.s32 152, %v6073_v3  ;;  %v4866_v63 = vunpack.c.l.bf16 %v4995_v16  ;;  %5103 = vmatpush3.bf16.msra.mxu0 %v6099_v18  ;;  %1308 = vst [vmem:[#allocation2 + $0x8b] sm:$0xff] %v1264_v30  ;;  %v5475_v39 = vld [vmem:[#allocation11 + $0xf8] sm:$0xff]   ;;  %v1516_v44 = vpack.c.bf16 %v1488_v34, %v1487_v52 }
  0xf1   : > { %v760_v46 = vsub.s32 %v6440_v7, %v759_v41  ;;  %vm977_vm13 = vcmp.ne.s32.totalorder %v749_v38, 0  ;;  %vm1013_vm4 = vcmp.lt.s32.totalorder %v749_v38, 0  ;;  %v1085_v5 = vadd.s32 18, %v749_v38  ;;  %5104 = vmatprep.subr.bf16.mxu0 %v6116_v26  ;;  %2666 = vmatpush1.bf16.msra.mxu1 %v5475_v39 }
  0xf2   : > { %vm1049_vm5 = vmand %vm1013_vm4, %vm977_vm13  ;;  %v6514_v24 = vadd.f32 %v6163_v51, %v431_v14  ;;  %v6517_v37 = vadd.f32 %v6163_v51, %v432_v15  ;;  %v4867_v18 = vunpack.c.h.bf16 %v4995_v16  ;;  %5127 = vmatmul.mubr.bf16.gmra.mrb[8].mxu1 %v1516_v44  ;;  %v8367_v13 = vmov 0  ;;  %2667 = vmatprep.subr.bf16.mxu1 %v8189_v1 }
  0xf3   : > { %vm978_vm8 = vcmp.ne.s32.totalorder %v760_v46, 0  ;;  %vm1014_vm0 = vcmp.lt.s32.totalorder %v760_v46, 0  ;;  %v1086_v7 = vadd.s32 18, %v760_v46  ;;  %v1121_v25 = vsel %vm1049_vm5, %v1085_v5, %v749_v38 }
  0xf4   : > { %vm1050_vm14 = vmand %vm1014_vm0, %vm978_vm8  ;;  %vm6519_vm1 = vcmp.lt.s32.totalorder %v1121_v25, 16  ;;  %v6524_v48 = vmul.u32.u64.low 3817748708, %v6504_v43  ;;  %v6525_v50 = vmul.u32.u64.high 3817748708, %v6504_v43, %v6524_v48  ;;  %v433_v33 = vmul.f32 %v4866_v63, %v6144_v42  ;;  %5105 = vmatpush3.bf16.msra.mxu0 %v6116_v26 }
  0xf5   : > { %v8368_v13 = vsel %vm6519_vm1, 4294967295, %v8367_v13  ;;  %v1122_v56 = vsel %vm1050_vm14, %v1086_v7, %v760_v46  ;;  %v1265_v49 = vsel %vm6519_vm1, %v508_v17, 0.0  ;;  %5106 = vmatprep.subr.bf16.mxu0 %v6132_v35  ;;  %v1489_v2 = vld [vmem:[#allocation2 + $0x82] sm:$0xff]  ;;  %v8370_v57 = vmov 0  ;;  %2668 = vmatpush1.bf16.msra.mxu1 %v5476_v11 }
  0xf6   : > { %8369 = vst [vmem:[#allocation37_spill] sm:$0xff] %v8368_v13  ;;  %v6532_v21 = vmul.u32.u64.low 3817748708, %v6507_v60  ;;  %v6533_v53 = vmul.u32.u64.high 3817748708, %v6507_v60, %v6532_v21  ;;  %vm6537_vm13 = vcmp.lt.s32.totalorder %v1122_v56, 16  ;;  %1309 = vst [vmem:[#allocation2 + $0x93] sm:$0xff] %v1265_v49  ;;  %v510_v26 = vmax.f32 %v6514_v24, 0.0  ;;  %2669 = vmatprep.subr.bf16.mxu1 %v8189_v1 }
  0xf7   : > { %v8371_v57 = vsel %vm6537_vm13, 4294967295, %v8370_v57  ;;  %v434_v58 = vmul.f32 %v4867_v18, %v6144_v42  ;;  %v6544_v17 = vadd.s32 160, %v6073_v3  ;;  %v1266_v61 = vsel %vm6537_vm13, %v509_v23, 0.0  ;;  %v1490_v36 = vld [vmem:[#allocation2 + $0x8a] sm:$0xff]  ;;  %v6588_v56 = vld [vmem:[#allocation8] ss:$0 sm:$0xff] }
  0xf8   : > { %8372 = vst [vmem:[#allocation38_spill] sm:$0xff] %v8371_v57  ;;  %v6550_v54 = vadd.f32 %v6163_v51, %v433_v33  ;;  %v6553_v16 = vadd.s32 168, %v6073_v3  ;;  %v6557_v6 = vadd.f32 %v6163_v51, %v6289_v55  ;;  %1310 = vst [vmem:[#allocation2 + $0x9b] sm:$0xff] %v1266_v61  ;;  %v769_v14 = vshrl.u32 %v6525_v50, 4  ;;  %5107 = vmatpush3.bf16.msra.mxu0 %v6132_v35  ;;  %v5477_v55 = vld [vmem:[#allocation11 + $0x108] sm:$0xff]   ;;  %v5478_v21 = vld [vmem:[#allocation11 + $0x110] sm:$0xff]  }
  0xf9   : > { %v6561_v15 = vadd.f32 %v6163_v51, %v434_v58  ;;  %v4870_v52 = vunpack.c.l.bf16 %v4996_v22  ;;  %v4871_v38 = vunpack.c.h.bf16 %v4996_v22  ;;  %v1517_v23 = vpack.c.bf16 %v1490_v36, %v1489_v2  ;;  %5108 = vmatprep.subr.bf16.mxu0 %v6151_v45  ;;  %2670 = vmatpush1.bf16.msra.mxu1 %v5477_v55  ;;  %v1337_v57 = vld [vmem:[#allocation2 + $0x40] sm:$0xff]  ;;  %v1418_v27 = vld [vmem:[#allocation2 + $0x89] sm:$0xff] }
  0xfa   : > { %v780_v41 = vshrl.u32 %v6533_v53, 4  ;;  %v6566_v30 = vmul.u32.u64.low 3817748708, %v6544_v17  ;;  %v6567_v63 = vmul.u32.u64.high 3817748708, %v6544_v17, %v6566_v30  ;;  %v511_v34 = vmax.f32 %v6517_v37, 0.0  ;;  %2671 = vmatprep.subr.bf16.mxu1 %v8189_v1 }
  0xfb   : > { %v770_v46 = vmul.u32 18, %v769_v14  ;;  %v6572_v51 = vmul.u32.u64.low 3817748708, %v6553_v16  ;;  %v6573_v5 = vmul.u32.u64.high 3817748708, %v6553_v16, %v6572_v51  ;;  %5130 = vmatprep.mubr.bf16.mxu1 %v1517_v23  ;;  %v512_v39 = vmax.f32 %v6550_v54, 0.0  ;;  %v5479_v30 = vld [vmem:[#allocation11 + $0x118] sm:$0xff]  }
  0xfc   : > { %v781_v35 = vmul.u32 18, %v780_v41  ;;  %v6578_v44 = vmul.u32.u64.low 3817748708, %v6073_v3  ;;  %v6579_v18 = vmul.u32.u64.high 3817748708, %v6073_v3, %v6578_v44  ;;  %v513_v25 = vmax.f32 %v6561_v15, 0.0  ;;  %5109 = vmatpush3.bf16.msra.mxu0 %v6151_v45 }
  0xfd   : > { %v771_v7 = vsub.s32 %v6504_v43, %v770_v46  ;;  %v8177_v37 = vmax.f32 %v6557_v6, 0.0  ;;  %v435_v48 = vmul.f32 %v4870_v52, %v6144_v42  ;;  %v1491_v50 = vld [vmem:[#allocation2 + $0x92] sm:$0xff]  ;;  %v791_v11 = vshrl.u32 %v6567_v63, 4  ;;  %5110 = vmatprep.subr.bf16.mxu0 %v6192_v4  ;;  %2672 = vmatpush1.bf16.msra.mxu1 %v5478_v21 }
  0xfe   : > { %v782_v33 = vsub.s32 %v6507_v60, %v781_v35  ;;  %v6591_v49 = vmul.f32 %v6588_v56, %v4871_v38  ;;  %v6594_v43 = vadd.s32 176, %v6073_v3  ;;  %v802_v45 = vshrl.u32 %v6573_v5, 4  ;;  %v6599_v60 = vld [vmem:[%s6058_s7 + $0x60] sm:$0xff]   ;;  %2673 = vmatprep.subr.bf16.mxu1 %v8189_v1 }
  0xff   : > { %vm979_vm14 = vcmp.ne.s32.totalorder %v771_v7, 0  ;;  %vm1015_vm4 = vcmp.lt.s32.totalorder %v771_v7, 0  ;;  %v1087_v42 = vadd.s32 18, %v771_v7  ;;  %v1492_v53 = vld [vmem:[#allocation2 + $0x9a] sm:$0xff]  ;;  %v792_v2 = vmul.u32 18, %v791_v11  ;;  %v1419_v9 = vld [vmem:[#allocation2 + $0x91] sm:$0xff] }
 0x100   : > { %vm980_vm5 = vcmp.ne.s32.totalorder %v782_v33, 0  ;;  %vm1016_vm8 = vcmp.lt.s32.totalorder %v782_v33, 0  ;;  %vm1051_vm0 = vmand %vm1015_vm4, %vm979_vm14  ;;  %v1088_v22 = vadd.s32 18, %v782_v33  ;;  %v1518_v58 = vpack.c.bf16 %v1492_v53, %v1491_v50  ;;  %5111 = vmatpush3.bf16.msra.mxu0 %v6192_v4  ;;  %v6625_v35 = vld [vmem:[#allocation10] ss:$0 sm:$0xff] }
 0x101   : > { %vm1052_vm13 = vmand %vm1016_vm8, %vm980_vm5  ;;  %v1123_v61 = vsel %vm1051_vm0, %v1087_v42, %v771_v7  ;;  %v803_v36 = vmul.u32 18, %v802_v45  ;;  %v571_v14 = vshrl.u32 %v6579_v18, 4  ;;  %v8373_v38 = vmov 0  ;;  %5112 = vmatprep.subr.bf16.mxu0 %v6210_v28  ;;  %2674 = vmatpush1.bf16.msra.mxu1 %v5479_v30 }
 0x102   : > { %v1124_v52 = vsel %vm1052_vm13, %v1088_v22, %v782_v33  ;;  %vm6604_vm1 = vcmp.lt.s32.totalorder %v1123_v61, 16  ;;  %v793_v23 = vsub.s32 %v6544_v17, %v792_v2  ;;  %v4874_v41 = vunpack.c.l.bf16 %v6599_v60  ;;  %5131 = vmatmul.mubr.bf16.gmra.mrb[12].mxu1 %v1518_v58  ;;  %2675 = vmatprep.subr.bf16.mxu1 %v8189_v1 }
 0x103   : > { %v8374_v38 = vsel %vm6604_vm1, 4294967295, %v8373_v38  ;;  %vm6611_vm14 = vcmp.lt.s32.totalorder %v1124_v52, 16  ;;  %v8376_v63 = vmov 0  ;;  %v1267_v4 = vsel %vm6604_vm1, %v510_v26, 0.0  ;;  %v5480_v26 = vld [vmem:[#allocation11 + $0x120] sm:$0xff]  }
 0x104   : > { %8375 = vst [vmem:[#allocation39_spill] sm:$0xff] %v8374_v38  ;;  %v8377_v63 = vsel %vm6611_vm14, 4294967295, %v8376_v63  ;;  %v804_v55 = vsub.s32 %v6553_v16, %v803_v36  ;;  %v572_v46 = vmul.u32 18, %v571_v14  ;;  %v1268_v17 = vsel %vm6611_vm14, %v511_v34, 0.0  ;;  %1311 = vst [vmem:[#allocation2 + $0xa3] sm:$0xff] %v1267_v4  ;;  %5113 = vmatpush3.bf16.msra.mxu0 %v6210_v28  ;;  %v6683_v52 = vld [vmem:[#allocation2 + $0x21] sm:$0xff] }
 0x105   : > { %8378 = vst [vmem:[#allocation40_spill] sm:$0xff] %v8377_v63  ;;  %vm981_vm13 = vcmp.ne.s32.totalorder %v793_v23, 0  ;;  %vm1017_vm4 = vcmp.lt.s32.totalorder %v793_v23, 0  ;;  %v1089_v51 = vadd.s32 18, %v793_v23  ;;  %1312 = vst [vmem:[#allocation2 + $0xab] sm:$0xff] %v1268_v17  ;;  %v6628_v34 = vadd.f32 %v6625_v35, %v435_v48  ;;  %2676 = vmatpush1.bf16.msra.mxu1 %v5480_v26  ;;  %v6694_v17 = vld [vmem:[#allocation2 + $0x28] sm:$0xff] }
 0x106   : > { %vm982_vm5 = vcmp.ne.s32.totalorder %v804_v55, 0  ;;  %vm1018_vm8 = vcmp.lt.s32.totalorder %v804_v55, 0  ;;  %vm1053_vm0 = vmand %vm1017_vm4, %vm981_vm13  ;;  %v1090_v24 = vadd.s32 18, %v804_v55  ;;  %v573_v5 = vsub.s32 %v6073_v3, %v572_v46  ;;  %2677 = vmatprep.subr.bf16.mxu1 %v8189_v1  ;;  %v6692_v46 = vld [vmem:[#allocation2 + $0x20] sm:$0xff] }
 0x107   : > { %vm1054_vm1 = vmand %vm1018_vm8, %vm982_vm5  ;;  %v1125_v16 = vsel %vm1053_vm0, %v1089_v51, %v793_v23  ;;  %v6631_v44 = vadd.s32 184, %v6073_v3  ;;  %v4875_v18 = vunpack.c.h.bf16 %v6599_v60  ;;  %v8379_v50 = vmov 0  ;;  %v5481_v60 = vld [vmem:[#allocation11 + $0x128] sm:$0xff]  }
 0x108   : > { %v1126_v7 = vsel %vm1054_vm1, %v1090_v24, %v804_v55  ;;  %vm6634_vm13 = vcmp.lt.s32.totalorder %v1125_v16, 16  ;;  %vm961_vm4 = vcmp.ne.s32.totalorder %v573_v5, 0  ;;  %vm997_vm14 = vcmp.lt.s32.totalorder %v573_v5, 0  ;;  %v6685_v23 = vld [vmem:[#allocation2 + $0x29] sm:$0xff] }
 0x109   : > { %v8380_v50 = vsel %vm6634_vm13, 4294967295, %v8379_v50  ;;  %vm6639_vm5 = vcmp.lt.s32.totalorder %v1126_v7, 16  ;;  %v8382_v28 = vmov 0  ;;  %v1269_v48 = vsel %vm6634_vm13, %v512_v39, 0.0  ;;  %vm1033_vm8 = vmand %vm997_vm14, %vm961_vm4  ;;  %v4998_v51 = vld [vmem:[%s6058_s7 + $0x68] sm:$0xff]   ;;  %2678 = vmatpush1.bf16.msra.mxu1 %v5481_v60 }
 0x10a   : > { %8381 = vst [vmem:[#allocation41_spill] sm:$0xff] %v8380_v50  ;;  %v8383_v28 = vsel %vm6639_vm5, 4294967295, %v8382_v28  ;;  %v1069_v33 = vadd.s32 18, %v573_v5  ;;  %v6649_v11 = vadd.f32 %v6625_v35, %v6591_v49  ;;  %v1270_v21 = vsel %vm6639_vm5, %v513_v25, 0.0  ;;  %1313 = vst [vmem:[#allocation2 + $0xb3] sm:$0xff] %v1269_v48  ;;  %2679 = vmatprep.subr.bf16.mxu1 %v8189_v1 }
 0x10b   : > { %8384 = vst [vmem:[#allocation42_spill] sm:$0xff] %v8383_v28  ;;  %v6656_v42 = vmul.u32.u64.low 3817748708, %v6594_v43  ;;  %v6657_v45 = vmul.u32.u64.high 3817748708, %v6594_v43, %v6656_v42  ;;  %v437_v54 = vmul.f32 %v6588_v56, %v4874_v41  ;;  %1314 = vst [vmem:[#allocation2 + $0xbb] sm:$0xff] %v1270_v21  ;;  %v438_v49 = vmul.f32 %v6588_v56, %v4875_v18  ;;  %v1493_v15 = vld [vmem:[#allocation2 + $0xa2] sm:$0xff]  ;;  %v5482_v18 = vld [vmem:[#allocation11 + $0x130] sm:$0xff]  }
 0x10c   : > { %v1105_v39 = vsel %vm1033_vm8, %v1069_v33, %v573_v5  ;;  %v6661_v53 = vmul.u32.u64.low 3817748708, %v6631_v44  ;;  %v6662_v22 = vmul.u32.u64.high 3817748708, %v6631_v44, %v6661_v53  ;;  %v8385_v25 = vmov 0  ;;  %v1494_v61 = vld [vmem:[#allocation2 + $0xaa] sm:$0xff] }
 0x10d   : > { %vm6665_vm1 = vcmp.lt.s32.totalorder %v1105_v39, 16  ;;  %v6670_v2 = vadd.s32 192, %v6073_v3  ;;  %v6673_v58 = vadd.s32 200, %v6073_v3  ;;  %v6681_v14 = vadd.f32 %v6625_v35, %v437_v54  ;;  %2680 = vmatpush1.bf16.msra.mxu1 %v5482_v18  ;;  %v3201_v10 = vld [vmem:[#allocation2 + $0xa5] sm:$0xff] }
 0x10e   : > { %v8386_v25 = vsel %vm6665_vm1, 4294967295, %v8385_v25  ;;  %v1249_v36 = vsel %vm6665_vm1, %v8177_v37, 0.0  ;;  %v1519_v41 = vpack.c.bf16 %v1494_v61, %v1493_v15  ;;  %v8188_v30 = vmax.f32 %v6628_v34, 0.0  ;;  %2681 = vmatprep.subr.bf16.mxu1 %v8189_v1 }
 0x10f   : > { %8387 = vst [vmem:[#allocation43_spill] sm:$0xff] %v8386_v25  ;;  %1293 = vst [vmem:[#allocation2 + $0x13] sm:$0xff] %v1249_v36  ;;  %v813_v4 = vshrl.u32 %v6657_v45, 4  ;;  %v6690_v55 = vadd.f32 %v6625_v35, %v438_v49  ;;  %v824_v5 = vshrl.u32 %v6662_v22, 4  ;;  %v1439_v21 = vpack.c.bf16 %v6685_v23, %v6683_v52  ;;  %v5483_v36 = vld [vmem:[#allocation11 + $0x138] sm:$0xff]  }
 0x110   : > { %v6700_v26 = vmul.u32.u64.low 3817748708, %v6670_v2  ;;  %v6701_v16 = vmul.u32.u64.high 3817748708, %v6670_v2, %v6700_v26  ;;  %5134 = vmatprep.mubr.bf16.mxu1 %v1519_v41  ;;  %v6704_v48 = vmul.u32.u64.low 3817748708, %v6673_v58  ;;  %v6705_v33 = vmul.u32.u64.high 3817748708, %v6673_v58, %v6704_v48 }
 0x111   : > { %v814_v7 = vmul.u32 18, %v813_v4  ;;  %v1495_v42 = vld [vmem:[#allocation2 + $0xb2] sm:$0xff]  ;;  %v825_v45 = vmul.u32 18, %v824_v5  ;;  %v4878_v60 = vunpack.c.l.bf16 %v4998_v51  ;;  %v4879_v15 = vunpack.c.h.bf16 %v4998_v51  ;;  %2682 = vmatpush1.bf16.msra.mxu1 %v5483_v36 }
 0x112   : > { %v1496_v53 = vld [vmem:[#allocation2 + $0xba] sm:$0xff]  ;;  %v6716_v61 = vadd.s32 208, %v6073_v3  ;;  %v835_v41 = vshrl.u32 %v6701_v16, 4  ;;  %v6721_v4 = vadd.s32 216, %v6073_v3  ;;  %v8388_v24 = vmov 0  ;;  %3576 = vmatprep.subr.bf16.mxu1 %v8189_v1 }
 0x113   : > { %v815_v22 = vsub.s32 %v6594_v43, %v814_v7  ;;  %v1520_v52 = vpack.c.bf16 %v1496_v53, %v1495_v42  ;;  %v826_v23 = vsub.s32 %v6631_v44, %v825_v45  ;;  %v846_v43 = vshrl.u32 %v6705_v33, 4  ;;  %v4999_v26 = vld [vmem:[%s6058_s7 + $0x70] sm:$0xff]  }
 0x114   : > { %v439_v16 = vmul.f32 %v6588_v56, %v4878_v60  ;;  %v836_v18 = vmul.u32 18, %v835_v41  ;;  %v440_v33 = vmul.f32 %v6588_v56, %v4879_v15  ;;  %v4882_v39 = vunpack.c.l.bf16 %v4999_v26 }
 0x115   : > { %vm983_vm14 = vcmp.ne.s32.totalorder %v815_v22, 0  ;;  %vm1019_vm0 = vcmp.lt.s32.totalorder %v815_v22, 0  ;;  %v1091_v5 = vadd.s32 18, %v815_v22  ;;  %5135 = vmatmul.mubr.bf16.gmra.mrb[16].mxu1 %v1520_v52  ;;  %vm984_vm4 = vcmp.ne.s32.totalorder %v826_v23, 0 }
 0x116   : > { %v1403_v51 = vld [vmem:[#allocation2 + $0x11] sm:$0xff]  ;;  %v1404_v7 = vld [vmem:[#allocation2 + $0x19] sm:$0xff]  ;;  %vm1020_vm8 = vcmp.lt.s32.totalorder %v826_v23, 0  ;;  %v1092_v44 = vadd.s32 18, %v826_v23  ;;  %vm1055_vm5 = vmand %vm1019_vm0, %vm983_vm14  ;;  %v847_v53 = vmul.u32 18, %v846_v43  ;;  %v4883_v49 = vunpack.c.h.bf16 %v4999_v26 }
 0x117   : > { %v1331_v48 = vld [vmem:[#allocation2 + $0x10] sm:$0xff]  ;;  %v1438_v42 = vpack.c.bf16 %v1404_v7, %v1403_v51  ;;  %v1332_v45 = vld [vmem:[#allocation2 + $0x18] sm:$0xff]  ;;  %vm1056_vm13 = vmand %vm1020_vm8, %vm984_vm4  ;;  %v1127_v52 = vsel %vm1055_vm5, %v1091_v5, %v815_v22  ;;  %v837_v60 = vsub.s32 %v6670_v2, %v836_v18  ;;  %v8391_v15 = vmov 0 }
 0x118   : > { %v1366_v37 = vpack.c.bf16 %v1332_v45, %v1331_v48  ;;  %v1128_v54 = vsel %vm1056_vm13, %v1092_v44, %v826_v23  ;;  %vm6730_vm10 = vcmp.lt.s32.totalorder %v1127_v52, 16  ;;  %v848_v51 = vsub.s32 %v6673_v58, %v847_v53  ;;  %v1407_v45 = vld [vmem:[#allocation2 + $0x31] sm:$0xff] }
 0x119   : > { %1838 = vmatprep.mubr.bf16.mxu0 %v1438_v42  ;;  %v8389_v24 = vsel %vm6730_vm10, 4294967295, %v8388_v24  ;;  %vm6737_vm14 = vcmp.lt.s32.totalorder %v1128_v54, 16  ;;  %v1271_v22 = vsel %vm6730_vm10, %v8188_v30, 0.0  ;;  %v8394_v2 = vmax.f32 %v6649_v11, 0.0 }
 0x11a   : > { %8390 = vst [vmem:[#allocation44_spill] sm:$0xff] %v8389_v24  ;;  %1839 = vmatmul.mubr.bf16.gmra.mrb[4].mxu0 %v1366_v37  ;;  %v8392_v15 = vsel %vm6737_vm14, 4294967295, %v8391_v15  ;;  %v6746_v36 = vmul.u32.u64.low 3817748708, %v6716_v61  ;;  %v6747_v23 = vmul.u32.u64.high 3817748708, %v6716_v61, %v6746_v36  ;;  %1315 = vst [vmem:[#allocation2 + $0xc3] sm:$0xff] %v1271_v22  ;;  %vm985_vm13 = vcmp.ne.s32.totalorder %v837_v60, 0 }
 0x11b   : > { %8393 = vst [vmem:[#allocation45_spill] sm:$0xff] %v8392_v15  ;;  %v1272_v58 = vsel %vm6737_vm14, %v8394_v2, 0.0  ;;  %vm986_vm5 = vcmp.ne.s32.totalorder %v848_v51, 0  ;;  %vm1021_vm0 = vcmp.lt.s32.totalorder %v837_v60, 0  ;;  %1846 = vmatprep.mubr.bf16.mxu0 %v1439_v21  ;;  %vm1022_vm4 = vcmp.lt.s32.totalorder %v848_v51, 0  ;;  %v3261_v15 = vld [vmem:[#allocation2 + $0x46] sm:$0xff] }
 0x11c   : > { %1316 = vst [vmem:[#allocation2 + $0xcb] sm:$0xff] %v1272_v58  ;;  %vm1057_vm8 = vmand %vm1021_vm0, %vm985_vm13  ;;  %v1093_v37 = vadd.s32 18, %v837_v60  ;;  %v1094_v54 = vadd.s32 18, %v848_v51  ;;  %v6754_v41 = vadd.f32 %v6625_v35, %v439_v16  ;;  %v6757_v5 = vadd.f32 %v6625_v35, %v440_v33  ;;  %v1408_v16 = vld [vmem:[#allocation2 + $0x39] sm:$0xff]  ;;  %v3262_v24 = vld [vmem:[#allocation2 + $0x4e] sm:$0xff] }
 0x11d   : > { %vm1058_vm9 = vmand %vm1022_vm4, %vm986_vm5  ;;  %v6760_v43 = vmul.u32.u64.low 3817748708, %v6721_v4  ;;  %v6761_v26 = vmul.u32.u64.high 3817748708, %v6721_v4, %v6760_v43  ;;  %v6764_v7 = vadd.s32 224, %v6073_v3  ;;  %v857_v44 = vshrl.u32 %v6747_v23, 4 }
 0x11e   : > { %v1129_v21 = vsel %vm1057_vm8, %v1093_v37, %v837_v60  ;;  %v1130_v48 = vsel %vm1058_vm9, %v1094_v54, %v848_v51  ;;  %v441_v42 = vmul.f32 %v6588_v56, %v4882_v39  ;;  %v8395_v18 = vmov 0  ;;  %v1335_v37 = vld [vmem:[#allocation2 + $0x30] sm:$0xff] }
 0x11f   : > { %vm6768_vm13 = vcmp.lt.s32.totalorder %v1129_v21, 16  ;;  %vm6772_vm5 = vcmp.lt.s32.totalorder %v1130_v48, 16  ;;  %v8398_v53 = vmov 0  ;;  %v442_v33 = vmul.f32 %v6588_v56, %v4883_v49 }
 0x120   : > { %v8396_v18 = vsel %vm6768_vm13, 4294967295, %v8395_v18  ;;  %v8399_v53 = vsel %vm6772_vm5, 4294967295, %v8398_v53  ;;  %v558_v52 = vadd.s32 232, %v6073_v3  ;;  %v8401_v60 = vmax.f32 %v6681_v14, 0.0 }
 0x121   : > { %8397 = vst [vmem:[#allocation46_spill] sm:$0xff] %v8396_v18  ;;  %8400 = vst [vmem:[#allocation47_spill] sm:$0xff] %v8399_v53  ;;  %v8402_v51 = vmax.f32 %v6690_v55, 0.0  ;;  %v858_v36 = vmul.u32 18, %v857_v44  ;;  %v868_v23 = vshrl.u32 %v6761_v26, 4  ;;  %v1440_v58 = vpack.c.bf16 %v1408_v16, %v1407_v45  ;;  %v1497_v54 = vld [vmem:[#allocation2 + $0xc2] sm:$0xff] }
 0x122   : > { %v1273_v39 = vsel %vm6768_vm13, %v8401_v60, 0.0  ;;  %v6788_v49 = vmul.u32.u64.low 3817748708, %v6764_v7  ;;  %v6789_v2 = vmul.u32.u64.high 3817748708, %v6764_v7, %v6788_v49  ;;  %v8403_v43 = vpack.c.bf16 %v6694_v17, %v6692_v46  ;;  %v5000_v26 = vld [vmem:[%s6058_s7 + $0x78] sm:$0xff]  }
 0x123   : > { %v1274_v22 = vsel %vm6772_vm5, %v8402_v51, 0.0  ;;  %1317 = vst [vmem:[#allocation2 + $0xd3] sm:$0xff] %v1273_v39  ;;  %v8191_v21 = vmax.f32 %v6754_v41, 0.0  ;;  %v859_v48 = vsub.s32 %v6716_v61, %v858_v36  ;;  %v1336_v39 = vld [vmem:[#allocation2 + $0x38] sm:$0xff]  ;;  %v1498_v51 = vld [vmem:[#allocation2 + $0xca] sm:$0xff]  ;;  %v869_v49 = vmul.u32 18, %v868_v23 }
 0x124   : > { %1318 = vst [vmem:[#allocation2 + $0xdb] sm:$0xff] %v1274_v22  ;;  %1847 = vmatmul.mubr.bf16.gmra.mrb[8].mxu0 %v8403_v43  ;;  %v6796_v44 = vmul.u32.u64.low 3817748708, %v558_v52  ;;  %v6797_v60 = vmul.u32.u64.high 3817748708, %v558_v52, %v6796_v44  ;;  %v6802_v45 = vadd.f32 %v6625_v35, %v441_v42  ;;  %v6805_v16 = vadd.f32 %v6625_v35, %v442_v33 }
 0x125   : > { %1854 = vmatprep.mubr.bf16.mxu0 %v1440_v58  ;;  %v6807_v46 = vpack.c.bf16 %v1498_v51, %v1497_v54  ;;  %vm987_vm9 = vcmp.ne.s32.totalorder %v859_v48, 0  ;;  %vm1023_vm0 = vcmp.lt.s32.totalorder %v859_v48, 0  ;;  %v1095_v17 = vadd.s32 18, %v859_v48 }
 0x126   : > { %v870_v61 = vsub.s32 %v6721_v4, %v869_v49  ;;  %vm1059_vm4 = vmand %vm1023_vm0, %vm987_vm9  ;;  %v879_v36 = vshrl.u32 %v6789_v2, 4  ;;  %v1368_v43 = vpack.c.bf16 %v1336_v39, %v1335_v37  ;;  %v4886_v44 = vunpack.c.l.bf16 %v5000_v26 }
 0x127   : > { %5138 = vmatprep.mubr.bf16.mxu1 %v6807_v46  ;;  %v1131_v42 = vsel %vm1059_vm4, %v1095_v17, %v859_v48  ;;  %v890_v23 = vshrl.u32 %v6797_v60, 4  ;;  %v4887_v33 = vunpack.c.h.bf16 %v5000_v26  ;;  %v6814_v58 = vadd.s32 240, %v6073_v3 }
 0x128   : > { %vm988_vm8 = vcmp.ne.s32.totalorder %v870_v61, 0  ;;  %vm1024_vm2 = vcmp.lt.s32.totalorder %v870_v61, 0  ;;  %v1096_v54 = vadd.s32 18, %v870_v61  ;;  %vm6816_vm12 = vcmp.lt.s32.totalorder %v1131_v42, 16 }
 0x129   : > { %v8404_v51 = vmov 0  ;;  %vm1060_vm9 = vmand %vm1024_vm2, %vm988_vm8  ;;  %v1275_v37 = vsel %vm6816_vm12, %v8191_v21, 0.0  ;;  %v880_v60 = vmul.u32 18, %v879_v36  ;;  %v891_v39 = vmul.u32 18, %v890_v23  ;;  %v5001_v36 = vld [vmem:[%s6058_s7 + $0x80] sm:$0xff]  }
 0x12a   : > { %v8405_v51 = vsel %vm6816_vm12, 4294967295, %v8404_v51  ;;  %v1499_v4 = vld [vmem:[#allocation2 + $0xd2] sm:$0xff]  ;;  %v1132_v49 = vsel %vm1060_vm9, %v1096_v54, %v870_v61  ;;  %1319 = vst [vmem:[#allocation2 + $0xe3] sm:$0xff] %v1275_v37  ;;  %v560_v42 = vadd.s32 248, %v6073_v3  ;;  %v8407_v30 = vmov 0  ;;  %v1409_v23 = vld [vmem:[#allocation2 + $0x41] sm:$0xff] }
 0x12b   : > { %8406 = vst [vmem:[#allocation48_spill] sm:$0xff] %v8405_v51  ;;  %v1500_v2 = vld [vmem:[#allocation2 + $0xda] sm:$0xff]  ;;  %vm6829_vm0 = vcmp.lt.s32.totalorder %v1132_v49, 16  ;;  %v881_v1 = vsub.s32 %v6764_v7, %v880_v60  ;;  %v892_v22 = vsub.s32 %v558_v52, %v891_v39  ;;  %v443_v21 = vmul.f32 %v6588_v56, %v4886_v44  ;;  %v1410_v7 = vld [vmem:[#allocation2 + $0x49] sm:$0xff] }
 0x12c   : > { %v6825_v26 = vpack.c.bf16 %v1500_v2, %v1499_v4  ;;  %v8408_v30 = vsel %vm6829_vm0, 4294967295, %v8407_v30  ;;  %1855 = vmatmul.mubr.bf16.gmra.mrb[12].mxu0 %v1368_v43  ;;  %v8410_v61 = vmax.f32 %v6757_v5, 0.0  ;;  %v444_v4 = vmul.f32 %v6588_v56, %v4887_v33  ;;  %v1338_v52 = vld [vmem:[#allocation2 + $0x48] sm:$0xff] }
 0x12d   : > { %8409 = vst [vmem:[#allocation49_spill] sm:$0xff] %v8408_v30  ;;  %v6843_v2 = vmul.u32.u64.low 3817748708, %v6814_v58  ;;  %v6844_v37 = vmul.u32.u64.high 3817748708, %v6814_v58, %v6843_v2  ;;  %vm989_vm2 = vcmp.ne.s32.totalorder %v881_v1, 0  ;;  %vm990_vm4 = vcmp.ne.s32.totalorder %v892_v22, 0 }
 0x12e   : > { %5139 = vmatmul.mubr.bf16.gmra.mrb[20].mxu1 %v6825_v26  ;;  %v1276_v54 = vsel %vm6829_vm0, %v8410_v61, 0.0  ;;  %vm1025_vm8 = vcmp.lt.s32.totalorder %v881_v1, 0  ;;  %vm1026_vm9 = vcmp.lt.s32.totalorder %v892_v22, 0  ;;  %v1097_v43 = vadd.s32 18, %v881_v1 }
 0x12f   : > { %1320 = vst [vmem:[#allocation2 + $0xeb] sm:$0xff] %v1276_v54  ;;  %vm6846_vm3 = vmand %vm1025_vm8, %vm989_vm2  ;;  %v1098_v44 = vadd.s32 18, %v892_v22  ;;  %v6850_v60 = vmul.u32.u64.low 3817748708, %v560_v42  ;;  %v6851_v39 = vmul.u32.u64.high 3817748708, %v560_v42, %v6850_v60  ;;  %v6854_v33 = vadd.f32 %v6625_v35, %v443_v21 }
 0x130   : > { %vm1062_vm15 = vmand %vm1026_vm9, %vm990_vm4  ;;  %v4890_v49 = vunpack.c.l.bf16 %v5001_v36  ;;  %v6857_v61 = vadd.s32 256, %v6073_v3  ;;  %v6860_v54 = vadd.s32 264, %v6073_v3  ;;  %v1133_v2 = vsel %vm6846_vm3, %v1097_v43, %v881_v1 }
 0x131   : > { %v1134_v17 = vsel %vm1062_vm15, %v1098_v44, %v892_v22  ;;  %v901_v48 = vshrl.u32 %v6844_v37, 4  ;;  %v1441_v28 = vpack.c.bf16 %v1410_v7, %v1409_v23  ;;  %v1501_v50 = vld [vmem:[#allocation2 + $0xe2] sm:$0xff]  ;;  %vm6865_vm2 = vcmp.lt.s32.totalorder %v1133_v2, 16 }
 0x132   : > { %v8413_v60 = vmov 0  ;;  %vm6869_vm4 = vcmp.lt.s32.totalorder %v1134_v17, 16  ;;  %v8416_v21 = vmov 0  ;;  %v6874_v63 = vadd.f32 %v6625_v35, %v444_v4 }
 0x133   : > { %v8414_v60 = vsel %vm6865_vm2, 4294967295, %v8413_v60  ;;  %v8417_v21 = vsel %vm6869_vm4, 4294967295, %v8416_v21  ;;  %v4891_v38 = vunpack.c.h.bf16 %v5001_v36  ;;  %v8419_v1 = vmax.f32 %v6802_v45, 0.0  ;;  %1862 = vmatprep.mubr.bf16.mxu0 %v1441_v28  ;;  %v1412_v28 = vld [vmem:[#allocation2 + $0x59] sm:$0xff] }
 0x134   : > { %8415 = vst [vmem:[#allocation50_spill] sm:$0xff] %v8414_v60  ;;  %8418 = vst [vmem:[#allocation51_spill] sm:$0xff] %v8417_v21  ;;  %v8420_v23 = vmax.f32 %v6805_v16, 0.0  ;;  %v902_v17 = vmul.u32 18, %v901_v48  ;;  %v912_v7 = vshrl.u32 %v6851_v39, 4  ;;  %v445_v4 = vmul.f32 %v6588_v56, %v4890_v49  ;;  %v1411_v39 = vld [vmem:[#allocation2 + $0x51] sm:$0xff] }
 0x135   : > { %v1277_v22 = vsel %vm6865_vm2, %v8419_v1, 0.0  ;;  %v6888_v43 = vmul.u32.u64.low 3817748708, %v6857_v61  ;;  %v6889_v44 = vmul.u32.u64.high 3817748708, %v6857_v61, %v6888_v43  ;;  %v1369_v36 = vpack.c.bf16 %v1338_v52, %v1337_v57  ;;  %v3195_v21 = vld [vmem:[#allocation2 + $0x75] sm:$0xff]  ;;  %v3196_v60 = vld [vmem:[#allocation2 + $0x7d] sm:$0xff] }
 0x136   : > { %v1278_v37 = vsel %vm6869_vm4, %v8420_v23, 0.0  ;;  %1321 = vst [vmem:[#allocation2 + $0xf3] sm:$0xff] %v1277_v22  ;;  %v1502_v2 = vld [vmem:[#allocation2 + $0xea] sm:$0xff]  ;;  %v903_v1 = vsub.s32 %v6814_v58, %v902_v17  ;;  %v913_v13 = vmul.u32 18, %v912_v7  ;;  %v6902_v17 = vadd.f32 %v6625_v35, %v445_v4 }
 0x137   : > { %1322 = vst [vmem:[#allocation2 + $0xfb] sm:$0xff] %v1278_v37  ;;  %v6893_v23 = vmul.u32.u64.low 3817748708, %v6860_v54  ;;  %v6894_v48 = vmul.u32.u64.high 3817748708, %v6860_v54, %v6893_v23  ;;  %v6896_v22 = vpack.c.bf16 %v1502_v2, %v1501_v50  ;;  %v446_v37 = vmul.f32 %v6588_v56, %v4891_v38  ;;  %v1339_v43 = vld [vmem:[#allocation2 + $0x50] sm:$0xff]  ;;  %1863 = vmatmul.mubr.bf16.gmra.mrb[16].mxu0 %v1369_v36  ;;  %v1340_v2 = vld [vmem:[#allocation2 + $0x58] sm:$0xff]  ;;  %v1413_v38 = vld [vmem:[#allocation2 + $0x61] sm:$0xff] }
 0x138   : > { %v914_v49 = vsub.s32 %v560_v42, %v913_v13  ;;  %vm991_vm15 = vcmp.ne.s32.totalorder %v903_v1, 0  ;;  %vm1027_vm3 = vcmp.lt.s32.totalorder %v903_v1, 0  ;;  %v1099_v32 = vadd.s32 18, %v903_v1  ;;  %v1414_v4 = vld [vmem:[#allocation2 + $0x69] sm:$0xff] }
 0x139   : > { %5142 = vmatprep.mubr.bf16.mxu1 %v6896_v22  ;;  %vm1063_vm8 = vmand %vm1027_vm3, %vm991_vm15  ;;  %v923_v7 = vshrl.u32 %v6889_v44, 4  ;;  %v1442_v50 = vpack.c.bf16 %v1412_v28, %v1411_v39  ;;  %v8421_v42 = vmov 0  ;;  %v934_v23 = vshrl.u32 %v6894_v48, 4 }
 0x13a   : > { %vm992_vm9 = vcmp.ne.s32.totalorder %v914_v49, 0  ;;  %vm1028_vm11 = vcmp.lt.s32.totalorder %v914_v49, 0  ;;  %v1100_v13 = vadd.s32 18, %v914_v49  ;;  %v1135_v57 = vsel %vm1063_vm8, %v1099_v32, %v903_v1 }
 0x13b   : > { %vm1064_vm7 = vmand %vm1028_vm11, %vm992_vm9  ;;  %vm6905_vm6 = vcmp.lt.s32.totalorder %v1135_v57, 16  ;;  %v924_v52 = vmul.u32 18, %v923_v7  ;;  %1870 = vmatprep.mubr.bf16.mxu0 %v1442_v50  ;;  %v8424_v39 = vmax.f32 %v6854_v33, 0.0  ;;  %v6915_v32 = vadd.f32 %v6625_v35, %v446_v37 }
 0x13c   : > { %v8422_v42 = vsel %vm6905_vm6, 4294967295, %v8421_v42  ;;  %v1136_v36 = vsel %vm1064_vm7, %v1100_v13, %v914_v49  ;;  %v1370_v1 = vpack.c.bf16 %v1340_v2, %v1339_v43  ;;  %v8425_v7 = vmov 0 }
 0x13d   : > { %8423 = vst [vmem:[#allocation52_spill] sm:$0xff] %v8422_v42  ;;  %v1503_v58 = vld [vmem:[#allocation2 + $0xf2] sm:$0xff]  ;;  %v1279_v28 = vsel %vm6905_vm6, %v8424_v39, 0.0  ;;  %vm6919_vm11 = vcmp.lt.s32.totalorder %v1136_v36, 16  ;;  %v925_v48 = vsub.s32 %v6857_v61, %v924_v52  ;;  %v935_v50 = vmul.u32 18, %v934_v23  ;;  %v1341_v61 = vld [vmem:[#allocation2 + $0x60] sm:$0xff] }
 0x13e   : > { %v1504_v44 = vld [vmem:[#allocation2 + $0xfa] sm:$0xff]  ;;  %v8426_v7 = vsel %vm6919_vm11, 4294967295, %v8425_v7  ;;  %1323 = vst [vmem:[#allocation2 + $0x103] sm:$0xff] %v1279_v28  ;;  %v8428_v49 = vmax.f32 %v6874_v63, 0.0  ;;  %v8220_v39 = vmax.f32 %v6902_v17, 0.0  ;;  %v1443_v37 = vpack.c.bf16 %v1414_v4, %v1413_v38  ;;  %v1342_v52 = vld [vmem:[#allocation2 + $0x68] sm:$0xff] }
 0x13f   : > { %v6917_v57 = vpack.c.bf16 %v1504_v44, %v1503_v58  ;;  %8427 = vst [vmem:[#allocation53_spill] sm:$0xff] %v8426_v7  ;;  %v936_v43 = vsub.s32 %v6860_v54, %v935_v50  ;;  %vm993_vm7 = vcmp.ne.s32.totalorder %v925_v48, 0  ;;  %vm1029_vm15 = vcmp.lt.s32.totalorder %v925_v48, 0  ;;  %1871 = vmatmul.mubr.bf16.gmra.mrb[20].mxu0 %v1370_v1  ;;  %v1415_v36 = vld [vmem:[#allocation2 + $0x71] sm:$0xff]  ;;  %v6932_v38 = vld [vmem:[#allocation11 + $0x140] sm:$0xff]  }
 0x140   : > { %v1280_v13 = vsel %vm6919_vm11, %v8428_v49, 0.0  ;;  %v1101_v58 = vadd.s32 18, %v925_v48  ;;  %v8225_v2 = vmax.f32 %v6915_v32, 0.0  ;;  %vm1065_vm3 = vmand %vm1029_vm15, %vm993_vm7  ;;  %v8429_v4 = vmov 0  ;;  %1878 = vmatprep.mubr.bf16.mxu0 %v1443_v37  ;;  %v1416_v50 = vld [vmem:[#allocation2 + $0x79] sm:$0xff]  ;;  %5150 = vmatprep.subr.bf16.mxu0 %v6932_v38 }
 0x141   : > { %5143 = vmatmul.mubr.bf16.gmra.mrb[24].mxu1 %v6917_v57  ;;  %1324 = vst [vmem:[#allocation2 + $0x10b] sm:$0xff] %v1280_v13  ;;  %vm994_vm8 = vcmp.ne.s32.totalorder %v936_v43, 0  ;;  %vm1030_vm9 = vcmp.lt.s32.totalorder %v936_v43, 0  ;;  %v1102_v23 = vadd.s32 18, %v936_v43  ;;  %v8432_v1 = vmov 0 }
 0x142   : > { %v1137_v44 = vsel %vm1065_vm3, %v1101_v58, %v925_v48  ;;  %vm1066_vm11 = vmand %vm1030_vm9, %vm994_vm8  ;;  %v1371_v13 = vpack.c.bf16 %v1342_v52, %v1341_v61  ;;  %v563_v62 = vadd.s32 272, %v6073_v3 }
 0x143   : > { %vm6934_vm6 = vcmp.lt.s32.totalorder %v1137_v44, 16  ;;  %v1138_v54 = vsel %vm1066_vm11, %v1102_v23, %v936_v43  ;;  %v1444_v43 = vpack.c.bf16 %v1416_v50, %v1415_v36  ;;  %v2261_v23 = vld [vmem:[#allocation2 + $0x1b] sm:$0xff]  ;;  %v1343_v44 = vld [vmem:[#allocation2 + $0x70] sm:$0xff]  ;;  %v564_v36 = vadd.s32 280, %v6073_v3 }
 0x144   : > { %v8430_v4 = vsel %vm6934_vm6, 4294967295, %v8429_v4  ;;  %v1281_v28 = vsel %vm6934_vm6, %v8220_v39, 0.0  ;;  %vm6943_vm7 = vcmp.lt.s32.totalorder %v1138_v54, 16  ;;  %v1344_v54 = vld [vmem:[#allocation2 + $0x78] sm:$0xff]  ;;  %v1417_v39 = vld [vmem:[#allocation2 + $0x81] sm:$0xff]  ;;  %vm5802_vm11 = vmmov 1  }
 0x145   : > { %8431 = vst [vmem:[#allocation54_spill] sm:$0xff] %v8430_v4  ;;  %v1505_v48 = vld [vmem:[#allocation2 + $0x102] sm:$0xff]  ;;  %v8433_v1 = vsel %vm6943_vm7, 4294967295, %v8432_v1  ;;  %1325 = vst [vmem:[#allocation2 + $0x113] sm:$0xff] %v1281_v28  ;;  %v1282_v49 = vsel %vm6943_vm7, %v8225_v2, 0.0  ;;  %v1372_v61 = vpack.c.bf16 %v1344_v54, %v1343_v44  ;;  %v8435_v44 = vmax.f32 %v6557_v6, 0.0 }
 0x146   : > { %8434 = vst [vmem:[#allocation55_spill] sm:$0xff] %v8433_v1  ;;  %1326 = vst [vmem:[#allocation2 + $0x11b] sm:$0xff] %v1282_v49  ;;  %v5002_v2 = vld [vmem:[%s6058_s7 + $0x88] sm:$0xff]  }
 0x147   : > { %1879 = vmatmul.mubr.bf16.gmra.mrb[24].mxu0 %v1371_v13  ;;  %v4894_v52 = vunpack.c.l.bf16 %v5002_v2  ;;  %v4895_v49 = vunpack.c.h.bf16 %v5002_v2  ;;  %vm5518_vm15 = vmpackc.low %vm5802_vm11, %vm6665_vm1  ;;  %v5519_v54 = vpack.c.bf16 %v2261_v23, %v8435_v44  ;;  %v2188_v3 = vld [vmem:[#allocation2 + $0x12] sm:$0xff]  ;;  %v5484_v44 = vld [vmem:[#allocation11 + $0x180] sm:$0xff]  }
 0x148   : > { %v1506_v37 = vld [vmem:[#allocation2 + $0x10a] sm:$0xff]  ;;  %1886 = vmatprep.mubr.bf16.mxu0 %v1444_v43  ;;  %v6963_v43 = vmul.u32.u64.low 3817748708, %v564_v36  ;;  %v6964_v31 = vmul.u32.u64.high 3817748708, %v564_v36, %v6963_v43  ;;  %v1420_v6 = vld [vmem:[#allocation2 + $0x99] sm:$0xff] }
 0x149   : > { %v6951_v58 = vpack.c.bf16 %v1506_v37, %v1505_v48  ;;  %v1445_v48 = vpack.c.bf16 %v1418_v27, %v1417_v39  ;;  %v6959_v13 = vmul.u32.u64.low 3817748708, %v563_v62  ;;  %v6960_v37 = vmul.u32.u64.high 3817748708, %v563_v62, %v6959_v13  ;;  %v2262_v39 = vld [vmem:[#allocation2 + $0x23] sm:$0xff]  ;;  %v2263_v2 = vld [vmem:[#allocation2 + $0x2b] sm:$0xff] }
 0x14a   : > { %v447_v27 = vmul.f32 %v6588_v56, %v4894_v52  ;;  %v1345_v13 = vld [vmem:[#allocation2 + $0x80] sm:$0xff]  ;;  %v1346_v43 = vld [vmem:[#allocation2 + $0x88] sm:$0xff]  ;;  %v956_v23 = vshrl.u32 %v6964_v31, 4 }
 0x14b   : > { %5146 = vmatprep.mubr.bf16.mxu1 %v6951_v58  ;;  %v945_v40 = vshrl.u32 %v6960_v37, 4  ;;  %v1373_v29 = vpack.c.bf16 %v1346_v43, %v1345_v13  ;;  %v2190_v37 = vld [vmem:[#allocation2 + $0x22] sm:$0xff]  ;;  %v2191_v31 = vld [vmem:[#allocation2 + $0x2a] sm:$0xff] }
 0x14c   : > { %v1507_v28 = vld [vmem:[#allocation2 + $0x112] sm:$0xff]  ;;  %v2225_v43 = vpack.c.bf16 %v2191_v31, %v2190_v37 }
 0x14d   : > { %v1508_v19 = vld [vmem:[#allocation2 + $0x11a] sm:$0xff]  ;;  %v946_v52 = vmul.u32 18, %v945_v40  ;;  %v2192_v31 = vld [vmem:[#allocation2 + $0x32] sm:$0xff] }
 0x14e   : > { %v6957_v50 = vpack.c.bf16 %v1508_v19, %v1507_v28  ;;  %v2189_v19 = vld [vmem:[#allocation2 + $0x1a] sm:$0xff]  ;;  %v448_v28 = vmul.f32 %v6588_v56, %v4895_v49  ;;  %v957_v56 = vmul.u32 18, %v956_v23  ;;  %v1446_v49 = vpack.c.bf16 %v1420_v6, %v1419_v9  ;;  %v1422_v23 = vld [vmem:[#allocation2 + $0xa9] sm:$0xff] }
 0x14f   : > { %1887 = vmatmul.mubr.bf16.gmra.mrb[28].mxu0 %v1372_v61  ;;  %v6973_v20 = vpack.c.bf16 %v2189_v19, %v2188_v3  ;;  %v6977_v61 = vadd.f32 %v6625_v35, %v447_v27  ;;  %v947_v47 = vsub.s32 %v563_v62, %v946_v52  ;;  %v5485_v19 = vld [vmem:[#allocation11 + $0x188] sm:$0xff]   ;;  %v8436_v27 = vmov 0   ;;  %v5486_v52 = vld [vmem:[#allocation11 + $0x190] sm:$0xff]  }
 0x150   : > { %5147 = vmatmul.mubr.bf16.gmra.mrb[28].mxu1 %v6957_v50  ;;  %1894 = vmatprep.mubr.bf16.mxu0 %v1445_v48  ;;  %v6980_v48 = vadd.f32 %v6625_v35, %v448_v28  ;;  %v958_v3 = vsub.s32 %v564_v36, %v957_v56  ;;  %v2264_v35 = vld [vmem:[#allocation2 + $0x33] sm:$0xff]  ;;  %v1421_v6 = vld [vmem:[#allocation2 + $0xa1] sm:$0xff]  ;;  %v8440_v56 = vmov 0 }
 0x151   : > { %5520 = vmatprep.mubr.msk.bf16.mxu1 %vm5518_vm15, %v5519_v54  ;;  %v2297_v54 = vpack.c.bf16 %v2263_v2, %v2262_v39  ;;  %v8247_v39 = vmax.f32 %v6977_v61, 0.0  ;;  %vm995_vm3 = vcmp.ne.s32.totalorder %v947_v47, 0  ;;  %vm1031_vm8 = vcmp.lt.s32.totalorder %v947_v47, 0  ;;  %v2265_v2 = vld [vmem:[#allocation2 + $0x3b] sm:$0xff]  ;;  %v1347_v36 = vld [vmem:[#allocation2 + $0x90] sm:$0xff] }
 0x152   : > { %v1103_v40 = vadd.s32 18, %v947_v47  ;;  %v8246_v9 = vmax.f32 %v6980_v48, 0.0  ;;  %vm996_vm9 = vcmp.ne.s32.totalorder %v958_v3, 0  ;;  %vm1032_vm11 = vcmp.lt.s32.totalorder %v958_v3, 0  ;;  %vm1067_vm15 = vmand %vm1031_vm8, %vm995_vm3  ;;  %v1348_v28 = vld [vmem:[#allocation2 + $0x98] sm:$0xff] }
 0x153   : > { %v1104_v62 = vadd.s32 18, %v958_v3  ;;  %vm1068_vm1 = vmand %vm1032_vm11, %vm996_vm9  ;;  %vm8451_vm11 = vnez %v8422_v42 }
 0x154   : > { %v1139_v13 = vsel %vm1067_vm15, %v1103_v40, %v947_v47  ;;  %v5487_v40 = vld [vmem:[#allocation11 + $0x198] sm:$0xff]   ;;  %vm5524_vm3 = vmpackc.low %vm6772_vm5, %vm6768_vm13  ;;  %vm8452_vm15 = vnez %v8426_v7 }
 0x155   : > { %vm6986_vm7 = vcmp.lt.s32.totalorder %v1139_v13, 16  ;;  %v1423_v13 = vld [vmem:[#allocation2 + $0xb1] sm:$0xff]  ;;  %vm5527_vm8 = vmpackc.low %vm6829_vm0, %vm6816_vm12 }
 0x156   : > { %v1283_v47 = vsel %vm6986_vm7, %v8247_v39, 0.0  ;;  %v1474_v39 = vld [vmem:[#allocation2 + $0xa] sm:$0xff]  ;;  %vm5530_vm9 = vmpackc.low %vm6869_vm4, %vm6865_vm2 }
 0x157   : > { %1895 = vmatmul.mubr.bf16.gmra.mrb[32].mxu0 %v1373_v29  ;;  %v2298_v29 = vpack.c.bf16 %v2265_v2, %v2264_v35  ;;  %1327 = vst [vmem:[#allocation2 + $0x123] sm:$0xff] %v1283_v47  ;;  %v2266_v35 = vld [vmem:[#allocation2 + $0x43] sm:$0xff]  ;;  %v2267_v2 = vld [vmem:[#allocation2 + $0x4b] sm:$0xff] }
 0x158   : > { %2684 = vmatmul.mubr.bf16.vlgmr.msra.gmra.mrb[32].mxu1 %v6973_v20  ;;  %1902 = vmatprep.mubr.bf16.mxu0 %v1446_v49  ;;  %v1374_v49 = vpack.c.bf16 %v1348_v28, %v1347_v36  ;;  %v1350_v36 = vld [vmem:[#allocation2 + $0xa8] sm:$0xff]  ;;  %v2299_v47 = vpack.c.bf16 %v2267_v2, %v2266_v35 }
 0x159   : > { %3577 = vmatpush1.bf16.msra.mxu1 %v5484_v44  ;;  %2691 = vmatprep.mubr.bf16.mxu1 %v2297_v54  ;;  %v1140_v44 = vsel %vm1068_vm1, %v1104_v62, %v958_v3  ;;  %v8437_v54 = vmov 0  ;;  %v1447_v3 = vpack.c.bf16 %v1422_v23, %v1421_v6  ;;  %v1349_v62 = vld [vmem:[#allocation2 + $0xa0] sm:$0xff]  ;;  %v1426_v2 = vld [vmem:[#allocation2 + $0xc9] sm:$0xff]  ;;  %vm5521_vm1 = vmpackc.low %vm6737_vm14, %vm6730_vm10 }
 0x15a   : > { %3578 = vmatprep.subr.bf16.mxu1 %v8436_v27  ;;  %v8438_v54 = vsel %vm6986_vm7, 4294967295, %v8437_v54  ;;  %vm6990_vm6 = vcmp.lt.s32.totalorder %v1140_v44, 16  ;;  %v1424_v44 = vld [vmem:[#allocation2 + $0xb9] sm:$0xff]  ;;  %v1425_v35 = vld [vmem:[#allocation2 + $0xc1] sm:$0xff] }
 0x15b   : > { %8439 = vst [vmem:[#allocation56_spill] sm:$0xff] %v8438_v54  ;;  %v8441_v56 = vsel %vm6990_vm6, 4294967295, %v8440_v56  ;;  %v1284_v37 = vsel %vm6990_vm6, %v8246_v9, 0.0  ;;  %v5488_v6 = vld [vmem:[#allocation11 + $0x1a0] sm:$0xff]   ;;  %v1448_v23 = vpack.c.bf16 %v1424_v44, %v1423_v13  ;;  %v2196_v13 = vld [vmem:[#allocation2 + $0x52] sm:$0xff] }
 0x15c   : > { %8442 = vst [vmem:[#allocation57_spill] sm:$0xff] %v8441_v56  ;;  %1328 = vst [vmem:[#allocation2 + $0x12b] sm:$0xff] %v1284_v37  ;;  %v5489_v37 = vld [vmem:[#allocation11 + $0x1a8] sm:$0xff]   ;;  %v2197_v44 = vld [vmem:[#allocation2 + $0x5a] sm:$0xff] }
 0x15d   : > { %3579 = vmatpush1.bf16.msra.mxu1 %v5485_v19  ;;  %v2193_v19 = vld [vmem:[#allocation2 + $0x3a] sm:$0xff] }
 0x15e   : > { %3580 = vmatprep.subr.bf16.mxu1 %v8436_v27  ;;  %v2226_v28 = vpack.c.bf16 %v2193_v19, %v2192_v31  ;;  %v1351_v31 = vld [vmem:[#allocation2 + $0xb0] sm:$0xff]  ;;  %v1352_v19 = vld [vmem:[#allocation2 + $0xb8] sm:$0xff] }
 0x15f   : > { %1903 = vmatmul.mubr.bf16.gmra.mrb[36].mxu0 %v1374_v49  ;;  %v2268_v49 = vld [vmem:[#allocation2 + $0x53] sm:$0xff] }
 0x160   : > { %2692 = vmatmul.mubr.bf16.gmra.mrb[36].mxu1 %v2225_v43  ;;  %1910 = vmatprep.mubr.bf16.mxu0 %v1447_v3  ;;  %v1375_v43 = vpack.c.bf16 %v1350_v36, %v1349_v62  ;;  %v2269_v3 = vld [vmem:[#allocation2 + $0x5b] sm:$0xff]  ;;  %v5490_v62 = vld [vmem:[#allocation11 + $0x1b0] sm:$0xff]   ;;  %v1376_v36 = vpack.c.bf16 %v1352_v19, %v1351_v31 }
 0x161   : > { %2699 = vmatprep.mubr.bf16.mxu1 %v2298_v29  ;;  %3581 = vmatpush1.bf16.msra.mxu1 %v5486_v52  ;;  %v2194_v29 = vld [vmem:[#allocation2 + $0x42] sm:$0xff]  ;;  %v2195_v52 = vld [vmem:[#allocation2 + $0x4a] sm:$0xff]  ;;  %v2300_v9 = vpack.c.bf16 %v2269_v3, %v2268_v49  ;;  %v1428_v49 = vld [vmem:[#allocation2 + $0xd9] sm:$0xff] }
 0x162   : > { %3582 = vmatprep.subr.bf16.mxu1 %v8436_v27  ;;  %v5492_v31 = vld [vmem:[#allocation11 + $0x1c0] sm:$0xff]  }
 0x165   : > { %3583 = vmatpush1.bf16.msra.mxu1 %v5487_v40  ;;  %v2227_v40 = vpack.c.bf16 %v2195_v52, %v2194_v29  ;;  %v1354_v29 = vld [vmem:[#allocation2 + $0xc8] sm:$0xff]  ;;  %v2228_v52 = vpack.c.bf16 %v2197_v44, %v2196_v13  ;;  %v1356_v13 = vld [vmem:[#allocation2 + $0xd8] sm:$0xff] }
 0x166   : > { %3584 = vmatprep.subr.bf16.mxu1 %v8436_v27 }
 0x167   : > { %1911 = vmatmul.mubr.bf16.gmra.mrb[40].mxu0 %v1375_v43  ;;  %v2271_v43 = vld [vmem:[#allocation2 + $0x6b] sm:$0xff] }
 0x168   : > { %2700 = vmatmul.mubr.bf16.gmra.mrb[40].mxu1 %v2226_v28  ;;  %1918 = vmatprep.mubr.bf16.mxu0 %v1448_v23  ;;  %v1449_v28 = vpack.c.bf16 %v1426_v2, %v1425_v35  ;;  %v1353_v23 = vld [vmem:[#allocation2 + $0xc0] sm:$0xff]  ;;  %v2199_v35 = vld [vmem:[#allocation2 + $0x6a] sm:$0xff] }
 0x169   : > { %2707 = vmatprep.mubr.bf16.mxu1 %v2299_v47  ;;  %3585 = vmatpush1.bf16.msra.mxu1 %v5488_v6  ;;  %v5491_v47 = vld [vmem:[#allocation11 + $0x1b8] sm:$0xff]   ;;  %v2270_v6 = vld [vmem:[#allocation2 + $0x63] sm:$0xff]  ;;  %v1377_v19 = vpack.c.bf16 %v1354_v29, %v1353_v23  ;;  %v5494_v23 = vld [vmem:[#allocation11 + $0x1d0] sm:$0xff]  }
 0x16a   : > { %3586 = vmatprep.subr.bf16.mxu1 %v8436_v27  ;;  %v2301_v3 = vpack.c.bf16 %v2271_v43, %v2270_v6  ;;  %v5493_v2 = vld [vmem:[#allocation11 + $0x1c8] sm:$0xff]  }
 0x16b   : > { %v1430_v6 = vld [vmem:[#allocation2 + $0xe9] sm:$0xff] }
 0x16d   : > { %3587 = vmatpush1.bf16.msra.mxu1 %v5489_v37  ;;  %v1427_v37 = vld [vmem:[#allocation2 + $0xd1] sm:$0xff] }
 0x16e   : > { %3588 = vmatprep.subr.bf16.mxu1 %v8436_v27 }
 0x16f   : > { %1919 = vmatmul.mubr.bf16.gmra.mrb[44].mxu0 %v1376_v36  ;;  %v2273_v36 = vld [vmem:[#allocation2 + $0x7b] sm:$0xff] }
 0x170   : > { %2708 = vmatmul.mubr.bf16.gmra.mrb[44].mxu1 %v2227_v40  ;;  %1926 = vmatprep.mubr.bf16.mxu0 %v1449_v28  ;;  %v2198_v40 = vld [vmem:[#allocation2 + $0x62] sm:$0xff]  ;;  %v1355_v28 = vld [vmem:[#allocation2 + $0xd0] sm:$0xff] }
 0x171   : > { %2715 = vmatprep.mubr.bf16.mxu1 %v2300_v9  ;;  %3589 = vmatpush1.bf16.msra.mxu1 %v5490_v62  ;;  %v1450_v9 = vpack.c.bf16 %v1428_v49, %v1427_v37  ;;  %v2272_v62 = vld [vmem:[#allocation2 + $0x73] sm:$0xff]  ;;  %v2229_v44 = vpack.c.bf16 %v2199_v35, %v2198_v40  ;;  %v1378_v29 = vpack.c.bf16 %v1356_v13, %v1355_v28  ;;  %v1358_v40 = vld [vmem:[#allocation2 + $0xe8] sm:$0xff]  ;;  %v5497_v28 = vld [vmem:[#allocation11 + $0x1e0] sm:$0xff]  }
 0x172   : > { %3590 = vmatprep.subr.bf16.mxu1 %v8436_v27  ;;  %v2302_v43 = vpack.c.bf16 %v2273_v36, %v2272_v62  ;;  %v2200_v37 = vld [vmem:[#allocation2 + $0x72] sm:$0xff]  ;;  %v2201_v49 = vld [vmem:[#allocation2 + $0x7a] sm:$0xff] }
 0x173   : > { %v2230_v35 = vpack.c.bf16 %v2201_v49, %v2200_v37  ;;  %v1432_v62 = vld [vmem:[#allocation2 + $0xf9] sm:$0xff] }
 0x174   : > { %v1360_v37 = vld [vmem:[#allocation2 + $0xf8] sm:$0xff] }
 0x175   : > { %3591 = vmatpush1.bf16.msra.mxu1 %v5491_v47  ;;  %v1429_v47 = vld [vmem:[#allocation2 + $0xe1] sm:$0xff] }
 0x176   : > { %3592 = vmatprep.subr.bf16.mxu1 %v8436_v27 }
 0x177   : > { %1927 = vmatmul.mubr.bf16.gmra.mrb[48].mxu0 %v1377_v19  ;;  %v2275_v19 = vld [vmem:[#allocation2 + $0x8b] sm:$0xff] }
 0x178   : > { %2716 = vmatmul.mubr.bf16.gmra.mrb[48].mxu1 %v2228_v52  ;;  %1934 = vmatprep.mubr.bf16.mxu0 %v1450_v9  ;;  %v1451_v52 = vpack.c.bf16 %v1430_v6, %v1429_v47  ;;  %v1357_v9 = vld [vmem:[#allocation2 + $0xe0] sm:$0xff]  ;;  %v2203_v6 = vld [vmem:[#allocation2 + $0x8a] sm:$0xff] }
 0x179   : > { %2723 = vmatprep.mubr.bf16.mxu1 %v2301_v3  ;;  %3593 = vmatpush1.bf16.msra.mxu1 %v5492_v31  ;;  %v5495_v3 = vld [vmem:[#allocation11 + $0x1d8] sm:$0xff]   ;;  %v2274_v31 = vld [vmem:[#allocation2 + $0x83] sm:$0xff]  ;;  %v1379_v13 = vpack.c.bf16 %v1358_v40, %v1357_v9  ;;  %v5504_v9 = vld [vmem:[#allocation11 + $0x1f0] sm:$0xff]  }
 0x17a   : > { %3594 = vmatprep.subr.bf16.mxu1 %v8436_v27  ;;  %v2303_v36 = vpack.c.bf16 %v2275_v19, %v2274_v31  ;;  %v2202_v47 = vld [vmem:[#allocation2 + $0x82] sm:$0xff] }
 0x17b   : > { %v2231_v49 = vpack.c.bf16 %v2203_v6, %v2202_v47  ;;  %v1434_v31 = vld [vmem:[#allocation2 + $0x109] sm:$0xff] }
 0x17c   : > { %v1362_v47 = vld [vmem:[#allocation2 + $0x108] sm:$0xff] }
 0x17d   : > { %3595 = vmatpush1.bf16.msra.mxu1 %v5493_v2  ;;  %v1431_v2 = vld [vmem:[#allocation2 + $0xf1] sm:$0xff] }
 0x17e   : > { %3596 = vmatprep.subr.bf16.mxu1 %v8436_v27 }
 0x17f   : > { %1935 = vmatmul.mubr.bf16.gmra.mrb[52].mxu0 %v1378_v29  ;;  %v2277_v29 = vld [vmem:[#allocation2 + $0x9b] sm:$0xff] }
 0x180   : > { %2724 = vmatmul.mubr.bf16.gmra.mrb[52].mxu1 %v2229_v44  ;;  %1942 = vmatprep.mubr.bf16.mxu0 %v1451_v52  ;;  %v1452_v44 = vpack.c.bf16 %v1432_v62, %v1431_v2  ;;  %v1359_v52 = vld [vmem:[#allocation2 + $0xf0] sm:$0xff]  ;;  %v2205_v62 = vld [vmem:[#allocation2 + $0x9a] sm:$0xff] }
 0x181   : > { %2731 = vmatprep.mubr.bf16.mxu1 %v2302_v43  ;;  %3597 = vmatpush1.bf16.msra.mxu1 %v5494_v23  ;;  %v5500_v43 = vld [vmem:[#allocation11 + $0x1e8] sm:$0xff]   ;;  %v2276_v23 = vld [vmem:[#allocation2 + $0x93] sm:$0xff]  ;;  %v1380_v40 = vpack.c.bf16 %v1360_v37, %v1359_v52 }
 0x182   : > { %3598 = vmatprep.subr.bf16.mxu1 %v8436_v27  ;;  %v2304_v19 = vpack.c.bf16 %v2277_v29, %v2276_v23  ;;  %v2204_v2 = vld [vmem:[#allocation2 + $0x92] sm:$0xff] }
 0x183   : > { %v2232_v6 = vpack.c.bf16 %v2205_v62, %v2204_v2  ;;  %v1436_v23 = vld [vmem:[#allocation2 + $0x119] sm:$0xff] }
 0x185   : > { %3599 = vmatpush1.bf16.msra.mxu1 %v5495_v3  ;;  %v1433_v3 = vld [vmem:[#allocation2 + $0x101] sm:$0xff] }
 0x186   : > { %3600 = vmatprep.subr.bf16.mxu1 %v8436_v27 }
 0x187   : > { %1943 = vmatmul.mubr.bf16.gmra.mrb[56].mxu0 %v1379_v13  ;;  %v2279_v13 = vld [vmem:[#allocation2 + $0xab] sm:$0xff] }
 0x188   : > { %2732 = vmatmul.mubr.bf16.gmra.mrb[56].mxu1 %v2230_v35  ;;  %1950 = vmatprep.mubr.bf16.mxu0 %v1452_v44  ;;  %v1453_v35 = vpack.c.bf16 %v1434_v31, %v1433_v3  ;;  %v1361_v44 = vld [vmem:[#allocation2 + $0x100] sm:$0xff]  ;;  %v2207_v3 = vld [vmem:[#allocation2 + $0xaa] sm:$0xff]  ;;  %v2280_v31 = vld [vmem:[#allocation2 + $0xb3] sm:$0xff] }
 0x189   : > { %2739 = vmatprep.mubr.bf16.mxu1 %v2303_v36  ;;  %3601 = vmatpush1.bf16.msra.mxu1 %v5497_v28  ;;  %v5507_v36 = vld [vmem:[#allocation11 + $0x1f8] sm:$0xff]   ;;  %v2278_v28 = vld [vmem:[#allocation2 + $0xa3] sm:$0xff]  ;;  %v1381_v52 = vpack.c.bf16 %v1362_v47, %v1361_v44 }
 0x18a   : > { %3602 = vmatprep.subr.bf16.mxu1 %v8436_v27  ;;  %v2305_v29 = vpack.c.bf16 %v2279_v13, %v2278_v28  ;;  %v2209_v28 = vld [vmem:[#allocation2 + $0xba] sm:$0xff] }
 0x18b   : > { %v2332_v44 = vld [vmem:[#allocation2 + $0x14] sm:$0xff]  ;;  %v2333_v47 = vld [vmem:[#allocation2 + $0x1c] sm:$0xff] }
 0x18d   : > { %3603 = vmatpush1.bf16.msra.mxu1 %v5500_v43  ;;  %v1435_v43 = vld [vmem:[#allocation2 + $0x111] sm:$0xff] }
 0x18e   : > { %3604 = vmatprep.subr.bf16.mxu1 %v8436_v27  ;;  %v1454_v37 = vpack.c.bf16 %v1436_v23, %v1435_v43  ;;  %v5498_v43 = vld [vmem:[#allocation11 + $0x148] sm:$0xff]   ;;  %v8443_v23 = vmax.f32 %v6628_v34, 0.0  ;;  %v8445_v34 = vmax.f32 %v6681_v14, 0.0  ;;  %v8447_v14 = vmax.f32 %v6754_v41, 0.0  ;;  %v5506_v41 = vld [vmem:[#allocation11 + $0x178] sm:$0xff]  }
 0x18f   : > { %1951 = vmatmul.mubr.bf16.gmra.mrb[60].mxu0 %v1380_v40 }
 0x190   : > { %2740 = vmatmul.mubr.bf16.gmra.mrb[60].mxu1 %v2231_v49  ;;  %1958 = vmatprep.mubr.bf16.mxu0 %v1453_v35  ;;  %v2206_v49 = vld [vmem:[#allocation2 + $0xa2] sm:$0xff] }
 0x191   : > { %2747 = vmatprep.mubr.bf16.mxu1 %v2304_v19  ;;  %3605 = vmatpush1.bf16.msra.mxu1 %v5504_v9  ;;  %v2281_v19 = vld [vmem:[#allocation2 + $0xbb] sm:$0xff]  ;;  %v1363_v9 = vld [vmem:[#allocation2 + $0x110] sm:$0xff]  ;;  %v2233_v40 = vpack.c.bf16 %v2207_v3, %v2206_v49 }
 0x192   : > { %3606 = vmatprep.subr.bf16.mxu1 %v8436_v27  ;;  %v1364_v27 = vld [vmem:[#allocation2 + $0x118] sm:$0xff]  ;;  %v1473_v35 = vld [vmem:[#allocation2 + $0x2] sm:$0xff]  ;;  %v2306_v2 = vpack.c.bf16 %v2281_v19, %v2280_v31 }
 0x193   : > { %v1382_v62 = vpack.c.bf16 %v1364_v27, %v1363_v9  ;;  %v1509_v8 = vpack.c.bf16 %v1474_v39, %v1473_v35  ;;  %v8444_v39 = vmax.f32 %v6649_v11, 0.0  ;;  %v5502_v3 = vld [vmem:[#allocation11 + $0x160] sm:$0xff]   ;;  %v5503_v31 = vld [vmem:[#allocation11 + $0x168] sm:$0xff]  }
 0x195   : > { %3607 = vmatpush1.bf16.msra.mxu1 %v5507_v36  ;;  %v2208_v36 = vld [vmem:[#allocation2 + $0xb2] sm:$0xff] }
 0x196   : > { %v2234_v13 = vpack.c.bf16 %v2209_v28, %v2208_v36 }
 0x197   : > { %1959 = vmatmul.mubr.bf16.gmra.mrb[64].mxu0 %v1381_v52  ;;  %v5501_v52 = vld [vmem:[#allocation11 + $0x158] sm:$0xff]  }
 0x198   : > { %2748 = vmatmul.mubr.bf16.gmra.mrb[64].mxu1 %v2232_v6  ;;  %1966 = vmatprep.mubr.bf16.mxu0 %v1454_v37  ;;  %v2368_v6 = vpack.c.bf16 %v2333_v47, %v2332_v44  ;;  %v2335_v44 = vld [vmem:[#allocation2 + $0x2c] sm:$0xff] }
 0x199   : > { %2755 = vmatprep.mubr.bf16.mxu1 %v2305_v29  ;;  %v5522_v29 = vpack.c.bf16 %v8444_v39, %v8443_v23  ;;  %v2337_v23 = vld [vmem:[#allocation2 + $0x3c] sm:$0xff] }
 0x19f   : > { %1967 = vmatmul.mubr.bf16.gmra.mrb[68].mxu0 %v1382_v62  ;;  %v8450_v62 = vmax.f32 %v6805_v16, 0.0  ;;  %v8453_v16 = vmax.f32 %v6854_v33, 0.0 }
 0x1a0   : > { %2756 = vmatmul.mubr.bf16.gmra.mrb[68].mxu1 %v2233_v40  ;;  %5114 = vmatprep.mubr.bf16.mxu0 %v1509_v8  ;;  %v5499_v8 = vld [vmem:[#allocation11 + $0x150] sm:$0xff]  }
 0x1a1   : > { %2763 = vmatprep.mubr.bf16.mxu1 %v2306_v2 }
 0x1a6   : > { %v7027_v37 = vpop.f32.mrb[0].mxu1 }
 0x1a7   : > { %5115 = vmatmul.mubr.bf16.vlgmr.msra.gmra.mrb[72].mxu0 %v6973_v20  ;;  %v8446_v20 = vmax.f32 %v6690_v55, 0.0  ;;  %v8448_v55 = vmax.f32 %v6757_v5, 0.0  ;;  %v8449_v5 = vmax.f32 %v6802_v45, 0.0  ;;  %v5509_v45 = vld [vmem:[#allocation11 + $0x208] sm:$0xff]  }
 0x1a8   : > { %2764 = vmatmul.mubr.bf16.gmra.mrb[72].mxu1 %v2234_v13  ;;  %5151 = vmatpush3.bf16.msra.mxu0 %v6932_v38  ;;  %v7037_v38 = vpop.f32.mrb[1].mxu1 }
 0x1a9   : > { %5523 = vmatprep.mubr.msk.bf16.mxu1 %vm5521_vm1, %v5522_v29  ;;  %5166 = vmatprep.mubr.bf16.mxu0 %v2368_v6  ;;  %v5525_v11 = vpack.c.bf16 %v8446_v20, %v8445_v34  ;;  %v7039_v49 = vpop.f32.mrb[2].mxu1  ;;  %v5528_v19 = vpack.c.bf16 %v8448_v55, %v8447_v14  ;;  %v5531_v36 = vpack.c.bf16 %v8450_v62, %v8449_v5  ;;  %v5508_v6 = vld [vmem:[#allocation11 + $0x200] sm:$0xff]   ;;  %vm5533_vm1 = vmpackc.low %vm8452_vm15, %vm8451_vm11  ;;  %v2338_v34 = vld [vmem:[#allocation2 + $0x44] sm:$0xff]  ;;  %v8458_v5 = vmax.f32 %v6915_v32, 0.0 }
 0x1aa   : > { %5152 = vmatprep.subr.bf16.mxu0 %v5498_v43  ;;  %v2340_v20 = vld [vmem:[#allocation2 + $0x54] sm:$0xff]  ;;  %v8459_v32 = vmax.f32 %v6977_v61, 0.0 }
 0x1ab   : > { %v2348_v61 = vld [vmem:[#allocation2 + $0x94] sm:$0xff] }
 0x1ac   : > { %5153 = vmatpush3.bf16.msra.mxu0 %v5498_v43  ;;  %v2336_v43 = vld [vmem:[#allocation2 + $0x34] sm:$0xff] }
 0x1ad   : > { %5154 = vmatprep.subr.bf16.mxu0 %v5499_v8  ;;  %v7075_v29 = vpack.c.bf16 %v2337_v23, %v2336_v43  ;;  %v8460_v43 = vmax.f32 %v6980_v48, 0.0  ;;  %v2349_v48 = vld [vmem:[#allocation2 + $0x9c] sm:$0xff] }
 0x1af   : > { %v5540_v23 = vpack.c.bf16 %v8460_v43, %v8459_v32  ;;  %v2351_v32 = vld [vmem:[#allocation2 + $0xac] sm:$0xff]  ;;  %v2352_v43 = vld [vmem:[#allocation2 + $0xb4] sm:$0xff] }
 0x1b0   : > { %2772 = vmatmul.mubr.bf16.gmra.mrb[76].mxu1 %v6807_v46  ;;  %5155 = vmatpush3.bf16.msra.mxu0 %v5499_v8  ;;  %v7041_v46 = vpop.f32.mrb[3].mxu1  ;;  %v8454_v8 = vmax.f32 %v6874_v63, 0.0 }
 0x1b1   : > { %5526 = vmatprep.mubr.msk.bf16.mxu1 %vm5524_vm3, %v5525_v11  ;;  %5156 = vmatprep.subr.bf16.mxu0 %v5501_v52  ;;  %v7052_v9 = vpop.f32.mrb[4].mxu1  ;;  %v2341_v11 = vld [vmem:[#allocation2 + $0x5c] sm:$0xff]  ;;  %vm8455_vm3 = vnez %v8430_v4  ;;  %v3194_v4 = vld [vmem:[#allocation2 + $0x6d] sm:$0xff] }
 0x1b2   : > { %v7054_v27 = vpop.f32.mrb[5].mxu1  ;;  %v7094_v63 = vpack.c.bf16 %v2341_v11, %v2340_v20 }
 0x1b3   : > { %v7056_v40 = vpop.f32.mrb[6].mxu1 }
 0x1b4   : > { %5157 = vmatpush3.bf16.msra.mxu0 %v5501_v52  ;;  %v7058_v35 = vpop.f32.mrb[7].mxu1  ;;  %v5534_v52 = vpack.c.bf16 %v8454_v8, %v8453_v16  ;;  %v2223_v16 = vld [vmem:[#allocation2 + $0x12a] sm:$0xff] }
 0x1b5   : > { %5158 = vmatprep.subr.bf16.mxu0 %v5502_v3  ;;  %v3185_v8 = vld [vmem:[#allocation2 + $0x25] sm:$0xff] }
 0x1b8   : > { %2780 = vmatmul.mubr.bf16.gmra.mrb[80].mxu1 %v6825_v26  ;;  %5159 = vmatpush3.bf16.msra.mxu0 %v5502_v3  ;;  %v5505_v26 = vld [vmem:[#allocation11 + $0x170] sm:$0xff]  }
 0x1b9   : > { %5529 = vmatprep.mubr.msk.bf16.mxu1 %vm5527_vm8, %v5528_v19  ;;  %5160 = vmatprep.subr.bf16.mxu0 %v5503_v31  ;;  %v5510_v3 = vld [vmem:[#allocation11 + $0x210] sm:$0xff]   ;;  %vm8456_vm8 = vnez %v8433_v1 }
 0x1ba   : > { %v7061_v2 = vpop.f32.mrb[0].mxu0  ;;  %v3193_v1 = vld [vmem:[#allocation2 + $0x65] sm:$0xff] }
 0x1bb   : > { %v1834_v28 = vpop.f32.mrb[1].mxu0 }
 0x1bc   : > { %5161 = vmatpush3.bf16.msra.mxu0 %v5503_v31  ;;  %v7071_v13 = vpop.f32.mrb[2].mxu0  ;;  %v2344_v28 = vld [vmem:[#allocation2 + $0x74] sm:$0xff] }
 0x1bd   : > { %5162 = vmatprep.subr.bf16.mxu0 %v5505_v26  ;;  %v1837_v47 = vpop.f32.mrb[3].mxu0 }
 0x1c0   : > { %2788 = vmatmul.mubr.bf16.gmra.mrb[84].mxu1 %v6896_v22  ;;  %5163 = vmatpush3.bf16.msra.mxu0 %v5505_v26  ;;  %v2334_v22 = vld [vmem:[#allocation2 + $0x24] sm:$0xff]  ;;  %v5511_v26 = vld [vmem:[#allocation11 + $0x218] sm:$0xff]  }
 0x1c1   : > { %5532 = vmatprep.mubr.msk.bf16.mxu1 %vm5530_vm9, %v5531_v36  ;;  %5164 = vmatprep.subr.bf16.mxu0 %v5506_v41  ;;  %v7073_v39 = vpack.c.bf16 %v2335_v44, %v2334_v22  ;;  %vm5536_vm9 = vmpackc.low %vm8456_vm8, %vm8455_vm3  ;;  %v2343_v36 = vld [vmem:[#allocation2 + $0x6c] sm:$0xff]  ;;  %v2345_v22 = vld [vmem:[#allocation2 + $0x7c] sm:$0xff] }
 0x1c2   : > { %v5512_v44 = vld [vmem:[#allocation11 + $0x220] sm:$0xff]  }
 0x1c4   : > { %5165 = vmatpush3.bf16.msra.mxu0 %v5506_v41  ;;  %v8457_v41 = vmax.f32 %v6902_v17, 0.0  ;;  %v5513_v17 = vld [vmem:[#allocation11 + $0x228] sm:$0xff]  }
 0x1c5   : > { %5202 = vmatprep.subr.bf16.mxu0 %v5508_v6  ;;  %v7088_v31 = vpop.f32.mrb[8].mxu1 }
 0x1c6   : > { %v7092_v33 = vpop.f32.mrb[9].mxu1  ;;  %v5537_v62 = vpack.c.bf16 %v8458_v5, %v8457_v41 }
 0x1c7   : > { %5167 = vmatmul.mubr.bf16.vlgmr.msra.gmra.mrb[76].mxu0 %v7073_v39  ;;  %v7096_v55 = vpop.f32.mrb[10].mxu1 }
 0x1c8   : > { %2796 = vmatmul.mubr.bf16.gmra.mrb[88].mxu1 %v6917_v57  ;;  %5203 = vmatpush3.bf16.msra.mxu0 %v5508_v6  ;;  %v2339_v57 = vld [vmem:[#allocation2 + $0x4c] sm:$0xff]  ;;  %v7099_v19 = vpop.f32.mrb[11].mxu1  ;;  %v7113_v6 = vpack.c.bf16 %v2345_v22, %v2344_v28  ;;  %v3187_v28 = vld [vmem:[#allocation2 + $0x35] sm:$0xff]  ;;  %v3188_v22 = vld [vmem:[#allocation2 + $0x3d] sm:$0xff] }
 0x1c9   : > { %5535 = vmatprep.mubr.msk.bf16.mxu1 %vm5533_vm1, %v5534_v52  ;;  %5170 = vmatprep.mubr.bf16.mxu0 %v7075_v29  ;;  %v7090_v14 = vpack.c.bf16 %v2339_v57, %v2338_v34  ;;  %vm5539_vm1 = vmpackc.low %vm6990_vm6, %vm6986_vm7  ;;  %v3186_v52 = vld [vmem:[#allocation2 + $0x2d] sm:$0xff] }
 0x1ca   : > { %5204 = vmatprep.subr.bf16.mxu0 %v5509_v45  ;;  %v2347_v34 = vld [vmem:[#allocation2 + $0x8c] sm:$0xff] }
 0x1cc   : > { %5205 = vmatpush3.bf16.msra.mxu0 %v5509_v45  ;;  %v2222_v45 = vld [vmem:[#allocation2 + $0x122] sm:$0xff] }
 0x1cd   : > { %5206 = vmatprep.subr.bf16.mxu0 %v5510_v3  ;;  %v2241_v20 = vpack.c.bf16 %v2223_v16, %v2222_v45  ;;  %v3222_v45 = vpack.c.bf16 %v3188_v22, %v3187_v28 }
 0x1cf   : > { %5171 = vmatmul.mubr.bf16.gmra.mrb[80].mxu0 %v7090_v14 }
 0x1d0   : > { %2804 = vmatmul.mubr.bf16.gmra.mrb[92].mxu1 %v6951_v58  ;;  %5174 = vmatprep.mubr.bf16.mxu0 %v7094_v63  ;;  %v2342_v58 = vld [vmem:[#allocation2 + $0x64] sm:$0xff] }
 0x1d1   : > { %5538 = vmatprep.mubr.msk.bf16.mxu1 %vm5536_vm9, %v5537_v62  ;;  %5207 = vmatpush3.bf16.msra.mxu0 %v5510_v3  ;;  %v7111_v47 = vpack.c.bf16 %v2343_v36, %v2342_v58  ;;  %v5514_v3 = vld [vmem:[#allocation11 + $0x230] sm:$0xff]   ;;  %v7136_v58 = vpack.c.bf16 %v2349_v48, %v2348_v61  ;;  %v5515_v36 = vld [vmem:[#allocation11 + $0x238] sm:$0xff]   ;;  %v2357_v48 = vld [vmem:[#allocation2 + $0xdc] sm:$0xff] }
 0x1d2   : > { %5208 = vmatprep.subr.bf16.mxu0 %v5511_v26  ;;  %v2356_v61 = vld [vmem:[#allocation2 + $0xd4] sm:$0xff] }
 0x1d3   : > { %v7157_v22 = vpack.c.bf16 %v2357_v48, %v2356_v61  ;;  %v2361_v61 = vld [vmem:[#allocation2 + $0xfc] sm:$0xff] }
 0x1d5   : > { %5209 = vmatpush3.bf16.msra.mxu0 %v5511_v26  ;;  %v7126_v57 = vpop.f32.mrb[12].mxu1  ;;  %v3221_v26 = vpack.c.bf16 %v3186_v52, %v3185_v8  ;;  %v3189_v8 = vld [vmem:[#allocation2 + $0x45] sm:$0xff]  ;;  %v3190_v52 = vld [vmem:[#allocation2 + $0x4d] sm:$0xff] }
 0x1d6   : > { %5210 = vmatprep.subr.bf16.mxu0 %v5512_v44  ;;  %v7128_v11 = vpop.f32.mrb[13].mxu1 }
 0x1d7   : > { %5175 = vmatmul.mubr.bf16.gmra.mrb[84].mxu0 %v7111_v47  ;;  %v7130_v41 = vpop.f32.mrb[14].mxu1 }
 0x1d8   : > { %2812 = vmatmul.mubr.bf16.gmra.mrb[96].mxu1 %v6957_v50  ;;  %5178 = vmatprep.mubr.bf16.mxu0 %v7113_v6  ;;  %v2346_v50 = vld [vmem:[#allocation2 + $0x84] sm:$0xff]  ;;  %v7134_v62 = vpop.f32.mrb[15].mxu1 }
 0x1d9   : > { %5541 = vmatprep.mubr.msk.bf16.mxu1 %vm5539_vm1, %v5540_v23  ;;  %5211 = vmatpush3.bf16.msra.mxu0 %v5512_v44  ;;  %v7132_v5 = vpack.c.bf16 %v2347_v34, %v2346_v50  ;;  %v2350_v44 = vld [vmem:[#allocation2 + $0xa4] sm:$0xff]  ;;  %v2353_v23 = vld [vmem:[#allocation2 + $0xbc] sm:$0xff]  ;;  %v2355_v34 = vld [vmem:[#allocation2 + $0xcc] sm:$0xff] }
 0x1da   : > { %5212 = vmatprep.subr.bf16.mxu0 %v5513_v17  ;;  %v7140_v16 = vpack.c.bf16 %v2351_v32, %v2350_v44  ;;  %v2354_v50 = vld [vmem:[#allocation2 + $0xc4] sm:$0xff] }
 0x1dd   : > { %5213 = vmatpush3.bf16.msra.mxu0 %v5513_v17  ;;  %v7142_v17 = vpack.c.bf16 %v2353_v23, %v2352_v43  ;;  %v3191_v43 = vld [vmem:[#allocation2 + $0x55] sm:$0xff]  ;;  %v3192_v23 = vld [vmem:[#allocation2 + $0x5d] sm:$0xff] }
 0x1de   : > { %5214 = vmatprep.subr.bf16.mxu0 %v5514_v3  ;;  %v3224_v48 = vpack.c.bf16 %v3192_v23, %v3191_v43 }
 0x1df   : > { %5179 = vmatmul.mubr.bf16.gmra.mrb[88].mxu0 %v7132_v5 }
 0x1e0   : > { %2820 = vmatmul.mubr.bf16.gmra.mrb[100].mxu1 %v2241_v20  ;;  %5182 = vmatprep.mubr.bf16.mxu0 %v7136_v58 }
 0x1e1   : > { %3608 = vmatprep.mubr.bf16.mxu1 %v3221_v26  ;;  %5215 = vmatpush3.bf16.msra.mxu0 %v5514_v3  ;;  %v3223_v3 = vpack.c.bf16 %v3190_v52, %v3189_v8  ;;  %v2358_v52 = vld [vmem:[#allocation2 + $0xe4] sm:$0xff] }
 0x1e2   : > { %5216 = vmatprep.subr.bf16.mxu0 %v5515_v36 }
 0x1e5   : > { %5217 = vmatpush3.bf16.msra.mxu0 %v5515_v36  ;;  %v7153_v36 = vpack.c.bf16 %v2355_v34, %v2354_v50  ;;  %v2359_v50 = vld [vmem:[#allocation2 + $0xec] sm:$0xff]  ;;  %v2360_v34 = vld [vmem:[#allocation2 + $0xf4] sm:$0xff] }
 0x1e6   : > { %v7166_v56 = vpack.c.bf16 %v2359_v50, %v2358_v52  ;;  %v2363_v50 = vld [vmem:[#allocation2 + $0x10c] sm:$0xff] }
 0x1e7   : > { %5183 = vmatmul.mubr.bf16.gmra.mrb[92].mxu0 %v7140_v16 }
 0x1e8   : > { %3609 = vmatmul.mubr.bf16.vlgmr.msra.gmra.mrb[104].mxu1 %v7073_v39  ;;  %5186 = vmatprep.mubr.bf16.mxu0 %v7142_v17  ;;  %v7147_v20 = vpop.f32.mrb[16].mxu1 }
 0x1e9   : > { %3616 = vmatprep.mubr.bf16.mxu1 %v3222_v45  ;;  %v7149_v26 = vpop.f32.mrb[17].mxu1 }
 0x1ea   : > { %v7151_v28 = vpop.f32.mrb[18].mxu1 }
 0x1eb   : > { %v7155_v39 = vpop.f32.mrb[19].mxu1 }
 0x1ed   : > { %v7160_v44 = vpop.f32.mrb[4].mxu0 }
 0x1ee   : > { %v1842_v32 = vpop.f32.mrb[5].mxu0 }
 0x1ef   : > { %5187 = vmatmul.mubr.bf16.gmra.mrb[96].mxu0 %v7153_v36  ;;  %v7163_v45 = vpop.f32.mrb[6].mxu0 }
 0x1f0   : > { %3617 = vmatmul.mubr.bf16.gmra.mrb[108].mxu1 %v7075_v29  ;;  %v1845_v8 = vpop.f32.mrb[7].mxu0  ;;  %5190 = vmatprep.mubr.bf16.mxu0 %v7157_v22  ;;  %v7168_v29 = vpack.c.bf16 %v2361_v61, %v2360_v34  ;;  %v2364_v34 = vld [vmem:[#allocation2 + $0x114] sm:$0xff]  ;;  %v2365_v61 = vld [vmem:[#allocation2 + $0x11c] sm:$0xff] }
 0x1f1   : > { %3624 = vmatprep.mubr.bf16.mxu1 %v3223_v3  ;;  %v7171_v3 = vld [vmem:[#allocation13] ss:$0 sm:$0xff]  ;;  %v7185_v42 = vpack.c.bf16 %v2365_v61, %v2364_v34  ;;  %v3257_v61 = vld [vmem:[#allocation2 + $0x26] sm:$0xff] }
 0x1f7   : > { %v1848_v32 = vpop.f32.mrb[8].mxu0  ;;  %5191 = vmatmul.mubr.bf16.gmra.mrb[100].mxu0 %v7166_v56 }
 0x1f8   : > { %3625 = vmatmul.mubr.bf16.gmra.mrb[112].mxu1 %v7090_v14  ;;  %v1849_v54 = vadd.f32 %v7171_v3, %v1848_v32  ;;  %v1850_v8 = vpop.f32.mrb[9].mxu0  ;;  %5194 = vmatprep.mubr.bf16.mxu0 %v7168_v29  ;;  %v2362_v14 = vld [vmem:[#allocation2 + $0x104] sm:$0xff] }
 0x1f9   : > { %3632 = vmatprep.mubr.bf16.mxu1 %v3224_v48  ;;  %v1851_v7 = vpop.f32.mrb[10].mxu0  ;;  %v3225_v48 = vpack.c.bf16 %v3194_v4, %v3193_v1  ;;  %v7183_v8 = vpack.c.bf16 %v2363_v50, %v2362_v14  ;;  %v2366_v14 = vld [vmem:[#allocation2 + $0x124] sm:$0xff]  ;;  %v2367_v50 = vld [vmem:[#allocation2 + $0x12c] sm:$0xff] }
 0x1fa   : > { %v7176_v43 = vadd.f32 %v7037_v38, %v1849_v54  ;;  %v1852_v23 = vadd.f32 %v7171_v3, %v1851_v7  ;;  %v1853_v52 = vpop.f32.mrb[11].mxu0  ;;  %v7206_v51 = vpack.c.bf16 %v2367_v50, %v2366_v14 }
 0x1fc   : > { %v7181_v32 = vadd.f32 %v7041_v46, %v1852_v23 }
 0x1ff   : > { %v1856_v54 = vpop.f32.mrb[12].mxu0  ;;  %5195 = vmatmul.mubr.bf16.gmra.mrb[104].mxu0 %v7183_v8 }
 0x200   : > { %3633 = vmatmul.mubr.bf16.gmra.mrb[116].mxu1 %v7094_v63  ;;  %v1857_v38 = vadd.f32 %v7171_v3, %v1856_v54  ;;  %v1858_v52 = vpop.f32.mrb[13].mxu0  ;;  %5198 = vmatprep.mubr.bf16.mxu0 %v7185_v42  ;;  %v3226_v54 = vpack.c.bf16 %v3196_v60, %v3195_v21 }
 0x201   : > { %3640 = vmatprep.mubr.bf16.mxu1 %v3225_v48  ;;  %v7188_v7 = vpop.f32.mrb[20].mxu1  ;;  %v1859_v4 = vpop.f32.mrb[14].mxu0  ;;  %v3258_v48 = vld [vmem:[#allocation2 + $0x2e] sm:$0xff] }
 0x202   : > { %v7191_v30 = vpop.f32.mrb[21].mxu1  ;;  %v7197_v46 = vadd.f32 %v7027_v37, %v1857_v38  ;;  %v1860_v63 = vadd.f32 %v7171_v3, %v1859_v4  ;;  %v1861_v23 = vpop.f32.mrb[15].mxu0  ;;  %v3293_v53 = vpack.c.bf16 %v3258_v48, %v3257_v61  ;;  %v3197_v37 = vld [vmem:[#allocation2 + $0x85] sm:$0xff]  ;;  %v3198_v38 = vld [vmem:[#allocation2 + $0x8d] sm:$0xff]  ;;  %v3259_v4 = vld [vmem:[#allocation2 + $0x36] sm:$0xff]  ;;  %v3295_v48 = vpack.c.bf16 %v3262_v24, %v3261_v15 }
 0x203   : > { %v7194_v1 = vpop.f32.mrb[22].mxu1  ;;  %v3260_v23 = vld [vmem:[#allocation2 + $0x3e] sm:$0xff]  ;;  %v3227_v60 = vpack.c.bf16 %v3198_v38, %v3197_v37  ;;  %v3199_v37 = vld [vmem:[#allocation2 + $0x95] sm:$0xff]  ;;  %v3265_v24 = vld [vmem:[#allocation2 + $0x66] sm:$0xff] }
 0x204   : > { %v7201_v34 = vpop.f32.mrb[23].mxu1  ;;  %v7204_v52 = vadd.f32 %v7039_v49, %v1860_v63  ;;  %v3294_v14 = vpack.c.bf16 %v3260_v23, %v3259_v4  ;;  %v3264_v4 = vld [vmem:[#allocation2 + $0x5e] sm:$0xff]  ;;  %v3266_v15 = vld [vmem:[#allocation2 + $0x6e] sm:$0xff] }
 0x205   : > { %v3297_v12 = vpack.c.bf16 %v3266_v15, %v3265_v24 }
 0x207   : > { %5199 = vmatmul.mubr.bf16.gmra.mrb[108].mxu0 %v7206_v51 }
 0x208   : > { %3641 = vmatmul.mubr.bf16.gmra.mrb[120].mxu1 %v7111_v47  ;;  %5218 = vmatprep.mubr.bf16.mxu0 %v3293_v53 }
 0x209   : > { %3648 = vmatprep.mubr.bf16.mxu1 %v3226_v54 }
 0x20a   : > { %v1864_v18 = vpop.f32.mrb[16].mxu0 }
 0x20b   : > { %v1865_v21 = vadd.f32 %v7171_v3, %v1864_v18  ;;  %v1866_v49 = vpop.f32.mrb[17].mxu0  ;;  %v3200_v18 = vld [vmem:[#allocation2 + $0x9d] sm:$0xff] }
 0x20c   : > { %v1867_v63 = vpop.f32.mrb[18].mxu0 }
 0x20d   : > { %v7212_v50 = vadd.f32 %v7054_v27, %v1865_v21  ;;  %v1868_v47 = vadd.f32 %v7171_v3, %v1867_v63  ;;  %v1869_v61 = vpop.f32.mrb[19].mxu0  ;;  %v3263_v27 = vld [vmem:[#allocation2 + $0x56] sm:$0xff] }
 0x20f   : > { %v7217_v53 = vadd.f32 %v7058_v35, %v1868_v47  ;;  %5219 = vmatmul.mubr.bf16.vlgmr.msra.gmra.mrb[112].mxu0 %v3294_v14  ;;  %v3296_v47 = vpack.c.bf16 %v3264_v4, %v3263_v27  ;;  %v3269_v4 = vld [vmem:[#allocation2 + $0x86] sm:$0xff] }
 0x210   : > { %3649 = vmatmul.mubr.bf16.gmra.mrb[124].mxu1 %v7113_v6  ;;  %5222 = vmatprep.mubr.bf16.mxu0 %v3295_v48 }
 0x211   : > { %3656 = vmatprep.mubr.bf16.mxu1 %v3227_v60  ;;  %v3228_v60 = vpack.c.bf16 %v3200_v18, %v3199_v37  ;;  %v3202_v37 = vld [vmem:[#allocation2 + $0xad] sm:$0xff]  ;;  %v3267_v18 = vld [vmem:[#allocation2 + $0x76] sm:$0xff] }
 0x212   : > { %v1872_v21 = vpop.f32.mrb[20].mxu0 }
 0x213   : > { %v1873_v35 = vadd.f32 %v7171_v3, %v1872_v21  ;;  %v1874_v49 = vpop.f32.mrb[21].mxu0  ;;  %v3268_v21 = vld [vmem:[#allocation2 + $0x7e] sm:$0xff] }
 0x214   : > { %v7219_v54 = vpop.f32.mrb[24].mxu1  ;;  %v1875_v63 = vpop.f32.mrb[22].mxu0  ;;  %v3298_v15 = vpack.c.bf16 %v3268_v21, %v3267_v18  ;;  %v3272_v18 = vld [vmem:[#allocation2 + $0x9e] sm:$0xff] }
 0x215   : > { %v7221_v38 = vpop.f32.mrb[25].mxu1  ;;  %v7229_v14 = vadd.f32 %v7052_v9, %v1873_v35  ;;  %v1876_v61 = vadd.f32 %v7171_v3, %v1875_v63  ;;  %v1877_v48 = vpop.f32.mrb[23].mxu0  ;;  %v3270_v9 = vld [vmem:[#allocation2 + $0x8e] sm:$0xff]  ;;  %v3229_v35 = vpack.c.bf16 %v3202_v37, %v3201_v10  ;;  %v3204_v10 = vld [vmem:[#allocation2 + $0xbd] sm:$0xff] }
 0x216   : > { %v7223_v23 = vpop.f32.mrb[26].mxu1  ;;  %v3271_v37 = vld [vmem:[#allocation2 + $0x96] sm:$0xff] }
 0x217   : > { %v7225_v6 = vpop.f32.mrb[27].mxu1  ;;  %v7234_v59 = vadd.f32 %v7056_v40, %v1876_v61  ;;  %5223 = vmatmul.mubr.bf16.gmra.mrb[116].mxu0 %v3296_v47  ;;  %v3299_v61 = vpack.c.bf16 %v3270_v9, %v3269_v4  ;;  %v3203_v47 = vld [vmem:[#allocation2 + $0xb5] sm:$0xff] }
 0x218   : > { %3657 = vmatmul.mubr.bf16.gmra.mrb[128].mxu1 %v7132_v5  ;;  %5226 = vmatprep.mubr.bf16.mxu0 %v3297_v12 }
 0x219   : > { %3664 = vmatprep.mubr.bf16.mxu1 %v3228_v60 }
 0x21a   : > { %v1880_v27 = vpop.f32.mrb[24].mxu0 }
 0x21b   : > { %v1881_v49 = vadd.f32 %v7171_v3, %v1880_v27  ;;  %v1882_v63 = vpop.f32.mrb[25].mxu0  ;;  %v3273_v27 = vld [vmem:[#allocation2 + $0xa6] sm:$0xff] }
 0x21c   : > { %v1883_v24 = vpop.f32.mrb[26].mxu0 }
 0x21d   : > { %v7238_v5 = vadd.f32 %v7092_v33, %v1881_v49  ;;  %v1884_v40 = vadd.f32 %v7171_v3, %v1883_v24  ;;  %v1885_v60 = vpop.f32.mrb[27].mxu0  ;;  %v3274_v49 = vld [vmem:[#allocation2 + $0xae] sm:$0xff]  ;;  %v3300_v24 = vpack.c.bf16 %v3272_v18, %v3271_v37  ;;  %v3275_v37 = vld [vmem:[#allocation2 + $0xb6] sm:$0xff]  ;;  %v3276_v18 = vld [vmem:[#allocation2 + $0xbe] sm:$0xff] }
 0x21f   : > { %v7243_v12 = vadd.f32 %v7099_v19, %v1884_v40  ;;  %5227 = vmatmul.mubr.bf16.gmra.mrb[120].mxu0 %v3298_v15 }
 0x220   : > { %3665 = vmatmul.mubr.bf16.gmra.mrb[132].mxu1 %v7136_v58  ;;  %5230 = vmatprep.mubr.bf16.mxu0 %v3299_v61  ;;  %v3230_v58 = vpack.c.bf16 %v3204_v10, %v3203_v47  ;;  %v3301_v61 = vpack.c.bf16 %v3274_v49, %v3273_v27  ;;  %v3205_v47 = vld [vmem:[#allocation2 + $0xc5] sm:$0xff]  ;;  %v3206_v10 = vld [vmem:[#allocation2 + $0xcd] sm:$0xff] }
 0x221   : > { %3672 = vmatprep.mubr.bf16.mxu1 %v3229_v35  ;;  %8461 = vst [vmem:[#allocation58_spill] sm:$0xff] %v7243_v12  ;;  %v3231_v27 = vpack.c.bf16 %v3206_v10, %v3205_v47  ;;  %v3207_v12 = vld [vmem:[#allocation2 + $0xd5] sm:$0xff] }
 0x222   : > { %v1888_v21 = vpop.f32.mrb[28].mxu0 }
 0x223   : > { %v7245_v48 = vpop.f32.mrb[28].mxu1  ;;  %v1889_v9 = vadd.f32 %v7171_v3, %v1888_v21  ;;  %v1890_v19 = vpop.f32.mrb[29].mxu0 }
 0x224   : > { %v7247_v33 = vpop.f32.mrb[29].mxu1  ;;  %v1891_v63 = vpop.f32.mrb[30].mxu0  ;;  %v3278_v19 = vld [vmem:[#allocation2 + $0xce] sm:$0xff] }
 0x225   : > { %v7249_v4 = vpop.f32.mrb[30].mxu1  ;;  %v7255_v15 = vadd.f32 %v7088_v31, %v1889_v9  ;;  %v1892_v40 = vadd.f32 %v7171_v3, %v1891_v63  ;;  %v1893_v60 = vpop.f32.mrb[31].mxu0  ;;  %v3277_v9 = vld [vmem:[#allocation2 + $0xc6] sm:$0xff] }
 0x226   : > { %v7252_v35 = vpop.f32.mrb[31].mxu1  ;;  %v3303_v25 = vpack.c.bf16 %v3278_v19, %v3277_v9  ;;  %v3282_v19 = vld [vmem:[#allocation2 + $0xee] sm:$0xff] }
 0x227   : > { %v7260_v0 = vadd.f32 %v7096_v55, %v1892_v40  ;;  %5231 = vmatmul.mubr.bf16.gmra.mrb[124].mxu0 %v3300_v24  ;;  %v3302_v40 = vpack.c.bf16 %v3276_v18, %v3275_v37  ;;  %v3279_v37 = vld [vmem:[#allocation2 + $0xd6] sm:$0xff]  ;;  %v3280_v18 = vld [vmem:[#allocation2 + $0xde] sm:$0xff] }
 0x228   : > { %3673 = vmatmul.mubr.bf16.gmra.mrb[136].mxu1 %v7140_v16  ;;  %5234 = vmatprep.mubr.bf16.mxu0 %v3301_v61 }
 0x229   : > { %3680 = vmatprep.mubr.bf16.mxu1 %v3230_v58  ;;  %8462 = vst [vmem:[#allocation59_spill] sm:$0xff] %v7260_v0  ;;  %v3208_v0 = vld [vmem:[#allocation2 + $0xdd] sm:$0xff] }
 0x22a   : > { %v1896_v49 = vpop.f32.mrb[32].mxu0 }
 0x22b   : > { %v7262_v21 = vpop.f32.mrb[32].mxu1  ;;  %v1897_v58 = vadd.f32 %v7171_v3, %v1896_v49  ;;  %v1898_v55 = vpop.f32.mrb[33].mxu0  ;;  %v3232_v49 = vpack.c.bf16 %v3208_v0, %v3207_v12 }
 0x22c   : > { %v2687_v31 = vpop.f32.mrb[33].mxu1  ;;  %v1899_v60 = vpop.f32.mrb[34].mxu0 }
 0x22d   : > { %v7264_v63 = vpop.f32.mrb[34].mxu1  ;;  %v7269_v24 = vadd.f32 %v7128_v11, %v1897_v58  ;;  %v1900_v61 = vadd.f32 %v7171_v3, %v1899_v60  ;;  %v1901_v31 = vpop.f32.mrb[35].mxu0  ;;  %v3304_v60 = vpack.c.bf16 %v3280_v18, %v3279_v37  ;;  %v3283_v37 = vld [vmem:[#allocation2 + $0xf6] sm:$0xff]  ;;  %v3284_v18 = vld [vmem:[#allocation2 + $0xfe] sm:$0xff] }
 0x22e   : > { %v2690_v16 = vpop.f32.mrb[35].mxu1 }
 0x22f   : > { %v7273_v47 = vadd.f32 %v7134_v62, %v1900_v61  ;;  %5235 = vmatmul.mubr.bf16.gmra.mrb[128].mxu0 %v3302_v40 }
 0x230   : > { %3681 = vmatmul.mubr.bf16.gmra.mrb[140].mxu1 %v7142_v17  ;;  %5238 = vmatprep.mubr.bf16.mxu0 %v3303_v25  ;;  %v3281_v17 = vld [vmem:[#allocation2 + $0xe6] sm:$0xff] }
 0x231   : > { %3688 = vmatprep.mubr.bf16.mxu1 %v3231_v27  ;;  %8463 = vst [vmem:[#allocation60_spill] sm:$0xff] %v7273_v47  ;;  %v3305_v61 = vpack.c.bf16 %v3282_v19, %v3281_v17  ;;  %v3210_v47 = vld [vmem:[#allocation2 + $0xed] sm:$0xff] }
 0x232   : > { %v1904_v16 = vpop.f32.mrb[36].mxu0  ;;  %v3286_v19 = vld [vmem:[#allocation2 + $0x10e] sm:$0xff] }
 0x233   : > { %v7275_v10 = vpop.f32.mrb[36].mxu1  ;;  %v1905_v27 = vadd.f32 %v7171_v3, %v1904_v16  ;;  %v1906_v55 = vpop.f32.mrb[37].mxu0 }
 0x234   : > { %v2695_v9 = vpop.f32.mrb[37].mxu1  ;;  %v1907_v62 = vpop.f32.mrb[38].mxu0 }
 0x235   : > { %v7277_v11 = vpop.f32.mrb[38].mxu1  ;;  %v7282_v25 = vadd.f32 %v7126_v57, %v1905_v27  ;;  %v1908_v40 = vadd.f32 %v7171_v3, %v1907_v62  ;;  %v1909_v31 = vpop.f32.mrb[39].mxu0  ;;  %v3209_v9 = vld [vmem:[#allocation2 + $0xe5] sm:$0xff]  ;;  %v3306_v62 = vpack.c.bf16 %v3284_v18, %v3283_v37  ;;  %v3287_v37 = vld [vmem:[#allocation2 + $0x116] sm:$0xff] }
 0x236   : > { %v2698_v58 = vpop.f32.mrb[39].mxu1  ;;  %v3233_v16 = vpack.c.bf16 %v3210_v47, %v3209_v9  ;;  %v3288_v18 = vld [vmem:[#allocation2 + $0x11e] sm:$0xff] }
 0x237   : > { %v7286_v0 = vadd.f32 %v7130_v41, %v1908_v40  ;;  %5239 = vmatmul.mubr.bf16.gmra.mrb[132].mxu0 %v3304_v60 }
 0x238   : > { %3689 = vmatmul.mubr.bf16.gmra.mrb[144].mxu1 %v7153_v36  ;;  %5242 = vmatprep.mubr.bf16.mxu0 %v3305_v61  ;;  %v3285_v36 = vld [vmem:[#allocation2 + $0x106] sm:$0xff] }
 0x239   : > { %3696 = vmatprep.mubr.bf16.mxu1 %v3232_v49  ;;  %8464 = vst [vmem:[#allocation61_spill] sm:$0xff] %v7286_v0  ;;  %v3307_v40 = vpack.c.bf16 %v3286_v19, %v3285_v36  ;;  %v3212_v0 = vld [vmem:[#allocation2 + $0xfd] sm:$0xff]  ;;  %v3290_v19 = vld [vmem:[#allocation2 + $0x12e] sm:$0xff] }
 0x23a   : > { %v1912_v58 = vpop.f32.mrb[40].mxu0 }
 0x23b   : > { %v7288_v12 = vpop.f32.mrb[40].mxu1  ;;  %v1913_v49 = vadd.f32 %v7171_v3, %v1912_v58  ;;  %v1914_v55 = vpop.f32.mrb[41].mxu0 }
 0x23c   : > { %v2703_v17 = vpop.f32.mrb[41].mxu1  ;;  %v1915_v41 = vpop.f32.mrb[42].mxu0 }
 0x23d   : > { %v7290_v57 = vpop.f32.mrb[42].mxu1  ;;  %v7295_v60 = vadd.f32 %v7149_v26, %v1913_v49  ;;  %v1916_v61 = vadd.f32 %v7171_v3, %v1915_v41  ;;  %v1917_v31 = vpop.f32.mrb[43].mxu0  ;;  %v3211_v17 = vld [vmem:[#allocation2 + $0xf5] sm:$0xff]  ;;  %v3308_v41 = vpack.c.bf16 %v3288_v18, %v3287_v37  ;;  %v3292_v18 = vld [vmem:[#allocation2 + $0x13e] sm:$0xff] }
 0x23e   : > { %v2706_v27 = vpop.f32.mrb[43].mxu1  ;;  %v3234_v58 = vpack.c.bf16 %v3212_v0, %v3211_v17  ;;  %v3291_v37 = vld [vmem:[#allocation2 + $0x136] sm:$0xff] }
 0x23f   : > { %v7299_v47 = vadd.f32 %v7155_v39, %v1916_v61  ;;  %5243 = vmatmul.mubr.bf16.gmra.mrb[136].mxu0 %v3306_v62 }
 0x240   : > { %3697 = vmatmul.mubr.bf16.gmra.mrb[148].mxu1 %v7157_v22  ;;  %5246 = vmatprep.mubr.bf16.mxu0 %v3307_v40  ;;  %v3289_v22 = vld [vmem:[#allocation2 + $0x126] sm:$0xff] }
 0x241   : > { %3704 = vmatprep.mubr.bf16.mxu1 %v3233_v16  ;;  %8465 = vst [vmem:[#allocation62_spill] sm:$0xff] %v7299_v47  ;;  %v3309_v61 = vpack.c.bf16 %v3290_v19, %v3289_v22  ;;  %v3214_v47 = vld [vmem:[#allocation2 + $0x10d] sm:$0xff] }
 0x242   : > { %v1920_v27 = vpop.f32.mrb[44].mxu0 }
 0x243   : > { %v7301_v9 = vpop.f32.mrb[44].mxu1  ;;  %v1921_v16 = vadd.f32 %v7171_v3, %v1920_v27  ;;  %v1922_v55 = vpop.f32.mrb[45].mxu0 }
 0x244   : > { %v2711_v36 = vpop.f32.mrb[45].mxu1  ;;  %v1923_v39 = vpop.f32.mrb[46].mxu0 }
 0x245   : > { %v7303_v26 = vpop.f32.mrb[46].mxu1  ;;  %v7308_v62 = vadd.f32 %v7147_v20, %v1921_v16  ;;  %v1924_v40 = vadd.f32 %v7171_v3, %v1923_v39  ;;  %v1925_v31 = vpop.f32.mrb[47].mxu0  ;;  %v3213_v36 = vld [vmem:[#allocation2 + $0x105] sm:$0xff]  ;;  %v3310_v16 = vpack.c.bf16 %v3292_v18, %v3291_v37 }
 0x246   : > { %v2714_v49 = vpop.f32.mrb[47].mxu1  ;;  %v3235_v20 = vpack.c.bf16 %v3214_v47, %v3213_v36 }
 0x247   : > { %v7312_v0 = vadd.f32 %v7151_v28, %v1924_v40  ;;  %5247 = vmatmul.mubr.bf16.gmra.mrb[140].mxu0 %v3308_v41  ;;  %v3216_v40 = vld [vmem:[#allocation2 + $0x11d] sm:$0xff] }
 0x248   : > { %3705 = vmatmul.mubr.bf16.gmra.mrb[152].mxu1 %v7166_v56  ;;  %5250 = vmatprep.mubr.bf16.mxu0 %v3309_v61  ;;  %v3215_v61 = vld [vmem:[#allocation2 + $0x115] sm:$0xff] }
 0x249   : > { %3712 = vmatprep.mubr.bf16.mxu1 %v3234_v58  ;;  %v3236_v18 = vpack.c.bf16 %v3216_v40, %v3215_v61 }
 0x24a   : > { %v1928_v19 = vpop.f32.mrb[48].mxu0 }
 0x24b   : > { %v7314_v17 = vpop.f32.mrb[48].mxu1  ;;  %v1929_v49 = vadd.f32 %v7171_v3, %v1928_v19  ;;  %v1930_v58 = vpop.f32.mrb[49].mxu0 }
 0x24c   : > { %v2719_v22 = vpop.f32.mrb[49].mxu1  ;;  %v1931_v55 = vpop.f32.mrb[50].mxu0  ;;  %v3217_v58 = vld [vmem:[#allocation2 + $0x125] sm:$0xff] }
 0x24d   : > { %v7316_v56 = vpop.f32.mrb[50].mxu1  ;;  %v7321_v28 = vadd.f32 %v7191_v30, %v1929_v49  ;;  %v1932_v41 = vadd.f32 %v7171_v3, %v1931_v55  ;;  %v1933_v39 = vpop.f32.mrb[51].mxu0 }
 0x24e   : > { %v2722_v27 = vpop.f32.mrb[51].mxu1 }
 0x24f   : > { %v7325_v47 = vadd.f32 %v7201_v34, %v1932_v41  ;;  %5251 = vmatmul.mubr.bf16.gmra.mrb[144].mxu0 %v3310_v16  ;;  %v3218_v16 = vld [vmem:[#allocation2 + $0x12d] sm:$0xff] }
 0x250   : > { %3713 = vmatmul.mubr.bf16.gmra.mrb[156].mxu1 %v7168_v29  ;;  %v3237_v40 = vpack.c.bf16 %v3218_v16, %v3217_v58 }
 0x251   : > { %3720 = vmatprep.mubr.bf16.mxu1 %v3235_v20  ;;  %8466 = vst [vmem:[#allocation63_spill] sm:$0xff] %v7325_v47 }
 0x252   : > { %v1936_v29 = vpop.f32.mrb[52].mxu0 }
 0x253   : > { %v7327_v31 = vpop.f32.mrb[52].mxu1  ;;  %v1937_v30 = vadd.f32 %v7171_v3, %v1936_v29  ;;  %v1938_v19 = vpop.f32.mrb[53].mxu0 }
 0x254   : > { %v2727_v36 = vpop.f32.mrb[53].mxu1  ;;  %v1939_v27 = vpop.f32.mrb[54].mxu0  ;;  %v3219_v19 = vld [vmem:[#allocation2 + $0x135] sm:$0xff] }
 0x255   : > { %v7329_v37 = vpop.f32.mrb[54].mxu1  ;;  %v7334_v20 = vadd.f32 %v7188_v7, %v1937_v30  ;;  %v1940_v34 = vadd.f32 %v7171_v3, %v1939_v27  ;;  %v1941_v49 = vpop.f32.mrb[55].mxu0  ;;  %v3220_v27 = vld [vmem:[#allocation2 + $0x13d] sm:$0xff] }
 0x256   : > { %v2730_v22 = vpop.f32.mrb[55].mxu1 }
 0x257   : > { %v7338_v55 = vadd.f32 %v7194_v1, %v1940_v34 }
 0x258   : > { %3721 = vmatmul.mubr.bf16.gmra.mrb[160].mxu1 %v7183_v8 }
 0x259   : > { %3728 = vmatprep.mubr.bf16.mxu1 %v3236_v18 }
 0x25a   : > { %v1944_v36 = vpop.f32.mrb[56].mxu0 }
 0x25b   : > { %v7340_v41 = vpop.f32.mrb[56].mxu1  ;;  %v1945_v7 = vadd.f32 %v7171_v3, %v1944_v36  ;;  %v1946_v29 = vpop.f32.mrb[57].mxu0 }
 0x25c   : > { %v2735_v39 = vpop.f32.mrb[57].mxu1  ;;  %v1947_v22 = vpop.f32.mrb[58].mxu0 }
 0x25d   : > { %v7342_v61 = vpop.f32.mrb[58].mxu1  ;;  %v7347_v18 = vadd.f32 %v7221_v38, %v1945_v7  ;;  %v1948_v1 = vadd.f32 %v7171_v3, %v1947_v22  ;;  %v1949_v30 = vpop.f32.mrb[59].mxu0  ;;  %v3238_v39 = vpack.c.bf16 %v3220_v27, %v3219_v19  ;;  %v3147_v22 = vld [vmem:[#allocation2 + $0x134] sm:$0xff] }
 0x25e   : > { %v2738_v8 = vpop.f32.mrb[59].mxu1 }
 0x25f   : > { %8467 = vst [vmem:[#allocation64_spill] sm:$0xff] %v7347_v18  ;;  %v7351_v34 = vadd.f32 %v7225_v6, %v1948_v1  ;;  %v3148_v1 = vld [vmem:[#allocation2 + $0x13c] sm:$0xff] }
 0x260   : > { %3729 = vmatmul.mubr.bf16.gmra.mrb[164].mxu1 %v7185_v42 }
 0x261   : > { %3736 = vmatprep.mubr.bf16.mxu1 %v3237_v40  ;;  %8468 = vst [vmem:[#allocation65_spill] sm:$0xff] %v7351_v34 }
 0x262   : > { %v1952_v36 = vpop.f32.mrb[60].mxu0 }
 0x263   : > { %v7353_v49 = vpop.f32.mrb[60].mxu1  ;;  %v1953_v38 = vadd.f32 %v7171_v3, %v1952_v36  ;;  %v1954_v8 = vpop.f32.mrb[61].mxu0 }
 0x264   : > { %v2743_v58 = vpop.f32.mrb[61].mxu1  ;;  %v1955_v7 = vpop.f32.mrb[62].mxu0 }
 0x265   : > { %v7355_v16 = vpop.f32.mrb[62].mxu1  ;;  %v7360_v40 = vadd.f32 %v7219_v54, %v1953_v38  ;;  %v1956_v6 = vadd.f32 %v7171_v3, %v1955_v7  ;;  %v1957_v29 = vpop.f32.mrb[63].mxu0  ;;  %v3166_v58 = vpack.c.bf16 %v3148_v1, %v3147_v22 }
 0x266   : > { %v2746_v42 = vpop.f32.mrb[63].mxu1 }
 0x267   : > { %8469 = vst [vmem:[#allocation66_spill] sm:$0xff] %v7360_v40  ;;  %v7364_v30 = vadd.f32 %v7223_v23, %v1956_v6 }
 0x268   : > { %3737 = vmatmul.mubr.bf16.gmra.mrb[168].mxu1 %v7206_v51 }
 0x269   : > { %3744 = vmatprep.mubr.bf16.mxu1 %v3238_v39  ;;  %8470 = vst [vmem:[#allocation67_spill] sm:$0xff] %v7364_v30 }
 0x26a   : > { %v1960_v42 = vpop.f32.mrb[64].mxu0 }
 0x26b   : > { %v7366_v19 = vpop.f32.mrb[64].mxu1  ;;  %v1961_v54 = vadd.f32 %v7171_v3, %v1960_v42  ;;  %v1962_v38 = vpop.f32.mrb[65].mxu0 }
 0x26c   : > { %v2751_v27 = vpop.f32.mrb[65].mxu1  ;;  %v1963_v8 = vpop.f32.mrb[66].mxu0 }
 0x26d   : > { %v7368_v36 = vpop.f32.mrb[66].mxu1  ;;  %v7372_v39 = vadd.f32 %v7247_v33, %v1961_v54  ;;  %v1964_v7 = vadd.f32 %v7171_v3, %v1963_v8  ;;  %v1965_v23 = vpop.f32.mrb[67].mxu0 }
 0x26e   : > { %v2754_v51 = vpop.f32.mrb[67].mxu1  ;;  %v1841_v23 = vadd.f32 %v7171_v3, %v7160_v44 }
 0x26f   : > { %8471 = vst [vmem:[#allocation68_spill] sm:$0xff] %v7372_v39  ;;  %v7376_v6 = vadd.f32 %v7252_v35, %v1964_v7 }
 0x270   : > { %3745 = vmatmul.mubr.bf16.gmra.mrb[172].mxu1 %v3166_v58 }
 0x271   : > { %8472 = vst [vmem:[#allocation69_spill] sm:$0xff] %v7376_v6 }
 0x272   : > { %v1968_v27 = vpop.f32.mrb[68].mxu0 }
 0x273   : > { %v7378_v29 = vpop.f32.mrb[68].mxu1  ;;  %v1969_v42 = vadd.f32 %v7171_v3, %v1968_v27  ;;  %v1970_v38 = vpop.f32.mrb[69].mxu0  ;;  %v1833_v27 = vadd.f32 %v7171_v3, %v7061_v2 }
 0x274   : > { %v2759_v22 = vpop.f32.mrb[69].mxu1  ;;  %v1971_v58 = vpop.f32.mrb[70].mxu0 }
 0x275   : > { %v7380_v1 = vpop.f32.mrb[70].mxu1  ;;  %v7384_v33 = vadd.f32 %v7245_v48, %v1969_v42  ;;  %v1972_v54 = vadd.f32 %v7171_v3, %v1971_v58  ;;  %v1973_v8 = vpop.f32.mrb[71].mxu0  ;;  %v1844_v48 = vadd.f32 %v7171_v3, %v7163_v45 }
 0x276   : > { %v2762_v51 = vpop.f32.mrb[71].mxu1 }
 0x277   : > { %8473 = vst [vmem:[#allocation70_spill] sm:$0xff] %v7384_v33  ;;  %v7388_v35 = vadd.f32 %v7249_v4, %v1972_v54  ;;  %v1836_v4 = vadd.f32 %v7171_v3, %v7071_v13 }
 0x279   : > { %8474 = vst [vmem:[#allocation71_spill] sm:$0xff] %v7388_v35 }
 0x27a   : > { %v5116_v38 = vpop.f32.mrb[72].mxu0 }
 0x27b   : > { %v7390_v7 = vpop.f32.mrb[72].mxu1  ;;  %v2018_v58 = vadd.f32 %v5116_v38, %v1841_v23  ;;  %v2009_v8 = vpop.f32.mrb[73].mxu0 }
 0x27c   : > { %v2767_v22 = vpop.f32.mrb[73].mxu1  ;;  %v2010_v54 = vadd.f32 %v2009_v8, %v1833_v27  ;;  %v5117_v6 = vpop.f32.mrb[74].mxu0 }
 0x27d   : > { %v7396_v51 = vpop.f32.mrb[74].mxu1  ;;  %v2021_v35 = vadd.f32 %v5117_v6, %v1844_v48  ;;  %v2012_v44 = vpop.f32.mrb[75].mxu0 }
 0x27e   : > { %v2770_v42 = vpop.f32.mrb[75].mxu1  ;;  %v2013_v22 = vadd.f32 %v2012_v44, %v1836_v4 }
 0x283   : > { %v7402_v39 = vpop.f32.mrb[76].mxu1 }
 0x284   : > { %v2775_v2 = vpop.f32.mrb[77].mxu1 }
 0x285   : > { %v7404_v33 = vpop.f32.mrb[78].mxu1 }
 0x286   : > { %v2778_v34 = vpop.f32.mrb[79].mxu1 }
 0x28b   : > { %v7406_v30 = vpop.f32.mrb[80].mxu1 }
 0x28c   : > { %v2783_v45 = vpop.f32.mrb[81].mxu1 }
 0x28d   : > { %v7408_v42 = vpop.f32.mrb[82].mxu1 }
 0x28e   : > { %v2786_v23 = vpop.f32.mrb[83].mxu1 }
 0x293   : > { %v7410_v38 = vpop.f32.mrb[84].mxu1 }
 0x294   : > { %v2791_v13 = vpop.f32.mrb[85].mxu1 }
 0x295   : > { %v7412_v3 = vpop.f32.mrb[86].mxu1 }
 0x296   : > { %v2794_v6 = vpop.f32.mrb[87].mxu1 }
 0x29a   : > { %v5168_v4 = vpop.f32.mrb[76].mxu0 }
 0x29b   : > { %v7414_v27 = vpop.f32.mrb[88].mxu1  ;;  %v2871_v34 = vadd.f32 %v5168_v4, %v7275_v10  ;;  %v2862_v2 = vpop.f32.mrb[77].mxu0 }
 0x29c   : > { %v2799_v48 = vpop.f32.mrb[89].mxu1  ;;  %v2863_v45 = vadd.f32 %v2862_v2, %v7262_v21  ;;  %v5169_v18 = vpop.f32.mrb[78].mxu0 }
 0x29d   : > { %v7416_v8 = vpop.f32.mrb[90].mxu1  ;;  %v7420_v23 = vadd.f32 %v2871_v34, %v2018_v58  ;;  %v2874_v13 = vadd.f32 %v5169_v18, %v7277_v11  ;;  %v2865_v40 = vpop.f32.mrb[79].mxu0 }
 0x29e   : > { %8475 = vst [vmem:[#allocation72_spill] sm:$0xff] %v7416_v8  ;;  %v2802_v44 = vpop.f32.mrb[91].mxu1  ;;  %v7423_v47 = vadd.f32 %v2863_v45, %v2010_v54  ;;  %v2866_v6 = vadd.f32 %v2865_v40, %v7264_v63 }
 0x29f   : > { %v7426_v48 = vadd.f32 %v2874_v13, %v2021_v35 }
 0x2a0   : > { %v7430_v44 = vadd.f32 %v2866_v6, %v2013_v22 }
 0x2a2   : > { %v5172_v21 = vpop.f32.mrb[80].mxu0 }
 0x2a3   : > { %v7428_v8 = vpop.f32.mrb[92].mxu1  ;;  %v2887_v58 = vadd.f32 %v5172_v21, %v7301_v9  ;;  %v2878_v34 = vpop.f32.mrb[81].mxu0 }
 0x2a4   : > { %v2807_v10 = vpop.f32.mrb[93].mxu1  ;;  %v2879_v11 = vadd.f32 %v2878_v34, %v7288_v12  ;;  %v5173_v18 = vpop.f32.mrb[82].mxu0 }
 0x2a5   : > { %v7432_v4 = vpop.f32.mrb[94].mxu1  ;;  %v7437_v54 = vadd.f32 %v2887_v58, %v7197_v46  ;;  %v2890_v63 = vadd.f32 %v5173_v18, %v7303_v26  ;;  %v2881_v40 = vpop.f32.mrb[83].mxu0 }
 0x2a6   : > { %v2810_v2 = vpop.f32.mrb[95].mxu1  ;;  %v7441_v35 = vadd.f32 %v2879_v11, %v7176_v43  ;;  %v2882_v22 = vadd.f32 %v2881_v40, %v7290_v57 }
 0x2a7   : > { %v7445_v45 = vadd.f32 %v2890_v63, %v7204_v52 }
 0x2a8   : > { %v7450_v9 = vadd.f32 %v2882_v22, %v7181_v32 }
 0x2aa   : > { %v5176_v46 = vpop.f32.mrb[84].mxu0 }
 0x2ab   : > { %v7447_v13 = vpop.f32.mrb[96].mxu1  ;;  %v2903_v26 = vadd.f32 %v5176_v46, %v7327_v31  ;;  %v2894_v21 = vpop.f32.mrb[85].mxu0 }
 0x2ac   : > { %v2815_v12 = vpop.f32.mrb[97].mxu1  ;;  %v2895_v43 = vadd.f32 %v2894_v21, %v7314_v17  ;;  %v5177_v2 = vpop.f32.mrb[86].mxu0 }
 0x2ad   : > { %v7452_v6 = vpop.f32.mrb[98].mxu1  ;;  %v7457_v57 = vadd.f32 %v2903_v26, %v7229_v14  ;;  %v2906_v52 = vadd.f32 %v5177_v2, %v7329_v37  ;;  %v2897_v58 = vpop.f32.mrb[87].mxu0  ;;  %v8476_v26 = vld [vmem:[#allocation59_spill] sm:$0xff] }
 0x2ae   : > { %v2818_v10 = vpop.f32.mrb[99].mxu1  ;;  %v7461_v32 = vadd.f32 %v2895_v43, %v7212_v50  ;;  %v2898_v34 = vadd.f32 %v2897_v58, %v7316_v56 }
 0x2af   : > { %v7465_v11 = vadd.f32 %v2906_v52, %v7234_v59 }
 0x2b0   : > { %v7470_v31 = vadd.f32 %v2898_v34, %v7217_v53 }
 0x2b2   : > { %v5180_v14 = vpop.f32.mrb[88].mxu0 }
 0x2b3   : > { %v7467_v18 = vpop.f32.mrb[100].mxu1  ;;  %v2919_v37 = vadd.f32 %v5180_v14, %v7353_v49  ;;  %v2910_v22 = vpop.f32.mrb[89].mxu0  ;;  %v8477_v49 = vld [vmem:[#allocation58_spill] sm:$0xff] }
 0x2b4   : > { %v2823_v17 = vpop.f32.mrb[101].mxu1  ;;  %v2911_v50 = vadd.f32 %v2910_v22, %v7340_v41  ;;  %v5181_v12 = vpop.f32.mrb[90].mxu0 }
 0x2b5   : > { %v7472_v63 = vpop.f32.mrb[102].mxu1  ;;  %v7477_v56 = vadd.f32 %v2919_v37, %v7255_v15  ;;  %v2922_v59 = vadd.f32 %v5181_v12, %v7355_v16  ;;  %v2913_v46 = vpop.f32.mrb[91].mxu0 }
 0x2b6   : > { %v2826_v40 = vpop.f32.mrb[103].mxu1  ;;  %v7481_v53 = vadd.f32 %v2911_v50, %v7238_v5  ;;  %v2914_v10 = vadd.f32 %v2913_v46, %v7342_v61  ;;  %v8478_v50 = vld [vmem:[#allocation61_spill] sm:$0xff] }
 0x2b7   : > { %v7485_v21 = vadd.f32 %v2922_v59, %v8476_v26 }
 0x2b8   : > { %v7490_v2 = vadd.f32 %v2914_v10, %v8477_v49 }
 0x2ba   : > { %v5184_v15 = vpop.f32.mrb[92].mxu0 }
 0x2bb   : > { %v7487_v43 = vpop.f32.mrb[104].mxu1  ;;  %v2935_v16 = vadd.f32 %v5184_v15, %v7378_v29  ;;  %v2926_v34 = vpop.f32.mrb[93].mxu0  ;;  %v8479_v29 = vld [vmem:[#allocation60_spill] sm:$0xff] }
 0x2bc   : > { %v3612_v41 = vpop.f32.mrb[105].mxu1  ;;  %v2927_v5 = vadd.f32 %v2926_v34, %v7366_v19  ;;  %v5185_v17 = vpop.f32.mrb[94].mxu0 }
 0x2bd   : > { %v7492_v52 = vpop.f32.mrb[106].mxu1  ;;  %v7497_v61 = vadd.f32 %v2935_v16, %v7282_v25  ;;  %v2938_v14 = vadd.f32 %v5185_v17, %v7380_v1  ;;  %v2929_v40 = vpop.f32.mrb[95].mxu0 }
 0x2be   : > { %v3615_v58 = vpop.f32.mrb[107].mxu1  ;;  %v7501_v37 = vadd.f32 %v2927_v5, %v7269_v24  ;;  %v2930_v22 = vadd.f32 %v2929_v40, %v7368_v36 }
 0x2bf   : > { %v7505_v12 = vadd.f32 %v2938_v14, %v8478_v50 }
 0x2c0   : > { %v7510_v46 = vadd.f32 %v2930_v22, %v8479_v29 }
 0x2c2   : > { %v5188_v25 = vpop.f32.mrb[96].mxu0 }
 0x2c3   : > { %v7507_v59 = vpop.f32.mrb[108].mxu1  ;;  %v2951_v1 = vadd.f32 %v5188_v25, %v7402_v39  ;;  %v2942_v49 = vpop.f32.mrb[97].mxu0  ;;  %v8480_v39 = vld [vmem:[#allocation62_spill] sm:$0xff] }
 0x2c4   : > { %v3620_v19 = vpop.f32.mrb[109].mxu1  ;;  %v2943_v24 = vadd.f32 %v2942_v49, %v7390_v7  ;;  %v5189_v41 = vpop.f32.mrb[98].mxu0 }
 0x2c5   : > { %v7512_v10 = vpop.f32.mrb[110].mxu1  ;;  %v7517_v36 = vadd.f32 %v2951_v1, %v7308_v62  ;;  %v2954_v15 = vadd.f32 %v5189_v41, %v7404_v33  ;;  %v2945_v58 = vpop.f32.mrb[99].mxu0 }
 0x2c6   : > { %v3623_v26 = vpop.f32.mrb[111].mxu1  ;;  %v7521_v16 = vadd.f32 %v2943_v24, %v7295_v60  ;;  %v2946_v34 = vadd.f32 %v2945_v58, %v7396_v51 }
 0x2c7   : > { %v7525_v5 = vadd.f32 %v2954_v15, %v7312_v0 }
 0x2c8   : > { %v7530_v14 = vadd.f32 %v2946_v34, %v8480_v39  ;;  %v8482_v39 = vld [vmem:[#allocation66_spill] sm:$0xff] }
 0x2ca   : > { %v5192_v62 = vpop.f32.mrb[100].mxu0 }
 0x2cb   : > { %v7527_v17 = vpop.f32.mrb[112].mxu1  ;;  %v2967_v33 = vadd.f32 %v5192_v62, %v7410_v38  ;;  %v2958_v50 = vpop.f32.mrb[101].mxu0  ;;  %v8481_v38 = vld [vmem:[#allocation63_spill] sm:$0xff]  ;;  %v8483_v62 = vld [vmem:[#allocation64_spill] sm:$0xff] }
 0x2cc   : > { %v3628_v7 = vpop.f32.mrb[113].mxu1  ;;  %v2959_v60 = vadd.f32 %v2958_v50, %v7406_v30  ;;  %v5193_v29 = vpop.f32.mrb[102].mxu0 }
 0x2cd   : > { %v7532_v40 = vpop.f32.mrb[114].mxu1  ;;  %v7537_v51 = vadd.f32 %v2967_v33, %v7334_v20  ;;  %v2970_v0 = vadd.f32 %v5193_v29, %v7412_v3  ;;  %v2961_v19 = vpop.f32.mrb[103].mxu0  ;;  %v8484_v33 = vld [vmem:[#allocation72_spill] sm:$0xff] }
 0x2ce   : > { %v3631_v22 = vpop.f32.mrb[115].mxu1  ;;  %v7541_v25 = vadd.f32 %v2959_v60, %v7321_v28  ;;  %v2962_v26 = vadd.f32 %v2961_v19, %v7408_v42  ;;  %v8485_v60 = vld [vmem:[#allocation67_spill] sm:$0xff] }
 0x2cf   : > { %v7545_v1 = vadd.f32 %v2970_v0, %v7338_v55 }
 0x2d0   : > { %v7548_v24 = vadd.f32 %v2962_v26, %v8481_v38 }
 0x2d2   : > { %v5196_v20 = vpop.f32.mrb[104].mxu0 }
 0x2d3   : > { %v3634_v49 = vpop.f32.mrb[116].mxu1  ;;  %v2983_v3 = vadd.f32 %v5196_v20, %v7428_v8  ;;  %v2974_v58 = vpop.f32.mrb[105].mxu0  ;;  %v8486_v8 = vld [vmem:[#allocation65_spill] sm:$0xff] }
 0x2d4   : > { %v3636_v30 = vpop.f32.mrb[117].mxu1  ;;  %v2975_v28 = vadd.f32 %v2974_v58, %v7414_v27  ;;  %v5197_v34 = vpop.f32.mrb[106].mxu0  ;;  %v8487_v58 = vld [vmem:[#allocation70_spill] sm:$0xff] }
 0x2d5   : > { %v7550_v41 = vpop.f32.mrb[118].mxu1  ;;  %v7555_v42 = vadd.f32 %v2983_v3, %v8482_v39  ;;  %v2986_v55 = vadd.f32 %v5197_v34, %v7432_v4  ;;  %v2977_v7 = vpop.f32.mrb[107].mxu0 }
 0x2d6   : > { %v3639_v15 = vpop.f32.mrb[119].mxu1  ;;  %v7559_v22 = vadd.f32 %v2975_v28, %v8483_v62  ;;  %v2978_v50 = vadd.f32 %v2977_v7, %v8484_v33  ;;  %v8489_v33 = vld [vmem:[#allocation71_spill] sm:$0xff] }
 0x2d7   : > { %v7563_v29 = vadd.f32 %v2986_v55, %v8485_v60  ;;  %v8488_v55 = vld [vmem:[#allocation68_spill] sm:$0xff] }
 0x2d8   : > { %v7568_v19 = vadd.f32 %v2978_v50, %v8486_v8 }
 0x2da   : > { %v5200_v38 = vpop.f32.mrb[108].mxu0 }
 0x2db   : > { %v7565_v0 = vpop.f32.mrb[120].mxu1  ;;  %v2999_v4 = vadd.f32 %v5200_v38, %v7467_v18  ;;  %v2990_v20 = vpop.f32.mrb[109].mxu0  ;;  %v8490_v18 = vld [vmem:[#allocation69_spill] sm:$0xff] }
 0x2dc   : > { %v3644_v27 = vpop.f32.mrb[121].mxu1  ;;  %v2991_v15 = vadd.f32 %v2990_v20, %v7447_v13  ;;  %v5201_v3 = vpop.f32.mrb[110].mxu0 }
 0x2dd   : > { %v7570_v26 = vpop.f32.mrb[122].mxu1  ;;  %v7575_v28 = vadd.f32 %v2999_v4, %v8487_v58  ;;  %v3002_v34 = vadd.f32 %v5201_v3, %v7472_v63  ;;  %v2993_v39 = vpop.f32.mrb[111].mxu0 }
 0x2de   : > { %v3647_v30 = vpop.f32.mrb[123].mxu1  ;;  %v7579_v7 = vadd.f32 %v2991_v15, %v8488_v55  ;;  %v2994_v62 = vadd.f32 %v2993_v39, %v7452_v6 }
 0x2df   : > { %v7583_v50 = vadd.f32 %v3002_v34, %v8489_v33 }
 0x2e0   : > { %v7586_v8 = vadd.f32 %v2994_v62, %v8490_v18 }
 0x2e2   : > { %v5220_v38 = vpop.f32.mrb[112].mxu0 }
 0x2e3   : > { %v3650_v60 = vpop.f32.mrb[124].mxu1  ;;  %v3796_v4 = vadd.f32 %v5220_v38, %v7507_v59  ;;  %v3787_v63 = vpop.f32.mrb[113].mxu0 }
 0x2e4   : > { %v3652_v13 = vpop.f32.mrb[125].mxu1  ;;  %v3788_v20 = vadd.f32 %v3787_v63, %v7487_v43  ;;  %v5221_v15 = vpop.f32.mrb[114].mxu0  ;;  %v8495_v63 = vld [vmem:[#allocation23_spill] sm:$0xff] }
 0x2e5   : > { %v3653_v27 = vpop.f32.mrb[126].mxu1  ;;  %v7591_v3 = vadd.f32 %v3796_v4, %v7420_v23  ;;  %v3799_v6 = vadd.f32 %v5221_v15, %v7512_v10  ;;  %v3790_v58 = vpop.f32.mrb[115].mxu0  ;;  %v8491_v10 = vld [vmem:[#allocation43_spill] sm:$0xff] }
 0x2e6   : > { %v3655_v30 = vpop.f32.mrb[127].mxu1  ;;  %v7595_v34 = vadd.f32 %v3788_v20, %v7423_v47  ;;  %v3791_v39 = vadd.f32 %v3790_v58, %v7492_v52  ;;  %vm8492_vm9 = vnez %v8491_v10 }
 0x2e7   : > { %v7599_v55 = vadd.f32 %v3799_v6, %v7426_v48  ;;  %v8493_v48 = vld [vmem:[#allocation22_spill] sm:$0xff] }
 0x2e8   : > { %v7604_v43 = vadd.f32 %v3791_v39, %v7430_v44  ;;  %v4254_v47 = vsel %vm8492_vm9, %v7595_v34, 0.0  ;;  %vm8494_vm1 = vnez %v8493_v48  ;;  %vm8496_vm9 = vnez %v8495_v63 }
 0x2e9   : > { %v4904_v23 = vpack.c.bf16 %v7599_v55, %v7591_v3  ;;  %v4256_v20 = vsel %vm8496_vm9, %v7591_v3, 0.0 }
 0x2ea   : > { %v4899_v52 = vpack.c.bf16 %v7604_v43, %v7595_v34  ;;  %v4255_v18 = vsel %vm8494_vm1, %v7604_v43, 0.0  ;;  %v5224_v13 = vpop.f32.mrb[116].mxu0 }
 0x2eb   : > { %v7601_v59 = vpop.f32.mrb[128].mxu1  ;;  %5003 = vst [vmem:[%s7620_s27 + $0x8] sm:$0xff] %v4904_v23   ;;  %v4290_v38 = vadd.f32 %v4255_v18, %v4254_v47  ;;  %v3812_v30 = vadd.f32 %v5224_v13, %v3634_v49  ;;  %v3803_v4 = vpop.f32.mrb[117].mxu0  ;;  %v8497_v23 = vld [vmem:[#allocation24_spill] sm:$0xff] }
 0x2ec   : > { %v3660_v62 = vpop.f32.mrb[129].mxu1  ;;  %4900 = vst [vmem:[%s7620_s27] sm:$0xff] %v4899_v52   ;;  %v3804_v15 = vadd.f32 %v3803_v4, %v7527_v17  ;;  %v5225_v6 = vpop.f32.mrb[118].mxu0  ;;  %vm8498_vm1 = vnez %v8497_v23 }
 0x2ed   : > { %v7608_v33 = vpop.f32.mrb[130].mxu1  ;;  %v4291_v58 = vadd.f32 %v4290_v38, %v4256_v20  ;;  %v7629_v39 = vadd.f32 %v3812_v30, %v7437_v54  ;;  %v3815_v62 = vadd.f32 %v5225_v6, %v7550_v41  ;;  %v4257_v49 = vsel %vm8498_vm1, %v7599_v55, 0.0  ;;  %v8499_v54 = vld [vmem:[#allocation25_spill] sm:$0xff] }
 0x2ee   : > { %v3663_v44 = vpop.f32.mrb[131].mxu1  ;;  %v7636_v47 = vadd.f32 %v3804_v15, %v7441_v35  ;;  %vm8500_vm9 = vnez %v8499_v54 }
 0x2ef   : > { %v3806_v44 = vpop.f32.mrb[119].mxu0  ;;  %v4292_v18 = vadd.f32 %v4291_v58, %v4257_v49  ;;  %v7640_v17 = vadd.f32 %v3815_v62, %v7445_v45  ;;  %v8501_v45 = vld [vmem:[#allocation26_spill] sm:$0xff]  ;;  %v8503_v49 = vld [vmem:[#allocation27_spill] sm:$0xff] }
 0x2f0   : > { %v3807_v52 = vadd.f32 %v3806_v44, %v7532_v40  ;;  %v4258_v41 = vsel %vm8500_vm9, %v7636_v47, 0.0  ;;  %vm8502_vm1 = vnez %v8501_v45  ;;  %vm8504_vm9 = vnez %v8503_v49 }
 0x2f1   : > { %v4293_v4 = vadd.f32 %v4292_v18, %v4258_v41  ;;  %v4914_v35 = vpack.c.bf16 %v7640_v17, %v7629_v39 }
 0x2f2   : > { %v7646_v38 = vadd.f32 %v3807_v52, %v7450_v9  ;;  %v5228_v6 = vpop.f32.mrb[120].mxu0  ;;  %v4260_v52 = vsel %vm8504_vm9, %v7629_v39, 0.0 }
 0x2f3   : > { %v3666_v13 = vpop.f32.mrb[132].mxu1  ;;  %5005 = vst [vmem:[%s7620_s27 + $0x18] sm:$0xff] %v4914_v35   ;;  %v3828_v44 = vadd.f32 %v5228_v6, %v3650_v60  ;;  %v3819_v9 = vpop.f32.mrb[121].mxu0 }
 0x2f4   : > { %v3668_v30 = vpop.f32.mrb[133].mxu1  ;;  %v4909_v40 = vpack.c.bf16 %v7646_v38, %v7636_v47  ;;  %v4259_v15 = vsel %vm8502_vm1, %v7646_v38, 0.0  ;;  %v3820_v18 = vadd.f32 %v3819_v9, %v7565_v0  ;;  %v5229_v41 = vpop.f32.mrb[122].mxu0 }
 0x2f5   : > { %v3669_v20 = vpop.f32.mrb[134].mxu1  ;;  %v4294_v62 = vadd.f32 %v4293_v4, %v4259_v15  ;;  %v7662_v54 = vadd.f32 %v3828_v44, %v7457_v57  ;;  %v3831_v45 = vadd.f32 %v5229_v41, %v3653_v27  ;;  %v3822_v23 = vpop.f32.mrb[123].mxu0  ;;  %v8507_v57 = vld [vmem:[#allocation29_spill] sm:$0xff] }
 0x2f6   : > { %v3671_v58 = vpop.f32.mrb[135].mxu1  ;;  %5004 = vst [vmem:[%s7620_s27 + $0x10] sm:$0xff] %v4909_v40   ;;  %v7668_v60 = vadd.f32 %v3820_v18, %v7461_v32  ;;  %v3823_v35 = vadd.f32 %v3822_v23, %v7570_v26  ;;  %vm8508_vm9 = vnez %v8507_v57 }
 0x2f7   : > { %v4295_v30 = vadd.f32 %v4294_v62, %v4260_v52  ;;  %v8505_v58 = vld [vmem:[#allocation28_spill] sm:$0xff]  ;;  %v7672_v0 = vadd.f32 %v3831_v45, %v7465_v11  ;;  %v8509_v11 = vld [vmem:[#allocation30_spill] sm:$0xff] }
 0x2f8   : > { %vm8506_vm1 = vnez %v8505_v58  ;;  %v4262_v27 = vsel %vm8508_vm9, %v7668_v60, 0.0  ;;  %v7678_v6 = vadd.f32 %v3823_v35, %v7470_v31 }
 0x2f9   : > { %v4261_v4 = vsel %vm8506_vm1, %v7640_v17, 0.0  ;;  %v4924_v32 = vpack.c.bf16 %v7672_v0, %v7662_v54  ;;  %vm8510_vm1 = vnez %v8509_v11 }
 0x2fa   : > { %v4296_v40 = vadd.f32 %v4295_v30, %v4261_v4  ;;  %v4919_v26 = vpack.c.bf16 %v7678_v6, %v7668_v60  ;;  %v4263_v23 = vsel %vm8510_vm1, %v7678_v6, 0.0  ;;  %v5232_v45 = vpop.f32.mrb[124].mxu0  ;;  %v8511_v30 = vld [vmem:[#allocation31_spill] sm:$0xff] }
 0x2fb   : > { %v3674_v15 = vpop.f32.mrb[136].mxu1  ;;  %5007 = vst [vmem:[%s7620_s27 + $0x28] sm:$0xff] %v4924_v32   ;;  %v3844_v41 = vadd.f32 %v5232_v45, %v3666_v13  ;;  %v3835_v31 = vpop.f32.mrb[125].mxu0  ;;  %vm8512_vm9 = vnez %v8511_v30 }
 0x2fc   : > { %v3676_v62 = vpop.f32.mrb[137].mxu1  ;;  %v4297_v44 = vadd.f32 %v4296_v40, %v4262_v27  ;;  %v4264_v4 = vsel %vm8512_vm9, %v7662_v54, 0.0  ;;  %5006 = vst [vmem:[%s7620_s27 + $0x20] sm:$0xff] %v4919_v26   ;;  %v3836_v35 = vadd.f32 %v3835_v31, %v7601_v59  ;;  %v5233_v40 = vpop.f32.mrb[126].mxu0 }
 0x2fd   : > { %v3677_v9 = vpop.f32.mrb[138].mxu1  ;;  %v7694_v62 = vadd.f32 %v3844_v41, %v7477_v56  ;;  %v3847_v11 = vadd.f32 %v5233_v40, %v3669_v20  ;;  %v3838_v57 = vpop.f32.mrb[127].mxu0  ;;  %v8515_v56 = vld [vmem:[#allocation33_spill] sm:$0xff] }
 0x2fe   : > { %v3679_v52 = vpop.f32.mrb[139].mxu1  ;;  %v4298_v18 = vadd.f32 %v4297_v44, %v4263_v23  ;;  %v7700_v13 = vadd.f32 %v3836_v35, %v7481_v53  ;;  %v3839_v32 = vadd.f32 %v3838_v57, %v7608_v33  ;;  %vm8516_vm9 = vnez %v8515_v56 }
 0x2ff   : > { %v8513_v52 = vld [vmem:[#allocation32_spill] sm:$0xff]  ;;  %v7704_v59 = vadd.f32 %v3847_v11, %v7485_v21  ;;  %v8517_v21 = vld [vmem:[#allocation34_spill] sm:$0xff] }
 0x300   : > { %v4299_v27 = vadd.f32 %v4298_v18, %v4264_v4  ;;  %vm8514_vm1 = vnez %v8513_v52  ;;  %v4266_v20 = vsel %vm8516_vm9, %v7700_v13, 0.0  ;;  %v7710_v45 = vadd.f32 %v3839_v32, %v7490_v2  ;;  %v8521_v52 = vld [vmem:[#allocation36_spill] sm:$0xff] }
 0x301   : > { %v4265_v44 = vsel %vm8514_vm1, %v7672_v0, 0.0  ;;  %v4934_v53 = vpack.c.bf16 %v7704_v59, %v7694_v62  ;;  %vm8518_vm1 = vnez %v8517_v21 }
 0x302   : > { %v4300_v26 = vadd.f32 %v4299_v27, %v4265_v44  ;;  %v4929_v33 = vpack.c.bf16 %v7710_v45, %v7700_v13  ;;  %v4267_v57 = vsel %vm8518_vm1, %v7710_v45, 0.0  ;;  %v5236_v11 = vpop.f32.mrb[128].mxu0  ;;  %v8519_v27 = vld [vmem:[#allocation35_spill] sm:$0xff]  ;;  %vm8522_vm1 = vnez %v8521_v52 }
 0x303   : > { %v3682_v23 = vpop.f32.mrb[140].mxu1  ;;  %5009 = vst [vmem:[%s7620_s27 + $0x38] sm:$0xff] %v4934_v53   ;;  %v3851_v2 = vpop.f32.mrb[129].mxu0  ;;  %vm8520_vm9 = vnez %v8519_v27  ;;  %v4269_v53 = vsel %vm8522_vm1, %v7704_v59, 0.0 }
 0x304   : > { %v3684_v18 = vpop.f32.mrb[141].mxu1  ;;  %v4301_v41 = vadd.f32 %v4300_v26, %v4266_v20  ;;  %v3860_v40 = vadd.f32 %v5236_v11, %v3682_v23  ;;  %v4268_v44 = vsel %vm8520_vm9, %v7694_v62, 0.0  ;;  %5008 = vst [vmem:[%s7620_s27 + $0x30] sm:$0xff] %v4929_v33   ;;  %v3852_v32 = vadd.f32 %v3851_v2, %v3674_v15  ;;  %v5237_v26 = vpop.f32.mrb[130].mxu0 }
 0x305   : > { %v3685_v31 = vpop.f32.mrb[142].mxu1  ;;  %v3854_v21 = vpop.f32.mrb[131].mxu0 }
 0x306   : > { %v3687_v4 = vpop.f32.mrb[143].mxu1  ;;  %v4302_v35 = vadd.f32 %v4301_v41, %v4267_v57  ;;  %v7725_v18 = vadd.f32 %v3860_v40, %v7497_v61  ;;  %v3863_v56 = vadd.f32 %v5237_v26, %v3685_v31  ;;  %v7731_v23 = vadd.f32 %v3852_v32, %v7501_v37  ;;  %v8523_v61 = vld [vmem:[#allocation37_spill] sm:$0xff] }
 0x307   : > { %v3855_v41 = vadd.f32 %v3854_v21, %v3677_v9  ;;  %vm8524_vm9 = vnez %v8523_v61 }
 0x308   : > { %v4303_v20 = vadd.f32 %v4302_v35, %v4268_v44  ;;  %v7734_v33 = vadd.f32 %v3863_v56, %v7505_v12  ;;  %v4270_v31 = vsel %vm8524_vm9, %v7731_v23, 0.0  ;;  %v8525_v12 = vld [vmem:[#allocation38_spill] sm:$0xff] }
 0x309   : > { %v7740_v11 = vadd.f32 %v3855_v41, %v7510_v46  ;;  %vm8526_vm1 = vnez %v8525_v12  ;;  %v8527_v46 = vld [vmem:[#allocation39_spill] sm:$0xff] }
 0x30a   : > { %v4304_v57 = vadd.f32 %v4303_v20, %v4269_v53  ;;  %v4944_v37 = vpack.c.bf16 %v7734_v33, %v7725_v18  ;;  %v5240_v21 = vpop.f32.mrb[132].mxu0  ;;  %vm8528_vm9 = vnez %v8527_v46 }
 0x30b   : > { %v3690_v15 = vpop.f32.mrb[144].mxu1  ;;  %v4939_v9 = vpack.c.bf16 %v7740_v11, %v7731_v23  ;;  %v4271_v56 = vsel %vm8526_vm1, %v7740_v11, 0.0  ;;  %v3867_v32 = vpop.f32.mrb[133].mxu0  ;;  %v4272_v26 = vsel %vm8528_vm9, %v7725_v18, 0.0 }
 0x30c   : > { %v3692_v4 = vpop.f32.mrb[145].mxu1  ;;  %v4305_v35 = vadd.f32 %v4304_v57, %v4270_v31  ;;  %5011 = vst [vmem:[%s7620_s27 + $0x48] sm:$0xff] %v4944_v37   ;;  %v3868_v20 = vadd.f32 %v3867_v32, %v3690_v15  ;;  %v5241_v53 = vpop.f32.mrb[134].mxu0  ;;  %v8529_v31 = vld [vmem:[#allocation40_spill] sm:$0xff] }
 0x30d   : > { %v3693_v40 = vpop.f32.mrb[146].mxu1  ;;  %5010 = vst [vmem:[%s7620_s27 + $0x40] sm:$0xff] %v4939_v9   ;;  %v3870_v57 = vpop.f32.mrb[135].mxu0  ;;  %vm8530_vm6 = vnez %v8529_v31 }
 0x30e   : > { %v3695_v2 = vpop.f32.mrb[147].mxu1  ;;  %v4306_v44 = vadd.f32 %v4305_v35, %v4271_v56  ;;  %v4273_v4 = vsel %vm8530_vm6, %v7734_v33, 0.0  ;;  %v7758_v12 = vadd.f32 %v3868_v20, %v7521_v16  ;;  %v8531_v56 = vld [vmem:[#allocation41_spill] sm:$0xff]  ;;  %v8534_v16 = vld [vmem:[#allocation42_spill] sm:$0xff] }
 0x30f   : > { %v3871_v2 = vadd.f32 %v3870_v57, %v3693_v40  ;;  %vm8532_vm1 = vnez %v8531_v56  ;;  %vm8535_vm6 = vnez %v8534_v16 }
 0x310   : > { %v4307_v41 = vadd.f32 %v4306_v44, %v4272_v26  ;;  %v4274_v46 = vsel %vm8532_vm1, %v7758_v12, 0.0 }
 0x311   : > { %v7764_v15 = vadd.f32 %v3871_v2, %v7530_v14 }
 0x312   : > { %v4308_v37 = vadd.f32 %v4307_v41, %v4273_v4  ;;  %v5244_v20 = vpop.f32.mrb[136].mxu0 }
 0x313   : > { %v3698_v35 = vpop.f32.mrb[148].mxu1  ;;  %8533 = vst [vmem:[#allocation59_spill] sm:$0xff] %v7764_v15  ;;  %v4949_v31 = vpack.c.bf16 %v7764_v15, %v7758_v12  ;;  %v4275_v40 = vsel %vm8535_vm6, %v7764_v15, 0.0  ;;  %v3883_v2 = vpop.f32.mrb[137].mxu0 }
 0x314   : > { %v3700_v9 = vpop.f32.mrb[149].mxu1  ;;  %v3876_v44 = vadd.f32 %v5240_v21, %v3698_v35  ;;  %v4309_v32 = vadd.f32 %v4308_v37, %v4274_v46  ;;  %v5245_v21 = vpop.f32.mrb[138].mxu0 }
 0x315   : > { %v3701_v26 = vpop.f32.mrb[150].mxu1  ;;  %5012 = vst [vmem:[%s7620_s27 + $0x50] sm:$0xff] %v4949_v31   ;;  %v3886_v9 = vpop.f32.mrb[139].mxu0 }
 0x316   : > { %v3703_v41 = vpop.f32.mrb[151].mxu1  ;;  %v7772_v57 = vadd.f32 %v3876_v44, %v7517_v36  ;;  %v3879_v4 = vadd.f32 %v5241_v53, %v3701_v26  ;;  %v4310_v14 = vadd.f32 %v4309_v32, %v4275_v40 }
 0x318   : > { %8536 = vst [vmem:[#allocation58_spill] sm:$0xff] %v7772_v57  ;;  %v4276_v37 = vsel %vm6730_vm10, %v7772_v57, 0.0  ;;  %v7779_v35 = vadd.f32 %v3879_v4, %v7525_v5 }
 0x319   : > { %v4311_v16 = vadd.f32 %v4310_v14, %v4276_v37 }
 0x31a   : > { %8538 = vst [vmem:[#allocation61_spill] sm:$0xff] %v7779_v35  ;;  %v4954_v41 = vpack.c.bf16 %v7779_v35, %v7772_v57  ;;  %v4277_v31 = vsel %vm6737_vm14, %v7779_v35, 0.0  ;;  %v5248_v40 = vpop.f32.mrb[140].mxu0 }
 0x31b   : > { %v3706_v56 = vpop.f32.mrb[152].mxu1  ;;  %v4312_v26 = vadd.f32 %v4311_v16, %v4277_v31  ;;  %v3899_v14 = vpop.f32.mrb[141].mxu0 }
 0x31c   : > { %v3708_v36 = vpop.f32.mrb[153].mxu1  ;;  %5013 = vst [vmem:[%s7620_s27 + $0x58] sm:$0xff] %v4954_v41   ;;  %v3884_v44 = vadd.f32 %v3883_v2, %v3706_v56  ;;  %v5249_v37 = vpop.f32.mrb[142].mxu0 }
 0x31d   : > { %v3709_v32 = vpop.f32.mrb[154].mxu1  ;;  %v3902_v53 = vpop.f32.mrb[143].mxu0 }
 0x31e   : > { %v3711_v46 = vpop.f32.mrb[155].mxu1  ;;  %v7788_v5 = vadd.f32 %v3884_v44, %v7541_v25  ;;  %v3887_v4 = vadd.f32 %v3886_v9, %v3709_v32 }
 0x320   : > { %8540 = vst [vmem:[#allocation60_spill] sm:$0xff] %v7788_v5  ;;  %v4278_v41 = vsel %vm6768_vm13, %v7788_v5, 0.0  ;;  %v7794_v36 = vadd.f32 %v3887_v4, %v7548_v24 }
 0x321   : > { %v4313_v56 = vadd.f32 %v4312_v26, %v4278_v41 }
 0x322   : > { %v4959_v16 = vpack.c.bf16 %v7794_v36, %v7788_v5  ;;  %v4279_v25 = vsel %vm6772_vm5, %v7794_v36, 0.0  ;;  %v5252_v57 = vpop.f32.mrb[144].mxu0 }
 0x323   : > { %v3714_v46 = vpop.f32.mrb[156].mxu1  ;;  %v4314_v32 = vadd.f32 %v4313_v56, %v4279_v25  ;;  %v3915_v4 = vpop.f32.mrb[145].mxu0 }
 0x324   : > { %v3716_v9 = vpop.f32.mrb[157].mxu1  ;;  %v3892_v31 = vadd.f32 %v5244_v20, %v3714_v46  ;;  %5014 = vst [vmem:[%s7620_s27 + $0x60] sm:$0xff] %v4959_v16   ;;  %v5253_v41 = vpop.f32.mrb[146].mxu0 }
 0x325   : > { %v3717_v44 = vpop.f32.mrb[158].mxu1  ;;  %v3918_v20 = vpop.f32.mrb[147].mxu0 }
 0x326   : > { %v3719_v35 = vpop.f32.mrb[159].mxu1  ;;  %v7803_v24 = vadd.f32 %v3892_v31, %v7537_v51  ;;  %v3895_v26 = vadd.f32 %v5245_v21, %v3717_v44 }
 0x328   : > { %v4280_v2 = vsel %vm6816_vm12, %v7803_v24, 0.0  ;;  %v7809_v15 = vadd.f32 %v3895_v26, %v7545_v1 }
 0x329   : > { %v4315_v16 = vadd.f32 %v4314_v32, %v4280_v2 }
 0x32a   : > { %v4964_v56 = vpack.c.bf16 %v7809_v15, %v7803_v24  ;;  %v4281_v51 = vsel %vm6829_vm0, %v7809_v15, 0.0 }
 0x32b   : > { %v3722_v25 = vpop.f32.mrb[160].mxu1  ;;  %v4316_v21 = vadd.f32 %v4315_v16, %v4281_v51 }
 0x32c   : > { %v3724_v46 = vpop.f32.mrb[161].mxu1  ;;  %5015 = vst [vmem:[%s7620_s27 + $0x68] sm:$0xff] %v4964_v56   ;;  %v3900_v9 = vadd.f32 %v3899_v14, %v3722_v25 }
 0x32d   : > { %v3725_v31 = vpop.f32.mrb[162].mxu1 }
 0x32e   : > { %v3727_v44 = vpop.f32.mrb[163].mxu1  ;;  %v7818_v1 = vadd.f32 %v3900_v9, %v7559_v22  ;;  %v3903_v26 = vadd.f32 %v3902_v53, %v3725_v31 }
 0x330   : > { %v4282_v32 = vsel %vm6865_vm2, %v7818_v1, 0.0  ;;  %v7824_v5 = vadd.f32 %v3903_v26, %v7568_v19 }
 0x331   : > { %v4317_v35 = vadd.f32 %v4316_v21, %v4282_v32 }
 0x332   : > { %v4969_v16 = vpack.c.bf16 %v7824_v5, %v7818_v1  ;;  %v4283_v14 = vsel %vm6869_vm4, %v7824_v5, 0.0 }
 0x333   : > { %v3730_v51 = vpop.f32.mrb[164].mxu1  ;;  %v4318_v22 = vadd.f32 %v4317_v35, %v4283_v14 }
 0x334   : > { %v3732_v25 = vpop.f32.mrb[165].mxu1  ;;  %v3908_v53 = vadd.f32 %v5248_v40, %v3730_v51  ;;  %5016 = vst [vmem:[%s7620_s27 + $0x70] sm:$0xff] %v4969_v16   ;;  %v8548_v40 = vld [vmem:[#allocation53_spill] sm:$0xff] }
 0x335   : > { %v3733_v46 = vpop.f32.mrb[166].mxu1 }
 0x336   : > { %v3735_v9 = vpop.f32.mrb[167].mxu1  ;;  %v7833_v31 = vadd.f32 %v3908_v53, %v7555_v42  ;;  %v3911_v19 = vadd.f32 %v5249_v37, %v3733_v46  ;;  %v8549_v46 = vld [vmem:[#allocation54_spill] sm:$0xff] }
 0x338   : > { %v4284_v44 = vsel %vm8451_vm11, %v7833_v31, 0.0  ;;  %v7839_v26 = vadd.f32 %v3911_v19, %v7563_v29 }
 0x339   : > { %v4319_v32 = vadd.f32 %v4318_v22, %v4284_v44 }
 0x33a   : > { %v4974_v35 = vpack.c.bf16 %v7839_v26, %v7833_v31  ;;  %v4285_v16 = vsel %vm8452_vm15, %v7839_v26, 0.0 }
 0x33b   : > { %v3738_v14 = vpop.f32.mrb[168].mxu1  ;;  %v4320_v51 = vadd.f32 %v4319_v32, %v4285_v16 }
 0x33c   : > { %5017 = vst [vmem:[%s7620_s27 + $0x78] sm:$0xff] %v4974_v35   ;;  %v3740_v42 = vpop.f32.mrb[169].mxu1  ;;  %v3916_v37 = vadd.f32 %v3915_v4, %v3738_v14  ;;  %v8550_v4 = vld [vmem:[#allocation55_spill] sm:$0xff] }
 0x33d   : > { %v3741_v25 = vpop.f32.mrb[170].mxu1 }
 0x33e   : > { %v3743_v53 = vpop.f32.mrb[171].mxu1  ;;  %v7848_v29 = vadd.f32 %v3916_v37, %v7579_v7  ;;  %v3919_v22 = vadd.f32 %v3918_v20, %v3741_v25  ;;  %v8551_v25 = vld [vmem:[#allocation56_spill] sm:$0xff] }
 0x340   : > { %v4286_v9 = vsel %vm8455_vm3, %v7848_v29, 0.0  ;;  %v7854_v19 = vadd.f32 %v3919_v22, %v7586_v8 }
 0x341   : > { %v4321_v44 = vadd.f32 %v4320_v51, %v4286_v9 }
 0x342   : > { %v4979_v32 = vpack.c.bf16 %v7854_v19, %v7848_v29  ;;  %v4287_v35 = vsel %vm8456_vm8, %v7854_v19, 0.0 }
 0x343   : > { %v3746_v16 = vpop.f32.mrb[172].mxu1  ;;  %v4322_v7 = vadd.f32 %v4321_v44, %v4287_v35 }
 0x344   : > { %v3924_v14 = vadd.f32 %v5252_v57, %v3746_v16  ;;  %v3748_v20 = vpop.f32.mrb[173].mxu1  ;;  %5018 = vst [vmem:[%s7620_s27 + $0x80] sm:$0xff] %v4979_v32  }
 0x345   : > { %v3749_v42 = vpop.f32.mrb[174].mxu1 }
 0x346   : > { %v7864_v8 = vadd.f32 %v3924_v14, %v7575_v28  ;;  %v3927_v51 = vadd.f32 %v5253_v41, %v3749_v42  ;;  %v3751_v37 = vpop.f32.mrb[175].mxu1  ;;  %v8552_v41 = vld [vmem:[#allocation57_spill] sm:$0xff] }
 0x347   : > { %vm8553_vm8 = vnez %v8552_v41 }
 0x348   : > { %v4288_v53 = vsel %vm6986_vm7, %v7864_v8, 0.0  ;;  %v7871_v22 = vadd.f32 %v3927_v51, %v7583_v50 }
 0x349   : > { %v4323_v57 = vadd.f32 %v4322_v7, %v4288_v53 }
 0x34a   : > { %v4984_v28 = vpack.c.bf16 %v7871_v22, %v7864_v8  ;;  %v4289_v9 = vsel %vm8553_vm8, %v7871_v22, 0.0 }
 0x34b   : > { %v4324_v50 = vadd.f32 %v4323_v57, %v4289_v9 }
 0x34c   : > { %5019 = vst [vmem:[%s7620_s27 + $0x88] sm:$0xff] %v4984_v28  }
 0x34d   : > { %v4325_v44 = vrot.slane %v4324_v50, 4 }
 0x34e   : > { %5697 = shalt.err (!%p5694_p13)
}
 0x34f   : > { %s5698_s9 = scalar_lea.hbm %s7876_s19, 2304  ;;  %s5702_s27 = scalar_lea.hbm %s8148_s5, 4608 }
 0x350   : > { %p5699_p0 = scmp.ne.s32.totalorder %s7876_s19, %s5698_s9  ;;  %p5703_p9 = scmp.lt.u32.totalorder %s7876_s19, %s8148_s5 }
 0x351   : > { %p5704_p12 = scmp.lt.u32.totalorder %s5702_s27, %s5698_s9  ;;  %p5706_p4 = scmp.lt.u32.totalorder %s5698_s9, %s7876_s19 }
 0x352   : > { %p5700_p5 = pnand %p5699_p0, %p5997_p1 }
 0x353   : > { %p5705_p2 = por %p5704_p12, %p5703_p9 }
 0x354   : > { %p5701_p11 = pneg %p5700_p5 }
 0x355   : > { %p5707_p6 = por %p5706_p4, %p5705_p2 }
 0x357   : > { %p5708_p8 = pnand %p5707_p6, %p5701_p11 }
 0x359   : > { %5711 = shalt.err (!%p5708_p8)
}
 0x35a   : > { %s5804_s15 = smov 64   ;;  %s5805_s11 = smov 4   ;;  %v4326_v32 = vadd.f32 %v4325_v44, %v4324_v50  ;;  %vm8554_vm8 = vnez %v8491_v10  ;;  %vm8555_vm7 = vnez %v8493_v48  ;;  %vm8556_vm3 = vnez %v8495_v63  ;;  %v8557_v28 = vld [vmem:[#allocation24_spill] sm:$0xff] }
 0x35b   : > { %5364 = dma.vmem_to_hbm [thread:$0]  (%p5997_p1), %s7883_s8, 2304, %s7876_s19, %s4484_s20, %s5804_s15, %s5804_s15, %s5805_s11   ;;  %vm8558_vm15 = vnez %v8557_v28 }
 0x35c   : > { %v4327_v35 = vrot.slane %v4326_v32, 2  ;;  %s4671_s26 = sshll.u32 %s6052_s14, 1  ;;  %s4785_s8 = sshll.u32 %s5863_s25, 5 }
 0x35d   : > { %s7911_s30 = scalar_lea.vmem [#allocation15], %s4671_s26  ;;  %s8098_s9 = scalar_lea.hbm %s8149_s6, %s4785_s8 }
 0x35e   : > { %v4328_v16 = vadd.f32 %v4327_v35, %v4326_v32  ;;  %s4518_s19 = sshll.u32 %s7911_s30, 4  ;;  %s4489_s12 = scalar_lea.sflag [#allocation16], %s6052_s14  ;;  %s8100_s19 = int_to_ptr.vmem [resolvable:$true] %s4518_s19 }
 0x35f   : > { %s5712_s7 = scalar_lea.vmem %s8100_s19, 32  ;;  %s5806_s25 = smov [#allocation15]  }
 0x360   : > { %v4329_v7 = vrot.slane %v4328_v16, 1  ;;  %p5713_p3 = scmp.ne.s32.totalorder %s8100_s19, %s5712_s7  ;;  %s5716_s27 = sshll.u32 %s5806_s25, 4  ;;  %s5717_s27 = int_to_ptr.vmem [resolvable:$false] %s5716_s27 }
 0x361   : > { %s5718_s29 = scalar_lea.vmem %s5717_s27, 64  ;;  %p5719_p13 = scmp.lt.s32.totalorder %s8100_s19, %s5717_s27 }
 0x362   : > { %v4330_v14 = vadd.f32 %v4329_v7, %v4328_v16  ;;  %p5714_p7 = pnand %p5713_p3, %p5997_p1  ;;  %p5720_p0 = scmp.lt.s32.totalorder %s5718_s29, %s5712_s7 }
 0x364   : > { %4404 = vst [vmem:[%s7911_s30] sm:$0x1] %v4330_v14  ;;  %v7914_v20 = vmul.f32 0.00390625, %v4330_v14  ;;  %p5715_p10 = pneg %p5714_p7  ;;  %p5721_p5 = por %p5720_p0, %p5719_p13 }
 0x366   : > { %v4357_v42 = vsub.f32 %v7794_v36, %v7914_v20  ;;  %v4358_v51 = vsub.f32 %v7803_v24, %v7914_v20  ;;  %v4359_v37 = vsub.f32 %v7809_v15, %v7914_v20  ;;  %v4332_v16 = vsub.f32 %v7595_v34, %v7914_v20  ;;  %p5722_p11 = pnand %p5721_p5, %p5715_p10 }
 0x367   : > { %v4333_v7 = vsub.f32 %v7604_v43, %v7914_v20  ;;  %v4334_v14 = vsub.f32 %v7591_v3, %v7914_v20  ;;  %v4335_v32 = vsub.f32 %v7599_v55, %v7914_v20  ;;  %v4336_v34 = vsub.f32 %v7636_v47, %v7914_v20  ;;  %v8559_v55 = vld [vmem:[#allocation25_spill] sm:$0xff]  ;;  %v8561_v47 = vld [vmem:[#allocation26_spill] sm:$0xff] }
 0x368   : > { %v4368_v50 = vsel %vm8554_vm8, %v4332_v16, 0.0  ;;  %v4337_v3 = vsub.f32 %v7646_v38, %v7914_v20  ;;  %v4339_v63 = vsub.f32 %v7640_v17, %v7914_v20  ;;  %v4340_v28 = vsub.f32 %v7668_v60, %v7914_v20 }
 0x369   : > { %v4369_v44 = vsel %vm8555_vm7, %v4333_v7, 0.0  ;;  %v4405_v9 = vmul.f32 %v4368_v50, %v4368_v50  ;;  %v4370_v43 = vsel %vm8556_vm3, %v4334_v14, 0.0  ;;  %v4371_v10 = vsel %vm8558_vm15, %v4335_v32, 0.0 }
 0x36a   : > { %v4406_v35 = vmul.f32 %v4369_v44, %v4369_v44  ;;  %v4407_v16 = vmul.f32 %v4370_v43, %v4370_v43  ;;  %v4338_v7 = vsub.f32 %v7629_v39, %v7914_v20  ;;  %vm8560_vm7 = vnez %v8559_v55 }
 0x36b   : > { %v4372_v50 = vsel %vm8560_vm7, %v4336_v34, 0.0  ;;  %v4408_v44 = vmul.f32 %v4371_v10, %v4371_v10  ;;  %vm8562_vm3 = vnez %v8561_v47  ;;  %vm8563_vm15 = vnez %v8503_v49 }
 0x36c   : > { %v4441_v48 = vadd.f32 %v4406_v35, %v4405_v9  ;;  %v4373_v14 = vsel %vm8562_vm3, %v4337_v3, 0.0  ;;  %v4409_v38 = vmul.f32 %v4372_v50, %v4372_v50  ;;  %v4374_v9 = vsel %vm8563_vm15, %v4338_v7, 0.0 }
 0x36d   : > { %v4410_v39 = vmul.f32 %v4373_v14, %v4373_v14  ;;  %v4341_v35 = vsub.f32 %v7678_v6, %v7914_v20  ;;  %vm8564_vm8 = vnez %v8505_v58  ;;  %v4411_v17 = vmul.f32 %v4374_v9, %v4374_v9 }
 0x36e   : > { %v4442_v57 = vadd.f32 %v4441_v48, %v4407_v16  ;;  %v4375_v34 = vsel %vm8564_vm8, %v4339_v63, 0.0  ;;  %v4342_v3 = vsub.f32 %v7662_v54, %v7914_v20  ;;  %v4343_v49 = vsub.f32 %v7672_v0, %v7914_v20  ;;  %v8570_v63 = vld [vmem:[#allocation32_spill] sm:$0xff] }
 0x36f   : > { %v4412_v60 = vmul.f32 %v4375_v34, %v4375_v34  ;;  %v4344_v58 = vsub.f32 %v7700_v13, %v7914_v20  ;;  %vm8569_vm15 = vnez %v8511_v30  ;;  %vm8571_vm8 = vnez %v8570_v63 }
 0x370   : > { %v4443_v53 = vadd.f32 %v4442_v57, %v4408_v44  ;;  %v8565_v57 = vld [vmem:[#allocation29_spill] sm:$0xff]  ;;  %v4378_v55 = vsel %vm8569_vm15, %v4342_v3, 0.0  ;;  %v4345_v44 = vsub.f32 %v7710_v45, %v7914_v20  ;;  %v4379_v47 = vsel %vm8571_vm8, %v4343_v49, 0.0 }
 0x371   : > { %vm8566_vm7 = vnez %v8565_v57  ;;  %v4415_v0 = vmul.f32 %v4378_v55, %v4378_v55  ;;  %v4416_v13 = vmul.f32 %v4379_v47, %v4379_v47  ;;  %v4347_v30 = vsub.f32 %v7704_v59, %v7914_v20 }
 0x372   : > { %v4444_v32 = vadd.f32 %v4443_v53, %v4409_v38  ;;  %v4376_v10 = vsel %vm8566_vm7, %v4340_v28, 0.0  ;;  %v8567_v53 = vld [vmem:[#allocation30_spill] sm:$0xff]  ;;  %v4346_v38 = vsub.f32 %v7694_v62, %v7914_v20  ;;  %v8572_v28 = vld [vmem:[#allocation33_spill] sm:$0xff]  ;;  %vm8576_vm15 = vnez %v8519_v27 }
 0x373   : > { %vm8568_vm3 = vnez %v8567_v53  ;;  %v4413_v6 = vmul.f32 %v4376_v10, %v4376_v10  ;;  %vm8573_vm7 = vnez %v8572_v28  ;;  %v4349_v57 = vsub.f32 %v7740_v11, %v7914_v20 }
 0x374   : > { %v4445_v43 = vadd.f32 %v4444_v32, %v4410_v39  ;;  %v4377_v48 = vsel %vm8568_vm3, %v4341_v35, 0.0  ;;  %v4380_v9 = vsel %vm8573_vm7, %v4344_v58, 0.0  ;;  %v8574_v32 = vld [vmem:[#allocation34_spill] sm:$0xff]  ;;  %vm8577_vm8 = vnez %v8521_v52 }
 0x375   : > { %v4414_v54 = vmul.f32 %v4377_v48, %v4377_v48  ;;  %vm8575_vm3 = vnez %v8574_v32  ;;  %v4417_v45 = vmul.f32 %v4380_v9, %v4380_v9  ;;  %v4383_v10 = vsel %vm8577_vm8, %v4347_v30, 0.0  ;;  %v8579_v48 = vld [vmem:[#allocation38_spill] sm:$0xff] }
 0x376   : > { %v4446_v16 = vadd.f32 %v4445_v43, %v4411_v17  ;;  %v4381_v35 = vsel %vm8575_vm3, %v4345_v44, 0.0  ;;  %v4348_v17 = vsub.f32 %v7731_v23, %v7914_v20  ;;  %v4382_v43 = vsel %vm8576_vm15, %v4346_v38, 0.0  ;;  %v8583_v44 = vld [vmem:[#allocation40_spill] sm:$0xff] }
 0x377   : > { %v4418_v62 = vmul.f32 %v4381_v35, %v4381_v35  ;;  %v4419_v59 = vmul.f32 %v4382_v43, %v4382_v43  ;;  %vm8578_vm7 = vnez %v8523_v61  ;;  %v4420_v23 = vmul.f32 %v4383_v10, %v4383_v10  ;;  %v8582_v61 = vld [vmem:[#allocation59_spill] sm:$0xff] }
 0x378   : > { %v4447_v7 = vadd.f32 %v4446_v16, %v4412_v60  ;;  %v4350_v16 = vsub.f32 %v7725_v18, %v7914_v20  ;;  %v4384_v49 = vsel %vm8578_vm7, %v4348_v17, 0.0  ;;  %v4351_v27 = vsub.f32 %v7734_v33, %v7914_v20 }
 0x379   : > { %vm8580_vm3 = vnez %v8579_v48  ;;  %v4421_v11 = vmul.f32 %v4384_v49, %v4384_v49  ;;  %v4352_v52 = vsub.f32 %v7758_v12, %v7914_v20  ;;  %vm8584_vm15 = vnez %v8583_v44 }
 0x37a   : > { %v4448_v50 = vadd.f32 %v4447_v7, %v4413_v6  ;;  %v4385_v6 = vsel %vm8580_vm3, %v4349_v57, 0.0  ;;  %v4386_v55 = vsel %vm8528_vm9, %v4350_v16, 0.0  ;;  %v4387_v63 = vsel %vm8584_vm15, %v4351_v27, 0.0 }
 0x37b   : > { %v4422_v18 = vmul.f32 %v4385_v6, %v4385_v6  ;;  %v4423_v33 = vmul.f32 %v4386_v55, %v4386_v55  ;;  %v4388_v28 = vsel %vm8532_vm1, %v4352_v52, 0.0  ;;  %v4424_v12 = vmul.f32 %v4387_v63, %v4387_v63 }
 0x37c   : > { %v4449_v14 = vadd.f32 %v4448_v50, %v4414_v54  ;;  %v4353_v50 = vsub.f32 %v8582_v61, %v7914_v20  ;;  %v4425_v35 = vmul.f32 %v4388_v28, %v4388_v28  ;;  %v4393_v6 = vsel %vm6772_vm5, %v4357_v42, 0.0 }
 0x37d   : > { %v4394_v58 = vsel %vm6816_vm12, %v4358_v51, 0.0  ;;  %v4430_v55 = vmul.f32 %v4393_v6, %v4393_v6  ;;  %v4395_v61 = vsel %vm6829_vm0, %v4359_v37, 0.0  ;;  %v8596_v42 = vsub.f32 %v7818_v1, %v7914_v20 }
 0x37e   : > { %v4450_v39 = vadd.f32 %v4449_v14, %v4415_v0  ;;  %v8585_v0 = vld [vmem:[#allocation58_spill] sm:$0xff]  ;;  %v4389_v32 = vsel %vm8535_vm6, %v4353_v50, 0.0  ;;  %v4431_v36 = vmul.f32 %v4394_v58, %v4394_v58  ;;  %v4432_v24 = vmul.f32 %v4395_v61, %v4395_v61 }
 0x37f   : > { %v4354_v14 = vsub.f32 %v8585_v0, %v7914_v20  ;;  %v4396_v44 = vsel %vm6865_vm2, %v8596_v42, 0.0  ;;  %v8597_v51 = vsub.f32 %v7824_v5, %v7914_v20  ;;  %v8598_v37 = vsub.f32 %v7833_v31, %v7914_v20 }
 0x380   : > { %v4451_v34 = vadd.f32 %v4450_v39, %v4416_v13  ;;  %v8587_v13 = vld [vmem:[#allocation61_spill] sm:$0xff]  ;;  %v4433_v15 = vmul.f32 %v4396_v44, %v4396_v44  ;;  %v8599_v2 = vsub.f32 %v7839_v26, %v7914_v20  ;;  %vm8600_vm6 = vnez %v8548_v40 }
 0x381   : > { %v4355_v39 = vsub.f32 %v8587_v13, %v7914_v20  ;;  %v4398_v0 = vsel %vm8451_vm11, %v8598_v37, 0.0  ;;  %v8601_v56 = vsub.f32 %v7848_v29, %v7914_v20  ;;  %vm8602_vm12 = vnez %v8549_v46 }
 0x382   : > { %v4452_v3 = vadd.f32 %v4451_v34, %v4417_v45  ;;  %v8589_v34 = vld [vmem:[#allocation60_spill] sm:$0xff]  ;;  %v4399_v38 = vsel %vm8600_vm6, %v8599_v2, 0.0  ;;  %v4435_v5 = vmul.f32 %v4398_v0, %v4398_v0  ;;  %v8603_v21 = vsub.f32 %v7854_v19, %v7914_v20 }
 0x383   : > { %v4356_v17 = vsub.f32 %v8589_v34, %v7914_v20  ;;  %v4436_v31 = vmul.f32 %v4399_v38, %v4399_v38 }
 0x384   : > { %v4453_v60 = vadd.f32 %v4452_v3, %v4418_v62  ;;  %v4390_v62 = vsel %vm6730_vm10, %v4354_v14, 0.0  ;;  %v4426_v3 = vmul.f32 %v4389_v32, %v4389_v32  ;;  %vm8604_vm10 = vnez %v8550_v4 }
 0x385   : > { %v4401_v13 = vsel %vm8604_vm10, %v8603_v21, 0.0  ;;  %v8607_v32 = vsub.f32 %v7871_v22, %v7914_v20 }
 0x386   : > { %v4454_v53 = vadd.f32 %v4453_v60, %v4419_v59  ;;  %v4391_v59 = vsel %vm6737_vm14, %v4355_v39, 0.0  ;;  %v4427_v60 = vmul.f32 %v4390_v62, %v4390_v62  ;;  %v8605_v39 = vsub.f32 %v7864_v8, %v7914_v20 }
 0x387   : > { %vm8606_vm14 = vnez %v8551_v25  ;;  %v4438_v46 = vmul.f32 %v4401_v13, %v4401_v13 }
 0x388   : > { %v4455_v7 = vadd.f32 %v4454_v53, %v4420_v23  ;;  %v4392_v23 = vsel %vm6768_vm13, %v4356_v17, 0.0  ;;  %v4428_v53 = vmul.f32 %v4391_v59, %v4391_v59  ;;  %v4402_v29 = vsel %vm8606_vm14, %v8605_v39, 0.0 }
 0x389   : > { %vm8608_vm13 = vnez %v8552_v41  ;;  %v4439_v4 = vmul.f32 %v4402_v29, %v4402_v29 }
 0x38a   : > { %v4456_v54 = vadd.f32 %v4455_v7, %v4421_v11  ;;  %v4429_v11 = vmul.f32 %v4392_v23, %v4392_v23  ;;  %v4403_v19 = vsel %vm8608_vm13, %v8607_v32, 0.0 }
 0x38c   : > { %v4457_v47 = vadd.f32 %v4456_v54, %v4422_v18 }
 0x38e   : > { %v4458_v9 = vadd.f32 %v4457_v47, %v4423_v33  ;;  %v4397_v33 = vsel %vm6869_vm4, %v8597_v51, 0.0 }
 0x38f   : > { %v4434_v1 = vmul.f32 %v4397_v33, %v4397_v33 }
 0x390   : > { %v4459_v45 = vadd.f32 %v4458_v9, %v4424_v12  ;;  %v4400_v12 = vsel %vm8602_vm12, %v8601_v56, 0.0 }
 0x391   : > { %v4437_v26 = vmul.f32 %v4400_v12, %v4400_v12 }
 0x392   : > { %v4460_v57 = vadd.f32 %v4459_v45, %v4425_v35  ;;  %v4440_v45 = vmul.f32 %v4403_v19, %v4403_v19 }
 0x394   : > { %v4461_v16 = vadd.f32 %v4460_v57, %v4426_v3 }
 0x396   : > { %v4462_v27 = vadd.f32 %v4461_v16, %v4427_v60 }
 0x398   : > { %v4463_v7 = vadd.f32 %v4462_v27, %v4428_v53 }
 0x39a   : > { %v4464_v18 = vadd.f32 %v4463_v7, %v4429_v11 }
 0x39c   : > { %v4465_v50 = vadd.f32 %v4464_v18, %v4430_v55 }
 0x39e   : > { %v4466_v63 = vadd.f32 %v4465_v50, %v4431_v36 }
 0x3a0   : > { %v4467_v47 = vadd.f32 %v4466_v63, %v4432_v24 }
 0x3a2   : > { %v4468_v14 = vadd.f32 %v4467_v47, %v4433_v15 }
 0x3a4   : > { %v4469_v28 = vadd.f32 %v4468_v14, %v4434_v1 }
 0x3a6   : > { %v4470_v9 = vadd.f32 %v4469_v28, %v4435_v5 }
 0x3a8   : > { %v4471_v40 = vadd.f32 %v4470_v9, %v4436_v31 }
 0x3aa   : > { %v4472_v30 = vadd.f32 %v4471_v40, %v4437_v26 }
 0x3ac   : > { %v4473_v35 = vadd.f32 %v4472_v30, %v4438_v46 }
 0x3ae   : > { %v4474_v34 = vadd.f32 %v4473_v35, %v4439_v4 }
 0x3b0   : > { %v4475_v17 = vadd.f32 %v4474_v34, %v4440_v45 }
 0x3b2   : > { %v4476_v8 = vrot.slane %v4475_v17, 4 }
 0x3b4   : > { %v4477_v43 = vadd.f32 %v4476_v8, %v4475_v17 }
 0x3b6   : > { %v4478_v25 = vrot.slane %v4477_v43, 2 }
 0x3b8   : > { %v4479_v62 = vadd.f32 %v4478_v25, %v4477_v43 }
 0x3ba   : > { %v4480_v3 = vrot.slane %v4479_v62, 1 }
 0x3bc   : > { %v4481_v57 = vadd.f32 %v4480_v3, %v4479_v62 }
 0x3be   : > { %4482 = vst [vmem:[%s7911_s30 + $0x1] sm:$0x1] %v4481_v57 }
 0x3bf   : > { %5725 = shalt.err (!%p5722_p11)
}
 0x3c0   : > { %s5726_s14 = scalar_lea.hbm %s8098_s9, 32  ;;  %s5730_s11 = scalar_lea.hbm %s8149_s6, 64 }
 0x3c1   : > { %p5727_p9 = scmp.ne.s32.totalorder %s8098_s9, %s5726_s14  ;;  %p5731_p4 = scmp.lt.u32.totalorder %s8098_s9, %s8149_s6 }
 0x3c2   : > { %p5732_p6 = scmp.lt.u32.totalorder %s5730_s11, %s5726_s14  ;;  %p5734_p3 = scmp.lt.u32.totalorder %s5726_s14, %s8098_s9 }
 0x3c3   : > { %p5728_p12 = pnand %p5727_p9, %p5997_p1 }
 0x3c4   : > { %p5733_p8 = por %p5732_p6, %p5731_p4 }
 0x3c5   : > { %p5729_p2 = pneg %p5728_p12 }
 0x3c6   : > { %p5735_p7 = por %p5734_p3, %p5733_p8 }
 0x3c8   : > { %p5736_p10 = pnand %p5735_p7, %p5729_p2 }
 0x3ca   : > { %5739 = shalt.err (!%p5736_p10)
}
 0x3cb   : > { %5365 = dma.vmem_to_hbm [thread:$0]  (%p5997_p1), %s8100_s19, 32, %s8098_s9, %s4489_s12  }
 0x3cc PF: > { %s4530_s8 = sand.u32 1, %s5778_s21   ;;  %p8609_p13 = scmp.ne.s32.totalorder %s8299_s28, 0 }
 0x3cd   : > { %p8610_p0 = scmp.ge.s32.totalorder %s5790_s24, 2  ;;  %s4531_s20 = scalar_lea.sflag [#allocation7], %s4530_s8 }
 0x3cf   : > { %p5386_p5 = pnand %p8610_p0, %p8609_p13 }
 0x3d1   : > { %5769 = dma.done.wait (!%p5386_p5), %s4531_s20, 2304  }
 0x3d2   : > { %5771 = vsyncadd (!%p5386_p5), %s4531_s20, 4294964992  ;;  %s4540_s10 = scalar_lea.sflag [#allocation16], %s4530_s8 }
 0x3d3   : > { %5773 = dma.done.wait (!%p5386_p5), %s4540_s10, 32  }
 0x3d4   : > { %5775 = vsyncadd (!%p5386_p5), %s4540_s10, 4294967264  ;;  %p25_p1 = scmp.ge.s32.totalorder %s5987_s18, 4   ;;  %s8611_s21 = smov %s5782_s22 }
 0x3d5   : > { %s8612_s22 = smov %s5786_s23  ;;  %s8613_s23 = smov %s6003_s17 }
 0x3d6   : > { %s8614_s24 = smov %s5987_s18  ;;  %27 = sbr.rel (!%p25_p1) target bundleno = 9 (0x9), region = 120 }
 0x3dd   :  { %4545 = vsyncpa [#allocation6], 1 }
 0x3de   :  { %4547 = vsyncpa [#allocation6 + $0x1], 1 }
 0x3df   :  { %4548 = vsyncpa [#allocation9], 1 }
 0x3e0   :  { %4549 = vsyncpa [#allocation12], 1 }
 0x3e1   :  { %4550 = vsyncpa [#allocation7], 1 }
 0x3e2   :  { %4552 = vsyncpa [#allocation7 + $0x1], 1 }
 0x3e3   :  { %4553 = vsyncpa [#allocation16], 1 }
 0x3e4   :  { %4555 = vsyncpa [#allocation16 + $0x1], 1 }

// kernel: basic_block_forward.3
= control target key start
LH: loop header
LB: loop body
LE: loop exit
PB: predicated region body
PF: predicated region fallthrough
CT: control target
= control target key end

     0   :  { %12 = vsyncpa [#allocation6], 0  ;;  %s8510_s0 = inlined_call_operand.hbm [shape: bf16[2,288,128], index: 0, kind: input, shape index: {}]   ;;  %s8511_s1 = inlined_call_operand.hbm [shape: f32[1,128], index: 1, kind: input, shape index: {}, may-alias: {1,2}]   ;;  %s8512_s2 = inlined_call_operand.hbm [shape: f32[1,128], index: 2, kind: input, shape index: {}, may-alias: {1,2}]   ;;  %s8513_s3 = inlined_call_operand.hbm [shape: bf16[3,384,128], index: 3, kind: input, shape index: {}]   ;;  %s8514_s4 = inlined_call_operand.hbm [shape: f32[1,128], index: 4, kind: input, shape index: {}]   ;;  %s8515_s5 = inlined_call_operand.hbm [shape: bf16[2,288,128], index: 5, kind: output, shape index: {0}]   ;;  %s8516_s6 = inlined_call_operand.hbm [shape: f32[2,2,128], index: 6, kind: output, shape index: {1}]  }
   0x1   :  { %14 = vsyncpa [#allocation6 + $0x1], 0 }
   0x2   :  { %15 = vsyncpa [#allocation9], 0 }
   0x3   :  { %16 = vsyncpa [#allocation12], 0 }
   0x4   :  { %17 = vsyncpa [#allocation7], 0 }
   0x5   :  { %19 = vsyncpa [#allocation7 + $0x1], 0 }
   0x6   :  { %20 = vsyncpa [#allocation16], 0 }
   0x7   :  { %22 = vsyncpa [#allocation16 + $0x1], 0  ;;  %s5673_s21 = smov 0   ;;  %s5675_s22 = smov 0  }
   0x8   :  { %s5677_s23 = smov 0   ;;  %s5679_s24 = smov 0  }
   0x9 LB: > { %s5694_s25 = sadd.s32 4294967295, %s5622_s24   ;;  %s4500_s26 = sadd.s32 4294967294, %s5622_s24   ;;  %s5622_s24 = sphi %s5679_s24, %s9185_s24   ;;  %s5618_s23 = sphi %s5677_s23, %s9184_s23   ;;  %s5614_s22 = sphi %s5675_s22, %s9183_s22   ;;  %s5610_s21 = sphi %s5673_s21, %s9182_s21  }
   0xa   : > { %p48_p0 = scmp.ne.s32.totalorder %s5614_s22, %s5610_s21  ;;  %p8517_p1 = scmp.eq.s32.totalorder %s5694_s25, 0 }
   0xb   : > { %p162_p3 = scmp.eq.s32.totalorder %s4500_s26, 1  ;;  %p4501_p5 = scmp.ge.s32.totalorder %s5622_s24, 1 }
   0xc   : > { %p5703_p4 = por %p8517_p1, %p48_p0  ;;  %p195_p7 = scmp.lt.s32.totalorder %s5622_s24, 3 }
   0xd   : > { %p5708_p6 = por %p162_p3, %p48_p0  ;;  %s5624_s30 = smov [#allocation8]  }
   0xe   : > { %s8620_s27 = scalar_select %p5703_p4, 1, 0 }
   0xf   : > { %s8621_s28 = scalar_select %p5708_p6, 1, 0 }
  0x10   : > { %p5713_p8 = pnand %p4501_p5, %p195_p7  ;;  %s208_s7 = sshll.u32 %s5624_s30, 4  ;;  %s209_s7 = int_to_ptr.vmem [resolvable:$true] %s208_s7 }
  0x11   : > { %s5625_s8 = smov [#allocation11]   ;;  %s5626_s11 = smov [#allocation10]  }
  0x12   : > { %s8622_s29 = scalar_select %p5713_p8, 1, 0 }
  0x13   : > { %p5208_p10 = pneg %p5713_p8  ;;  %s229_s9 = sshll.u32 %s5625_s8, 4  ;;  %s5726_s9 = int_to_ptr.vmem [resolvable:$true] %s229_s9 }
  0x14   : > { %s5728_s12 = sshll.u32 %s5626_s11, 4  ;;  %s5374_s15 = scalar_lea.hbm %s8511_s1, 16  ;;  %s220_s12 = int_to_ptr.vmem [resolvable:$true] %s5728_s12 }
  0x15   : > { %p5722_p11 = pnand %p5208_p10, %p8517_p1  ;;  %p5375_p12 = scmp.ne.s32.totalorder %s8511_s1, %s5374_s15 }
  0x16   : > { %p5381_p5 = scmp.lt.u32.totalorder %s5374_s15, %s8511_s1 }
  0x17   : > { %p5738_p13 = pneg %p5722_p11 }
  0x19   : > { %p5377_p0 = pnand %p5738_p13, %p5375_p12 }
  0x1b   : > { %p5378_p3 = pneg %p5377_p0 }
  0x1d   : > { %p5383_p7 = pnand %p5381_p5, %p5378_p3 }
  0x1f   : > { %5386 = shalt.err (!%p5383_p7)
}
  0x20   : > { %s5387_s26 = scalar_lea.vmem %s209_s7, 16  ;;  %s5394_s30 = scalar_lea.vmem %s209_s7, 32 }
  0x21   : > { %p5388_p10 = scmp.ne.s32.totalorder %s209_s7, %s5387_s26  ;;  %p5395_p2 = scmp.lt.s32.totalorder %s209_s7, %s209_s7 }
  0x22   : > { %p5396_p6 = scmp.lt.s32.totalorder %s5394_s30, %s5387_s26 }
  0x23   : > { %p5390_p9 = pnand %p5388_p10, %p5738_p13 }
  0x24   : > { %p5397_p4 = por %p5396_p6, %p5395_p2 }
  0x25   : > { %p5391_p1 = pneg %p5390_p9 }
  0x27   : > { %p5398_p8 = pnand %p5397_p4, %p5391_p1 }
  0x29   : > { %5401 = shalt.err (!%p5398_p8)
}
  0x2a   : > { %5211 = dma.hbm_to_vmem [thread:$0]  (!%p5722_p11), %s8511_s1, 16, %s209_s7, [#allocation9]  }
  0x2b   : > { %s5402_s15 = scalar_lea.hbm %s8513_s3, 9216 }
  0x2c   : > { %p5403_p9 = scmp.ne.s32.totalorder %s8513_s3, %s5402_s15  ;;  %p5409_p1 = scmp.lt.u32.totalorder %s5402_s15, %s8513_s3 }
  0x2e   : > { %p5405_p12 = pnand %p5403_p9, %p5738_p13 }
  0x30   : > { %p5406_p2 = pneg %p5405_p12 }
  0x32   : > { %p5411_p4 = pnand %p5409_p1, %p5406_p2 }
  0x34   : > { %5414 = shalt.err (!%p5411_p4)
}
  0x35   : > { %s5415_s7 = scalar_lea.vmem %s5726_s9, 9216  ;;  %p5423_p3 = scmp.lt.s32.totalorder %s5726_s9, %s5726_s9 }
  0x36   : > { %p5416_p6 = scmp.ne.s32.totalorder %s5726_s9, %s5415_s7  ;;  %p5424_p5 = scmp.lt.s32.totalorder %s5415_s7, %s5415_s7 }
  0x38   : > { %p5418_p8 = pnand %p5416_p6, %p5738_p13  ;;  %p5425_p7 = por %p5424_p5, %p5423_p3 }
  0x3a   : > { %p5419_p0 = pneg %p5418_p8 }
  0x3c   : > { %p5426_p10 = pnand %p5425_p7, %p5419_p0 }
  0x3e   : > { %5429 = shalt.err (!%p5426_p10)
}
  0x3f   : > { %s8520_s26 = smov 64   ;;  %s8521_s30 = smov 4  }
  0x40   : > { %5217 = dma.hbm_to_vmem [thread:$0]  (!%p5722_p11), %s8513_s3, 9216, %s5726_s9, [#allocation12], %s8520_s26, %s8520_s26, %s8521_s30  }
  0x41   : > { %s5430_s15 = scalar_lea.hbm %s8512_s2, 16 }
  0x42   : > { %p5431_p9 = scmp.ne.s32.totalorder %s8512_s2, %s5430_s15  ;;  %p5437_p1 = scmp.lt.u32.totalorder %s5430_s15, %s8512_s2 }
  0x44   : > { %p5433_p12 = pnand %p5431_p9, %p5738_p13 }
  0x46   : > { %p5434_p2 = pneg %p5433_p12 }
  0x48   : > { %p5439_p4 = pnand %p5437_p1, %p5434_p2 }
  0x4a   : > { %5442 = shalt.err (!%p5439_p4)
}
  0x4b   : > { %s5443_s7 = scalar_lea.vmem %s220_s12, 16  ;;  %s5450_s9 = scalar_lea.vmem %s220_s12, 32 }
  0x4c   : > { %p5444_p6 = scmp.ne.s32.totalorder %s220_s12, %s5443_s7  ;;  %p5451_p3 = scmp.lt.s32.totalorder %s220_s12, %s220_s12 }
  0x4d   : > { %p5452_p5 = scmp.lt.s32.totalorder %s5450_s9, %s5443_s7 }
  0x4e   : > { %p5446_p8 = pnand %p5444_p6, %p5738_p13 }
  0x4f   : > { %p5453_p7 = por %p5452_p5, %p5451_p3 }
  0x50   : > { %p5447_p0 = pneg %p5446_p8 }
  0x52   : > { %p5454_p10 = pnand %p5453_p7, %p5447_p0 }
  0x54   : > { %5457 = shalt.err (!%p5454_p10)
}
  0x55   : > { %5214 = dma.hbm_to_vmem [thread:$0]  (!%p5722_p11), %s8512_s2, 16, %s220_s12, [#allocation9]  }
  0x56   : > { %s5629_s13 = smov [#allocation13]   ;;  %s5458_s17 = scalar_lea.hbm %s8514_s4, 16 }
  0x57   : > { %s243_s14 = sshll.u32 %s5629_s13, 4  ;;  %p5459_p9 = scmp.ne.s32.totalorder %s8514_s4, %s5458_s17  ;;  %s244_s14 = int_to_ptr.vmem [resolvable:$true] %s243_s14 }
  0x58   : > { %p5465_p1 = scmp.lt.u32.totalorder %s5458_s17, %s8514_s4 }
  0x59   : > { %p5461_p12 = pnand %p5459_p9, %p5738_p13 }
  0x5b   : > { %p5462_p2 = pneg %p5461_p12 }
  0x5d   : > { %p5467_p4 = pnand %p5465_p1, %p5462_p2 }
  0x5f   : > { %5470 = shalt.err (!%p5467_p4)
}
  0x60   : > { %s5471_s12 = scalar_lea.vmem %s244_s14, 16  ;;  %s5478_s8 = scalar_lea.vmem %s244_s14, 32 }
  0x61   : > { %p5472_p6 = scmp.ne.s32.totalorder %s244_s14, %s5471_s12  ;;  %p5479_p3 = scmp.lt.s32.totalorder %s244_s14, %s244_s14 }
  0x62   : > { %p5480_p5 = scmp.lt.s32.totalorder %s5478_s8, %s5471_s12 }
  0x63   : > { %p5474_p8 = pnand %p5472_p6, %p5738_p13 }
  0x64   : > { %p5481_p7 = por %p5480_p5, %p5479_p3 }
  0x65   : > { %p5475_p0 = pneg %p5474_p8 }
  0x67   : > { %p5482_p10 = pnand %p5481_p7, %p5475_p0 }
  0x69   : > { %5485 = shalt.err (!%p5482_p10)
}
  0x6a   : > { %5220 = dma.hbm_to_vmem [thread:$0]  (!%p5722_p11), %s8514_s4, 16, %s244_s14, [#allocation12]  }
  0x6b   : > { %s5818_s18 = sadd.s32 1, %s5622_s24   ;;  %s35_s15 = sadd.s32 1, %s5618_s23 }
  0x6c   : > { %s32_s10 = ssub.s32 %s5622_s24, %s5818_s18  ;;  %p42_p13 = scmp.ne.s32.totalorder %s5618_s23, %s5614_s22 }
  0x6d   : > { %p33_p9 = scmp.eq.s32.totalorder %s32_s10, 0  ;;  %p43_p12 = scmp.eq.s32.totalorder %s5622_s24, 0 }
  0x6e   : > { %p8625_p2 = scmp.eq.s32.totalorder %s5694_s25, 1  ;;  %p5236_p4 = scmp.lt.s32.totalorder %s5622_s24, 2 }
  0x6f   : > { %s5834_s17 = scalar_select %p33_p9, %s5618_s23, %s35_s15  }
  0x70   : > { %p5828_p1 = por %p8625_p2, %p42_p13  ;;  %p44_p6 = por %p43_p12, %p42_p13 }
  0x71   : > { %s254_s19 = sand.u32 1, %s5618_s23   ;;  %s5111_s14 = smul.u32 2304, %s5622_s24 }
  0x72   : > { %s5110_s20 = smul.u32 144, %s254_s19  ;;  %p5838_p11 = pnand %p5236_p4, %p44_p6 }
  0x73   : > { %s5845_s8 = scalar_lea.hbm %s8510_s0, %s5111_s14  ;;  %s5849_s15 = scalar_lea.sflag [#allocation6], %s254_s19 }
  0x74   : > { %s258_s11 = scalar_lea.vmem [#allocation5], %s5110_s20  ;;  %s5486_s10 = scalar_lea.hbm %s5845_s8, 2304 }
  0x75   : > { %s265_s13 = sshll.u32 %s258_s11, 4  ;;  %p5487_p8 = scmp.ne.s32.totalorder %s5845_s8, %s5486_s10  ;;  %s5847_s13 = int_to_ptr.vmem [resolvable:$true] %s265_s13 }
  0x76   : > { %p5488_p0 = pneg %p5838_p11  ;;  %s5491_s12 = scalar_lea.hbm %s8510_s0, 4608 }
  0x77   : > { %p5492_p7 = scmp.lt.u32.totalorder %s5845_s8, %s8510_s0  ;;  %p5493_p10 = scmp.lt.u32.totalorder %s5491_s12, %s5486_s10 }
  0x78   : > { %p5489_p3 = pnand %p5488_p0, %p5487_p8  ;;  %p5495_p9 = scmp.lt.u32.totalorder %s5486_s10, %s5845_s8 }
  0x79   : > { %p5494_p13 = por %p5493_p10, %p5492_p7 }
  0x7a   : > { %p5490_p5 = pneg %p5489_p3 }
  0x7b   : > { %p5496_p12 = por %p5495_p9, %p5494_p13 }
  0x7d   : > { %p5497_p2 = pnand %p5496_p12, %p5490_p5 }
  0x7f   : > { %5500 = shalt.err (!%p5497_p2)
}
  0x80   : > { %s5501_s19 = scalar_lea.vmem %s5847_s13, 2304  ;;  %s5630_s20 = smov [#allocation5]  }
  0x81   : > { %p5502_p4 = scmp.ne.s32.totalorder %s5847_s13, %s5501_s19  ;;  %s5506_s11 = sshll.u32 %s5630_s20, 4  ;;  %s5507_s11 = int_to_ptr.vmem [resolvable:$false] %s5506_s11 }
  0x82   : > { %s5508_s26 = scalar_lea.vmem %s5507_s11, 4608  ;;  %p5509_p3 = scmp.lt.s32.totalorder %s5847_s13, %s5507_s11 }
  0x83   : > { %p5504_p6 = pnand %p5502_p4, %p5488_p0  ;;  %p5510_p7 = scmp.lt.s32.totalorder %s5508_s26, %s5501_s19 }
  0x85   : > { %p5505_p8 = pneg %p5504_p6  ;;  %p5511_p10 = por %p5510_p7, %p5509_p3 }
  0x87   : > { %p5512_p13 = pnand %p5511_p10, %p5505_p8 }
  0x89   : > { %5515 = shalt.err (!%p5512_p13)
}
  0x8a   : > { %s8628_s30 = smov 4   ;;  %s8629_s10 = smov 64  }
  0x8b   : > { %5224 = dma.hbm_to_vmem [thread:$0]  (!%p5838_p11), %s5845_s8, 2304, %s5847_s13, %s5849_s15, %s8629_s10, %s8629_s10, %s8628_s30  }
  0x8c   : > { %p8630_p0 = scmp.ne.s32.totalorder %s8622_s29, 0 }
  0x8e   : > { %277 = sbr.rel (%p8630_p0) target bundleno = 931 (0x3a3), region = 40 }
  0x95   : > { %s5883_s14 = sand.u32 1, %s5614_s22   ;;  %p8631_p5 = scmp.ne.s32.totalorder %s8620_s27, 0 }
  0x96   : > { %s5112_s9 = smul.u32 144, %s5883_s14  ;;  %s280_s12 = scalar_lea.sflag [#allocation6], %s5883_s14 }
  0x98   : > { %s5889_s7 = scalar_lea.vmem [#allocation5], %s5112_s9 }
  0x99   : > { %5589 = dma.done.wait (%p8631_p5), %s280_s12, 2304  }
  0x9a   : > { %5591 = vsyncadd (%p8631_p5), %s280_s12, 4294964992  ;;  %p8632_p11 = scmp.eq.s32.totalorder %s5694_s25, 0 }
  0x9c   : > { %5593 = dma.done.wait (%p8632_p11), [#allocation9], 32   ;;  %p8633_p9 = pmov %p8632_p11 }
  0x9e   : > { %5595 = vsyncadd (%p8633_p9), [#allocation9], 4294967264  ;;  %p8634_p12 = pmov %p8633_p9 }
  0x9f   : > { %p8635_p2 = pmov %p8633_p9 }
  0xa0   : > { %5597 = dma.done.wait (%p8634_p12), [#allocation12], 9232  }
  0xa1   : > { %5599 = vsyncadd (%p8635_p2), [#allocation12], 4294958064  ;;  %v5631_v0 = vmov 0   ;;  %v5632_v1 = vmov 0.0   ;;  %v5284_v2 = vld [vmem:[#allocation11] sm:$0xff]   ;;  %v5286_v4 = vld [vmem:[#allocation11 + $0x8] sm:$0xff]  }
  0xa2   : > { %919 = vmatprep.subr.bf16.mxu0 %v5631_v0  ;;  %406 = vst [vmem:[#allocation2] sm:$0xff] %v5632_v1  ;;  %407 = vst [vmem:[#allocation2 + $0x8] sm:$0xff] %v5632_v1  ;;  %v5904_v3 = vld [vmem:[#allocation11 + $0x80] sm:$0xff]   ;;  %v5908_v5 = vld [vmem:[#allocation11 + $0x88] sm:$0xff]   ;;  %s7395_s27 = scalar_lea.vmem [#allocation14], %s5112_s9  ;;  %s5185_s29 = smul.u32 2304, %s5694_s25 }
  0xa3   : > { %408 = vst [vmem:[#allocation2 + $0x10] sm:$0x7] %v5632_v1  ;;  %409 = vst [vmem:[#allocation2 + $0x133] sm:$0xff] %v5632_v1  ;;  %920 = vmatpush1.bf16.msra.mxu0 %v5284_v2  ;;  %5094 = vmatprep.subr.bf16.mxu1 %v5904_v3  ;;  %v5912_v6 = vld [vmem:[#allocation11 + $0x90] sm:$0xff]   ;;  %v5917_v8 = vld [vmem:[#allocation11 + $0x98] sm:$0xff]   ;;  %s4344_s8 = sshll.u32 %s7395_s27, 4  ;;  %s8197_s8 = int_to_ptr.vmem [resolvable:$true] %s4344_s8 }
  0xa4   : > { %410 = vst [vmem:[#allocation2 + $0x13b] sm:$0xff] %v5632_v1  ;;  %411 = vst [vmem:[#allocation2 + $0x143] sm:$0xff] %v5632_v1  ;;  %921 = vmatprep.subr.bf16.mxu0 %v5631_v0  ;;  %5102 = vmatpush3.bf16.msra.mxu1 %v5904_v3  ;;  %v5288_v7 = vld [vmem:[#allocation11 + $0x10] sm:$0xff]   ;;  %v5290_v9 = vld [vmem:[#allocation11 + $0x18] sm:$0xff]   ;;  %s8189_s19 = scalar_lea.hbm %s8515_s5, %s5185_s29  ;;  %s4326_s20 = scalar_lea.sflag [#allocation7], %s5883_s14 }
  0xa5   : > { %5095 = vmatprep.subr.bf16.mxu1 %v5908_v5  ;;  %v5922_v10 = vld [vmem:[#allocation11 + $0xa0] sm:$0xff]   ;;  %v5929_v14 = vld [vmem:[#allocation11 + $0xa8] sm:$0xff]   ;;  %v5934_v23 = vld [vmem:[#allocation11 + $0xb0] sm:$0xff]   ;;  %s5516_s11 = scalar_lea.vmem %s8197_s8, 2304  ;;  %s5634_s26 = smov [#allocation14]  }
  0xa6   : > { %v5292_v11 = vld [vmem:[#allocation11 + $0x20] sm:$0xff]   ;;  %v5294_v20 = vld [vmem:[#allocation11 + $0x28] sm:$0xff]   ;;  %v5296_v25 = vld [vmem:[#allocation11 + $0x30] sm:$0xff]   ;;  %p5517_p4 = scmp.ne.s32.totalorder %s8197_s8, %s5516_s11  ;;  %s5520_s30 = sshll.u32 %s5634_s26, 4  ;;  %s5521_s30 = int_to_ptr.vmem [resolvable:$false] %s5520_s30 }
  0xa7   : > { %922 = vmatpush1.bf16.msra.mxu0 %v5286_v4  ;;  %v4665_v12 = vld [vmem:[%s5889_s7] sm:$0xff]   ;;  %v4826_v13 = vld [vmem:[%s5889_s7 + $0x8] sm:$0xff]   ;;  %v4827_v19 = vld [vmem:[%s5889_s7 + $0x10] sm:$0xff]   ;;  %s5522_s10 = scalar_lea.vmem %s5521_s30, 4608  ;;  %p5523_p3 = scmp.lt.s32.totalorder %s8197_s8, %s5521_s30 }
  0xa8   : > { %923 = vmatprep.subr.bf16.mxu0 %v5631_v0  ;;  %5103 = vmatpush3.bf16.msra.mxu1 %v5908_v5  ;;  %v4666_v15 = vunpack.c.l.bf16 %v4665_v12  ;;  %v4667_v16 = vunpack.c.h.bf16 %v4665_v12  ;;  %v4670_v17 = vunpack.c.l.bf16 %v4826_v13  ;;  %v4671_v18 = vunpack.c.h.bf16 %v4826_v13  ;;  %v4828_v24 = vld [vmem:[%s5889_s7 + $0x18] sm:$0xff]   ;;  %v4829_v28 = vld [vmem:[%s5889_s7 + $0x20] sm:$0xff]   ;;  %v4830_v33 = vld [vmem:[%s5889_s7 + $0x28] sm:$0xff]   ;;  %p5518_p6 = pnand %p5517_p4, %p5828_p1  ;;  %p5524_p7 = scmp.lt.s32.totalorder %s5522_s10, %s5516_s11 }
  0xa9   : > { %5096 = vmatprep.subr.bf16.mxu1 %v5912_v6  ;;  %v4674_v21 = vunpack.c.l.bf16 %v4827_v19  ;;  %v4675_v22 = vunpack.c.h.bf16 %v4827_v19  ;;  %v4678_v26 = vunpack.c.l.bf16 %v4828_v24  ;;  %v4679_v27 = vunpack.c.h.bf16 %v4828_v24  ;;  %v5298_v31 = vld [vmem:[#allocation11 + $0x38] sm:$0xff]   ;;  %v5300_v44 = vld [vmem:[#allocation11 + $0x40] sm:$0xff]   ;;  %v5302_v49 = vld [vmem:[#allocation11 + $0x48] sm:$0xff]  }
  0xaa   : > { %415 = vst [vmem:[#allocation2 + $0x1b] sm:$0xff] %v4667_v16  ;;  %416 = vst [vmem:[#allocation2 + $0x23] sm:$0xff] %v4670_v17  ;;  %v4682_v29 = vunpack.c.l.bf16 %v4829_v28  ;;  %v4683_v30 = vunpack.c.h.bf16 %v4829_v28  ;;  %v5942_v32 = vld [vmem:[#allocation11 + $0xb8] sm:$0xff]   ;;  %v4686_v36 = vunpack.c.l.bf16 %v4830_v33  ;;  %v4687_v37 = vunpack.c.h.bf16 %v4830_v33  ;;  %v5301_v48 = vld [vmem:[#allocation11 + $0xc0] sm:$0xff]   ;;  %p5519_p8 = pneg %p5518_p6  ;;  %p5525_p10 = por %p5524_p7, %p5523_p3 }
  0xab   : > { %924 = vmatpush1.bf16.msra.mxu0 %v5288_v7  ;;  %417 = vst [vmem:[#allocation2 + $0x2b] sm:$0xff] %v4671_v18  ;;  %414 = vst [vmem:[#allocation2 + $0x13] sm:$0xff] %v4666_v15  ;;  %v4831_v41 = vld [vmem:[%s5889_s7 + $0x30] sm:$0xff]   ;;  %v4832_v51 = vld [vmem:[%s5889_s7 + $0x38] sm:$0xff]  }
  0xac   : > { %925 = vmatprep.subr.bf16.mxu0 %v5631_v0  ;;  %5104 = vmatpush3.bf16.msra.mxu1 %v5912_v6  ;;  %418 = vst [vmem:[#allocation2 + $0x33] sm:$0xff] %v4674_v21  ;;  %419 = vst [vmem:[#allocation2 + $0x3b] sm:$0xff] %v4675_v22  ;;  %v4690_v42 = vunpack.c.l.bf16 %v4831_v41  ;;  %v4691_v43 = vunpack.c.h.bf16 %v4831_v41  ;;  %v5303_v52 = vld [vmem:[#allocation11 + $0xc8] sm:$0xff]   ;;  %v4694_v53 = vunpack.c.l.bf16 %v4832_v51  ;;  %v4695_v54 = vunpack.c.h.bf16 %v4832_v51  ;;  %v5304_v62 = vld [vmem:[#allocation11 + $0x50] sm:$0xff]   ;;  %p5526_p13 = pnand %p5525_p10, %p5519_p8 }
  0xad   : > { %5097 = vmatprep.subr.bf16.mxu1 %v5917_v8  ;;  %420 = vst [vmem:[#allocation2 + $0x43] sm:$0xff] %v4678_v26  ;;  %421 = vst [vmem:[#allocation2 + $0x4b] sm:$0xff] %v4679_v27  ;;  %v4833_v55 = vld [vmem:[%s5889_s7 + $0x40] sm:$0xff]   ;;  %v4834_v7 = vld [vmem:[%s5889_s7 + $0x48] sm:$0xff]  }
  0xae   : > { %422 = vst [vmem:[#allocation2 + $0x53] sm:$0xff] %v4682_v29  ;;  %423 = vst [vmem:[#allocation2 + $0x5b] sm:$0xff] %v4683_v30  ;;  %v4698_v58 = vunpack.c.l.bf16 %v4833_v55  ;;  %v4699_v59 = vunpack.c.h.bf16 %v4833_v55  ;;  %v5305_v63 = vld [vmem:[#allocation11 + $0xd0] sm:$0xff]   ;;  %v522_v2 = vld [vmem:[#allocation2 + $0x1] sm:$0xff]  ;;  %v4702_v12 = vunpack.c.l.bf16 %v4834_v7  ;;  %v4703_v13 = vunpack.c.h.bf16 %v4834_v7 }
  0xaf   : > { %926 = vmatpush1.bf16.msra.mxu0 %v5290_v9  ;;  %424 = vst [vmem:[#allocation2 + $0x63] sm:$0xff] %v4686_v36  ;;  %425 = vst [vmem:[#allocation2 + $0x6b] sm:$0xff] %v4687_v37  ;;  %v523_v4 = vld [vmem:[#allocation2 + $0x9] sm:$0xff]  ;;  %v5306_v18 = vld [vmem:[#allocation11 + $0x58] sm:$0xff]  }
  0xb0   : > { %927 = vmatprep.subr.bf16.mxu0 %v5631_v0  ;;  %5105 = vmatpush3.bf16.msra.mxu1 %v5917_v8  ;;  %426 = vst [vmem:[#allocation2 + $0x73] sm:$0xff] %v4690_v42  ;;  %427 = vst [vmem:[#allocation2 + $0x7b] sm:$0xff] %v4691_v43  ;;  %v4835_v15 = vld [vmem:[%s5889_s7 + $0x50] sm:$0xff]   ;;  %v4837_v26 = vld [vmem:[%s5889_s7 + $0x60] sm:$0xff]  }
  0xb1   : > { %5098 = vmatprep.subr.bf16.mxu1 %v5922_v10  ;;  %v598_v34 = vld [vmem:[#allocation2 + $0x22] sm:$0xff]  ;;  %428 = vst [vmem:[#allocation2 + $0x83] sm:$0xff] %v4694_v53  ;;  %429 = vst [vmem:[#allocation2 + $0x8b] sm:$0xff] %v4695_v54  ;;  %v4706_v16 = vunpack.c.l.bf16 %v4835_v15  ;;  %v4707_v17 = vunpack.c.h.bf16 %v4835_v15  ;;  %v5307_v19 = vld [vmem:[#allocation11 + $0xd8] sm:$0xff]   ;;  %v4714_v30 = vunpack.c.l.bf16 %v4837_v26 }
  0xb2   : > { %v599_v35 = vld [vmem:[#allocation2 + $0x2a] sm:$0xff]  ;;  %430 = vst [vmem:[#allocation2 + $0x93] sm:$0xff] %v4698_v58  ;;  %431 = vst [vmem:[#allocation2 + $0x9b] sm:$0xff] %v4699_v59  ;;  %v5308_v27 = vld [vmem:[#allocation11 + $0x60] sm:$0xff]  }
  0xb3   : > { %928 = vmatpush1.bf16.msra.mxu0 %v5292_v11  ;;  %v5946_v38 = vpack.c.bf16 %v599_v35, %v598_v34  ;;  %v600_v39 = vld [vmem:[#allocation2 + $0x32] sm:$0xff]  ;;  %v601_v40 = vld [vmem:[#allocation2 + $0x3a] sm:$0xff]  ;;  %v558_v11 = vpack.c.bf16 %v523_v4, %v522_v2  ;;  %432 = vst [vmem:[#allocation2 + $0xa3] sm:$0xff] %v4702_v12  ;;  %433 = vst [vmem:[#allocation2 + $0xab] sm:$0xff] %v4703_v13 }
  0xb4   : > { %929 = vmatprep.subr.bf16.mxu0 %v5631_v0  ;;  %5106 = vmatpush3.bf16.msra.mxu1 %v5922_v10  ;;  %v5953_v45 = vpack.c.bf16 %v601_v40, %v600_v39  ;;  %v602_v46 = vld [vmem:[#allocation2 + $0x42] sm:$0xff]  ;;  %v603_v47 = vld [vmem:[#allocation2 + $0x4a] sm:$0xff]  ;;  %434 = vst [vmem:[#allocation2 + $0xb3] sm:$0xff] %v4706_v16  ;;  %435 = vst [vmem:[#allocation2 + $0xbb] sm:$0xff] %v4707_v17 }
  0xb5   : > { %5099 = vmatprep.subr.bf16.mxu1 %v5929_v14  ;;  %4958 = vmatprep.mubr.bf16.mxu1 %v5946_v38  ;;  %v5956_v50 = vpack.c.bf16 %v603_v47, %v602_v46  ;;  %v604_v56 = vld [vmem:[#allocation2 + $0x52] sm:$0xff]  ;;  %v605_v57 = vld [vmem:[#allocation2 + $0x5a] sm:$0xff]  ;;  %438 = vst [vmem:[#allocation2 + $0xd3] sm:$0xff] %v4714_v30  ;;  %v5310_v37 = vld [vmem:[#allocation11 + $0x68] sm:$0xff]  }
  0xb6   : > { %v606_v60 = vld [vmem:[#allocation2 + $0x62] sm:$0xff]  ;;  %v607_v61 = vld [vmem:[#allocation2 + $0x6a] sm:$0xff]  ;;  %v5966_v1 = vpack.c.bf16 %v605_v57, %v604_v56  ;;  %951 = vmatprep.mubr.bf16.mxu0 %v558_v11  ;;  %v5315_v2 = vld [vmem:[#allocation11 + $0xf8] sm:$0xff]  }
  0xb7   : > { %930 = vmatpush1.bf16.msra.mxu0 %v5294_v20  ;;  %v5969_v9 = vpack.c.bf16 %v607_v61, %v606_v60  ;;  %v608_v20 = vld [vmem:[#allocation2 + $0x72] sm:$0xff]  ;;  %v609_v21 = vld [vmem:[#allocation2 + $0x7a] sm:$0xff]  ;;  %v5311_v39 = vld [vmem:[#allocation11 + $0xe8] sm:$0xff]  }
  0xb8   : > { %931 = vmatprep.subr.bf16.mxu0 %v5631_v0  ;;  %5107 = vmatpush3.bf16.msra.mxu1 %v5929_v14  ;;  %v610_v22 = vld [vmem:[#allocation2 + $0x82] sm:$0xff]  ;;  %v611_v24 = vld [vmem:[#allocation2 + $0x8a] sm:$0xff]  ;;  %v5980_v33 = vpack.c.bf16 %v609_v21, %v608_v20  ;;  %v5314_v61 = vld [vmem:[#allocation11 + $0x78] sm:$0xff]  }
  0xb9   : > { %5100 = vmatprep.subr.bf16.mxu1 %v5934_v23  ;;  %v5309_v34 = vld [vmem:[#allocation11 + $0xe0] sm:$0xff]   ;;  %v5982_v35 = vpack.c.bf16 %v611_v24, %v610_v22  ;;  %v612_v43 = vld [vmem:[#allocation2 + $0x92] sm:$0xff]  ;;  %v5317_v21 = vld [vmem:[#allocation11 + $0x108] sm:$0xff]  }
  0xba   : > { %v4838_v36 = vld [vmem:[%s5889_s7 + $0x68] sm:$0xff]   ;;  %v4839_v42 = vld [vmem:[%s5889_s7 + $0x70] sm:$0xff]   ;;  %v4841_v53 = vld [vmem:[%s5889_s7 + $0x80] sm:$0xff]  }
  0xbb   : > { %932 = vmatpush1.bf16.msra.mxu0 %v5296_v25  ;;  %v4836_v25 = vld [vmem:[%s5889_s7 + $0x58] sm:$0xff]   ;;  %v4718_v40 = vunpack.c.l.bf16 %v4838_v36  ;;  %v4719_v41 = vunpack.c.h.bf16 %v4838_v36  ;;  %v4723_v46 = vunpack.c.h.bf16 %v4839_v42  ;;  %v4730_v57 = vunpack.c.l.bf16 %v4841_v53  ;;  %v453_v20 = vld [vmem:[#allocation2 + $0x18] sm:$0xff] }
  0xbc   : > { %933 = vmatprep.subr.bf16.mxu0 %v5631_v0  ;;  %5108 = vmatpush3.bf16.msra.mxu1 %v5934_v23  ;;  %v4710_v28 = vunpack.c.l.bf16 %v4836_v25  ;;  %v4711_v29 = vunpack.c.h.bf16 %v4836_v25  ;;  %v613_v47 = vld [vmem:[#allocation2 + $0x9a] sm:$0xff]  ;;  %v5312_v51 = vld [vmem:[#allocation11 + $0x70] sm:$0xff]   ;;  %v4731_v60 = vunpack.c.h.bf16 %v4841_v53 }
  0xbd   : > { %5101 = vmatprep.subr.bf16.mxu1 %v5942_v32  ;;  %440 = vst [vmem:[#allocation2 + $0xe3] sm:$0xff] %v4718_v40  ;;  %441 = vst [vmem:[#allocation2 + $0xeb] sm:$0xff] %v4719_v41  ;;  %v5994_v54 = vpack.c.bf16 %v613_v47, %v612_v43  ;;  %v5313_v58 = vld [vmem:[#allocation11 + $0xf0] sm:$0xff]   ;;  %v617_v7 = vld [vmem:[#allocation2 + $0xba] sm:$0xff] }
  0xbe   : > { %436 = vst [vmem:[#allocation2 + $0xc3] sm:$0xff] %v4710_v28  ;;  %437 = vst [vmem:[#allocation2 + $0xcb] sm:$0xff] %v4711_v29  ;;  %v616_v4 = vld [vmem:[#allocation2 + $0xb2] sm:$0xff]  ;;  %v5316_v16 = vld [vmem:[#allocation11 + $0x100] sm:$0xff]  }
  0xbf   : > { %934 = vmatpush1.bf16.msra.mxu0 %v5298_v31  ;;  %v4715_v31 = vunpack.c.h.bf16 %v4837_v26  ;;  %443 = vst [vmem:[#allocation2 + $0xfb] sm:$0xff] %v4723_v46  ;;  %446 = vst [vmem:[#allocation2 + $0x113] sm:$0xff] %v4730_v57  ;;  %v6004_v15 = vpack.c.bf16 %v617_v7, %v616_v4  ;;  %v526_v22 = vld [vmem:[#allocation2 + $0x21] sm:$0xff]  ;;  %v527_v24 = vld [vmem:[#allocation2 + $0x29] sm:$0xff] }
  0xc0   : > { %935 = vmatprep.subr.bf16.mxu0 %v5631_v0  ;;  %5109 = vmatpush3.bf16.msra.mxu1 %v5942_v32  ;;  %447 = vst [vmem:[#allocation2 + $0x11b] sm:$0xff] %v4731_v60  ;;  %v5319_v36 = vld [vmem:[#allocation11 + $0x118] sm:$0xff]   ;;  %v459_v4 = vld [vmem:[#allocation2 + $0x48] sm:$0xff] }
  0xc1   : > { %1772 = vmatprep.subr.bf16.mxu1 %v5631_v0  ;;  %439 = vst [vmem:[#allocation2 + $0xdb] sm:$0xff] %v4715_v31  ;;  %v5318_v31 = vld [vmem:[#allocation11 + $0x110] sm:$0xff]   ;;  %v529_v40 = vld [vmem:[#allocation2 + $0x39] sm:$0xff] }
  0xc2   : > { %v457_v53 = vld [vmem:[#allocation2 + $0x38] sm:$0xff] }
  0xc3   : > { %936 = vmatpush1.bf16.msra.mxu0 %v5300_v44  ;;  %4959 = vmatmul.mubr.bf16.vlgmr.msra.gmra.mrb[0].mxu1 %v5953_v45  ;;  %v4722_v44 = vunpack.c.l.bf16 %v4839_v42  ;;  %v532_v7 = vld [vmem:[#allocation2 + $0x51] sm:$0xff] }
  0xc4   : > { %937 = vmatprep.subr.bf16.mxu0 %v5631_v0  ;;  %1773 = vmatpush1.bf16.msra.mxu1 %v5301_v48  ;;  %v614_v48 = vld [vmem:[#allocation2 + $0xa2] sm:$0xff]  ;;  %v623_v29 = vld [vmem:[#allocation2 + $0xea] sm:$0xff] }
  0xc5   : > { %4962 = vmatprep.mubr.bf16.mxu1 %v5956_v50  ;;  %1774 = vmatprep.subr.bf16.mxu1 %v5631_v0  ;;  %442 = vst [vmem:[#allocation2 + $0xf3] sm:$0xff] %v4722_v44  ;;  %v618_v11 = vld [vmem:[#allocation2 + $0xc2] sm:$0xff]  ;;  %v619_v12 = vld [vmem:[#allocation2 + $0xca] sm:$0xff]  ;;  %v620_v25 = vld [vmem:[#allocation2 + $0xd2] sm:$0xff] }
  0xc6   : > { %v6006_v17 = vpack.c.bf16 %v619_v12, %v618_v11  ;;  %v533_v11 = vld [vmem:[#allocation2 + $0x59] sm:$0xff] }
  0xc7   : > { %938 = vmatpush1.bf16.msra.mxu0 %v5302_v49  ;;  %v615_v49 = vld [vmem:[#allocation2 + $0xaa] sm:$0xff]  ;;  %v629_v57 = vld [vmem:[#allocation2 + $0x11a] sm:$0xff] }
  0xc8   : > { %939 = vmatprep.subr.bf16.mxu0 %v5631_v0  ;;  %1775 = vmatpush1.bf16.msra.mxu1 %v5303_v52  ;;  %v4840_v52 = vld [vmem:[%s5889_s7 + $0x78] sm:$0xff]   ;;  %v5996_v59 = vpack.c.bf16 %v615_v49, %v614_v48 }
  0xc9   : > { %1776 = vmatprep.subr.bf16.mxu1 %v5631_v0  ;;  %v4726_v55 = vunpack.c.l.bf16 %v4840_v52  ;;  %v4727_v56 = vunpack.c.h.bf16 %v4840_v52  ;;  %v621_v26 = vld [vmem:[#allocation2 + $0xda] sm:$0xff]  ;;  %v456_v52 = vld [vmem:[#allocation2 + $0x30] sm:$0xff] }
  0xca   : > { %v6015_v30 = vpack.c.bf16 %v621_v26, %v620_v25  ;;  %v5320_v48 = vld [vmem:[#allocation11 + $0x120] sm:$0xff]   ;;  %v535_v25 = vld [vmem:[#allocation2 + $0x69] sm:$0xff] }
  0xcb   : > { %940 = vmatpush1.bf16.msra.mxu0 %v5304_v62  ;;  %4963 = vmatmul.mubr.bf16.gmra.mrb[4].mxu1 %v5966_v1  ;;  %444 = vst [vmem:[#allocation2 + $0x103] sm:$0xff] %v4726_v55  ;;  %445 = vst [vmem:[#allocation2 + $0x10b] sm:$0xff] %v4727_v56  ;;  %v524_v62 = vld [vmem:[#allocation2 + $0x11] sm:$0xff]  ;;  %v531_v55 = vld [vmem:[#allocation2 + $0x49] sm:$0xff] }
  0xcc   : > { %941 = vmatprep.subr.bf16.mxu0 %v5631_v0  ;;  %1777 = vmatpush1.bf16.msra.mxu1 %v5305_v63  ;;  %v525_v63 = vld [vmem:[#allocation2 + $0x19] sm:$0xff] }
  0xcd   : > { %4966 = vmatprep.mubr.bf16.mxu1 %v5969_v9  ;;  %1778 = vmatprep.subr.bf16.mxu1 %v5631_v0  ;;  %v559_v13 = vpack.c.bf16 %v525_v63, %v524_v62  ;;  %v624_v41 = vld [vmem:[#allocation2 + $0xf2] sm:$0xff]  ;;  %v625_v42 = vld [vmem:[#allocation2 + $0xfa] sm:$0xff] }
  0xce   : > { %v5324_v62 = vld [vmem:[%s5889_s7] sm:$0xff] }
  0xcf   : > { %942 = vmatpush1.bf16.msra.mxu0 %v5306_v18  ;;  %v5633_v18 = vmov 0.0|0.0   ;;  %v5323_v63 = vld [vmem:[#allocation11 + $0x138] sm:$0xff]  }
  0xd0   : > { %943 = vmatprep.subr.bf16.mxu0 %v5631_v0  ;;  %1779 = vmatpush1.bf16.msra.mxu1 %v5307_v19  ;;  %v452_v19 = vld [vmem:[#allocation2 + $0x10] sm:$0xff]  ;;  %v1310_v12 = vld [vmem:[#allocation2 + $0x1a] sm:$0xff] }
  0xd1   : > { %1780 = vmatprep.subr.bf16.mxu1 %v5631_v0  ;;  %v487_v28 = vpack.c.bf16 %v453_v20, %v452_v19  ;;  %v5326_v19 = vld [vmem:[%s5889_s7 + $0x8] sm:$0xff] }
  0xd2   : > { %v626_v44 = vld [vmem:[#allocation2 + $0x102] sm:$0xff]  ;;  %v627_v46 = vld [vmem:[#allocation2 + $0x10a] sm:$0xff]  ;;  %v628_v56 = vld [vmem:[#allocation2 + $0x112] sm:$0xff] }
  0xd3   : > { %944 = vmatpush1.bf16.msra.mxu0 %v5308_v27  ;;  %4967 = vmatmul.mubr.bf16.gmra.mrb[8].mxu1 %v5980_v33  ;;  %v622_v27 = vld [vmem:[#allocation2 + $0xe2] sm:$0xff]  ;;  %v6030_v49 = vpack.c.bf16 %v627_v46, %v626_v44  ;;  %v460_v20 = vld [vmem:[#allocation2 + $0x50] sm:$0xff]  ;;  %v465_v46 = vld [vmem:[#allocation2 + $0x78] sm:$0xff] }
  0xd4   : > { %945 = vmatprep.subr.bf16.mxu0 %v5631_v0  ;;  %1781 = vmatpush1.bf16.msra.mxu1 %v5309_v34  ;;  %v6018_v34 = vpack.c.bf16 %v623_v29, %v622_v27  ;;  %v5329_v29 = vld [vmem:[#allocation11 + $0x190] sm:$0xff]  }
  0xd5   : > { %4970 = vmatprep.mubr.bf16.mxu1 %v5982_v35  ;;  %1782 = vmatprep.subr.bf16.mxu1 %v5631_v0  ;;  %v464_v44 = vld [vmem:[#allocation2 + $0x70] sm:$0xff] }
  0xd7   : > { %946 = vmatpush1.bf16.msra.mxu0 %v5310_v37  ;;  %v454_v37 = vld [vmem:[#allocation2 + $0x20] sm:$0xff] }
  0xd8   : > { %947 = vmatprep.subr.bf16.mxu0 %v5631_v0  ;;  %1783 = vmatpush1.bf16.msra.mxu1 %v5311_v39  ;;  %v455_v39 = vld [vmem:[#allocation2 + $0x28] sm:$0xff] }
  0xd9   : > { %1784 = vmatprep.subr.bf16.mxu1 %v5631_v0  ;;  %v488_v43 = vpack.c.bf16 %v455_v39, %v454_v37  ;;  %v537_v37 = vld [vmem:[#allocation2 + $0x79] sm:$0xff] }
  0xda   : > { %v5332_v39 = vld [vmem:[#allocation11 + $0x198] sm:$0xff]  }
  0xdb   : > { %948 = vmatpush1.bf16.msra.mxu0 %v5312_v51  ;;  %4971 = vmatmul.mubr.bf16.gmra.mrb[12].mxu1 %v5994_v54  ;;  %v5321_v51 = vld [vmem:[#allocation11 + $0x128] sm:$0xff]  }
  0xdc   : > { %949 = vmatprep.subr.bf16.mxu0 %v5631_v0  ;;  %1785 = vmatpush1.bf16.msra.mxu1 %v5313_v58  ;;  %v489_v58 = vpack.c.bf16 %v457_v53, %v456_v52  ;;  %v5336_v52 = vld [vmem:[#allocation11 + $0x1a8] sm:$0xff]   ;;  %v493_v53 = vpack.c.bf16 %v465_v46, %v464_v44  ;;  %v5365_v44 = vld [vmem:[#allocation11 + $0x1f8] sm:$0xff]  }
  0xdd   : > { %4974 = vmatprep.mubr.bf16.mxu1 %v5996_v59  ;;  %1786 = vmatprep.subr.bf16.mxu1 %v5631_v0 }
  0xdf   : > { %950 = vmatpush1.bf16.msra.mxu0 %v5314_v61  ;;  %v6039_v61 = vpack.c.bf16 %v629_v57, %v628_v56  ;;  %v5338_v56 = vld [vmem:[#allocation11 + $0x1b0] sm:$0xff]   ;;  %v466_v57 = vld [vmem:[#allocation2 + $0x80] sm:$0xff] }
  0xe0   : > { %4938 = vmatprep.subr.bf16.mxu0 %v5904_v3  ;;  %1787 = vmatpush1.bf16.msra.mxu1 %v5315_v2  ;;  %v458_v2 = vld [vmem:[#allocation2 + $0x40] sm:$0xff] }
  0xe1   : > { %1788 = vmatprep.subr.bf16.mxu1 %v5631_v0 }
  0xe2   : > { %952 = vmatmul.mubr.bf16.vlgmr.msra.gmra.mrb[0].mxu0 %v5633_v18 }
  0xe3   : > { %4939 = vmatpush3.bf16.msra.mxu0 %v5904_v3  ;;  %959 = vmatprep.mubr.bf16.mxu0 %v559_v13  ;;  %v560_v3 = vpack.c.bf16 %v527_v24, %v526_v22  ;;  %v490_v13 = vpack.c.bf16 %v459_v4, %v458_v2  ;;  %v534_v22 = vld [vmem:[#allocation2 + $0x61] sm:$0xff] }
  0xe4   : > { %4975 = vmatmul.mubr.bf16.gmra.mrb[16].mxu1 %v6004_v15  ;;  %4940 = vmatprep.subr.bf16.mxu0 %v5908_v5  ;;  %v6053_v24 = vld [vmem:[#allocation11 + $0x140] sm:$0xff]   ;;  %v564_v27 = vpack.c.bf16 %v535_v25, %v534_v22  ;;  %v5349_v25 = vld [vmem:[#allocation11 + $0x1d8] sm:$0xff]  }
  0xe5   : > { %1789 = vmatpush1.bf16.msra.mxu1 %v5316_v16  ;;  %4978 = vmatprep.mubr.bf16.mxu1 %v6006_v17  ;;  %v563_v16 = vpack.c.bf16 %v533_v11, %v532_v7  ;;  %v5333_v2 = vld [vmem:[%s5889_s7 + $0x28] sm:$0xff]  ;;  %v469_v7 = vld [vmem:[#allocation2 + $0x98] sm:$0xff] }
  0xe6   : > { %1790 = vmatprep.subr.bf16.mxu1 %v5631_v0  ;;  %v5342_v4 = vld [vmem:[#allocation11 + $0x1c0] sm:$0xff]   ;;  %v543_v11 = vld [vmem:[#allocation2 + $0xa9] sm:$0xff] }
  0xe7   : > { %4941 = vmatpush3.bf16.msra.mxu0 %v5908_v5  ;;  %v528_v5 = vld [vmem:[#allocation2 + $0x31] sm:$0xff]  ;;  %v545_v22 = vld [vmem:[#allocation2 + $0xb9] sm:$0xff] }
  0xe8   : > { %4942 = vmatprep.subr.bf16.mxu0 %v5912_v6  ;;  %v561_v47 = vpack.c.bf16 %v529_v40, %v528_v5  ;;  %v4842_v5 = vld [vmem:[%s5889_s7 + $0x88] sm:$0xff]  }
  0xe9   : > { %1791 = vmatpush1.bf16.msra.mxu1 %v5317_v21  ;;  %v461_v21 = vld [vmem:[#allocation2 + $0x58] sm:$0xff] }
  0xea   : > { %960 = vmatmul.mubr.bf16.gmra.mrb[4].mxu0 %v487_v28  ;;  %1792 = vmatprep.subr.bf16.mxu1 %v5631_v0  ;;  %v491_v26 = vpack.c.bf16 %v461_v21, %v460_v20  ;;  %v5328_v28 = vld [vmem:[%s5889_s7 + $0x10] sm:$0xff]  ;;  %v470_v20 = vld [vmem:[#allocation2 + $0xa0] sm:$0xff] }
  0xeb   : > { %967 = vmatprep.mubr.bf16.mxu0 %v560_v3  ;;  %4943 = vmatpush3.bf16.msra.mxu0 %v5912_v6  ;;  %v6027_v6 = vpack.c.bf16 %v625_v42, %v624_v41  ;;  %v462_v3 = vld [vmem:[#allocation2 + $0x60] sm:$0xff]  ;;  %v4734_v41 = vunpack.c.l.bf16 %v4842_v5  ;;  %v4735_v42 = vunpack.c.h.bf16 %v4842_v5  ;;  %v471_v21 = vld [vmem:[#allocation2 + $0xa8] sm:$0xff] }
  0xec   : > { %4979 = vmatmul.mubr.bf16.gmra.mrb[20].mxu1 %v6015_v30  ;;  %4944 = vmatprep.subr.bf16.mxu0 %v5917_v8  ;;  %v5339_v5 = vld [vmem:[%s5889_s7 + $0x40] sm:$0xff] }
  0xed   : > { %1793 = vmatpush1.bf16.msra.mxu1 %v5318_v31  ;;  %4982 = vmatprep.mubr.bf16.mxu1 %v6018_v34  ;;  %v463_v31 = vld [vmem:[#allocation2 + $0x68] sm:$0xff]  ;;  %448 = vst [vmem:[#allocation2 + $0x123] sm:$0xff] %v4734_v41  ;;  %449 = vst [vmem:[#allocation2 + $0x12b] sm:$0xff] %v4735_v42  ;;  %v474_v41 = vld [vmem:[#allocation2 + $0xc0] sm:$0xff] }
  0xee   : > { %1794 = vmatprep.subr.bf16.mxu1 %v5631_v0  ;;  %v492_v40 = vpack.c.bf16 %v463_v31, %v462_v3  ;;  %v473_v3 = vld [vmem:[#allocation2 + $0xb8] sm:$0xff]  ;;  %v547_v31 = vld [vmem:[#allocation2 + $0xc9] sm:$0xff] }
  0xef   : > { %4945 = vmatpush3.bf16.msra.mxu0 %v5917_v8  ;;  %v530_v8 = vld [vmem:[#allocation2 + $0x41] sm:$0xff] }
  0xf0   : > { %4946 = vmatprep.subr.bf16.mxu0 %v5922_v10  ;;  %v562_v60 = vpack.c.bf16 %v531_v55, %v530_v8  ;;  %v5331_v55 = vld [vmem:[%s5889_s7 + $0x20] sm:$0xff] }
  0xf1   : > { %1795 = vmatpush1.bf16.msra.mxu1 %v5319_v36  ;;  %v536_v36 = vld [vmem:[#allocation2 + $0x71] sm:$0xff]  ;;  %v475_v42 = vld [vmem:[#allocation2 + $0xc8] sm:$0xff] }
  0xf2   : > { %968 = vmatmul.mubr.bf16.gmra.mrb[8].mxu0 %v488_v43  ;;  %1796 = vmatprep.subr.bf16.mxu1 %v5631_v0  ;;  %v565_v43 = vpack.c.bf16 %v537_v37, %v536_v36  ;;  %v5356_v36 = vld [vmem:[#allocation11 + $0x1e8] sm:$0xff]   ;;  %v498_v46 = vpack.c.bf16 %v475_v42, %v474_v41  ;;  %v1456_v41 = vld [vmem:[#allocation2 + $0x2c] sm:$0xff]  ;;  %v5366_v42 = vld [vmem:[#allocation11 + $0x200] sm:$0xff]  }
  0xf3   : > { %975 = vmatprep.mubr.bf16.mxu0 %v561_v47  ;;  %4947 = vmatpush3.bf16.msra.mxu0 %v5922_v10  ;;  %v5322_v10 = vld [vmem:[#allocation11 + $0x130] sm:$0xff]  }
  0xf4   : > { %4983 = vmatmul.mubr.bf16.gmra.mrb[24].mxu1 %v6027_v6  ;;  %4948 = vmatprep.subr.bf16.mxu0 %v5929_v14  ;;  %v5330_v47 = vld [vmem:[%s5889_s7 + $0x18] sm:$0xff] }
  0xf5   : > { %1797 = vmatpush1.bf16.msra.mxu1 %v5320_v48  ;;  %4986 = vmatprep.mubr.bf16.mxu1 %v6030_v49  ;;  %v5334_v48 = vld [vmem:[#allocation11 + $0x1a0] sm:$0xff]  }
  0xf6   : > { %1798 = vmatprep.subr.bf16.mxu1 %v5631_v0 }
  0xf7   : > { %4949 = vmatpush3.bf16.msra.mxu0 %v5929_v14  ;;  %v1309_v14 = vld [vmem:[#allocation2 + $0x12] sm:$0xff] }
  0xf8   : > { %4950 = vmatprep.subr.bf16.mxu0 %v5934_v23  ;;  %v6049_v18 = vpack.c.bf16 %v1310_v12, %v1309_v14  ;;  %v468_v14 = vld [vmem:[#allocation2 + $0x90] sm:$0xff]  ;;  %v5344_v12 = vld [vmem:[#allocation11 + $0x1c8] sm:$0xff]  }
  0xf9   : > { %1799 = vmatpush1.bf16.msra.mxu1 %v5321_v51  ;;  %v539_v51 = vld [vmem:[#allocation2 + $0x89] sm:$0xff] }
  0xfa   : > { %976 = vmatmul.mubr.bf16.gmra.mrb[12].mxu0 %v489_v58  ;;  %1800 = vmatprep.subr.bf16.mxu1 %v5631_v0  ;;  %v467_v58 = vld [vmem:[#allocation2 + $0x88] sm:$0xff] }
  0xfb   : > { %983 = vmatprep.mubr.bf16.mxu0 %v562_v60  ;;  %4951 = vmatpush3.bf16.msra.mxu0 %v5934_v23  ;;  %v5325_v23 = vld [vmem:[#allocation11 + $0x180] sm:$0xff]   ;;  %v540_v60 = vld [vmem:[#allocation2 + $0x91] sm:$0xff] }
  0xfc   : > { %4987 = vmatmul.mubr.bf16.gmra.mrb[28].mxu1 %v6039_v61  ;;  %4952 = vmatprep.subr.bf16.mxu0 %v5942_v32 }
  0xfd   : > { %1801 = vmatpush1.bf16.msra.mxu1 %v5322_v10  ;;  %1804 = vmatprep.mubr.bf16.mxu1 %v5324_v62  ;;  %v5340_v10 = vld [vmem:[#allocation11 + $0x1b8] sm:$0xff]   ;;  %v494_v62 = vpack.c.bf16 %v467_v58, %v466_v57 }
  0xfe   : > { %1802 = vmatprep.subr.bf16.mxu1 %v5631_v0  ;;  %v552_v57 = vld [vmem:[#allocation2 + $0xf1] sm:$0xff]  ;;  %v553_v58 = vld [vmem:[#allocation2 + $0xf9] sm:$0xff] }
  0xff   : > { %4953 = vmatpush3.bf16.msra.mxu0 %v5942_v32  ;;  %v5327_v32 = vld [vmem:[#allocation11 + $0x188] sm:$0xff]  }
 0x100   : > { %4990 = vmatprep.subr.bf16.mxu0 %v6053_v24 }
 0x101   : > { %1803 = vmatpush1.bf16.msra.mxu1 %v5323_v63 }
 0x102   : > { %984 = vmatmul.mubr.bf16.gmra.mrb[16].mxu0 %v490_v13  ;;  %2697 = vmatprep.subr.bf16.mxu1 %v5631_v0  ;;  %v495_v13 = vpack.c.bf16 %v469_v7, %v468_v14  ;;  %v482_v7 = vld [vmem:[#allocation2 + $0x100] sm:$0xff] }
 0x103   : > { %991 = vmatprep.mubr.bf16.mxu0 %v563_v16 }
 0x104   : > { %1805 = vmatmul.mubr.bf16.vlgmr.msra.gmra.mrb[32].mxu1 %v6049_v18 }
 0x105   : > { %2698 = vmatpush1.bf16.msra.mxu1 %v5325_v23  ;;  %1812 = vmatprep.mubr.bf16.mxu1 %v5326_v19  ;;  %v5335_v23 = vld [vmem:[%s5889_s7 + $0x30] sm:$0xff] }
 0x106   : > { %2699 = vmatprep.subr.bf16.mxu1 %v5631_v0  ;;  %v5346_v19 = vld [vmem:[#allocation11 + $0x1d0] sm:$0xff]  }
 0x109   : > { %2700 = vmatpush1.bf16.msra.mxu1 %v5327_v32  ;;  %v496_v32 = vpack.c.bf16 %v471_v21, %v470_v20  ;;  %v594_v20 = vld [vmem:[#allocation2 + $0x2] sm:$0xff]  ;;  %v595_v21 = vld [vmem:[#allocation2 + $0xa] sm:$0xff] }
 0x10a   : > { %992 = vmatmul.mubr.bf16.gmra.mrb[20].mxu0 %v491_v26  ;;  %2701 = vmatprep.subr.bf16.mxu1 %v5631_v0 }
 0x10b   : > { %999 = vmatprep.mubr.bf16.mxu0 %v564_v27  ;;  %v5337_v27 = vld [vmem:[%s5889_s7 + $0x38] sm:$0xff] }
 0x10c   : > { %1813 = vmatmul.mubr.bf16.gmra.mrb[36].mxu1 %v5946_v38  ;;  %v538_v38 = vld [vmem:[#allocation2 + $0x81] sm:$0xff] }
 0x10d   : > { %1820 = vmatprep.mubr.bf16.mxu1 %v5328_v28  ;;  %2702 = vmatpush1.bf16.msra.mxu1 %v5329_v29  ;;  %v566_v8 = vpack.c.bf16 %v539_v51, %v538_v38  ;;  %v5352_v28 = vld [vmem:[#allocation11 + $0x1e0] sm:$0xff]   ;;  %v472_v29 = vld [vmem:[#allocation2 + $0xb0] sm:$0xff] }
 0x10e   : > { %2703 = vmatprep.subr.bf16.mxu1 %v5631_v0  ;;  %v497_v37 = vpack.c.bf16 %v473_v3, %v472_v29  ;;  %v476_v38 = vld [vmem:[#allocation2 + $0xd0] sm:$0xff]  ;;  %v477_v51 = vld [vmem:[#allocation2 + $0xd8] sm:$0xff] }
 0x10f   : > { %v5359_v29 = vld [vmem:[%s5889_s7 + $0x80] sm:$0xff] }
 0x110   : > { %v5358_v3 = vld [vmem:[#allocation11 + $0x160] sm:$0xff]  }
 0x111   : > { %2704 = vmatpush1.bf16.msra.mxu1 %v5332_v39 }
 0x112   : > { %1000 = vmatmul.mubr.bf16.gmra.mrb[24].mxu0 %v492_v40  ;;  %2705 = vmatprep.subr.bf16.mxu1 %v5631_v0  ;;  %v5361_v40 = vld [vmem:[#allocation11 + $0x1f0] sm:$0xff]  }
 0x113   : > { %1007 = vmatprep.mubr.bf16.mxu0 %v565_v43  ;;  %v549_v43 = vld [vmem:[#allocation2 + $0xd9] sm:$0xff] }
 0x114   : > { %1821 = vmatmul.mubr.bf16.gmra.mrb[40].mxu1 %v5953_v45  ;;  %v541_v45 = vld [vmem:[#allocation2 + $0x99] sm:$0xff] }
 0x115   : > { %1828 = vmatprep.mubr.bf16.mxu1 %v5330_v47  ;;  %2706 = vmatpush1.bf16.msra.mxu1 %v5334_v48  ;;  %v567_v63 = vpack.c.bf16 %v541_v45, %v540_v60  ;;  %v5341_v48 = vld [vmem:[%s5889_s7 + $0x48] sm:$0xff]  ;;  %v573_v45 = vpack.c.bf16 %v553_v58, %v552_v57 }
 0x116   : > { %2707 = vmatprep.subr.bf16.mxu1 %v5631_v0 }
 0x119   : > { %2708 = vmatpush1.bf16.msra.mxu1 %v5336_v52  ;;  %v550_v52 = vld [vmem:[#allocation2 + $0xe1] sm:$0xff] }
 0x11a   : > { %1008 = vmatmul.mubr.bf16.gmra.mrb[28].mxu0 %v493_v53  ;;  %2709 = vmatprep.subr.bf16.mxu1 %v5631_v0  ;;  %v499_v53 = vpack.c.bf16 %v477_v51, %v476_v38  ;;  %v1459_v51 = vld [vmem:[#allocation2 + $0x44] sm:$0xff] }
 0x11b   : > { %1015 = vmatprep.mubr.bf16.mxu0 %v566_v8 }
 0x11c   : > { %1829 = vmatmul.mubr.bf16.gmra.mrb[44].mxu1 %v5956_v50  ;;  %v542_v50 = vld [vmem:[#allocation2 + $0xa1] sm:$0xff] }
 0x11d   : > { %1836 = vmatprep.mubr.bf16.mxu1 %v5331_v55  ;;  %2710 = vmatpush1.bf16.msra.mxu1 %v5338_v56  ;;  %v568_v16 = vpack.c.bf16 %v543_v11, %v542_v50  ;;  %v5343_v55 = vld [vmem:[%s5889_s7 + $0x50] sm:$0xff]  ;;  %v478_v56 = vld [vmem:[#allocation2 + $0xe0] sm:$0xff] }
 0x11e   : > { %2711 = vmatprep.subr.bf16.mxu1 %v5631_v0  ;;  %v483_v50 = vld [vmem:[#allocation2 + $0x108] sm:$0xff]  ;;  %v556_v11 = vld [vmem:[#allocation2 + $0x111] sm:$0xff] }
 0x121   : > { %2712 = vmatpush1.bf16.msra.mxu1 %v5340_v10  ;;  %v480_v10 = vld [vmem:[#allocation2 + $0xf0] sm:$0xff] }
 0x122   : > { %1016 = vmatmul.mubr.bf16.gmra.mrb[32].mxu0 %v494_v62  ;;  %2713 = vmatprep.subr.bf16.mxu1 %v5631_v0  ;;  %v481_v62 = vld [vmem:[#allocation2 + $0xf8] sm:$0xff] }
 0x123   : > { %1023 = vmatprep.mubr.bf16.mxu0 %v567_v63  ;;  %v554_v63 = vld [vmem:[#allocation2 + $0x101] sm:$0xff] }
 0x124   : > { %1837 = vmatmul.mubr.bf16.gmra.mrb[48].mxu1 %v5966_v1  ;;  %v544_v1 = vld [vmem:[#allocation2 + $0xb1] sm:$0xff] }
 0x125   : > { %1844 = vmatprep.mubr.bf16.mxu1 %v5333_v2  ;;  %2714 = vmatpush1.bf16.msra.mxu1 %v5342_v4  ;;  %v569_v26 = vpack.c.bf16 %v545_v22, %v544_v1  ;;  %v555_v2 = vld [vmem:[#allocation2 + $0x109] sm:$0xff]  ;;  %v501_v4 = vpack.c.bf16 %v481_v62, %v480_v10  ;;  %v630_v22 = vpack.c.bf16 %v595_v21, %v594_v20 }
 0x126   : > { %2715 = vmatprep.subr.bf16.mxu1 %v5631_v0  ;;  %v574_v14 = vpack.c.bf16 %v555_v2, %v554_v63  ;;  %v1463_v63 = vld [vmem:[#allocation2 + $0x64] sm:$0xff]  ;;  %v1464_v2 = vld [vmem:[#allocation2 + $0x6c] sm:$0xff] }
 0x127   : > { %v1467_v21 = vld [vmem:[#allocation2 + $0x84] sm:$0xff] }
 0x129   : > { %2716 = vmatpush1.bf16.msra.mxu1 %v5344_v12  ;;  %v557_v12 = vld [vmem:[#allocation2 + $0x119] sm:$0xff] }
 0x12a   : > { %1024 = vmatmul.mubr.bf16.gmra.mrb[36].mxu0 %v495_v13  ;;  %2717 = vmatprep.subr.bf16.mxu1 %v5631_v0  ;;  %v502_v13 = vpack.c.bf16 %v483_v50, %v482_v7  ;;  %v1494_v7 = vpack.c.bf16 %v1464_v2, %v1463_v63  ;;  %v2312_v50 = vld [vmem:[#allocation2 + $0x55] sm:$0xff]  ;;  %v1479_v63 = vld [vmem:[#allocation2 + $0xe4] sm:$0xff]  ;;  %v1480_v2 = vld [vmem:[#allocation2 + $0xec] sm:$0xff] }
 0x12b   : > { %1031 = vmatprep.mubr.bf16.mxu0 %v568_v16  ;;  %v575_v16 = vpack.c.bf16 %v557_v12, %v556_v11  ;;  %v2313_v11 = vld [vmem:[#allocation2 + $0x5d] sm:$0xff] }
 0x12c   : > { %1845 = vmatmul.mubr.bf16.gmra.mrb[52].mxu1 %v5969_v9  ;;  %v546_v9 = vld [vmem:[#allocation2 + $0xc1] sm:$0xff] }
 0x12d   : > { %1852 = vmatprep.mubr.bf16.mxu1 %v5335_v23  ;;  %2718 = vmatpush1.bf16.msra.mxu1 %v5346_v19  ;;  %v570_v39 = vpack.c.bf16 %v547_v31, %v546_v9  ;;  %v484_v23 = vld [vmem:[#allocation2 + $0x110] sm:$0xff]  ;;  %v485_v19 = vld [vmem:[#allocation2 + $0x118] sm:$0xff]  ;;  %v1343_v9 = vld [vmem:[#allocation2 + $0x122] sm:$0xff] }
 0x12e   : > { %2719 = vmatprep.subr.bf16.mxu1 %v5631_v0  ;;  %v503_v1 = vpack.c.bf16 %v485_v19, %v484_v23  ;;  %v1344_v31 = vld [vmem:[#allocation2 + $0x12a] sm:$0xff]  ;;  %v2345_v19 = vpack.c.bf16 %v2313_v11, %v2312_v50  ;;  %v6175_v50 = vpack.c.bf16 %v1480_v2, %v1479_v63  ;;  %v2320_v11 = vld [vmem:[#allocation2 + $0x95] sm:$0xff] }
 0x131   : > { %2720 = vmatpush1.bf16.msra.mxu1 %v5349_v25  ;;  %v1453_v25 = vld [vmem:[#allocation2 + $0x14] sm:$0xff] }
 0x132   : > { %1032 = vmatmul.mubr.bf16.gmra.mrb[40].mxu0 %v496_v32  ;;  %2721 = vmatprep.subr.bf16.mxu1 %v5631_v0  ;;  %v1454_v32 = vld [vmem:[#allocation2 + $0x1c] sm:$0xff] }
 0x133   : > { %1039 = vmatprep.mubr.bf16.mxu0 %v569_v26  ;;  %v1489_v26 = vpack.c.bf16 %v1454_v32, %v1453_v25  ;;  %v5372_v25 = vld [vmem:[#allocation11 + $0x230] sm:$0xff]  }
 0x134   : > { %1853 = vmatmul.mubr.bf16.gmra.mrb[56].mxu1 %v5980_v33  ;;  %v548_v33 = vld [vmem:[#allocation2 + $0xd1] sm:$0xff] }
 0x135   : > { %1860 = vmatprep.mubr.bf16.mxu1 %v5337_v27  ;;  %2722 = vmatpush1.bf16.msra.mxu1 %v5352_v28  ;;  %v571_v47 = vpack.c.bf16 %v549_v43, %v548_v33  ;;  %v5353_v27 = vld [vmem:[#allocation11 + $0x148] sm:$0xff]   ;;  %v1457_v33 = vld [vmem:[#allocation2 + $0x34] sm:$0xff] }
 0x136   : > { %2723 = vmatprep.subr.bf16.mxu1 %v5631_v0  ;;  %v5355_v28 = vld [vmem:[%s5889_s7 + $0x78] sm:$0xff] }
 0x139   : > { %2724 = vmatpush1.bf16.msra.mxu1 %v5356_v36  ;;  %v2306_v36 = vld [vmem:[#allocation2 + $0x25] sm:$0xff] }
 0x13a   : > { %1040 = vmatmul.mubr.bf16.gmra.mrb[44].mxu0 %v497_v37  ;;  %2725 = vmatprep.subr.bf16.mxu1 %v5631_v0  ;;  %v2307_v37 = vld [vmem:[#allocation2 + $0x2d] sm:$0xff] }
 0x13b   : > { %1047 = vmatprep.mubr.bf16.mxu0 %v570_v39  ;;  %v5364_v39 = vld [vmem:[#allocation11 + $0x178] sm:$0xff]  }
 0x13c   : > { %1861 = vmatmul.mubr.bf16.gmra.mrb[60].mxu1 %v5982_v35  ;;  %v551_v35 = vld [vmem:[#allocation2 + $0xe9] sm:$0xff] }
 0x13d   : > { %1868 = vmatprep.mubr.bf16.mxu1 %v5339_v5  ;;  %2726 = vmatpush1.bf16.msra.mxu1 %v5361_v40  ;;  %v572_v8 = vpack.c.bf16 %v551_v35, %v550_v52  ;;  %v2342_v5 = vpack.c.bf16 %v2307_v37, %v2306_v36  ;;  %v1455_v40 = vld [vmem:[#allocation2 + $0x24] sm:$0xff]  ;;  %v1460_v52 = vld [vmem:[#allocation2 + $0x4c] sm:$0xff]  ;;  %v1461_v35 = vld [vmem:[#allocation2 + $0x54] sm:$0xff] }
 0x13e   : > { %2727 = vmatprep.subr.bf16.mxu1 %v5631_v0  ;;  %v479_v0 = vld [vmem:[#allocation2 + $0xe8] sm:$0xff]  ;;  %v1490_v43 = vpack.c.bf16 %v1456_v41, %v1455_v40  ;;  %v1474_v36 = vld [vmem:[#allocation2 + $0xbc] sm:$0xff] }
 0x13f   : > { %v500_v60 = vpack.c.bf16 %v479_v0, %v478_v56  ;;  %v2310_v56 = vld [vmem:[#allocation2 + $0x45] sm:$0xff]  ;;  %v2311_v0 = vld [vmem:[#allocation2 + $0x4d] sm:$0xff] }
 0x140   : > { %v2344_v10 = vpack.c.bf16 %v2311_v0, %v2310_v56 }
 0x141   : > { %2728 = vmatpush1.bf16.msra.mxu1 %v5365_v44  ;;  %v2308_v44 = vld [vmem:[#allocation2 + $0x35] sm:$0xff] }
 0x142   : > { %1048 = vmatmul.mubr.bf16.gmra.mrb[48].mxu0 %v498_v46  ;;  %v2309_v46 = vld [vmem:[#allocation2 + $0x3d] sm:$0xff] }
 0x143   : > { %1055 = vmatprep.mubr.bf16.mxu0 %v571_v47  ;;  %v2343_v38 = vpack.c.bf16 %v2309_v46, %v2308_v44  ;;  %v1476_v44 = vld [vmem:[#allocation2 + $0xcc] sm:$0xff]  ;;  %v1477_v46 = vld [vmem:[#allocation2 + $0xd4] sm:$0xff] }
 0x144   : > { %1869 = vmatmul.mubr.bf16.gmra.mrb[64].mxu1 %v5994_v54  ;;  %v5345_v54 = vld [vmem:[%s5889_s7 + $0x58] sm:$0xff] }
 0x145   : > { %1876 = vmatprep.mubr.bf16.mxu1 %v5341_v48  ;;  %v5367_v48 = vld [vmem:[#allocation11 + $0x208] sm:$0xff]  }
 0x14a   : > { %1056 = vmatmul.mubr.bf16.gmra.mrb[52].mxu0 %v499_v53  ;;  %v1462_v53 = vld [vmem:[#allocation2 + $0x5c] sm:$0xff] }
 0x14b   : > { %1063 = vmatprep.mubr.bf16.mxu0 %v572_v8  ;;  %v5368_v8 = vld [vmem:[#allocation11 + $0x210] sm:$0xff]   ;;  %v1493_v58 = vpack.c.bf16 %v1462_v53, %v1461_v35 }
 0x14c   : > { %1877 = vmatmul.mubr.bf16.gmra.mrb[68].mxu1 %v5996_v59  ;;  %v5347_v59 = vld [vmem:[%s5889_s7 + $0x60] sm:$0xff] }
 0x14d   : > { %1884 = vmatprep.mubr.bf16.mxu1 %v5343_v55  ;;  %v1492_v55 = vpack.c.bf16 %v1460_v52, %v1459_v51  ;;  %v2318_v52 = vld [vmem:[#allocation2 + $0x85] sm:$0xff]  ;;  %v2319_v35 = vld [vmem:[#allocation2 + $0x8d] sm:$0xff] }
 0x152   : > { %1064 = vmatmul.mubr.bf16.gmra.mrb[56].mxu0 %v500_v60 }
 0x153   : > { %1071 = vmatprep.mubr.bf16.mxu0 %v573_v45  ;;  %v5369_v45 = vld [vmem:[#allocation11 + $0x218] sm:$0xff]  }
 0x154   : > { %1885 = vmatmul.mubr.bf16.gmra.mrb[72].mxu1 %v6004_v15  ;;  %v5348_v15 = vld [vmem:[%s5889_s7 + $0x68] sm:$0xff] }
 0x155   : > { %1892 = vmatprep.mubr.bf16.mxu1 %v5345_v54 }
 0x15a   : > { %1072 = vmatmul.mubr.bf16.gmra.mrb[60].mxu0 %v501_v4  ;;  %v1465_v4 = vld [vmem:[#allocation2 + $0x74] sm:$0xff] }
 0x15b   : > { %1079 = vmatprep.mubr.bf16.mxu0 %v574_v14  ;;  %v1466_v14 = vld [vmem:[#allocation2 + $0x7c] sm:$0xff] }
 0x15c   : > { %1893 = vmatmul.mubr.bf16.gmra.mrb[76].mxu1 %v6006_v17  ;;  %v5351_v17 = vld [vmem:[%s5889_s7 + $0x70] sm:$0xff] }
 0x15d   : > { %1900 = vmatprep.mubr.bf16.mxu1 %v5347_v59  ;;  %v5370_v59 = vld [vmem:[#allocation11 + $0x220] sm:$0xff]  }
 0x162   : > { %1080 = vmatmul.mubr.bf16.gmra.mrb[64].mxu0 %v502_v13  ;;  %v6117_v13 = vpack.c.bf16 %v1466_v14, %v1465_v4  ;;  %v1481_v4 = vld [vmem:[#allocation2 + $0xf4] sm:$0xff]  ;;  %v1482_v14 = vld [vmem:[#allocation2 + $0xfc] sm:$0xff] }
 0x163   : > { %1087 = vmatprep.mubr.bf16.mxu0 %v575_v16 }
 0x164   : > { %1901 = vmatmul.mubr.bf16.gmra.mrb[80].mxu1 %v6015_v30  ;;  %v5354_v30 = vld [vmem:[#allocation11 + $0x150] sm:$0xff]  }
 0x165   : > { %1908 = vmatprep.mubr.bf16.mxu1 %v5348_v15  ;;  %v5371_v15 = vld [vmem:[#allocation11 + $0x228] sm:$0xff]  }
 0x16a   : > { %1088 = vmatmul.mubr.bf16.gmra.mrb[68].mxu0 %v503_v1  ;;  %v1468_v1 = vld [vmem:[#allocation2 + $0x8c] sm:$0xff] }
 0x16b   : > { %4954 = vmatprep.mubr.bf16.mxu0 %v630_v22  ;;  %v1469_v22 = vld [vmem:[#allocation2 + $0x94] sm:$0xff]  ;;  %v6126_v32 = vpack.c.bf16 %v1468_v1, %v1467_v21  ;;  %v6181_v1 = vpack.c.bf16 %v1482_v14, %v1481_v4  ;;  %v1487_v4 = vld [vmem:[#allocation2 + $0x124] sm:$0xff] }
 0x16c   : > { %1909 = vmatmul.mubr.bf16.gmra.mrb[84].mxu1 %v6018_v34  ;;  %v5357_v34 = vld [vmem:[#allocation11 + $0x158] sm:$0xff]   ;;  %v2378_v14 = vld [vmem:[#allocation2 + $0x26] sm:$0xff] }
 0x16d   : > { %1916 = vmatprep.mubr.bf16.mxu1 %v5351_v17  ;;  %v1470_v17 = vld [vmem:[#allocation2 + $0x9c] sm:$0xff] }
 0x172   : > { %4955 = vmatmul.mubr.bf16.vlgmr.msra.gmra.mrb[72].mxu0 %v6049_v18  ;;  %v5360_v18 = vld [vmem:[#allocation11 + $0x168] sm:$0xff]  }
 0x173   : > { %4991 = vmatpush3.bf16.msra.mxu0 %v6053_v24  ;;  %5006 = vmatprep.mubr.bf16.mxu0 %v1489_v26  ;;  %v5363_v24 = vld [vmem:[%s5889_s7 + $0x88] sm:$0xff] }
 0x174   : > { %1917 = vmatmul.mubr.bf16.gmra.mrb[88].mxu1 %v6027_v6  ;;  %4992 = vmatprep.subr.bf16.mxu0 %v5353_v27  ;;  %v5362_v6 = vld [vmem:[#allocation11 + $0x170] sm:$0xff]  }
 0x175   : > { %1924 = vmatprep.mubr.bf16.mxu1 %v5355_v28  ;;  %v2314_v26 = vld [vmem:[#allocation2 + $0x65] sm:$0xff] }
 0x177   : > { %4993 = vmatpush3.bf16.msra.mxu0 %v5353_v27  ;;  %v2315_v27 = vld [vmem:[#allocation2 + $0x6d] sm:$0xff] }
 0x178   : > { %4994 = vmatprep.subr.bf16.mxu0 %v5354_v30 }
 0x17b   : > { %4995 = vmatpush3.bf16.msra.mxu0 %v5354_v30  ;;  %v6130_v30 = vpack.c.bf16 %v1470_v17, %v1469_v22 }
 0x17c   : > { %1925 = vmatmul.mubr.bf16.gmra.mrb[92].mxu1 %v6030_v49  ;;  %4996 = vmatprep.subr.bf16.mxu0 %v5357_v34  ;;  %v1362_v49 = vpack.c.bf16 %v1344_v31, %v1343_v9  ;;  %v1472_v9 = vld [vmem:[#allocation2 + $0xac] sm:$0xff]  ;;  %v1473_v31 = vld [vmem:[#allocation2 + $0xb4] sm:$0xff] }
 0x17d   : > { %1932 = vmatprep.mubr.bf16.mxu1 %v5359_v29  ;;  %v5373_v29 = vld [vmem:[#allocation11 + $0x238] sm:$0xff]   ;;  %v6144_v40 = vpack.c.bf16 %v1474_v36, %v1473_v31 }
 0x17f   : > { %4997 = vmatpush3.bf16.msra.mxu0 %v5357_v34 }
 0x180   : > { %4998 = vmatprep.subr.bf16.mxu0 %v5358_v3 }
 0x183   : > { %4999 = vmatpush3.bf16.msra.mxu0 %v5358_v3 }
 0x184   : > { %1933 = vmatmul.mubr.bf16.gmra.mrb[96].mxu1 %v6039_v61  ;;  %5000 = vmatprep.subr.bf16.mxu0 %v5360_v18  ;;  %v1458_v61 = vld [vmem:[#allocation2 + $0x3c] sm:$0xff] }
 0x185   : > { %1940 = vmatprep.mubr.bf16.mxu1 %v5363_v24  ;;  %v1491_v47 = vpack.c.bf16 %v1458_v61, %v1457_v33 }
 0x187   : > { %5001 = vmatpush3.bf16.msra.mxu0 %v5360_v18  ;;  %v2346_v18 = vpack.c.bf16 %v2315_v27, %v2314_v26  ;;  %v1483_v27 = vld [vmem:[#allocation2 + $0x104] sm:$0xff] }
 0x188   : > { %5002 = vmatprep.subr.bf16.mxu0 %v5362_v6 }
 0x18b   : > { %5003 = vmatpush3.bf16.msra.mxu0 %v5362_v6  ;;  %v1471_v6 = vld [vmem:[#allocation2 + $0xa4] sm:$0xff] }
 0x18c   : > { %1941 = vmatmul.mubr.bf16.gmra.mrb[100].mxu1 %v1362_v49  ;;  %5004 = vmatprep.subr.bf16.mxu0 %v5364_v39  ;;  %v6140_v37 = vpack.c.bf16 %v1472_v9, %v1471_v6  ;;  %v2316_v49 = vld [vmem:[#allocation2 + $0x75] sm:$0xff] }
 0x18d   : > { %2729 = vmatprep.mubr.bf16.mxu1 %v2342_v5  ;;  %v1486_v6 = vld [vmem:[#allocation2 + $0x11c] sm:$0xff] }
 0x18e   : > { %v6192_v9 = vld [vmem:[#allocation13] ss:$0 sm:$0xff] }
 0x18f   : > { %5005 = vmatpush3.bf16.msra.mxu0 %v5364_v39  ;;  %v2317_v39 = vld [vmem:[#allocation2 + $0x7d] sm:$0xff] }
 0x190   : > { %5042 = vmatprep.subr.bf16.mxu0 %v5366_v42  ;;  %v2347_v33 = vpack.c.bf16 %v2317_v39, %v2316_v49 }
 0x192   : > { %5007 = vmatmul.mubr.bf16.vlgmr.msra.gmra.mrb[76].mxu0 %v1490_v43 }
 0x193   : > { %5043 = vmatpush3.bf16.msra.mxu0 %v5366_v42  ;;  %5010 = vmatprep.mubr.bf16.mxu0 %v1491_v47 }
 0x194   : > { %2730 = vmatmul.mubr.bf16.vlgmr.msra.gmra.mrb[104].mxu1 %v1490_v43  ;;  %5044 = vmatprep.subr.bf16.mxu0 %v5367_v48  ;;  %v1475_v43 = vld [vmem:[#allocation2 + $0xc4] sm:$0xff] }
 0x195   : > { %2737 = vmatprep.mubr.bf16.mxu1 %v2343_v38  ;;  %v6156_v51 = vpack.c.bf16 %v1476_v44, %v1475_v43  ;;  %v2323_v43 = vld [vmem:[#allocation2 + $0xad] sm:$0xff] }
 0x196   : > { %v6107_v57 = vpop.f32.mrb[0].mxu1 }
 0x197   : > { %5045 = vmatpush3.bf16.msra.mxu0 %v5367_v48  ;;  %v6109_v60 = vpop.f32.mrb[1].mxu1 }
 0x198   : > { %5046 = vmatprep.subr.bf16.mxu0 %v5368_v8  ;;  %v6111_v54 = vpop.f32.mrb[2].mxu1 }
 0x199   : > { %v6113_v62 = vpop.f32.mrb[3].mxu1 }
 0x19a   : > { %5011 = vmatmul.mubr.bf16.gmra.mrb[80].mxu0 %v1492_v55 }
 0x19b   : > { %5014 = vmatprep.mubr.bf16.mxu0 %v1493_v58  ;;  %5047 = vmatpush3.bf16.msra.mxu0 %v5368_v8 }
 0x19c   : > { %2738 = vmatmul.mubr.bf16.gmra.mrb[108].mxu1 %v1491_v47  ;;  %5048 = vmatprep.subr.bf16.mxu0 %v5369_v45  ;;  %v1478_v47 = vld [vmem:[#allocation2 + $0xdc] sm:$0xff] }
 0x19d   : > { %2745 = vmatprep.mubr.bf16.mxu1 %v2344_v10 }
 0x19e   : > { %v6115_v12 = vpop.f32.mrb[4].mxu1 }
 0x19f   : > { %5049 = vmatpush3.bf16.msra.mxu0 %v5369_v45  ;;  %v6119_v16 = vpop.f32.mrb[5].mxu1  ;;  %v2348_v45 = vpack.c.bf16 %v2319_v35, %v2318_v52 }
 0x1a0   : > { %5050 = vmatprep.subr.bf16.mxu0 %v5370_v59  ;;  %v6121_v23 = vpop.f32.mrb[6].mxu1 }
 0x1a1   : > { %v6123_v20 = vpop.f32.mrb[7].mxu1 }
 0x1a2   : > { %5015 = vmatmul.mubr.bf16.gmra.mrb[84].mxu0 %v1494_v7 }
 0x1a3   : > { %5018 = vmatprep.mubr.bf16.mxu0 %v6117_v13  ;;  %5051 = vmatpush3.bf16.msra.mxu0 %v5370_v59 }
 0x1a4   : > { %2746 = vmatmul.mubr.bf16.gmra.mrb[112].mxu1 %v1492_v55  ;;  %5052 = vmatprep.subr.bf16.mxu0 %v5371_v15  ;;  %v6162_v55 = vpack.c.bf16 %v1478_v47, %v1477_v46 }
 0x1a5   : > { %2753 = vmatprep.mubr.bf16.mxu1 %v2345_v19 }
 0x1a6   : > { %v6128_v28 = vpop.f32.mrb[8].mxu1 }
 0x1a7   : > { %5053 = vmatpush3.bf16.msra.mxu0 %v5371_v15  ;;  %v6132_v34 = vpop.f32.mrb[9].mxu1  ;;  %v2321_v15 = vld [vmem:[#allocation2 + $0x9d] sm:$0xff] }
 0x1a8   : > { %5054 = vmatprep.subr.bf16.mxu0 %v5372_v25  ;;  %v6134_v3 = vpop.f32.mrb[10].mxu1 }
 0x1a9   : > { %v6137_v24 = vpop.f32.mrb[11].mxu1 }
 0x1aa   : > { %5019 = vmatmul.mubr.bf16.gmra.mrb[88].mxu0 %v6126_v32 }
 0x1ab   : > { %5022 = vmatprep.mubr.bf16.mxu0 %v6130_v30  ;;  %5055 = vmatpush3.bf16.msra.mxu0 %v5372_v25  ;;  %v2349_v25 = vpack.c.bf16 %v2321_v15, %v2320_v11 }
 0x1ac   : > { %2754 = vmatmul.mubr.bf16.gmra.mrb[116].mxu1 %v1493_v58  ;;  %5056 = vmatprep.subr.bf16.mxu0 %v5373_v29 }
 0x1ad   : > { %2761 = vmatprep.mubr.bf16.mxu1 %v2346_v18  ;;  %v1485_v18 = vld [vmem:[#allocation2 + $0x114] sm:$0xff] }
 0x1ae   : > { %v6142_v5 = vpop.f32.mrb[12].mxu1  ;;  %v6199_v47 = vpack.c.bf16 %v1486_v6, %v1485_v18 }
 0x1af   : > { %5057 = vmatpush3.bf16.msra.mxu0 %v5373_v29  ;;  %v6146_v41 = vpop.f32.mrb[13].mxu1  ;;  %v1484_v29 = vld [vmem:[#allocation2 + $0x10c] sm:$0xff] }
 0x1b0   : > { %v6148_v42 = vpop.f32.mrb[14].mxu1  ;;  %v6195_v39 = vpack.c.bf16 %v1484_v29, %v1483_v27  ;;  %v2325_v27 = vld [vmem:[#allocation2 + $0xbd] sm:$0xff] }
 0x1b1   : > { %v6151_v61 = vpop.f32.mrb[15].mxu1 }
 0x1b2   : > { %5023 = vmatmul.mubr.bf16.gmra.mrb[92].mxu0 %v6140_v37 }
 0x1b3   : > { %5026 = vmatprep.mubr.bf16.mxu0 %v6144_v40 }
 0x1b4   : > { %2762 = vmatmul.mubr.bf16.gmra.mrb[120].mxu1 %v1494_v7 }
 0x1b5   : > { %v6154_v48 = vpop.f32.mrb[0].mxu0  ;;  %2769 = vmatprep.mubr.bf16.mxu1 %v2347_v33  ;;  %v2322_v33 = vld [vmem:[#allocation2 + $0xa5] sm:$0xff] }
 0x1b6   : > { %v955_v38 = vpop.f32.mrb[1].mxu0 }
 0x1b7   : > { %v6158_v53 = vpop.f32.mrb[2].mxu0  ;;  %v6160_v8 = vpop.f32.mrb[16].mxu1 }
 0x1b8   : > { %v958_v56 = vpop.f32.mrb[3].mxu0  ;;  %v6164_v0 = vpop.f32.mrb[17].mxu1 }
 0x1b9   : > { %v6166_v58 = vpop.f32.mrb[18].mxu1 }
 0x1ba   : > { %5027 = vmatmul.mubr.bf16.gmra.mrb[96].mxu0 %v6156_v51  ;;  %v6169_v10 = vpop.f32.mrb[19].mxu1 }
 0x1bb   : > { %5030 = vmatprep.mubr.bf16.mxu0 %v6162_v55 }
 0x1bc   : > { %2770 = vmatmul.mubr.bf16.gmra.mrb[124].mxu1 %v6117_v13 }
 0x1bd   : > { %v6173_v59 = vpop.f32.mrb[4].mxu0  ;;  %2777 = vmatprep.mubr.bf16.mxu1 %v2348_v45  ;;  %v2350_v45 = vpack.c.bf16 %v2323_v43, %v2322_v33 }
 0x1be   : > { %v963_v7 = vpop.f32.mrb[5].mxu0 }
 0x1bf   : > { %v6177_v19 = vpop.f32.mrb[6].mxu0  ;;  %v6179_v21 = vpop.f32.mrb[20].mxu1  ;;  %v2379_v7 = vld [vmem:[#allocation2 + $0x2e] sm:$0xff] }
 0x1c0   : > { %v966_v22 = vpop.f32.mrb[7].mxu0  ;;  %v6183_v17 = vpop.f32.mrb[21].mxu1  ;;  %v2414_v6 = vpack.c.bf16 %v2379_v7, %v2378_v14 }
 0x1c1   : > { %v6185_v13 = vpop.f32.mrb[22].mxu1 }
 0x1c2   : > { %5031 = vmatmul.mubr.bf16.gmra.mrb[100].mxu0 %v6175_v50  ;;  %v6188_v26 = vpop.f32.mrb[23].mxu1 }
 0x1c3   : > { %5034 = vmatprep.mubr.bf16.mxu0 %v6181_v1 }
 0x1c4   : > { %2778 = vmatmul.mubr.bf16.gmra.mrb[128].mxu1 %v6126_v32 }
 0x1c5   : > { %v969_v31 = vpop.f32.mrb[8].mxu0  ;;  %2785 = vmatprep.mubr.bf16.mxu1 %v2349_v25 }
 0x1c6   : > { %v970_v36 = vadd.f32 %v6192_v9, %v969_v31  ;;  %v971_v49 = vpop.f32.mrb[9].mxu0 }
 0x1c7   : > { %v972_v44 = vpop.f32.mrb[10].mxu0  ;;  %v6197_v46 = vpop.f32.mrb[24].mxu1 }
 0x1c8   : > { %v6202_v32 = vadd.f32 %v6109_v60, %v970_v36  ;;  %v973_v38 = vadd.f32 %v6192_v9, %v972_v44  ;;  %v974_v52 = vpop.f32.mrb[11].mxu0  ;;  %v6205_v35 = vpop.f32.mrb[25].mxu1  ;;  %v1488_v60 = vld [vmem:[#allocation2 + $0x12c] sm:$0xff] }
 0x1c9   : > { %v6207_v56 = vpop.f32.mrb[26].mxu1  ;;  %v6218_v25 = vpack.c.bf16 %v1488_v60, %v1487_v4  ;;  %v2380_v52 = vld [vmem:[#allocation2 + $0x36] sm:$0xff]  ;;  %v2383_v4 = vld [vmem:[#allocation2 + $0x4e] sm:$0xff] }
 0x1ca   : > { %v6210_v63 = vadd.f32 %v6113_v62, %v973_v38  ;;  %5035 = vmatmul.mubr.bf16.gmra.mrb[104].mxu0 %v6195_v39  ;;  %v6213_v2 = vpop.f32.mrb[27].mxu1  ;;  %v2324_v62 = vld [vmem:[#allocation2 + $0xb5] sm:$0xff] }
 0x1cb   : > { %5038 = vmatprep.mubr.bf16.mxu0 %v6199_v47  ;;  %v2351_v43 = vpack.c.bf16 %v2325_v27, %v2324_v62 }
 0x1cc   : > { %2786 = vmatmul.mubr.bf16.gmra.mrb[132].mxu1 %v6130_v30 }
 0x1cd   : > { %v977_v11 = vpop.f32.mrb[12].mxu0  ;;  %2793 = vmatprep.mubr.bf16.mxu1 %v2350_v45  ;;  %v2381_v45 = vld [vmem:[#allocation2 + $0x3e] sm:$0xff] }
 0x1ce   : > { %v978_v15 = vadd.f32 %v6192_v9, %v977_v11  ;;  %v979_v22 = vpop.f32.mrb[13].mxu0  ;;  %v2415_v11 = vpack.c.bf16 %v2381_v45, %v2380_v52  ;;  %v2384_v45 = vld [vmem:[#allocation2 + $0x56] sm:$0xff] }
 0x1cf   : > { %v980_v29 = vpop.f32.mrb[14].mxu0  ;;  %v6220_v18 = vpop.f32.mrb[28].mxu1 }
 0x1d0   : > { %v6223_v31 = vadd.f32 %v6107_v57, %v978_v15  ;;  %v981_v30 = vadd.f32 %v6192_v9, %v980_v29  ;;  %v982_v36 = vpop.f32.mrb[15].mxu0  ;;  %v6226_v49 = vpop.f32.mrb[29].mxu1  ;;  %v2382_v57 = vld [vmem:[#allocation2 + $0x46] sm:$0xff] }
 0x1d1   : > { %v6228_v33 = vpop.f32.mrb[30].mxu1  ;;  %v2326_v15 = vld [vmem:[#allocation2 + $0xc5] sm:$0xff]  ;;  %v2416_v27 = vpack.c.bf16 %v2383_v4, %v2382_v57 }
 0x1d2   : > { %v6231_v44 = vadd.f32 %v6111_v54, %v981_v30  ;;  %5039 = vmatmul.mubr.bf16.gmra.mrb[108].mxu0 %v6218_v25  ;;  %v6234_v38 = vpop.f32.mrb[31].mxu1  ;;  %v2327_v54 = vld [vmem:[#allocation2 + $0xcd] sm:$0xff] }
 0x1d3   : > { %5058 = vmatprep.mubr.bf16.mxu0 %v2414_v6  ;;  %v2386_v57 = vld [vmem:[#allocation2 + $0x66] sm:$0xff] }
 0x1d4   : > { %2794 = vmatmul.mubr.bf16.gmra.mrb[136].mxu1 %v6140_v37 }
 0x1d5   : > { %v985_v60 = vpop.f32.mrb[16].mxu0  ;;  %2801 = vmatprep.mubr.bf16.mxu1 %v2351_v43  ;;  %v2352_v43 = vpack.c.bf16 %v2327_v54, %v2326_v15  ;;  %v2329_v15 = vld [vmem:[#allocation2 + $0xdd] sm:$0xff] }
 0x1d6   : > { %v986_v14 = vadd.f32 %v6192_v9, %v985_v60  ;;  %v987_v7 = vpop.f32.mrb[17].mxu0 }
 0x1d7   : > { %v988_v22 = vpop.f32.mrb[18].mxu0  ;;  %v6238_v62 = vpop.f32.mrb[32].mxu1  ;;  %v2385_v7 = vld [vmem:[#allocation2 + $0x5e] sm:$0xff] }
 0x1d8   : > { %v6241_v29 = vadd.f32 %v6119_v16, %v986_v14  ;;  %v989_v6 = vadd.f32 %v6192_v9, %v988_v22  ;;  %v990_v37 = vpop.f32.mrb[19].mxu0  ;;  %v1808_v30 = vpop.f32.mrb[33].mxu1  ;;  %v2387_v16 = vld [vmem:[#allocation2 + $0x6e] sm:$0xff] }
 0x1d9   : > { %v6244_v36 = vpop.f32.mrb[34].mxu1  ;;  %v2417_v37 = vpack.c.bf16 %v2385_v7, %v2384_v45  ;;  %v2328_v30 = vld [vmem:[#allocation2 + $0xd5] sm:$0xff] }
 0x1da   : > { %v6247_v60 = vadd.f32 %v6123_v20, %v989_v6  ;;  %5059 = vmatmul.mubr.bf16.vlgmr.msra.gmra.mrb[112].mxu0 %v2415_v11  ;;  %v1811_v52 = vpop.f32.mrb[35].mxu1  ;;  %v2418_v11 = vpack.c.bf16 %v2387_v16, %v2386_v57  ;;  %v2388_v7 = vld [vmem:[#allocation2 + $0x76] sm:$0xff]  ;;  %v2390_v57 = vld [vmem:[#allocation2 + $0x86] sm:$0xff] }
 0x1db   : > { %5062 = vmatprep.mubr.bf16.mxu0 %v2416_v27 }
 0x1dc   : > { %8636 = vst [vmem:[#allocation22_spill] sm:$0xff] %v6247_v60  ;;  %2802 = vmatmul.mubr.bf16.gmra.mrb[140].mxu1 %v6144_v40 }
 0x1dd   : > { %v993_v4 = vpop.f32.mrb[20].mxu0  ;;  %2809 = vmatprep.mubr.bf16.mxu1 %v2352_v43  ;;  %v2353_v43 = vpack.c.bf16 %v2329_v15, %v2328_v30  ;;  %v2331_v30 = vld [vmem:[#allocation2 + $0xed] sm:$0xff] }
 0x1de   : > { %v994_v14 = vadd.f32 %v6192_v9, %v993_v4  ;;  %v995_v22 = vpop.f32.mrb[21].mxu0 }
 0x1df   : > { %v996_v54 = vpop.f32.mrb[22].mxu0  ;;  %v6251_v20 = vpop.f32.mrb[36].mxu1  ;;  %v2389_v22 = vld [vmem:[#allocation2 + $0x7e] sm:$0xff] }
 0x1e0   : > { %v6254_v27 = vadd.f32 %v6115_v12, %v994_v14  ;;  %v997_v6 = vadd.f32 %v6192_v9, %v996_v54  ;;  %v998_v40 = vpop.f32.mrb[23].mxu0  ;;  %v1816_v52 = vpop.f32.mrb[37].mxu1  ;;  %v2391_v12 = vld [vmem:[#allocation2 + $0x8e] sm:$0xff] }
 0x1e1   : > { %v6257_v60 = vpop.f32.mrb[38].mxu1  ;;  %v2419_v40 = vpack.c.bf16 %v2389_v22, %v2388_v7  ;;  %v2330_v52 = vld [vmem:[#allocation2 + $0xe5] sm:$0xff]  ;;  %v2392_v22 = vld [vmem:[#allocation2 + $0x96] sm:$0xff] }
 0x1e2   : > { %v6260_v4 = vadd.f32 %v6121_v23, %v997_v6  ;;  %5063 = vmatmul.mubr.bf16.gmra.mrb[116].mxu0 %v2417_v37  ;;  %v1819_v45 = vpop.f32.mrb[39].mxu1  ;;  %v2420_v37 = vpack.c.bf16 %v2391_v12, %v2390_v57  ;;  %v2394_v57 = vld [vmem:[#allocation2 + $0xa6] sm:$0xff] }
 0x1e3   : > { %5066 = vmatprep.mubr.bf16.mxu0 %v2418_v11 }
 0x1e4   : > { %8637 = vst [vmem:[#allocation23_spill] sm:$0xff] %v6260_v4  ;;  %2810 = vmatmul.mubr.bf16.gmra.mrb[144].mxu1 %v6156_v51 }
 0x1e5   : > { %v1001_v16 = vpop.f32.mrb[24].mxu0  ;;  %2817 = vmatprep.mubr.bf16.mxu1 %v2353_v43  ;;  %v2354_v43 = vpack.c.bf16 %v2331_v30, %v2330_v52  ;;  %v2333_v52 = vld [vmem:[#allocation2 + $0xfd] sm:$0xff] }
 0x1e6   : > { %v1002_v14 = vadd.f32 %v6192_v9, %v1001_v16  ;;  %v1003_v54 = vpop.f32.mrb[25].mxu0 }
 0x1e7   : > { %v1004_v15 = vpop.f32.mrb[26].mxu0  ;;  %v6264_v23 = vpop.f32.mrb[40].mxu1  ;;  %v2393_v54 = vld [vmem:[#allocation2 + $0x9e] sm:$0xff] }
 0x1e8   : > { %v6267_v11 = vadd.f32 %v6132_v34, %v1002_v14  ;;  %v1005_v6 = vadd.f32 %v6192_v9, %v1004_v15  ;;  %v1006_v51 = vpop.f32.mrb[27].mxu0  ;;  %v1824_v45 = vpop.f32.mrb[41].mxu1  ;;  %v2395_v34 = vld [vmem:[#allocation2 + $0xae] sm:$0xff] }
 0x1e9   : > { %v6270_v4 = vpop.f32.mrb[42].mxu1  ;;  %v2421_v51 = vpack.c.bf16 %v2393_v54, %v2392_v22  ;;  %v2332_v45 = vld [vmem:[#allocation2 + $0xf5] sm:$0xff] }
 0x1ea   : > { %v6273_v16 = vadd.f32 %v6137_v24, %v1005_v6  ;;  %5067 = vmatmul.mubr.bf16.gmra.mrb[120].mxu0 %v2419_v40  ;;  %v1827_v7 = vpop.f32.mrb[43].mxu1  ;;  %v2422_v40 = vpack.c.bf16 %v2395_v34, %v2394_v57  ;;  %v2396_v54 = vld [vmem:[#allocation2 + $0xb6] sm:$0xff]  ;;  %v2398_v57 = vld [vmem:[#allocation2 + $0xc6] sm:$0xff] }
 0x1eb   : > { %5070 = vmatprep.mubr.bf16.mxu0 %v2420_v37 }
 0x1ec   : > { %8638 = vst [vmem:[#allocation24_spill] sm:$0xff] %v6273_v16  ;;  %2818 = vmatmul.mubr.bf16.gmra.mrb[148].mxu1 %v6162_v55 }
 0x1ed   : > { %v1009_v12 = vpop.f32.mrb[28].mxu0  ;;  %2825 = vmatprep.mubr.bf16.mxu1 %v2354_v43  ;;  %v2355_v43 = vpack.c.bf16 %v2333_v52, %v2332_v45  ;;  %v2335_v45 = vld [vmem:[#allocation2 + $0x10d] sm:$0xff] }
 0x1ee   : > { %v1010_v14 = vadd.f32 %v6192_v9, %v1009_v12  ;;  %v1011_v15 = vpop.f32.mrb[29].mxu0 }
 0x1ef   : > { %v1012_v30 = vpop.f32.mrb[30].mxu0  ;;  %v6277_v24 = vpop.f32.mrb[44].mxu1  ;;  %v2397_v15 = vld [vmem:[#allocation2 + $0xbe] sm:$0xff] }
 0x1f0   : > { %v6280_v37 = vadd.f32 %v6128_v28, %v1010_v14  ;;  %v1013_v6 = vadd.f32 %v6192_v9, %v1012_v30  ;;  %v1014_v55 = vpop.f32.mrb[31].mxu0  ;;  %v1832_v7 = vpop.f32.mrb[45].mxu1  ;;  %v2399_v28 = vld [vmem:[#allocation2 + $0xce] sm:$0xff] }
 0x1f1   : > { %v6283_v16 = vpop.f32.mrb[46].mxu1  ;;  %v2423_v55 = vpack.c.bf16 %v2397_v15, %v2396_v54  ;;  %v2334_v7 = vld [vmem:[#allocation2 + $0x105] sm:$0xff]  ;;  %v2400_v15 = vld [vmem:[#allocation2 + $0xd6] sm:$0xff] }
 0x1f2   : > { %v6286_v12 = vadd.f32 %v6134_v3, %v1013_v6  ;;  %5071 = vmatmul.mubr.bf16.gmra.mrb[124].mxu0 %v2421_v51  ;;  %v1835_v22 = vpop.f32.mrb[47].mxu1  ;;  %v2424_v51 = vpack.c.bf16 %v2399_v28, %v2398_v57  ;;  %v2402_v57 = vld [vmem:[#allocation2 + $0xe6] sm:$0xff] }
 0x1f3   : > { %5074 = vmatprep.mubr.bf16.mxu0 %v2422_v40 }
 0x1f4   : > { %8639 = vst [vmem:[#allocation25_spill] sm:$0xff] %v6286_v12  ;;  %2826 = vmatmul.mubr.bf16.gmra.mrb[152].mxu1 %v6175_v50 }
 0x1f5   : > { %v1017_v34 = vpop.f32.mrb[32].mxu0  ;;  %2833 = vmatprep.mubr.bf16.mxu1 %v2355_v43  ;;  %v2356_v43 = vpack.c.bf16 %v2335_v45, %v2334_v7  ;;  %v2337_v7 = vld [vmem:[#allocation2 + $0x11d] sm:$0xff] }
 0x1f6   : > { %v1018_v14 = vadd.f32 %v6192_v9, %v1017_v34  ;;  %v1019_v30 = vpop.f32.mrb[33].mxu0 }
 0x1f7   : > { %v1020_v52 = vpop.f32.mrb[34].mxu0  ;;  %v6290_v3 = vpop.f32.mrb[48].mxu1  ;;  %v2401_v30 = vld [vmem:[#allocation2 + $0xde] sm:$0xff] }
 0x1f8   : > { %v6293_v40 = vadd.f32 %v6146_v41, %v1018_v14  ;;  %v1021_v6 = vadd.f32 %v6192_v9, %v1020_v52  ;;  %v1022_v50 = vpop.f32.mrb[35].mxu0  ;;  %v1840_v22 = vpop.f32.mrb[49].mxu1  ;;  %v2403_v41 = vld [vmem:[#allocation2 + $0xee] sm:$0xff] }
 0x1f9   : > { %v6296_v12 = vpop.f32.mrb[50].mxu1  ;;  %v2425_v50 = vpack.c.bf16 %v2401_v30, %v2400_v15  ;;  %v2336_v22 = vld [vmem:[#allocation2 + $0x115] sm:$0xff] }
 0x1fa   : > { %v6299_v34 = vadd.f32 %v6151_v61, %v1021_v6  ;;  %5075 = vmatmul.mubr.bf16.gmra.mrb[128].mxu0 %v2423_v55  ;;  %v1843_v54 = vpop.f32.mrb[51].mxu1  ;;  %v2426_v55 = vpack.c.bf16 %v2403_v41, %v2402_v57  ;;  %v2404_v30 = vld [vmem:[#allocation2 + $0xf6] sm:$0xff]  ;;  %v2406_v57 = vld [vmem:[#allocation2 + $0x106] sm:$0xff] }
 0x1fb   : > { %5078 = vmatprep.mubr.bf16.mxu0 %v2424_v51 }
 0x1fc   : > { %8640 = vst [vmem:[#allocation26_spill] sm:$0xff] %v6299_v34  ;;  %2834 = vmatmul.mubr.bf16.gmra.mrb[156].mxu1 %v6181_v1 }
 0x1fd   : > { %v1025_v28 = vpop.f32.mrb[36].mxu0  ;;  %2841 = vmatprep.mubr.bf16.mxu1 %v2356_v43  ;;  %v2357_v43 = vpack.c.bf16 %v2337_v7, %v2336_v22  ;;  %v2339_v22 = vld [vmem:[#allocation2 + $0x12d] sm:$0xff] }
 0x1fe   : > { %v1026_v14 = vadd.f32 %v6192_v9, %v1025_v28  ;;  %v1027_v52 = vpop.f32.mrb[37].mxu0 }
 0x1ff   : > { %v1028_v45 = vpop.f32.mrb[38].mxu0  ;;  %v6303_v61 = vpop.f32.mrb[52].mxu1  ;;  %v2405_v52 = vld [vmem:[#allocation2 + $0xfe] sm:$0xff] }
 0x200   : > { %v6306_v51 = vadd.f32 %v6142_v5, %v1026_v14  ;;  %v1029_v6 = vadd.f32 %v6192_v9, %v1028_v45  ;;  %v1030_v1 = vpop.f32.mrb[39].mxu0  ;;  %v1848_v54 = vpop.f32.mrb[53].mxu1  ;;  %v2407_v5 = vld [vmem:[#allocation2 + $0x10e] sm:$0xff] }
 0x201   : > { %v6309_v34 = vpop.f32.mrb[54].mxu1  ;;  %v2427_v1 = vpack.c.bf16 %v2405_v52, %v2404_v30  ;;  %v2338_v54 = vld [vmem:[#allocation2 + $0x125] sm:$0xff]  ;;  %v2408_v52 = vld [vmem:[#allocation2 + $0x116] sm:$0xff] }
 0x202   : > { %v6312_v28 = vadd.f32 %v6148_v42, %v1029_v6  ;;  %5079 = vmatmul.mubr.bf16.gmra.mrb[132].mxu0 %v2425_v50  ;;  %v1851_v15 = vpop.f32.mrb[55].mxu1  ;;  %v2428_v50 = vpack.c.bf16 %v2407_v5, %v2406_v57  ;;  %v2410_v57 = vld [vmem:[#allocation2 + $0x126] sm:$0xff] }
 0x203   : > { %5082 = vmatprep.mubr.bf16.mxu0 %v2426_v55 }
 0x204   : > { %8641 = vst [vmem:[#allocation27_spill] sm:$0xff] %v6312_v28  ;;  %2842 = vmatmul.mubr.bf16.gmra.mrb[160].mxu1 %v6195_v39 }
 0x205   : > { %v1033_v41 = vpop.f32.mrb[40].mxu0  ;;  %2849 = vmatprep.mubr.bf16.mxu1 %v2357_v43  ;;  %v2358_v43 = vpack.c.bf16 %v2339_v22, %v2338_v54  ;;  %v2341_v54 = vld [vmem:[#allocation2 + $0x13d] sm:$0xff] }
 0x206   : > { %v1034_v14 = vadd.f32 %v6192_v9, %v1033_v41  ;;  %v1035_v45 = vpop.f32.mrb[41].mxu0 }
 0x207   : > { %v1036_v7 = vpop.f32.mrb[42].mxu0  ;;  %v6316_v42 = vpop.f32.mrb[56].mxu1  ;;  %v2409_v45 = vld [vmem:[#allocation2 + $0x11e] sm:$0xff] }
 0x208   : > { %v6319_v55 = vadd.f32 %v6164_v0, %v1034_v14  ;;  %v1037_v6 = vadd.f32 %v6192_v9, %v1036_v7  ;;  %v1038_v39 = vpop.f32.mrb[43].mxu0  ;;  %v1856_v15 = vpop.f32.mrb[57].mxu1  ;;  %v2411_v0 = vld [vmem:[#allocation2 + $0x12e] sm:$0xff] }
 0x209   : > { %v6322_v28 = vpop.f32.mrb[58].mxu1  ;;  %v2429_v39 = vpack.c.bf16 %v2409_v45, %v2408_v52  ;;  %v2340_v15 = vld [vmem:[#allocation2 + $0x135] sm:$0xff] }
 0x20a   : > { %v6325_v41 = vadd.f32 %v6169_v10, %v1037_v6  ;;  %5083 = vmatmul.mubr.bf16.gmra.mrb[136].mxu0 %v2427_v1  ;;  %v1859_v30 = vpop.f32.mrb[59].mxu1  ;;  %v2430_v1 = vpack.c.bf16 %v2411_v0, %v2410_v57  ;;  %v2412_v45 = vld [vmem:[#allocation2 + $0x136] sm:$0xff] }
 0x20b   : > { %5086 = vmatprep.mubr.bf16.mxu0 %v2428_v50  ;;  %v2269_v0 = vld [vmem:[#allocation2 + $0x13c] sm:$0xff] }
 0x20c   : > { %8642 = vst [vmem:[#allocation28_spill] sm:$0xff] %v6325_v41  ;;  %2850 = vmatmul.mubr.bf16.gmra.mrb[164].mxu1 %v6199_v47 }
 0x20d   : > { %v1041_v5 = vpop.f32.mrb[44].mxu0  ;;  %2857 = vmatprep.mubr.bf16.mxu1 %v2358_v43  ;;  %v2359_v43 = vpack.c.bf16 %v2341_v54, %v2340_v15 }
 0x20e   : > { %v1042_v14 = vadd.f32 %v6192_v9, %v1041_v5  ;;  %v1043_v7 = vpop.f32.mrb[45].mxu0 }
 0x20f   : > { %v1044_v22 = vpop.f32.mrb[46].mxu0  ;;  %v6329_v10 = vpop.f32.mrb[60].mxu1  ;;  %v2413_v7 = vld [vmem:[#allocation2 + $0x13e] sm:$0xff] }
 0x210   : > { %v6332_v50 = vadd.f32 %v6160_v8, %v1042_v14  ;;  %v1045_v6 = vadd.f32 %v6192_v9, %v1044_v22  ;;  %v1046_v47 = vpop.f32.mrb[47].mxu0  ;;  %v1864_v30 = vpop.f32.mrb[61].mxu1  ;;  %v2268_v8 = vld [vmem:[#allocation2 + $0x134] sm:$0xff] }
 0x211   : > { %v6335_v41 = vpop.f32.mrb[62].mxu1  ;;  %v2431_v47 = vpack.c.bf16 %v2413_v7, %v2412_v45 }
 0x212   : > { %v6338_v5 = vadd.f32 %v6166_v58, %v1045_v6  ;;  %5087 = vmatmul.mubr.bf16.gmra.mrb[140].mxu0 %v2429_v39  ;;  %v1867_v52 = vpop.f32.mrb[63].mxu1  ;;  %v2287_v6 = vpack.c.bf16 %v2269_v0, %v2268_v8 }
 0x213   : > { %5090 = vmatprep.mubr.bf16.mxu0 %v2430_v1 }
 0x214   : > { %2858 = vmatmul.mubr.bf16.gmra.mrb[168].mxu1 %v6218_v25 }
 0x215   : > { %v1049_v57 = vpop.f32.mrb[48].mxu0  ;;  %2865 = vmatprep.mubr.bf16.mxu1 %v2359_v43 }
 0x216   : > { %v1050_v14 = vadd.f32 %v6192_v9, %v1049_v57  ;;  %v1051_v22 = vpop.f32.mrb[49].mxu0 }
 0x217   : > { %v1052_v30 = vpop.f32.mrb[50].mxu0  ;;  %v6342_v15 = vpop.f32.mrb[64].mxu1 }
 0x218   : > { %v6345_v58 = vadd.f32 %v6183_v17, %v1050_v14  ;;  %v1053_v39 = vadd.f32 %v6192_v9, %v1052_v30  ;;  %v1054_v54 = vpop.f32.mrb[51].mxu0  ;;  %v1872_v1 = vpop.f32.mrb[65].mxu1 }
 0x219   : > { %v6348_v25 = vpop.f32.mrb[66].mxu1 }
 0x21a   : > { %8643 = vst [vmem:[#allocation29_spill] sm:$0xff] %v6345_v58  ;;  %v6351_v43 = vadd.f32 %v6188_v26, %v1053_v39  ;;  %5091 = vmatmul.mubr.bf16.gmra.mrb[144].mxu0 %v2431_v47  ;;  %v1875_v52 = vpop.f32.mrb[67].mxu1 }
 0x21c   : > { %8644 = vst [vmem:[#allocation30_spill] sm:$0xff] %v6351_v43  ;;  %2866 = vmatmul.mubr.bf16.gmra.mrb[172].mxu1 %v2287_v6 }
 0x21d   : > { %v1057_v45 = vpop.f32.mrb[52].mxu0 }
 0x21e   : > { %v1058_v7 = vadd.f32 %v6192_v9, %v1057_v45  ;;  %v1059_v57 = vpop.f32.mrb[53].mxu0 }
 0x21f   : > { %v1060_v22 = vpop.f32.mrb[54].mxu0  ;;  %v6354_v17 = vpop.f32.mrb[68].mxu1 }
 0x220   : > { %v6357_v14 = vadd.f32 %v6179_v21, %v1058_v7  ;;  %v1061_v8 = vadd.f32 %v6192_v9, %v1060_v22  ;;  %v1062_v0 = vpop.f32.mrb[55].mxu0  ;;  %v1880_v30 = vpop.f32.mrb[69].mxu1 }
 0x221   : > { %v6360_v54 = vpop.f32.mrb[70].mxu1 }
 0x222   : > { %8645 = vst [vmem:[#allocation31_spill] sm:$0xff] %v6357_v14  ;;  %v6363_v26 = vadd.f32 %v6185_v13, %v1061_v8  ;;  %v1883_v47 = vpop.f32.mrb[71].mxu1 }
 0x224   : > { %8646 = vst [vmem:[#allocation32_spill] sm:$0xff] %v6363_v26 }
 0x225   : > { %v1065_v39 = vpop.f32.mrb[56].mxu0 }
 0x226   : > { %v1066_v1 = vadd.f32 %v6192_v9, %v1065_v39  ;;  %v1067_v6 = vpop.f32.mrb[57].mxu0 }
 0x227   : > { %v1068_v52 = vpop.f32.mrb[58].mxu0  ;;  %v6366_v45 = vpop.f32.mrb[72].mxu1 }
 0x228   : > { %v6369_v21 = vadd.f32 %v6205_v35, %v1066_v1  ;;  %v1069_v7 = vadd.f32 %v6192_v9, %v1068_v52  ;;  %v1070_v57 = vpop.f32.mrb[59].mxu0  ;;  %v1888_v22 = vpop.f32.mrb[73].mxu1 }
 0x229   : > { %v6372_v0 = vpop.f32.mrb[74].mxu1 }
 0x22a   : > { %8647 = vst [vmem:[#allocation33_spill] sm:$0xff] %v6369_v21  ;;  %v6375_v13 = vadd.f32 %v6213_v2, %v1069_v7  ;;  %v1891_v8 = vpop.f32.mrb[75].mxu1 }
 0x22c   : > { %8648 = vst [vmem:[#allocation34_spill] sm:$0xff] %v6375_v13 }
 0x22d   : > { %v1073_v30 = vpop.f32.mrb[60].mxu0 }
 0x22e   : > { %v1074_v47 = vadd.f32 %v6192_v9, %v1073_v30  ;;  %v1075_v39 = vpop.f32.mrb[61].mxu0 }
 0x22f   : > { %v1076_v6 = vpop.f32.mrb[62].mxu0  ;;  %v6378_v43 = vpop.f32.mrb[76].mxu1 }
 0x230   : > { %v6381_v35 = vadd.f32 %v6197_v46, %v1074_v47  ;;  %v1077_v1 = vadd.f32 %v6192_v9, %v1076_v6  ;;  %v1078_v52 = vpop.f32.mrb[63].mxu0  ;;  %v1896_v57 = vpop.f32.mrb[77].mxu1 }
 0x231   : > { %v6384_v22 = vpop.f32.mrb[78].mxu1 }
 0x232   : > { %8649 = vst [vmem:[#allocation35_spill] sm:$0xff] %v6381_v35  ;;  %v6387_v2 = vadd.f32 %v6207_v56, %v1077_v1  ;;  %v1899_v7 = vpop.f32.mrb[79].mxu1 }
 0x234   : > { %8650 = vst [vmem:[#allocation36_spill] sm:$0xff] %v6387_v2 }
 0x235   : > { %v1081_v8 = vpop.f32.mrb[64].mxu0 }
 0x236   : > { %v1082_v30 = vadd.f32 %v6192_v9, %v1081_v8  ;;  %v1083_v39 = vpop.f32.mrb[65].mxu0 }
 0x237   : > { %v1084_v13 = vpop.f32.mrb[66].mxu0  ;;  %v6390_v21 = vpop.f32.mrb[80].mxu1 }
 0x238   : > { %8651 = vst [vmem:[#allocation37_spill] sm:$0xff] %v6390_v21  ;;  %v6393_v46 = vadd.f32 %v6226_v49, %v1082_v30  ;;  %v1085_v47 = vadd.f32 %v6192_v9, %v1084_v13  ;;  %v1086_v6 = vpop.f32.mrb[67].mxu0  ;;  %v1904_v52 = vpop.f32.mrb[81].mxu1 }
 0x239   : > { %v6396_v57 = vpop.f32.mrb[82].mxu1 }
 0x23a   : > { %8652 = vst [vmem:[#allocation38_spill] sm:$0xff] %v6393_v46  ;;  %8653 = vst [vmem:[#allocation39_spill] sm:$0xff] %v6396_v57  ;;  %v6399_v56 = vadd.f32 %v6234_v38, %v1085_v47  ;;  %v1907_v1 = vpop.f32.mrb[83].mxu1 }
 0x23b   : > { %v962_v1 = vadd.f32 %v6192_v9, %v6173_v59 }
 0x23c   : > { %8654 = vst [vmem:[#allocation40_spill] sm:$0xff] %v6399_v56 }
 0x23d   : > { %v1089_v7 = vpop.f32.mrb[68].mxu0 }
 0x23e   : > { %v1090_v8 = vadd.f32 %v6192_v9, %v1089_v7  ;;  %v1091_v39 = vpop.f32.mrb[69].mxu0  ;;  %v954_v7 = vadd.f32 %v6192_v9, %v6154_v48 }
 0x23f   : > { %v1092_v2 = vpop.f32.mrb[70].mxu0  ;;  %v6402_v35 = vpop.f32.mrb[84].mxu1 }
 0x240   : > { %8655 = vst [vmem:[#allocation41_spill] sm:$0xff] %v6402_v35  ;;  %v6405_v49 = vadd.f32 %v6220_v18, %v1090_v8  ;;  %v1093_v13 = vadd.f32 %v6192_v9, %v1092_v2  ;;  %v1094_v30 = vpop.f32.mrb[71].mxu0  ;;  %v1912_v6 = vpop.f32.mrb[85].mxu1  ;;  %v965_v18 = vadd.f32 %v6192_v9, %v6177_v19 }
 0x241   : > { %v6408_v52 = vpop.f32.mrb[86].mxu1  ;;  %v957_v30 = vadd.f32 %v6192_v9, %v6158_v53 }
 0x242   : > { %8656 = vst [vmem:[#allocation42_spill] sm:$0xff] %v6405_v49  ;;  %8657 = vst [vmem:[#allocation43_spill] sm:$0xff] %v6408_v52  ;;  %v6411_v38 = vadd.f32 %v6228_v33, %v1093_v13  ;;  %v1915_v47 = vpop.f32.mrb[87].mxu1  ;;  %v3375_v49 = vlaneseq }
 0x244   : > { %8658 = vst [vmem:[#allocation44_spill] sm:$0xff] %v6411_v38 }
 0x245   : > { %v4956_v39 = vpop.f32.mrb[72].mxu0 }
 0x246   : > { %v1139_v8 = vadd.f32 %v4956_v39, %v962_v1  ;;  %v1130_v2 = vpop.f32.mrb[73].mxu0  ;;  %v6429_v39 = vshrl.u32 %v3375_v49, 7 }
 0x247   : > { %v1131_v6 = vadd.f32 %v1130_v2, %v954_v7  ;;  %v4957_v56 = vpop.f32.mrb[74].mxu0  ;;  %v6421_v33 = vpop.f32.mrb[88].mxu1 }
 0x248   : > { %8659 = vst [vmem:[#allocation45_spill] sm:$0xff] %v6421_v33  ;;  %v1142_v13 = vadd.f32 %v4957_v56, %v965_v18  ;;  %v1133_v47 = vpop.f32.mrb[75].mxu0  ;;  %v1920_v38 = vpop.f32.mrb[89].mxu1  ;;  %v3378_v9 = vadd.s32 16, %v6429_v39  ;;  %v6447_v49 = vadd.s32 8, %v6429_v39  ;;  %v6468_v52 = vadd.s32 32, %v6429_v39 }
 0x249   : > { %v1134_v59 = vadd.f32 %v1133_v47, %v957_v30  ;;  %v6423_v46 = vpop.f32.mrb[90].mxu1  ;;  %v6440_v30 = vmul.u32.u64.low 3817748708, %v6429_v39  ;;  %v6441_v47 = vmul.u32.u64.high 3817748708, %v6429_v39, %v6440_v30  ;;  %v6483_v35 = vadd.s32 56, %v6429_v39 }
 0x24a   : > { %8660 = vst [vmem:[#allocation46_spill] sm:$0xff] %v6423_v46  ;;  %v1923_v48 = vpop.f32.mrb[91].mxu1  ;;  %v6436_v38 = vmul.u32.u64.low 3817748708, %v3378_v9  ;;  %v6437_v2 = vmul.u32.u64.high 3817748708, %v3378_v9, %v6436_v38 }
 0x24b   : > { %v6456_v38 = vmul.u32.u64.low 3817748708, %v6447_v49  ;;  %v6457_v46 = vmul.u32.u64.high 3817748708, %v6447_v49, %v6456_v38 }
 0x24c   : > { %v3440_v30 = vshrl.u32 %v6437_v2, 4 }
 0x24e   : > { %v3441_v57 = vmul.u32 18, %v3440_v30 }
 0x24f   : > { %v6425_v26 = vpop.f32.mrb[92].mxu1 }
 0x250   : > { %8661 = vst [vmem:[#allocation47_spill] sm:$0xff] %v6425_v26  ;;  %v1928_v19 = vpop.f32.mrb[93].mxu1  ;;  %v6464_v26 = vadd.s32 48, %v6429_v39 }
 0x251   : > { %v6427_v1 = vpop.f32.mrb[94].mxu1  ;;  %v6444_v19 = vadd.s32 24, %v6429_v39 }
 0x252   : > { %8662 = vst [vmem:[#allocation48_spill] sm:$0xff] %v6427_v1  ;;  %v1931_v53 = vpop.f32.mrb[95].mxu1 }
 0x257   : > { %v6432_v7 = vpop.f32.mrb[96].mxu1 }
 0x258   : > { %8663 = vst [vmem:[#allocation49_spill] sm:$0xff] %v6432_v7  ;;  %v1936_v56 = vpop.f32.mrb[97].mxu1 }
 0x259   : > { %v6434_v18 = vpop.f32.mrb[98].mxu1  ;;  %v6452_v56 = vmul.u32.u64.low 3817748708, %v6444_v19  ;;  %v6453_v7 = vmul.u32.u64.high 3817748708, %v6444_v19, %v6452_v56 }
 0x25a   : > { %8664 = vst [vmem:[#allocation50_spill] sm:$0xff] %v6434_v18  ;;  %v1939_v48 = vpop.f32.mrb[99].mxu1 }
 0x25b   : > { %v3418_v48 = vshrl.u32 %v6441_v47, 4  ;;  %v3451_v2 = vshrl.u32 %v6453_v7, 4 }
 0x25d   : > { %v3419_v58 = vmul.u32 18, %v3418_v48  ;;  %v3429_v48 = vshrl.u32 %v6457_v46, 4 }
 0x25f   : > { %v6449_v53 = vpop.f32.mrb[100].mxu1 }
 0x260   : > { %8665 = vst [vmem:[#allocation51_spill] sm:$0xff] %v6449_v53  ;;  %v1944_v18 = vpop.f32.mrb[101].mxu1 }
 0x261   : > { %v6459_v1 = vpop.f32.mrb[102].mxu1 }
 0x262   : > { %8666 = vst [vmem:[#allocation52_spill] sm:$0xff] %v6459_v1  ;;  %v1947_v33 = vpop.f32.mrb[103].mxu1 }
 0x263   : > { %v6475_v33 = vmul.u32.u64.low 3817748708, %v6464_v26  ;;  %v6476_v47 = vmul.u32.u64.high 3817748708, %v6464_v26, %v6475_v33 }
 0x264   : > { %v6502_v33 = vadd.s32 40, %v6429_v39 }
 0x265   : > { %v5008_v53 = vpop.f32.mrb[76].mxu0 }
 0x266   : > { %v1992_v56 = vadd.f32 %v5008_v53, %v6251_v20  ;;  %v1983_v18 = vpop.f32.mrb[77].mxu0 }
 0x267   : > { %v1984_v38 = vadd.f32 %v1983_v18, %v6238_v62  ;;  %v5009_v1 = vpop.f32.mrb[78].mxu0  ;;  %v6471_v14 = vpop.f32.mrb[104].mxu1 }
 0x268   : > { %8667 = vst [vmem:[#allocation53_spill] sm:$0xff] %v6471_v14  ;;  %v6478_v21 = vadd.f32 %v1992_v56, %v1139_v8  ;;  %v1995_v30 = vadd.f32 %v5009_v1, %v6257_v60  ;;  %v1986_v20 = vpop.f32.mrb[79].mxu0  ;;  %v2733_v53 = vpop.f32.mrb[105].mxu1  ;;  %v6490_v14 = vsub.s32 %v3378_v9, %v3441_v57  ;;  %v6493_v8 = vsub.s32 %v6429_v39, %v3419_v58 }
 0x269   : > { %v6485_v62 = vadd.f32 %v1984_v38, %v1131_v6  ;;  %v1987_v18 = vadd.f32 %v1986_v20, %v6244_v36  ;;  %v6488_v7 = vpop.f32.mrb[106].mxu1  ;;  %v6498_v1 = vmul.u32.u64.low 3817748708, %v6468_v52  ;;  %v6499_v46 = vmul.u32.u64.high 3817748708, %v6468_v52, %v6498_v1 }
 0x26a   : > { %8668 = vst [vmem:[#allocation54_spill] sm:$0xff] %v6478_v21  ;;  %8670 = vst [vmem:[#allocation56_spill] sm:$0xff] %v6488_v7  ;;  %v6495_v56 = vadd.f32 %v1995_v30, %v1142_v13  ;;  %v2736_v60 = vpop.f32.mrb[107].mxu1  ;;  %v3452_v36 = vmul.u32 18, %v3451_v2  ;;  %v6507_v38 = vadd.s32 80, %v6429_v39  ;;  %v3430_v57 = vmul.u32 18, %v3429_v48 }
 0x26b   : > { %8669 = vst [vmem:[#allocation55_spill] sm:$0xff] %v6485_v62  ;;  %v6504_v6 = vadd.f32 %v1987_v18, %v1134_v59  ;;  %v6510_v58 = vmul.u32.u64.low 3817748708, %v6483_v35  ;;  %v6511_v9 = vmul.u32.u64.high 3817748708, %v6483_v35, %v6510_v58  ;;  %vm3810_vm0 = vcmp.ne.s32.totalorder %v6490_v14, 0 }
 0x26c   : > { %8671 = vst [vmem:[#allocation57_spill] sm:$0xff] %v6495_v56  ;;  %vm3846_vm1 = vcmp.lt.s32.totalorder %v6490_v14, 0  ;;  %v6516_v30 = vadd.s32 18, %v6490_v14  ;;  %vm3808_vm2 = vcmp.ne.s32.totalorder %v6493_v8, 0  ;;  %vm3844_vm3 = vcmp.lt.s32.totalorder %v6493_v8, 0 }
 0x26d   : > { %8672 = vst [vmem:[#allocation58_spill] sm:$0xff] %v6504_v6  ;;  %v5012_v13 = vpop.f32.mrb[80].mxu0  ;;  %v6522_v20 = vmul.u32.u64.low 3817748708, %v6502_v33  ;;  %v6523_v53 = vmul.u32.u64.high 3817748708, %v6502_v33, %v6522_v20  ;;  %v3484_v1 = vshrl.u32 %v6476_v47, 4  ;;  %vm6541_vm4 = vmand %vm3846_vm1, %vm3810_vm0  ;;  %v6546_v47 = vadd.s32 18, %v6493_v8 }
 0x26e   : > { %v2008_v59 = vadd.f32 %v5012_v13, %v6277_v24  ;;  %v1999_v2 = vpop.f32.mrb[81].mxu0  ;;  %v6530_v58 = vmul.u32.u64.low 3817748708, %v6507_v38  ;;  %v6531_v6 = vmul.u32.u64.high 3817748708, %v6507_v38, %v6530_v58  ;;  %vm6561_vm5 = vmand %vm3844_vm3, %vm3808_vm2  ;;  %v6566_v20 = vsub.s32 %v6444_v19, %v3452_v36 }
 0x26f   : > { %v2000_v48 = vadd.f32 %v1999_v2, %v6264_v23  ;;  %v5013_v18 = vpop.f32.mrb[82].mxu0  ;;  %v6526_v60 = vpop.f32.mrb[108].mxu1  ;;  %v6549_v2 = vadd.s32 64, %v6429_v39  ;;  %v3485_v36 = vmul.u32 18, %v3484_v1  ;;  %v8859_v23 = vmov 0 }
 0x270   : > { %v6534_v24 = vadd.f32 %v2008_v59, %v6223_v31  ;;  %v2011_v13 = vadd.f32 %v5013_v18, %v6283_v16  ;;  %v2002_v56 = vpop.f32.mrb[83].mxu0  ;;  %v2741_v7 = vpop.f32.mrb[109].mxu1  ;;  %v6569_v18 = vsub.s32 %v6447_v49, %v3430_v57  ;;  %v3495_v49 = vshrl.u32 %v6511_v9, 4 }
 0x271   : > { %v6552_v31 = vadd.f32 %v2000_v48, %v6202_v32  ;;  %v2003_v16 = vadd.f32 %v2002_v56, %v6270_v4  ;;  %v6555_v7 = vpop.f32.mrb[110].mxu1  ;;  %v3462_v56 = vshrl.u32 %v6499_v46, 4  ;;  %v6576_v48 = vadd.s32 88, %v6429_v39 }
 0x272   : > { %8673 = vst [vmem:[#allocation59_spill] sm:$0xff] %v6534_v24  ;;  %8677 = vst [vmem:[#allocation61_spill] sm:$0xff] %v6555_v7  ;;  %v6572_v32 = vadd.f32 %v2011_v13, %v6231_v44  ;;  %v2744_v4 = vpop.f32.mrb[111].mxu1  ;;  %v6591_v46 = vmul.u32.u64.low 3817748708, %v6549_v2  ;;  %v6592_v57 = vmul.u32.u64.high 3817748708, %v6549_v2, %v6591_v46  ;;  %vm3811_vm6 = vcmp.ne.s32.totalorder %v6566_v20, 0 }
 0x273   : > { %8676 = vst [vmem:[#allocation60_spill] sm:$0xff] %v6552_v31  ;;  %v6579_v58 = vadd.f32 %v2003_v16, %v6210_v63  ;;  %vm3847_vm7 = vcmp.lt.s32.totalorder %v6566_v20, 0  ;;  %v6597_v63 = vadd.s32 18, %v6566_v20  ;;  %vm3809_vm8 = vcmp.ne.s32.totalorder %v6569_v18, 0 }
 0x274   : > { %8680 = vst [vmem:[#allocation62_spill] sm:$0xff] %v6572_v32  ;;  %v3463_v4 = vmul.u32 18, %v3462_v56  ;;  %v6602_v9 = vmul.u32.u64.low 3817748708, %v6576_v48  ;;  %v6603_v19 = vmul.u32.u64.high 3817748708, %v6576_v48, %v6602_v9  ;;  %vm3845_vm9 = vcmp.lt.s32.totalorder %v6569_v18, 0  ;;  %vm6649_vm10 = vmand %vm3847_vm7, %vm3811_vm6 }
 0x275   : > { %8681 = vst [vmem:[#allocation63_spill] sm:$0xff] %v6579_v58  ;;  %v5016_v13 = vpop.f32.mrb[84].mxu0  ;;  %v6610_v32 = vsub.s32 %v6464_v26, %v3485_v36  ;;  %v3473_v31 = vshrl.u32 %v6523_v53, 4  ;;  %v3496_v9 = vmul.u32 18, %v3495_v49  ;;  %v6625_v26 = vadd.s32 72, %v6429_v39  ;;  %v8687_v53 = vld [vmem:[#allocation23_spill] sm:$0xff]  ;;  %vm6662_vm13 = vmand %vm3845_vm9, %vm3809_vm8 }
 0x276   : > { %v2024_v1 = vadd.f32 %v5016_v13, %v6303_v61  ;;  %v2015_v16 = vpop.f32.mrb[85].mxu0  ;;  %v6634_v36 = vadd.s32 18, %v6569_v18  ;;  %v8691_v49 = vmov 0 }
 0x277   : > { %v2016_v46 = vadd.f32 %v2015_v16, %v6290_v3  ;;  %v5017_v44 = vpop.f32.mrb[86].mxu0  ;;  %v6606_v58 = vpop.f32.mrb[112].mxu1  ;;  %8683 = vst [vmem:[#allocation65_spill] sm:$0xff] %v6610_v32  ;;  %v3528_v3 = vshrl.u32 %v6531_v6, 4  ;;  %v8689_v6 = vld [vmem:[#allocation22_spill] sm:$0xff]  ;;  %v8692_v49 = vsel %vm6649_vm10, 4294967295, %v8691_v49 }
 0x278   : > { %8682 = vst [vmem:[#allocation64_spill] sm:$0xff] %v6606_v58  ;;  %v6614_v61 = vadd.f32 %v2024_v1, %v6254_v27  ;;  %v2027_v56 = vadd.f32 %v5017_v44, %v6309_v34  ;;  %v2018_v13 = vpop.f32.mrb[87].mxu0  ;;  %v2749_v24 = vpop.f32.mrb[113].mxu1  ;;  %v6628_v27 = vadd.s32 112, %v6429_v39  ;;  %vm3814_vm11 = vcmp.ne.s32.totalorder %v6610_v32, 0 }
 0x279   : > { %v6619_v16 = vadd.f32 %v2016_v46, %v6241_v29  ;;  %v2019_v58 = vadd.f32 %v2018_v13, %v6296_v12  ;;  %v6622_v62 = vpop.f32.mrb[114].mxu1  ;;  %v6637_v29 = vsub.s32 %v6468_v52, %v3463_v4  ;;  %v6640_v12 = vadd.s32 96, %v6429_v39 }
 0x27a   : > { %8684 = vst [vmem:[#allocation66_spill] sm:$0xff] %v6614_v61  ;;  %8686 = vst [vmem:[#allocation68_spill] sm:$0xff] %v6622_v62  ;;  %v6631_v34 = vadd.f32 %v2027_v56, %v8687_v53  ;;  %v2752_v24 = vpop.f32.mrb[115].mxu1  ;;  %vm3850_vm12 = vcmp.lt.s32.totalorder %v6610_v32, 0  ;;  %v6656_v52 = vadd.s32 18, %v6610_v32  ;;  %v6667_v1 = vsub.s32 %v6483_v35, %v3496_v9 }
 0x27b   : > { %8685 = vst [vmem:[#allocation67_spill] sm:$0xff] %v6619_v16  ;;  %v6643_v44 = vadd.f32 %v2019_v58, %v8689_v6  ;;  %v3474_v4 = vmul.u32 18, %v3473_v31  ;;  %v3529_v46 = vmul.u32 18, %v3528_v3  ;;  %v3506_v56 = vshrl.u32 %v6592_v57, 4  ;;  %vm6699_vm14 = vmand %vm3850_vm12, %vm3814_vm11 }
 0x27c   : > { %8688 = vst [vmem:[#allocation23_spill] sm:$0xff] %v6631_v34  ;;  %8693 = vst [vmem:[#allocation69_spill] sm:$0xff] %v6656_v52  ;;  %v6671_v53 = vmul.u32.u64.low 3817748708, %v6625_v26  ;;  %v6672_v24 = vmul.u32.u64.high 3817748708, %v6625_v26, %v6671_v53  ;;  %v3539_v61 = vshrl.u32 %v6603_v19, 4  ;;  %v8698_v19 = vmov 0 }
 0x27d   : > { %8690 = vst [vmem:[#allocation22_spill] sm:$0xff] %v6643_v44  ;;  %8696 = vst [vmem:[#allocation70_spill] sm:$0xff] %v6667_v1  ;;  %v5020_v13 = vpop.f32.mrb[88].mxu0  ;;  %v6675_v6 = vmul.u32.u64.low 3817748708, %v6628_v27  ;;  %v6676_v44 = vmul.u32.u64.high 3817748708, %v6628_v27, %v6675_v6  ;;  %v8699_v19 = vsel %vm6699_vm14, 4294967295, %v8698_v19  ;;  %v6711_v53 = vsub.s32 %v6502_v33, %v3474_v4 }
 0x27e   : > { %v2040_v34 = vadd.f32 %v5020_v13, %v6329_v10  ;;  %v2031_v16 = vpop.f32.mrb[89].mxu0  ;;  %v6681_v35 = vmul.u32.u64.low 3817748708, %v6640_v12  ;;  %v6682_v31 = vmul.u32.u64.high 3817748708, %v6640_v12, %v6681_v35  ;;  %8700 = vst [vmem:[#allocation72_spill] sm:$0xff] %v8699_v19  ;;  %v3507_v10 = vmul.u32 18, %v3506_v56  ;;  %v8709_v4 = vld [vmem:[#allocation24_spill] sm:$0xff] }
 0x27f   : > { %v2032_v57 = vadd.f32 %v2031_v16, %v6316_v42  ;;  %v5021_v9 = vpop.f32.mrb[90].mxu0  ;;  %v6685_v3 = vpop.f32.mrb[116].mxu1  ;;  %v6704_v42 = vadd.s32 120, %v6429_v39  ;;  %8702 = vst [vmem:[#allocation74_spill] sm:$0xff] %v6711_v53  ;;  %v6720_v21 = vadd.s32 18, %v6637_v29  ;;  %vm3812_vm15 = vcmp.ne.s32.totalorder %v6637_v29, 0 }
 0x280   : > { %8697 = vst [vmem:[#allocation71_spill] sm:$0xff] %v6685_v3  ;;  %v6707_v16 = vadd.f32 %v2040_v34, %v6280_v37  ;;  %v2043_v13 = vadd.f32 %v5021_v9, %v6335_v41  ;;  %v2034_v6 = vpop.f32.mrb[91].mxu0  ;;  %v2757_v35 = vpop.f32.mrb[117].mxu1  ;;  %v6723_v37 = vsub.s32 %v6507_v38, %v3529_v46  ;;  %v8706_v41 = vld [vmem:[#allocation25_spill] sm:$0xff]  ;;  %vm3848_vm0 = vcmp.lt.s32.totalorder %v6637_v29, 0 }
 0x281   : > { %v6714_v62 = vadd.f32 %v2032_v57, %v6267_v11  ;;  %v2035_v3 = vadd.f32 %v2034_v6, %v6322_v28  ;;  %v6717_v7 = vpop.f32.mrb[118].mxu1  ;;  %v6735_v28 = vadd.s32 18, %v6667_v1  ;;  %v3540_v33 = vmul.u32 18, %v3539_v61  ;;  %vm6820_vm11 = vmand %vm3848_vm0, %vm3812_vm15 }
 0x282   : > { %8701 = vst [vmem:[#allocation73_spill] sm:$0xff] %v6707_v16  ;;  %8704 = vst [vmem:[#allocation76_spill] sm:$0xff] %v6717_v7  ;;  %v6726_v34 = vadd.f32 %v2043_v13, %v8706_v41  ;;  %v2760_v9 = vpop.f32.mrb[119].mxu1  ;;  %vm3815_vm1 = vcmp.ne.s32.totalorder %v6667_v1, 0  ;;  %vm3851_vm2 = vcmp.lt.s32.totalorder %v6667_v1, 0  ;;  %v6747_v57 = vadd.s32 104, %v6429_v39 }
 0x283   : > { %8703 = vst [vmem:[#allocation75_spill] sm:$0xff] %v6714_v62  ;;  %8705 = vst [vmem:[#allocation77_spill] sm:$0xff] %v6723_v37  ;;  %v6738_v38 = vadd.f32 %v2035_v3, %v8709_v4  ;;  %v6743_v46 = vmul.u32.u64.low 3817748708, %v6704_v42  ;;  %v6744_v56 = vmul.u32.u64.high 3817748708, %v6704_v42, %v6743_v46  ;;  %vm3813_vm3 = vcmp.ne.s32.totalorder %v6711_v53, 0 }
 0x284   : > { %8707 = vst [vmem:[#allocation25_spill] sm:$0xff] %v6726_v34  ;;  %8708 = vst [vmem:[#allocation78_spill] sm:$0xff] %v6735_v28  ;;  %vm3849_vm6 = vcmp.lt.s32.totalorder %v6711_v53, 0  ;;  %v6752_v61 = vadd.s32 18, %v6711_v53  ;;  %v6755_v3 = vsub.s32 %v6549_v2, %v3507_v10  ;;  %vm3818_vm7 = vcmp.ne.s32.totalorder %v6723_v37, 0 }
 0x285   : > { %8710 = vst [vmem:[#allocation24_spill] sm:$0xff] %v6738_v38  ;;  %v5024_v13 = vpop.f32.mrb[92].mxu0  ;;  %vm3854_vm8 = vcmp.lt.s32.totalorder %v6723_v37, 0  ;;  %v3517_v6 = vshrl.u32 %v6672_v24, 4  ;;  %v3572_v35 = vshrl.u32 %v6676_v44, 4  ;;  %v6763_v4 = vadd.s32 18, %v6723_v37  ;;  %vm6839_vm15 = vmand %vm3851_vm2, %vm3815_vm1 }
 0x286   : > { %8711 = vst [vmem:[#allocation79_spill] sm:$0xff] %v6752_v61  ;;  %8712 = vst [vmem:[#allocation80_spill] sm:$0xff] %v6755_v3  ;;  %v2056_v41 = vadd.f32 %v5024_v13, %v6354_v17  ;;  %v2047_v9 = vpop.f32.mrb[93].mxu0  ;;  %v3550_v46 = vshrl.u32 %v6682_v31, 4  ;;  %v6767_v2 = vadd.s32 144, %v6429_v39  ;;  %v6773_v24 = vsub.s32 %v6576_v48, %v3540_v33  ;;  %v8756_v37 = vld [vmem:[#allocation43_spill] sm:$0xff] }
 0x287   : > { %8713 = vst [vmem:[#allocation81_spill] sm:$0xff] %v6763_v4  ;;  %v2048_v10 = vadd.f32 %v2047_v9, %v6342_v15  ;;  %v5025_v11 = vpop.f32.mrb[94].mxu0  ;;  %v6770_v38 = vpop.f32.mrb[120].mxu1  ;;  %v6776_v44 = vmul.u32.u64.low 3817748708, %v6747_v57  ;;  %v6777_v17 = vmul.u32.u64.high 3817748708, %v6747_v57, %v6776_v44  ;;  %v6785_v15 = vadd.s32 128, %v6429_v39  ;;  %vm6859_vm0 = vmand %vm3849_vm6, %vm3813_vm3 }
 0x288   : > { %8714 = vst [vmem:[#allocation82_spill] sm:$0xff] %v6770_v38  ;;  %8715 = vst [vmem:[#allocation83_spill] sm:$0xff] %v6773_v24  ;;  %v6780_v13 = vadd.f32 %v2056_v41, %v6306_v51  ;;  %v2059_v31 = vadd.f32 %v5025_v11, %v6360_v54  ;;  %v2050_v34 = vpop.f32.mrb[95].mxu0  ;;  %v2765_v62 = vpop.f32.mrb[121].mxu1  ;;  %v3518_v44 = vmul.u32 18, %v3517_v6  ;;  %v3573_v16 = vmul.u32 18, %v3572_v35 }
 0x289   : > { %v6788_v9 = vadd.f32 %v2048_v10, %v6293_v40  ;;  %v2051_v48 = vadd.f32 %v2050_v34, %v6348_v25  ;;  %v6791_v33 = vpop.f32.mrb[122].mxu1  ;;  %v8719_v51 = vld [vmem:[#allocation27_spill] sm:$0xff]  ;;  %v3551_v11 = vmul.u32 18, %v3550_v46  ;;  %v8721_v38 = vld [vmem:[#allocation26_spill] sm:$0xff]  ;;  %v6805_v40 = vadd.s32 18, %v6755_v3  ;;  %vm6875_vm1 = vmand %vm3854_vm8, %vm3818_vm7 }
 0x28a   : > { %8716 = vst [vmem:[#allocation84_spill] sm:$0xff] %v6780_v13  ;;  %8718 = vst [vmem:[#allocation86_spill] sm:$0xff] %v6791_v33  ;;  %v6794_v41 = vadd.f32 %v2059_v31, %v8719_v51  ;;  %v2768_v54 = vpop.f32.mrb[123].mxu1  ;;  %v6797_v62 = vmul.u32.u64.low 3817748708, %v6767_v2  ;;  %v6798_v13 = vmul.u32.u64.high 3817748708, %v6767_v2, %v6797_v62  ;;  %v3583_v25 = vshrl.u32 %v6744_v56, 4 }
 0x28b   : > { %8717 = vst [vmem:[#allocation85_spill] sm:$0xff] %v6788_v9  ;;  %v6801_v7 = vadd.f32 %v2051_v48, %v8721_v38  ;;  %8723 = vst [vmem:[#allocation87_spill] sm:$0xff] %v6805_v40  ;;  %vm3819_vm12 = vcmp.ne.s32.totalorder %v6773_v24, 0  ;;  %v6810_v34 = vmul.u32.u64.low 3817748708, %v6785_v15  ;;  %v6811_v6 = vmul.u32.u64.high 3817748708, %v6785_v15, %v6810_v34 }
 0x28c   : > { %8720 = vst [vmem:[#allocation27_spill] sm:$0xff] %v6794_v41  ;;  %v6814_v35 = vadd.s32 152, %v6429_v39  ;;  %v8724_v38 = vmov 0  ;;  %vm3855_vm9 = vcmp.lt.s32.totalorder %v6773_v24, 0  ;;  %v6826_v56 = vadd.s32 18, %v6773_v24 }
 0x28d   : > { %8722 = vst [vmem:[#allocation26_spill] sm:$0xff] %v6801_v7  ;;  %v5028_v46 = vpop.f32.mrb[96].mxu0  ;;  %v8725_v38 = vsel %vm6820_vm11, 4294967295, %v8724_v38  ;;  %v6829_v10 = vsub.s32 %v6625_v26, %v3518_v44  ;;  %v6832_v31 = vadd.s32 136, %v6429_v39  ;;  %v8727_v54 = vmov 0  ;;  %vm6908_vm7 = vmand %vm3855_vm9, %vm3819_vm12 }
 0x28e   : > { %8726 = vst [vmem:[#allocation88_spill] sm:$0xff] %v6826_v56  ;;  %v2072_v48 = vadd.f32 %v5028_v46, %v6378_v43  ;;  %v2063_v51 = vpop.f32.mrb[97].mxu0  ;;  %v8728_v54 = vsel %vm6839_vm15, 4294967295, %v8727_v54  ;;  %v6844_v62 = vsub.s32 %v6628_v27, %v3573_v16  ;;  %v6847_v26 = vsub.s32 %v6640_v12, %v3551_v11 }
 0x28f   : > { %8729 = vst [vmem:[#allocation89_spill] sm:$0xff] %v8728_v54  ;;  %v6850_v44 = vadd.s32 176, %v6429_v39  ;;  %v2064_v43 = vadd.f32 %v2063_v51, %v6366_v45  ;;  %v5029_v34 = vpop.f32.mrb[98].mxu0  ;;  %v6853_v46 = vpop.f32.mrb[124].mxu1  ;;  %v8731_v7 = vmov 0  ;;  %v3584_v27 = vmul.u32 18, %v3583_v25 }
 0x290   : > { %8730 = vst [vmem:[#allocation90_spill] sm:$0xff] %v6853_v46  ;;  %v8732_v7 = vsel %vm6859_vm0, 4294967295, %v8731_v7  ;;  %v3561_v12 = vshrl.u32 %v6777_v17, 4  ;;  %v6865_v16 = vadd.s32 160, %v6429_v39  ;;  %v6868_v11 = vadd.f32 %v2072_v48, %v6332_v50  ;;  %v2066_v51 = vpop.f32.mrb[99].mxu0  ;;  %v2773_v41 = vpop.f32.mrb[125].mxu1 }
 0x291   : > { %8733 = vst [vmem:[#allocation91_spill] sm:$0xff] %v8732_v7  ;;  %v2075_v45 = vadd.f32 %v5029_v34, %v6384_v22  ;;  %v8735_v9 = vmov 0  ;;  %v6880_v17 = vmul.u32.u64.low 3817748708, %v6814_v35  ;;  %v6881_v25 = vmul.u32.u64.high 3817748708, %v6814_v35, %v6880_v17  ;;  %v6887_v22 = vpop.f32.mrb[126].mxu1 }
 0x292   : > { %8734 = vst [vmem:[#allocation92_spill] sm:$0xff] %v6868_v11  ;;  %v8736_v9 = vsel %vm6875_vm1, 4294967295, %v8735_v9  ;;  %v6884_v33 = vadd.f32 %v2064_v43, %v6319_v55  ;;  %v2067_v50 = vadd.f32 %v2066_v51, %v6372_v0  ;;  %8739 = vst [vmem:[#allocation95_spill] sm:$0xff] %v6887_v22  ;;  %vm8740_vm2 = vcmp.ne.s32.totalorder %v6755_v3, 0  ;;  %v2776_v55 = vpop.f32.mrb[127].mxu1  ;;  %v8749_v11 = vld [vmem:[#allocation28_spill] sm:$0xff] }
 0x293   : > { %8737 = vst [vmem:[#allocation93_spill] sm:$0xff] %v8736_v9  ;;  %vm8741_vm3 = vcmp.lt.s32.totalorder %v6755_v3, 0  ;;  %v8742_v41 = vmov 0  ;;  %v6898_v48 = vmul.u32.u64.low 3817748708, %v6832_v31  ;;  %v6899_v34 = vmul.u32.u64.high 3817748708, %v6832_v31, %v6898_v48 }
 0x294   : > { %8738 = vst [vmem:[#allocation94_spill] sm:$0xff] %v6884_v33  ;;  %vm6893_vm6 = vmand %vm8741_vm3, %vm8740_vm2  ;;  %v6902_v17 = vadd.f32 %v2075_v45, %v6338_v5  ;;  %v8746_v0 = vmov 0  ;;  %v3616_v43 = vshrl.u32 %v6798_v13, 4  ;;  %v6918_v48 = vadd.f32 %v2067_v50, %v8749_v11  ;;  %v8752_v13 = vld [vmem:[#allocation37_spill] sm:$0xff] }
 0x295   : > { %v8743_v41 = vsel %vm6893_vm6, 4294967295, %v8742_v41  ;;  %v8747_v0 = vsel %vm6908_vm7, 4294967295, %v8746_v0  ;;  %v6914_v51 = vmul.u32.u64.low 3817748708, %v6850_v44  ;;  %v6915_v33 = vmul.u32.u64.high 3817748708, %v6850_v44, %v6914_v51  ;;  %v5032_v50 = vpop.f32.mrb[100].mxu0 }
 0x296   : > { %8744 = vst [vmem:[#allocation96_spill] sm:$0xff] %v8743_v41  ;;  %8745 = vst [vmem:[#allocation97_spill] sm:$0xff] %v6902_v17  ;;  %v3562_v5 = vmul.u32 18, %v3561_v12  ;;  %v6921_v45 = vmul.u32.u64.low 3817748708, %v6865_v16  ;;  %v6922_v55 = vmul.u32.u64.high 3817748708, %v6865_v16, %v6921_v45  ;;  %v3594_v12 = vshrl.u32 %v6811_v6, 4 }
 0x297   : > { %8748 = vst [vmem:[#allocation98_spill] sm:$0xff] %v8747_v0  ;;  %8750 = vst [vmem:[#allocation28_spill] sm:$0xff] %v6918_v48  ;;  %v6950_v11 = vsub.s32 %v6704_v42, %v3584_v27  ;;  %v8751_v6 = vld [vmem:[#allocation41_spill] sm:$0xff]  ;;  %v2079_v48 = vpop.f32.mrb[101].mxu0  ;;  %vm3817_vm8 = vcmp.ne.s32.totalorder %v6829_v10, 0  ;;  %vm3853_vm9 = vcmp.lt.s32.totalorder %v6829_v10, 0 }
 0x298   : > { %v2088_v17 = vadd.f32 %v5032_v50, %v8751_v6  ;;  %v6956_v51 = vadd.s32 18, %v6829_v10  ;;  %v6959_v45 = vadd.s32 18, %v6844_v62  ;;  %v6962_v22 = vadd.s32 18, %v6847_v26  ;;  %v5033_v42 = vpop.f32.mrb[102].mxu0  ;;  %v6965_v27 = vpop.f32.mrb[128].mxu1  ;;  %v8754_v0 = vld [vmem:[#allocation31_spill] sm:$0xff]  ;;  %vm7053_vm2 = vmand %vm3853_vm9, %vm3817_vm8 }
 0x299   : > { %v2080_v24 = vadd.f32 %v2079_v48, %v8752_v13  ;;  %8753 = vst [vmem:[#allocation41_spill] sm:$0xff] %v6965_v27  ;;  %v6970_v50 = vsub.s32 %v6747_v57, %v3562_v5  ;;  %v3617_v6 = vmul.u32 18, %v3616_v43  ;;  %v6973_v56 = vadd.s32 184, %v6429_v39  ;;  %v2082_v48 = vpop.f32.mrb[103].mxu0  ;;  %v2781_v13 = vpop.f32.mrb[129].mxu1  ;;  %v8757_v57 = vld [vmem:[#allocation29_spill] sm:$0xff] }
 0x29a   : > { %v6976_v46 = vadd.f32 %v2088_v17, %v8754_v0  ;;  %v2091_v4 = vadd.f32 %v5033_v42, %v8756_v37  ;;  %v3595_v27 = vmul.u32 18, %v3594_v12  ;;  %v3627_v9 = vshrl.u32 %v6881_v25, 4  ;;  %v8759_v43 = vld [vmem:[#allocation39_spill] sm:$0xff]  ;;  %v6986_v40 = vpop.f32.mrb[130].mxu1  ;;  %v8761_v0 = vld [vmem:[#allocation32_spill] sm:$0xff] }
 0x29b   : > { %v6983_v5 = vadd.f32 %v2080_v24, %v8757_v57  ;;  %v2083_v3 = vadd.f32 %v2082_v48, %v8759_v43  ;;  %8760 = vst [vmem:[#allocation43_spill] sm:$0xff] %v6986_v40  ;;  %v3605_v37 = vshrl.u32 %v6899_v34, 4  ;;  %v6991_v17 = vadd.s32 168, %v6429_v39  ;;  %v2784_v12 = vpop.f32.mrb[131].mxu1  ;;  %v8763_v48 = vld [vmem:[#allocation30_spill] sm:$0xff] }
 0x29c   : > { %8755 = vst [vmem:[#allocation37_spill] sm:$0xff] %v6976_v46  ;;  %v6994_v42 = vadd.f32 %v2091_v4, %v8761_v0  ;;  %v3660_v24 = vshrl.u32 %v6915_v33, 4  ;;  %v6999_v25 = vadd.s32 208, %v6429_v39  ;;  %v3638_v57 = vshrl.u32 %v6922_v55, 4 }
 0x29d   : > { %8758 = vst [vmem:[#allocation31_spill] sm:$0xff] %v6983_v5  ;;  %v7002_v13 = vadd.f32 %v2083_v3, %v8763_v48  ;;  %v7006_v34 = vmul.u32.u64.low 3817748708, %v6973_v56  ;;  %v7007_v43 = vmul.u32.u64.high 3817748708, %v6973_v56, %v7006_v34  ;;  %v7010_v4 = vadd.s32 18, %v6950_v11  ;;  %v5036_v12 = vpop.f32.mrb[104].mxu0 }
 0x29e   : > { %8762 = vst [vmem:[#allocation29_spill] sm:$0xff] %v6994_v42  ;;  %v7014_v0 = vsub.s32 %v6767_v2, %v3617_v6  ;;  %v3628_v33 = vmul.u32 18, %v3627_v9  ;;  %v7017_v42 = vsub.s32 %v6785_v15, %v3595_v27  ;;  %v3606_v3 = vmul.u32 18, %v3605_v37  ;;  %v2095_v5 = vpop.f32.mrb[105].mxu0  ;;  %v8766_v2 = vld [vmem:[#allocation45_spill] sm:$0xff]  ;;  %v8768_v37 = vld [vmem:[#allocation35_spill] sm:$0xff] }
 0x29f   : > { %8764 = vst [vmem:[#allocation39_spill] sm:$0xff] %v7002_v13  ;;  %v7020_v55 = vmul.u32.u64.low 3817748708, %v6991_v17  ;;  %v7021_v48 = vmul.u32.u64.high 3817748708, %v6991_v17, %v7020_v55  ;;  %v8765_v13 = vld [vmem:[#allocation47_spill] sm:$0xff]  ;;  %v3661_v46 = vmul.u32 18, %v3660_v24  ;;  %v2096_v6 = vadd.f32 %v2095_v5, %v8766_v2  ;;  %v5037_v9 = vpop.f32.mrb[106].mxu0 }
 0x2a0   : > { %v2104_v34 = vadd.f32 %v5036_v12, %v8765_v13  ;;  %v7025_v40 = vmul.u32.u64.low 3817748708, %v6999_v25  ;;  %v7026_v41 = vmul.u32.u64.high 3817748708, %v6999_v25, %v7025_v40  ;;  %v7029_v1 = vpop.f32.mrb[132].mxu1  ;;  %v7033_v15 = vadd.s32 18, %v6970_v50  ;;  %v8770_v13 = vld [vmem:[#allocation48_spill] sm:$0xff]  ;;  %v2098_v12 = vpop.f32.mrb[107].mxu0 }
 0x2a1   : > { %8767 = vst [vmem:[#allocation32_spill] sm:$0xff] %v7029_v1  ;;  %v3639_v27 = vmul.u32 18, %v3638_v57  ;;  %v2107_v24 = vadd.f32 %v5037_v9, %v8770_v13  ;;  %v2789_v28 = vpop.f32.mrb[133].mxu1  ;;  %v7041_v40 = vsub.s32 %v6814_v35, %v3628_v33  ;;  %v8772_v5 = vld [vmem:[#allocation33_spill] sm:$0xff]  ;;  %v8774_v1 = vld [vmem:[#allocation46_spill] sm:$0xff]  ;;  %v8776_v57 = vmov 0 }
 0x2a2   : > { %v7036_v55 = vadd.f32 %v2104_v34, %v8768_v37  ;;  %v7044_v2 = vadd.f32 %v2096_v6, %v8772_v5  ;;  %v2099_v54 = vadd.f32 %v2098_v12, %v8774_v1  ;;  %v7047_v32 = vpop.f32.mrb[134].mxu1  ;;  %v8777_v57 = vsel %vm7053_vm2, 4294967295, %v8776_v57  ;;  %v8778_v35 = vld [vmem:[#allocation36_spill] sm:$0xff]  ;;  %v8802_v5 = vld [vmem:[#allocation51_spill] sm:$0xff] }
 0x2a3   : > { %8771 = vst [vmem:[#allocation47_spill] sm:$0xff] %v7041_v40  ;;  %8775 = vst [vmem:[#allocation35_spill] sm:$0xff] %v7047_v32  ;;  %v7059_v28 = vsub.s32 %v6832_v31, %v3606_v3  ;;  %v7062_v33 = vadd.f32 %v2107_v24, %v8778_v35  ;;  %v2792_v34 = vpop.f32.mrb[135].mxu1  ;;  %vm8780_vm3 = vcmp.ne.s32.totalorder %v6844_v62, 0  ;;  %vm8781_vm7 = vcmp.lt.s32.totalorder %v6844_v62, 0  ;;  %v8785_v3 = vld [vmem:[#allocation34_spill] sm:$0xff] }
 0x2a4   : > { %8769 = vst [vmem:[#allocation30_spill] sm:$0xff] %v7036_v55  ;;  %8773 = vst [vmem:[#allocation45_spill] sm:$0xff] %v7044_v2  ;;  %v7073_v6 = vadd.s32 18, %v7014_v0  ;;  %v7077_v31 = vsub.s32 %v6850_v44, %v3661_v46  ;;  %v7080_v9 = vadd.f32 %v2099_v54, %v8785_v3  ;;  %vm8787_vm9 = vcmp.ne.s32.totalorder %v6847_v26, 0  ;;  %v8813_v32 = vld [vmem:[#allocation42_spill] sm:$0xff] }
 0x2a5   : > { %8779 = vst [vmem:[#allocation48_spill] sm:$0xff] %v7062_v33  ;;  %vm7068_vm1 = vmand %vm8781_vm7, %vm8780_vm3  ;;  %vm8788_vm12 = vcmp.lt.s32.totalorder %v6847_v26, 0  ;;  %v7092_v13 = vsub.s32 %v6865_v16, %v3639_v27  ;;  %v3671_v24 = vshrl.u32 %v7007_v43, 4  ;;  %vm8792_vm3 = vcmp.ne.s32.totalorder %v6950_v11, 0  ;;  %v5040_v16 = vpop.f32.mrb[108].mxu0  ;;  %v8807_v33 = vld [vmem:[#allocation49_spill] sm:$0xff] }
 0x2a6   : > { %8784 = vst [vmem:[#allocation33_spill] sm:$0xff] %v7077_v31  ;;  %8786 = vst [vmem:[#allocation46_spill] sm:$0xff] %v7080_v9  ;;  %vm8793_vm8 = vcmp.lt.s32.totalorder %v6950_v11, 0  ;;  %v7104_v44 = vadd.s32 18, %v7017_v42  ;;  %v7109_v46 = vadd.s32 192, %v6429_v39  ;;  %vm8797_vm7 = vcmp.ne.s32.totalorder %v6970_v50, 0 }
 0x2a7   : > { %vm7086_vm6 = vmand %vm8788_vm12, %vm8787_vm9  ;;  %8791 = vst [vmem:[#allocation36_spill] sm:$0xff] %v7092_v13  ;;  %vm8798_vm14 = vcmp.lt.s32.totalorder %v6970_v50, 0  ;;  %v7120_v27 = vadd.s32 18, %v7041_v40  ;;  %v3649_v12 = vshrl.u32 %v7021_v48, 4  ;;  %v2120_v35 = vadd.f32 %v5040_v16, %v8802_v5  ;;  %v2111_v34 = vpop.f32.mrb[109].mxu0  ;;  %v7138_v55 = vpop.f32.mrb[136].mxu1 }
 0x2a8   : > { %vm7099_vm15 = vmand %vm8793_vm8, %vm8792_vm3  ;;  %8796 = vst [vmem:[#allocation34_spill] sm:$0xff] %v7109_v46  ;;  %vm8803_vm9 = vcmp.ne.s32.totalorder %v7014_v0, 0  ;;  %vm8804_vm12 = vcmp.lt.s32.totalorder %v7014_v0, 0  ;;  %v8805_v3 = vmov 0  ;;  %v3704_v9 = vshrl.u32 %v7026_v41, 4  ;;  %v5041_v48 = vpop.f32.mrb[110].mxu0 }
 0x2a9   : > { %vm7115_vm0 = vmand %vm8798_vm14, %vm8797_vm7  ;;  %8801 = vst [vmem:[#allocation99_spill] sm:$0xff] %v7120_v27  ;;  %v2112_v2 = vadd.f32 %v2111_v34, %v8807_v33  ;;  %vm8809_vm3 = vcmp.ne.s32.totalorder %v7017_v42, 0  ;;  %vm8810_vm8 = vcmp.lt.s32.totalorder %v7017_v42, 0  ;;  %v3672_v5 = vmul.u32 18, %v3671_v24  ;;  %v8815_v33 = vld [vmem:[#allocation52_spill] sm:$0xff]  ;;  %v2114_v52 = vpop.f32.mrb[111].mxu0 }
 0x2aa   : > { %vm7130_vm14 = vmand %vm8804_vm12, %vm8803_vm9  ;;  %8808 = vst [vmem:[#allocation51_spill] sm:$0xff] %v7138_v55  ;;  %v7151_v41 = vadd.f32 %v2120_v35, %v8813_v32  ;;  %v2123_v34 = vadd.f32 %v5041_v48, %v8815_v33  ;;  %v2797_v55 = vpop.f32.mrb[137].mxu1  ;;  %vm8816_vm11 = vcmp.ne.s32.totalorder %v7041_v40, 0  ;;  %vm8817_vm7 = vcmp.lt.s32.totalorder %v7041_v40, 0  ;;  %v8820_v24 = vld [vmem:[#allocation38_spill] sm:$0xff] }
 0x2ab   : > { %v8806_v3 = vsel %vm7130_vm14, 4294967295, %v8805_v3  ;;  %vm7144_vm10 = vmand %vm8810_vm8, %vm8809_vm3  ;;  %v8818_v19 = vmov 0  ;;  %v7163_v53 = vmul.u32.u64.low 3817748708, %v7109_v46  ;;  %v7164_v61 = vmul.u32.u64.high 3817748708, %v7109_v46, %v7163_v53  ;;  %v8822_v32 = vld [vmem:[#allocation50_spill] sm:$0xff]  ;;  %v7170_v48 = vpop.f32.mrb[138].mxu1 }
 0x2ac   : > { %8814 = vst [vmem:[#allocation49_spill] sm:$0xff] %v7151_v41  ;;  %vm7158_vm8 = vmand %vm8817_vm7, %vm8816_vm11  ;;  %v7167_v7 = vadd.f32 %v2112_v2, %v8820_v24  ;;  %v2115_v35 = vadd.f32 %v2114_v52, %v8822_v32  ;;  %vm8824_vm3 = vcmp.ne.s32.totalorder %v7059_v28, 0  ;;  %vm8825_vm9 = vcmp.lt.s32.totalorder %v7059_v28, 0  ;;  %v8828_v53 = vld [vmem:[#allocation44_spill] sm:$0xff]  ;;  %v2800_v2 = vpop.f32.mrb[139].mxu1 }
 0x2ad   : > { %v8819_v19 = vsel %vm7158_vm8, 4294967295, %v8818_v19  ;;  %8823 = vst [vmem:[#allocation52_spill] sm:$0xff] %v7170_v48  ;;  %vm7176_vm12 = vmand %vm8825_vm9, %vm8824_vm3  ;;  %v8826_v55 = vmov 0  ;;  %v7181_v33 = vadd.s32 18, %v7059_v28  ;;  %v3650_v41 = vmul.u32 18, %v3649_v12 }
 0x2ae   : > { %8821 = vst [vmem:[#allocation42_spill] sm:$0xff] %v7167_v7  ;;  %v8827_v55 = vsel %vm7176_vm12, 4294967295, %v8826_v55  ;;  %v7184_v46 = vadd.f32 %v2123_v34, %v8828_v53  ;;  %v8830_v52 = vsel %vm6561_vm5, %v6546_v47, %v6493_v8  ;;  %v8831_v24 = vmov 0 }
 0x2af   : > { %vm7191_vm11 = vcmp.lt.s32.totalorder %v8830_v52, 16  ;;  %v8834_v32 = vsel %vm6662_vm13, %v6634_v36, %v6569_v18  ;;  %v8835_v12 = vmov 0  ;;  %vm8838_vm5 = vcmp.ne.s32.totalorder %v7077_v31, 0  ;;  %v8845_v36 = vld [vmem:[#allocation40_spill] sm:$0xff] }
 0x2b0   : > { %8829 = vst [vmem:[#allocation38_spill] sm:$0xff] %v7184_v46  ;;  %v8832_v24 = vsel %vm7191_vm11, 4294967295, %v8831_v24  ;;  %vm7200_vm7 = vcmp.lt.s32.totalorder %v8834_v32, 16  ;;  %vm8839_vm9 = vcmp.lt.s32.totalorder %v7077_v31, 0  ;;  %v8840_v8 = vmov 0 }
 0x2b1   : > { %8833 = vst [vmem:[#allocation50_spill] sm:$0xff] %v8832_v24  ;;  %v8836_v12 = vsel %vm7200_vm7, 4294967295, %v8835_v12  ;;  %vm7212_vm3 = vmand %vm8839_vm9, %vm8838_vm5  ;;  %v7217_v47 = vadd.s32 18, %v7077_v31  ;;  %v7220_v18 = vadd.s32 18, %v7092_v13  ;;  %v7223_v58 = vadd.f32 %v2115_v35, %v8845_v36 }
 0x2b2   : > { %8837 = vst [vmem:[#allocation44_spill] sm:$0xff] %v8836_v12  ;;  %v8841_v8 = vsel %vm7212_vm3, 4294967295, %v8840_v8  ;;  %vm8847_vm13 = vcmp.ne.s32.totalorder %v7092_v13, 0  ;;  %vm8848_vm5 = vcmp.lt.s32.totalorder %v7092_v13, 0  ;;  %v8849_v53 = vmov 0  ;;  %v8902_v13 = vld [vmem:[#allocation89_spill] sm:$0xff] }
 0x2b3   : > { %8842 = vst [vmem:[#allocation100_spill] sm:$0xff] %v8841_v8  ;;  %8843 = vst [vmem:[#allocation101_spill] sm:$0xff] %v7217_v47  ;;  %v7238_v2 = vsub.s32 %v6973_v56, %v3672_v5  ;;  %v3705_v52 = vmul.u32 18, %v3704_v9  ;;  %v8853_v35 = vsel %vm6541_vm4, %v6516_v30, %v6490_v14  ;;  %v8854_v32 = vmov 0  ;;  %v5060_v30 = vpop.f32.mrb[112].mxu0  ;;  %v8864_v5 = vld [vmem:[#allocation54_spill] sm:$0xff] }
 0x2b4   : > { %8844 = vst [vmem:[#allocation102_spill] sm:$0xff] %v7220_v18  ;;  %8846 = vst [vmem:[#allocation40_spill] sm:$0xff] %v7223_v58  ;;  %vm7245_vm2 = vcmp.lt.s32.totalorder %v8853_v35, 16  ;;  %v7278_v56 = vsub.s32 %v6991_v17, %v3650_v41  ;;  %v2917_v14 = vadd.f32 %v5060_v30, %v6526_v60  ;;  %v2908_v34 = vpop.f32.mrb[113].mxu0  ;;  %vm8857_vm4 = vnez %v8692_v49  ;;  %v8862_v49 = vld [vmem:[#allocation53_spill] sm:$0xff]  ;;  %v8881_v58 = vld [vmem:[#allocation79_spill] sm:$0xff] }
 0x2b5   : > { %vm7233_vm9 = vmand %vm8848_vm5, %vm8847_vm13  ;;  %8852 = vst [vmem:[#allocation104_spill] sm:$0xff] %v7238_v2  ;;  %v8855_v32 = vsel %vm7245_vm2, 4294967295, %v8854_v32  ;;  %v8858_v9 = vsel %vm8857_vm4, %v6597_v63, %v6566_v20  ;;  %v7299_v17 = vadd.s32 200, %v6429_v39  ;;  %v2909_v41 = vadd.f32 %v2908_v34, %v8862_v49  ;;  %v5061_v20 = vpop.f32.mrb[114].mxu0  ;;  %v7302_v63 = vpop.f32.mrb[140].mxu1  ;;  %v8866_v60 = vld [vmem:[#allocation61_spill] sm:$0xff] }
 0x2b6   : > { %v8850_v53 = vsel %vm7233_vm9, 4294967295, %v8849_v53  ;;  %8856 = vst [vmem:[#allocation105_spill] sm:$0xff] %v8855_v32  ;;  %vm7286_vm13 = vcmp.lt.s32.totalorder %v8858_v9, 16  ;;  %v7306_v30 = vsub.s32 %v6999_v25, %v3705_v52  ;;  %v7309_v9 = vadd.s32 216, %v6429_v39  ;;  %v2911_v59 = vpop.f32.mrb[115].mxu0  ;;  %v2805_v46 = vpop.f32.mrb[141].mxu1 }
 0x2b7   : > { %8851 = vst [vmem:[#allocation103_spill] sm:$0xff] %v8850_v53  ;;  %v8860_v23 = vsel %vm7286_vm13, 4294967295, %v8859_v23  ;;  %v7312_v35 = vadd.f32 %v2917_v14, %v8864_v5  ;;  %v2920_v36 = vadd.f32 %v5061_v20, %v8866_v60  ;;  %vm8867_vm4 = vnez %v8725_v38  ;;  %v8872_v52 = vld [vmem:[#allocation55_spill] sm:$0xff]  ;;  %v8874_v5 = vld [vmem:[#allocation56_spill] sm:$0xff]  ;;  %v7330_v20 = vpop.f32.mrb[142].mxu1  ;;  %v8905_v18 = vld [vmem:[#allocation70_spill] sm:$0xff] }
 0x2b8   : > { %8861 = vst [vmem:[#allocation106_spill] sm:$0xff] %v8860_v23  ;;  %8863 = vst [vmem:[#allocation53_spill] sm:$0xff] %v7306_v30  ;;  %v8868_v34 = vsel %vm8867_vm4, %v6720_v21, %v6637_v29  ;;  %v8869_v49 = vmov 0  ;;  %vm3867_vm5 = vcmp.lt.s32.totalorder %v7238_v2, 0  ;;  %v3682_v25 = vshrl.u32 %v7164_v61, 4  ;;  %v8877_v21 = vld [vmem:[#allocation57_spill] sm:$0xff] }
 0x2b9   : > { %8865 = vst [vmem:[#allocation54_spill] sm:$0xff] %v7312_v35  ;;  %vm7320_vm3 = vcmp.lt.s32.totalorder %v8868_v34, 16  ;;  %v7327_v14 = vadd.f32 %v2909_v41, %v8872_v52  ;;  %v2912_v60 = vadd.f32 %v2911_v59, %v8874_v5  ;;  %8875 = vst [vmem:[#allocation56_spill] sm:$0xff] %v7330_v20  ;;  %v7333_v38 = vadd.s32 18, %v7238_v2  ;;  %v2808_v46 = vpop.f32.mrb[143].mxu1  ;;  %v8879_v34 = vld [vmem:[#allocation91_spill] sm:$0xff] }
 0x2ba   : > { %v8870_v49 = vsel %vm7320_vm3, 4294967295, %v8869_v49  ;;  %v7337_v29 = vadd.f32 %v2920_v36, %v8877_v21  ;;  %vm8880_vm9 = vnez %v8879_v34  ;;  %v8882_v61 = vld [vmem:[#allocation74_spill] sm:$0xff]  ;;  %v8884_v41 = vmov 0  ;;  %v8917_v32 = vld [vmem:[#allocation59_spill] sm:$0xff] }
 0x2bb   : > { %8871 = vst [vmem:[#allocation61_spill] sm:$0xff] %v8870_v49  ;;  %8873 = vst [vmem:[#allocation55_spill] sm:$0xff] %v7327_v14  ;;  %v8883_v7 = vsel %vm8880_vm9, %v8881_v58, %v8882_v61  ;;  %v7350_v59 = vmul.u32.u64.low 3817748708, %v7299_v17  ;;  %v7351_v52 = vmul.u32.u64.high 3817748708, %v7299_v17, %v7350_v59  ;;  %v8887_v5 = vld [vmem:[#allocation58_spill] sm:$0xff]  ;;  %vm8889_vm4 = vcmp.ne.s32.totalorder %v7238_v2, 0 }
 0x2bc   : > { %8876 = vst [vmem:[#allocation107_spill] sm:$0xff] %v7333_v38  ;;  %8878 = vst [vmem:[#allocation57_spill] sm:$0xff] %v7337_v29  ;;  %vm7344_vm8 = vcmp.lt.s32.totalorder %v8883_v7, 16  ;;  %v7354_v36 = vadd.f32 %v2912_v60, %v8887_v5  ;;  %v8890_v21 = vmov 0  ;;  %v7367_v46 = vadd.s32 240, %v6429_v39  ;;  %v8893_v61 = vld [vmem:[#allocation72_spill] sm:$0xff] }
 0x2bd   : > { %v8885_v41 = vsel %vm7344_vm8, 4294967295, %v8884_v41  ;;  %vm7358_vm12 = vmand %vm3867_vm5, %vm8889_vm4  ;;  %v7363_v7 = vmul.u32.u64.low 3817748708, %v7309_v9  ;;  %v7364_v58 = vmul.u32.u64.high 3817748708, %v7309_v9, %v7363_v7  ;;  %v4744_v34 = vpack.c.bf16 %v7337_v29, %v7312_v35  ;;  %v8895_v60 = vld [vmem:[#allocation69_spill] sm:$0xff]  ;;  %v8920_v2 = vld [vmem:[#allocation96_spill] sm:$0xff] }
 0x2be   : > { %8886 = vst [vmem:[#allocation91_spill] sm:$0xff] %v8885_v41  ;;  %8888 = vst [vmem:[#allocation79_spill] sm:$0xff] %v7354_v36  ;;  %v8891_v21 = vsel %vm7358_vm12, 4294967295, %v8890_v21  ;;  %vm8894_vm9 = vnez %v8893_v61  ;;  %v8896_v59 = vld [vmem:[#allocation65_spill] sm:$0xff]  ;;  %v8898_v31 = vmov 0  ;;  %v7381_v47 = vadd.s32 18, %v7278_v56 }
 0x2bf   : > { %8892 = vst [vmem:[#allocation74_spill] sm:$0xff] %v8891_v21  ;;  %v8897_v5 = vsel %vm8894_vm9, %v8895_v60, %v8896_v59  ;;  %v3683_v7 = vmul.u32 18, %v3682_v25  ;;  %v4096_v8 = vsel %vm7191_vm11, %v7327_v14, 0.0  ;;  %v4739_v61 = vpack.c.bf16 %v7354_v36, %v7327_v14  ;;  %v5064_v59 = vpop.f32.mrb[116].mxu0  ;;  %4843 = vst [vmem:[%s7395_s27 + $0x8] sm:$0xff] %v4744_v34   ;;  %v8904_v14 = vld [vmem:[#allocation78_spill] sm:$0xff] }
 0x2c0   : > { %vm7376_vm14 = vcmp.lt.s32.totalorder %v8897_v5, 16  ;;  %v4097_v60 = vsel %vm7200_vm7, %v7354_v36, 0.0  ;;  %v8901_v5 = vld [vmem:[#allocation71_spill] sm:$0xff]  ;;  %v2924_v48 = vpop.f32.mrb[117].mxu0  ;;  %vm8903_vm9 = vnez %v8902_v13  ;;  %v8907_v12 = vmov 0  ;;  %v8911_v13 = vld [vmem:[#allocation64_spill] sm:$0xff] }
 0x2c1   : > { %v8899_v31 = vsel %vm7376_vm14, 4294967295, %v8898_v31  ;;  %v4132_v25 = vadd.f32 %v4097_v60, %v4096_v8  ;;  %v2933_v24 = vadd.f32 %v5064_v59, %v8901_v5  ;;  %v8906_v53 = vsel %vm8903_vm9, %v8904_v14, %v8905_v18  ;;  %4740 = vst [vmem:[%s7395_s27] sm:$0xff] %v4739_v61   ;;  %v5065_v18 = vpop.f32.mrb[118].mxu0  ;;  %v8922_v38 = vld [vmem:[#allocation87_spill] sm:$0xff]  ;;  %v8923_v21 = vld [vmem:[#allocation80_spill] sm:$0xff] }
 0x2c2   : > { %8900 = vst [vmem:[#allocation58_spill] sm:$0xff] %v8899_v31  ;;  %vm7404_vm5 = vcmp.lt.s32.totalorder %v8906_v53, 16  ;;  %v7413_v34 = vadd.s32 18, %v7306_v30  ;;  %v4098_v8 = vsel %vm7245_vm2, %v7312_v35, 0.0  ;;  %v2925_v60 = vadd.f32 %v2924_v48, %v8911_v13  ;;  %v7420_v53 = vpop.f32.mrb[144].mxu1  ;;  %v8919_v48 = vld [vmem:[#allocation76_spill] sm:$0xff] }
 0x2c3   : > { %v8908_v12 = vsel %vm7404_vm5, 4294967295, %v8907_v12  ;;  %8912 = vst [vmem:[#allocation65_spill] sm:$0xff] %v7420_v53  ;;  %vm8913_vm9 = vcmp.ne.s32.totalorder %v7278_v56, 0  ;;  %vm8914_vm4 = vcmp.lt.s32.totalorder %v7278_v56, 0  ;;  %v4133_v36 = vadd.f32 %v4132_v25, %v4098_v8  ;;  %v2927_v35 = vpop.f32.mrb[119].mxu0  ;;  %v2813_v53 = vpop.f32.mrb[145].mxu1 }
 0x2c4   : > { %8909 = vst [vmem:[#allocation72_spill] sm:$0xff] %v8908_v12  ;;  %8910 = vst [vmem:[#allocation69_spill] sm:$0xff] %v7413_v34  ;;  %v7431_v59 = vmul.u32.u64.low 3817748708, %v7367_v46  ;;  %v7432_v5 = vmul.u32.u64.high 3817748708, %v7367_v46, %v7431_v59  ;;  %v7435_v61 = vadd.f32 %v2933_v24, %v8917_v32  ;;  %v2936_v13 = vadd.f32 %v5065_v18, %v8919_v48  ;;  %v8931_v32 = vld [vmem:[#allocation34_spill] sm:$0xff]  ;;  %v7465_v18 = vpop.f32.mrb[146].mxu1 }
 0x2c5   : > { %vm7426_vm7 = vmand %vm8914_vm4, %vm8913_vm9  ;;  %vm8921_vm2 = vnez %v8920_v2  ;;  %v8925_v40 = vmov 0  ;;  %vm8927_vm9 = vcmp.ne.s32.totalorder %v7306_v30, 0  ;;  %vm8928_vm11 = vcmp.lt.s32.totalorder %v7306_v30, 0  ;;  %v8935_v48 = vld [vmem:[#allocation62_spill] sm:$0xff]  ;;  %v8954_v49 = vld [vmem:[#allocation88_spill] sm:$0xff] }
 0x2c6   : > { %8918 = vst [vmem:[#allocation71_spill] sm:$0xff] %v7435_v61  ;;  %v8924_v20 = vsel %vm8921_vm2, %v8922_v38, %v8923_v21  ;;  %vm7451_vm12 = vmand %vm8928_vm11, %vm8927_vm9  ;;  %v7456_v25 = vsub.s32 %v8931_v32, %v3683_v7  ;;  %v4099_v2 = vsel %vm7286_vm13, %v7337_v29, 0.0  ;;  %v8932_v38 = vld [vmem:[#allocation60_spill] sm:$0xff]  ;;  %v7468_v53 = vadd.s32 224, %v6429_v39  ;;  %v2816_v7 = vpop.f32.mrb[147].mxu1  ;;  %v8955_v23 = vld [vmem:[#allocation83_spill] sm:$0xff] }
 0x2c7   : > { %vm7443_vm4 = vcmp.lt.s32.totalorder %v8924_v20, 16  ;;  %v7462_v20 = vadd.f32 %v2925_v60, %v8932_v38  ;;  %v8934_v21 = vld [vmem:[#allocation68_spill] sm:$0xff]  ;;  %v4134_v59 = vadd.f32 %v4133_v36, %v4099_v2  ;;  %v7471_v27 = vadd.f32 %v2936_v13, %v8935_v48  ;;  %v8943_v48 = vld [vmem:[#allocation93_spill] sm:$0xff] }
 0x2c8   : > { %v8926_v40 = vsel %vm7443_vm4, 4294967295, %v8925_v40  ;;  %v2928_v8 = vadd.f32 %v2927_v35, %v8934_v21  ;;  %vm8936_vm2 = vnez %v8777_v57  ;;  %v8938_v60 = vmov 0  ;;  %v8941_v57 = vld [vmem:[#allocation63_spill] sm:$0xff]  ;;  %v8946_v7 = vld [vmem:[#allocation77_spill] sm:$0xff]  ;;  %v8952_v35 = vld [vmem:[#allocation98_spill] sm:$0xff] }
 0x2c9   : > { %8933 = vst [vmem:[#allocation89_spill] sm:$0xff] %v7462_v20  ;;  %v8937_v32 = vsel %vm8936_vm2, %v6956_v51, %v6829_v10  ;;  %v3693_v36 = vshrl.u32 %v7351_v52, 4  ;;  %v4100_v13 = vsel %vm7320_vm3, %v7462_v20, 0.0  ;;  %v3715_v51 = vshrl.u32 %v7364_v58, 4  ;;  %v8945_v52 = vld [vmem:[#allocation81_spill] sm:$0xff] }
 0x2ca   : > { %vm7478_vm11 = vcmp.lt.s32.totalorder %v8937_v32, 16  ;;  %v7491_v2 = vadd.f32 %v2928_v8, %v8941_v57  ;;  %v4135_v38 = vadd.f32 %v4134_v59, %v4100_v13  ;;  %v4754_v21 = vpack.c.bf16 %v7471_v27, %v7435_v61  ;;  %v5068_v13 = vpop.f32.mrb[120].mxu0 }
 0x2cb   : > { %v8939_v60 = vsel %vm7478_vm11, 4294967295, %v8938_v60  ;;  %vm8944_vm9 = vnez %v8943_v48  ;;  %v8948_v8 = vmov 0  ;;  %vm3832_vm3 = vcmp.ne.s32.totalorder %v7456_v25, 0  ;;  %v2940_v10 = vpop.f32.mrb[121].mxu0 }
 0x2cc   : > { %8940 = vst [vmem:[#allocation78_spill] sm:$0xff] %v8939_v60  ;;  %8942 = vst [vmem:[#allocation70_spill] sm:$0xff] %v7491_v2  ;;  %v8947_v32 = vsel %vm8944_vm9, %v8945_v52, %v8946_v7  ;;  %v4749_v58 = vpack.c.bf16 %v7491_v2, %v7462_v20  ;;  %v4101_v59 = vsel %vm7344_vm8, %v7491_v2, 0.0  ;;  %v8951_v7 = vld [vmem:[#allocation90_spill] sm:$0xff]  ;;  %vm8953_vm9 = vnez %v8952_v35  ;;  %v7539_v35 = vpop.f32.mrb[148].mxu1 }
 0x2cd   : > { %vm7505_vm2 = vcmp.lt.s32.totalorder %v8947_v32, 16  ;;  %v7517_v57 = vmul.u32.u64.low 3817748708, %v7468_v53  ;;  %v7518_v48 = vmul.u32.u64.high 3817748708, %v7468_v53, %v7517_v57  ;;  %4845 = vst [vmem:[%s7395_s27 + $0x18] sm:$0xff] %v4754_v21   ;;  %v4136_v52 = vadd.f32 %v4135_v38, %v4101_v59  ;;  %v8960_v21 = vld [vmem:[#allocation82_spill] sm:$0xff] }
 0x2ce   : > { %v8949_v8 = vsel %vm7505_vm2, 4294967295, %v8948_v8  ;;  %v2949_v32 = vadd.f32 %v5068_v13, %v8951_v7  ;;  %v8956_v29 = vsel %vm8953_vm9, %v8954_v49, %v8955_v23  ;;  %v8957_v20 = vmov 0  ;;  %4844 = vst [vmem:[%s7395_s27 + $0x10] sm:$0xff] %v4749_v58   ;;  %v5069_v13 = vpop.f32.mrb[122].mxu0  ;;  %v8962_v7 = vld [vmem:[#allocation95_spill] sm:$0xff] }
 0x2cf   : > { %8950 = vst [vmem:[#allocation64_spill] sm:$0xff] %v8949_v8  ;;  %vm7527_vm13 = vcmp.lt.s32.totalorder %v8956_v29, 16  ;;  %v3694_v41 = vmul.u32 18, %v3693_v36  ;;  %v7532_v2 = vadd.s32 248, %v6429_v39  ;;  %v4102_v38 = vsel %vm7376_vm14, %v7435_v61, 0.0  ;;  %v8961_v36 = vld [vmem:[#allocation66_spill] sm:$0xff] }
 0x2d0   : > { %v8958_v20 = vsel %vm7527_vm13, 4294967295, %v8957_v20  ;;  %v2941_v59 = vadd.f32 %v2940_v10, %v8960_v21  ;;  %v7542_v23 = vadd.s32 18, %v7456_v25  ;;  %v7545_v49 = vadd.s32 232, %v6429_v39  ;;  %v2943_v31 = vpop.f32.mrb[123].mxu0  ;;  %v2821_v61 = vpop.f32.mrb[149].mxu1 }
 0x2d1   : > { %8959 = vst [vmem:[#allocation59_spill] sm:$0xff] %v8958_v20  ;;  %v4137_v29 = vadd.f32 %v4136_v52, %v4102_v38  ;;  %v7548_v57 = vadd.f32 %v2949_v32, %v8961_v36  ;;  %v2952_v30 = vadd.f32 %v5069_v13, %v8962_v7  ;;  %v8963_v10 = vsel %vm7086_vm6, %v6962_v22, %v6847_v26  ;;  %v8970_v61 = vld [vmem:[#allocation67_spill] sm:$0xff]  ;;  %v8971_v26 = vld [vmem:[#allocation86_spill] sm:$0xff]  ;;  %v7575_v21 = vpop.f32.mrb[150].mxu1  ;;  %v5072_v1 = vpop.f32.mrb[124].mxu0 }
 0x2d2   : > { %vm7556_vm9 = vcmp.lt.s32.totalorder %v8963_v10, 16  ;;  %v8964_v58 = vmov 0  ;;  %vm8967_vm14 = vcmp.lt.s32.totalorder %v7456_v25, 0  ;;  %v3716_v32 = vmul.u32 18, %v3715_v51  ;;  %v8972_v7 = vld [vmem:[#allocation23_spill] sm:$0xff]  ;;  %v2824_v34 = vpop.f32.mrb[151].mxu1 }
 0x2d3   : > { %v8965_v58 = vsel %vm7556_vm9, 4294967295, %v8964_v58  ;;  %vm7564_vm8 = vmand %vm8967_vm14, %vm3832_vm3  ;;  %v4103_v37 = vsel %vm7404_vm5, %v7471_v27, 0.0  ;;  %v7572_v38 = vadd.f32 %v2941_v59, %v8970_v61  ;;  %v2944_v22 = vadd.f32 %v2943_v31, %v8971_v26  ;;  %v8978_v34 = vld [vmem:[#allocation22_spill] sm:$0xff]  ;;  %v7650_v54 = vpop.f32.mrb[152].mxu1 }
 0x2d4   : > { %8966 = vst [vmem:[#allocation76_spill] sm:$0xff] %v8965_v58  ;;  %v3748_v13 = vshrl.u32 %v7432_v5, 4  ;;  %v4138_v36 = vadd.f32 %v4137_v29, %v4103_v37  ;;  %v7579_v10 = vadd.f32 %v2952_v30, %v8972_v7  ;;  %v8974_v51 = vsel %vm7115_vm0, %v7033_v15, %v6970_v50  ;;  %v8983_v7 = vld [vmem:[#allocation32_spill] sm:$0xff]  ;;  %v2829_v50 = vpop.f32.mrb[153].mxu1 }
 0x2d5   : > { %vm7586_vm6 = vcmp.lt.s32.totalorder %v8974_v51, 16  ;;  %v8975_v12 = vmov 0  ;;  %v7591_v31 = vsub.s32 %v7299_v17, %v3694_v41  ;;  %v7594_v5 = vadd.s32 256, %v6429_v39  ;;  %v9028_v58 = vld [vmem:[#allocation36_spill] sm:$0xff] }
 0x2d6   : > { %8973 = vst [vmem:[#allocation96_spill] sm:$0xff] %v7579_v10  ;;  %v8976_v12 = vsel %vm7586_vm6, 4294967295, %v8975_v12  ;;  %v4104_v30 = vsel %vm7443_vm4, %v7572_v38, 0.0  ;;  %v7600_v43 = vadd.f32 %v2944_v22, %v8978_v34  ;;  %v7607_v15 = vadd.s32 272, %v6429_v39 }
 0x2d7   : > { %8977 = vst [vmem:[#allocation87_spill] sm:$0xff] %v8976_v12  ;;  %v4139_v17 = vadd.f32 %v4138_v36, %v4104_v30  ;;  %v4764_v41 = vpack.c.bf16 %v7579_v10, %v7548_v57  ;;  %v8979_v59 = vsel %vm7068_vm1, %v6959_v45, %v6844_v62  ;;  %v8980_v29 = vmov 0  ;;  %v2956_v30 = vpop.f32.mrb[125].mxu0 }
 0x2d8   : > { %vm7616_vm0 = vcmp.lt.s32.totalorder %v8979_v59, 16  ;;  %v7621_v37 = vmul.u32.u64.low 3817748708, %v7532_v2  ;;  %v7622_v61 = vmul.u32.u64.high 3817748708, %v7532_v2, %v7621_v37  ;;  %v4759_v26 = vpack.c.bf16 %v7600_v43, %v7572_v38 }
 0x2d9   : > { %v8981_v29 = vsel %vm7616_vm0, 4294967295, %v8980_v29  ;;  %v4105_v22 = vsel %vm7478_vm11, %v7600_v43, 0.0  ;;  %v7630_v36 = vsub.s32 %v7309_v9, %v3716_v32  ;;  %v3749_v62 = vmul.u32 18, %v3748_v13  ;;  %4847 = vst [vmem:[%s7395_s27 + $0x28] sm:$0xff] %v4764_v41   ;;  %v8988_v13 = vld [vmem:[#allocation41_spill] sm:$0xff]  ;;  %v5073_v41 = vpop.f32.mrb[126].mxu0 }
 0x2da   : > { %8982 = vst [vmem:[#allocation80_spill] sm:$0xff] %v8981_v29  ;;  %v4140_v45 = vadd.f32 %v4139_v17, %v4105_v22  ;;  %v2965_v51 = vadd.f32 %v5072_v1, %v8983_v7  ;;  %v8984_v34 = vsel %vm7099_vm15, %v7010_v4, %v6950_v11  ;;  %v8985_v59 = vmov 0  ;;  %4846 = vst [vmem:[%s7395_s27 + $0x20] sm:$0xff] %v4759_v26   ;;  %v8989_v22 = vld [vmem:[#allocation73_spill] sm:$0xff]  ;;  %v8991_v7 = vld [vmem:[#allocation35_spill] sm:$0xff] }
 0x2db   : > { %vm7639_vm1 = vcmp.lt.s32.totalorder %v8984_v34, 16  ;;  %v3726_v9 = vshrl.u32 %v7518_v48, 4  ;;  %v4106_v32 = vsel %vm7505_vm2, %v7548_v57, 0.0  ;;  %v2957_v17 = vadd.f32 %v2956_v30, %v8988_v13  ;;  %v2959_v34 = vpop.f32.mrb[127].mxu0  ;;  %v8998_v13 = vld [vmem:[#allocation43_spill] sm:$0xff] }
 0x2dc   : > { %v8986_v59 = vsel %vm7639_vm1, 4294967295, %v8985_v59  ;;  %v7653_v11 = vmul.u32.u64.low 3817748708, %v7545_v49  ;;  %v7654_v4 = vmul.u32.u64.high 3817748708, %v7545_v49, %v7653_v11  ;;  %v4141_v37 = vadd.f32 %v4140_v45, %v4106_v32  ;;  %v9025_v29 = vld [vmem:[#allocation103_spill] sm:$0xff] }
 0x2dd   : > { %8987 = vst [vmem:[#allocation34_spill] sm:$0xff] %v8986_v59  ;;  %v7657_v1 = vadd.f32 %v2965_v51, %v8989_v22  ;;  %v2968_v48 = vadd.f32 %v5073_v41, %v8991_v7  ;;  %v8992_v26 = vsel %vm7144_vm10, %v7104_v44, %v7017_v42  ;;  %v8993_v30 = vmov 0  ;;  %v8996_v51 = vld [vmem:[#allocation75_spill] sm:$0xff]  ;;  %v7677_v41 = vpop.f32.mrb[154].mxu1  ;;  %v8999_v44 = vld [vmem:[#allocation25_spill] sm:$0xff] }
 0x2de   : > { %vm7665_vm15 = vcmp.lt.s32.totalorder %v8992_v26, 16  ;;  %v4107_v45 = vsel %vm7527_vm13, %v7579_v10, 0.0  ;;  %v7674_v32 = vadd.f32 %v2957_v17, %v8996_v51  ;;  %v2960_v50 = vadd.f32 %v2959_v34, %v8998_v13  ;;  %v2832_v22 = vpop.f32.mrb[155].mxu1 }
 0x2df   : > { %8990 = vst [vmem:[#allocation60_spill] sm:$0xff] %v7657_v1  ;;  %v8994_v30 = vsel %vm7665_vm15, 4294967295, %v8993_v30  ;;  %v7680_v16 = vadd.s32 264, %v6429_v39  ;;  %v4142_v42 = vadd.f32 %v4141_v37, %v4107_v45  ;;  %v7683_v11 = vadd.f32 %v2968_v48, %v8999_v44  ;;  %v9006_v48 = vld [vmem:[#allocation24_spill] sm:$0xff] }
 0x2e0   : > { %8995 = vst [vmem:[#allocation68_spill] sm:$0xff] %v8994_v30  ;;  %8997 = vst [vmem:[#allocation62_spill] sm:$0xff] %v7674_v32  ;;  %vm9001_vm10 = vnez %v8827_v55  ;;  %v9003_v17 = vmov 0  ;;  %v7695_v34 = vadd.s32 18, %v7591_v31  ;;  %v3727_v26 = vmul.u32 18, %v3726_v9  ;;  %v9049_v30 = vld [vmem:[#allocation104_spill] sm:$0xff] }
 0x2e1   : > { %9000 = vst [vmem:[#allocation63_spill] sm:$0xff] %v7683_v11  ;;  %v9002_v7 = vsel %vm9001_vm10, %v7181_v33, %v7059_v28  ;;  %v4108_v37 = vsel %vm7556_vm9, %v7674_v32, 0.0  ;;  %v7701_v45 = vadd.f32 %v2960_v50, %v9006_v48  ;;  %v7706_v28 = vadd.s32 18, %v7630_v36 }
 0x2e2   : > { %vm7690_vm3 = vcmp.lt.s32.totalorder %v9002_v7, 16  ;;  %vm9007_vm13 = vcmp.ne.s32.totalorder %v7591_v31, 0  ;;  %vm9008_vm2 = vcmp.lt.s32.totalorder %v7591_v31, 0  ;;  %v7717_v33 = vsub.s32 %v7367_v46, %v3749_v62  ;;  %v5076_v62 = vpop.f32.mrb[128].mxu0 }
 0x2e3   : > { %v9004_v17 = vsel %vm7690_vm3, 4294967295, %v9003_v17  ;;  %vm7712_vm11 = vmand %vm9008_vm2, %vm9007_vm13  ;;  %v4143_v9 = vadd.f32 %v4142_v42, %v4108_v37  ;;  %v4774_v51 = vpack.c.bf16 %v7683_v11, %v7657_v1  ;;  %vm9011_vm10 = vnez %v8806_v3  ;;  %v9018_v37 = vld [vmem:[#allocation47_spill] sm:$0xff] }
 0x2e4   : > { %9005 = vst [vmem:[#allocation93_spill] sm:$0xff] %v9004_v17  ;;  %v9012_v13 = vsel %vm9011_vm10, %v7073_v6, %v7014_v0  ;;  %v9013_v50 = vmov 0  ;;  %v3759_v44 = vshrl.u32 %v7622_v61, 4  ;;  %v7732_v22 = vadd.s32 280, %v6429_v39  ;;  %v2972_v61 = vpop.f32.mrb[129].mxu0  ;;  %v9017_v39 = vld [vmem:[#allocation99_spill] sm:$0xff] }
 0x2e5   : > { %vm7726_vm14 = vcmp.lt.s32.totalorder %v9012_v13, 16  ;;  %v4769_v46 = vpack.c.bf16 %v7701_v45, %v7674_v32  ;;  %v4109_v3 = vsel %vm7586_vm6, %v7701_v45, 0.0  ;;  %4849 = vst [vmem:[%s7395_s27 + $0x38] sm:$0xff] %v4774_v51   ;;  %v2981_v7 = vadd.f32 %v5076_v62, %v7302_v63  ;;  %v7766_v62 = vpop.f32.mrb[156].mxu1 }
 0x2e6   : > { %v9014_v50 = vsel %vm7726_vm14, 4294967295, %v9013_v50  ;;  %v7740_v0 = vmul.u32.u64.low 3817748708, %v7594_v5  ;;  %v7741_v6 = vmul.u32.u64.high 3817748708, %v7594_v5, %v7740_v0  ;;  %v4144_v42 = vadd.f32 %v4143_v9, %v4109_v3  ;;  %v5077_v3 = vpop.f32.mrb[130].mxu0  ;;  %v2837_v12 = vpop.f32.mrb[157].mxu1 }
 0x2e7   : > { %9015 = vst [vmem:[#allocation81_spill] sm:$0xff] %v9014_v50  ;;  %vm9016_vm13 = vnez %v8819_v19  ;;  %v9020_v13 = vmov 0  ;;  %v7759_v51 = vsub.s32 %v7468_v53, %v3727_v26  ;;  %v4110_v63 = vsel %vm7616_vm0, %v7657_v1, 0.0  ;;  %4848 = vst [vmem:[%s7395_s27 + $0x30] sm:$0xff] %v4769_v46   ;;  %v9022_v19 = vld [vmem:[#allocation51_spill] sm:$0xff]  ;;  %v9024_v53 = vld [vmem:[#allocation56_spill] sm:$0xff] }
 0x2e8   : > { %v9019_v48 = vsel %vm9016_vm13, %v9017_v39, %v9018_v37  ;;  %v2973_v9 = vadd.f32 %v2972_v61, %v9022_v19  ;;  %v4145_v0 = vadd.f32 %v4144_v42, %v4110_v63  ;;  %v9023_v39 = vld [vmem:[#allocation84_spill] sm:$0xff]  ;;  %v2984_v26 = vadd.f32 %v5077_v3, %v9024_v53  ;;  %v9027_v46 = vld [vmem:[#allocation102_spill] sm:$0xff]  ;;  %v9034_v53 = vld [vmem:[#allocation27_spill] sm:$0xff] }
 0x2e9   : > { %vm7750_vm2 = vcmp.lt.s32.totalorder %v9019_v48, 16  ;;  %v7771_v37 = vadd.f32 %v2981_v7, %v9023_v39  ;;  %v2975_v48 = vpop.f32.mrb[131].mxu0  ;;  %vm9026_vm0 = vnez %v9025_v29  ;;  %v7784_v1 = vadd.s32 18, %v7717_v33  ;;  %v9032_v7 = vld [vmem:[#allocation85_spill] sm:$0xff]  ;;  %v9033_v12 = vld [vmem:[#allocation52_spill] sm:$0xff]  ;;  %v7793_v29 = vpop.f32.mrb[158].mxu1 }
 0x2ea   : > { %v9021_v13 = vsel %vm7750_vm2, 4294967295, %v9020_v13  ;;  %v9029_v61 = vsel %vm9026_vm0, %v9027_v46, %v9028_v58  ;;  %v4111_v42 = vsel %vm7639_vm1, %v7683_v11, 0.0  ;;  %v7790_v63 = vadd.f32 %v2973_v9, %v9032_v7  ;;  %v9042_v7 = vld [vmem:[#allocation33_spill] sm:$0xff]  ;;  %v9062_v50 = vld [vmem:[#allocation92_spill] sm:$0xff] }
 0x2eb   : > { %vm7779_vm6 = vcmp.lt.s32.totalorder %v9029_v61, 16  ;;  %v2976_v3 = vadd.f32 %v2975_v48, %v9033_v12  ;;  %v3737_v58 = vshrl.u32 %v7654_v4, 4  ;;  %v4146_v39 = vadd.f32 %v4145_v0, %v4111_v42  ;;  %v2840_v61 = vpop.f32.mrb[159].mxu1  ;;  %v9038_v0 = vld [vmem:[#allocation26_spill] sm:$0xff]  ;;  %v9041_v42 = vld [vmem:[#allocation101_spill] sm:$0xff] }
 0x2ec   : > { %v7797_v46 = vadd.f32 %v2984_v26, %v9034_v53  ;;  %v9035_v59 = vsel %vm7426_vm7, %v7381_v47, %v7278_v56  ;;  %v3760_v9 = vmul.u32 18, %v3759_v44  ;;  %v4112_v4 = vsel %vm7665_vm15, %v7790_v63, 0.0  ;;  %v5080_v61 = vpop.f32.mrb[132].mxu0 }
 0x2ed   : > { %vm7804_vm0 = vcmp.lt.s32.totalorder %v9035_v59, 16  ;;  %v7813_v26 = vadd.f32 %v2976_v3, %v9038_v0  ;;  %v7816_v14 = vmul.u32.u64.low 3817748708, %v7680_v16  ;;  %v7817_v48 = vmul.u32.u64.high 3817748708, %v7680_v16, %v7816_v14  ;;  %v9039_v59 = vld [vmem:[#allocation100_spill] sm:$0xff] }
 0x2ee   : > { %v4147_v47 = vadd.f32 %v4146_v39, %v4112_v4  ;;  %v4784_v56 = vpack.c.bf16 %v7797_v46, %v7771_v37  ;;  %vm9040_vm7 = vnez %v9039_v59  ;;  %v7832_v3 = vadd.s32 18, %v7759_v51 }
 0x2ef   : > { %v9043_v44 = vsel %vm9040_vm7, %v9041_v42, %v9042_v7  ;;  %v4779_v39 = vpack.c.bf16 %v7813_v26, %v7790_v63  ;;  %v4113_v53 = vsel %vm7690_vm3, %v7813_v26, 0.0  ;;  %v3738_v4 = vmul.u32 18, %v3737_v58  ;;  %v2988_v42 = vpop.f32.mrb[133].mxu0  ;;  %v9046_v7 = vld [vmem:[#allocation74_spill] sm:$0xff] }
 0x2f0   : > { %vm7826_vm13 = vcmp.lt.s32.totalorder %v9043_v44, 16  ;;  %v3770_v0 = vshrl.u32 %v7741_v6, 4  ;;  %4851 = vst [vmem:[%s7395_s27 + $0x48] sm:$0xff] %v4784_v56   ;;  %v4148_v14 = vadd.f32 %v4147_v47, %v4113_v53  ;;  %v2997_v59 = vadd.f32 %v5080_v61, %v7539_v35  ;;  %v9048_v44 = vld [vmem:[#allocation107_spill] sm:$0xff]  ;;  %v5081_v56 = vpop.f32.mrb[134].mxu0  ;;  %v7868_v53 = vpop.f32.mrb[160].mxu1 }
 0x2f1   : > { %vm9047_vm7 = vnez %v9046_v7  ;;  %vm9053_vm3 = vcmp.ne.s32.totalorder %v7630_v36, 0  ;;  %vm9054_vm15 = vcmp.lt.s32.totalorder %v7630_v36, 0  ;;  %4850 = vst [vmem:[%s7395_s27 + $0x40] sm:$0xff] %v4779_v39   ;;  %v2845_v17 = vpop.f32.mrb[161].mxu1  ;;  %v9063_v32 = vsel %vm7564_vm8, %v7542_v23, %v7456_v25 }
 0x2f2   : > { %v9050_v20 = vsel %vm9047_vm7, %v9048_v44, %v9049_v30  ;;  %vm7855_vm1 = vmand %vm9054_vm15, %vm9053_vm3  ;;  %v7860_v35 = vmul.u32.u64.low 3817748708, %v7607_v15  ;;  %v7861_v58 = vmul.u32.u64.high 3817748708, %v7607_v15, %v7860_v35  ;;  %v4114_v30 = vsel %vm7726_vm14, %v7771_v37, 0.0  ;;  %v7905_v52 = vpop.f32.mrb[162].mxu1 }
 0x2f3   : > { %vm7847_vm10 = vcmp.lt.s32.totalorder %v9050_v20, 16  ;;  %v9057_v20 = vld [vmem:[#allocation65_spill] sm:$0xff]  ;;  %vm9058_vm7 = vcmp.ne.s32.totalorder %v7717_v33, 0  ;;  %vm9059_vm15 = vcmp.lt.s32.totalorder %v7717_v33, 0  ;;  %v4149_v35 = vadd.f32 %v4148_v14, %v4114_v30  ;;  %v9066_v14 = vld [vmem:[#allocation94_spill] sm:$0xff] }
 0x2f4   : > { %v2989_v47 = vadd.f32 %v2988_v42, %v9057_v20  ;;  %vm7874_vm3 = vmand %vm9059_vm15, %vm9058_vm7  ;;  %v7879_v7 = vmul.u32.u64.low 3817748708, %v7732_v22  ;;  %v7880_v44 = vmul.u32.u64.high 3817748708, %v7732_v22, %v7879_v7  ;;  %v7883_v39 = vadd.f32 %v2997_v59, %v9062_v50  ;;  %v2991_v20 = vpop.f32.mrb[135].mxu0 }
 0x2f5   : > { %v3000_v42 = vadd.f32 %v5081_v56, %v7575_v21  ;;  %vm7891_vm7 = vcmp.lt.s32.totalorder %v9063_v32, 16  ;;  %v7896_v10 = vsub.s32 %v7532_v2, %v3760_v9  ;;  %v4115_v50 = vsel %vm7750_vm2, %v7797_v46, 0.0  ;;  %v9071_v32 = vld [vmem:[#allocation97_spill] sm:$0xff] }
 0x2f6   : > { %v7902_v21 = vadd.f32 %v2989_v47, %v9066_v14  ;;  %v2992_v17 = vadd.f32 %v2991_v20, %v7465_v18  ;;  %v3979_v25 = vsel %vm7855_vm1, %v7706_v28, %v7630_v36  ;;  %vm9067_vm8 = vcmp.ne.s32.totalorder %v7759_v51, 0  ;;  %v2848_v18 = vpop.f32.mrb[163].mxu1  ;;  %v9075_v47 = vld [vmem:[#allocation28_spill] sm:$0xff] }
 0x2f7   : > { %vm9068_vm15 = vcmp.lt.s32.totalorder %v7759_v51, 0  ;;  %v4150_v23 = vadd.f32 %v4149_v35, %v4115_v50  ;;  %v7920_v9 = vadd.f32 %v3000_v42, %v9071_v32  ;;  %v9072_v59 = vsel %vm7712_vm11, %v7695_v34, %v7591_v31  ;;  %v2851_v32 = vpop.f32.mrb[164].mxu1  ;;  %v9083_v18 = vld [vmem:[#allocation37_spill] sm:$0xff] }
 0x2f8   : > { %vm7915_vm14 = vmand %vm9068_vm15, %vm9067_vm8  ;;  %vm7927_vm2 = vcmp.lt.s32.totalorder %v9072_v59, 16  ;;  %v3982_v28 = vsel %vm7874_vm3, %v7784_v1, %v7717_v33  ;;  %v3771_v6 = vmul.u32 18, %v3770_v0  ;;  %v4116_v30 = vsel %vm7779_vm6, %v7902_v21, 0.0  ;;  %v9076_v1 = vld [vmem:[#allocation69_spill] sm:$0xff] }
 0x2f9   : > { %v7939_v55 = vadd.f32 %v2992_v17, %v9075_v47  ;;  %v7942_v31 = vsub.s32 %v7545_v49, %v3738_v4  ;;  %v3781_v34 = vshrl.u32 %v7817_v48, 4  ;;  %v4151_v56 = vadd.f32 %v4150_v23, %v4116_v30  ;;  %v9077_v33 = vld [vmem:[#allocation53_spill] sm:$0xff]  ;;  %v5084_v4 = vpop.f32.mrb[136].mxu0 }
 0x2fa   : > { %v4794_v7 = vpack.c.bf16 %v7920_v9, %v7883_v39  ;;  %v9078_v0 = vsel %vm7451_vm12, %v9076_v1, %v9077_v33  ;;  %v3980_v49 = vsel %vm7915_vm14, %v7832_v3, %v7759_v51  ;;  %vm3839_vm1 = vcmp.ne.s32.totalorder %v7896_v10, 0  ;;  %v3004_v51 = vpop.f32.mrb[137].mxu0  ;;  %v9087_v33 = vld [vmem:[#allocation29_spill] sm:$0xff] }
 0x2fb   : > { %vm7952_vm11 = vcmp.lt.s32.totalorder %v9078_v0, 16  ;;  %v4789_v48 = vpack.c.bf16 %v7939_v55, %v7902_v21  ;;  %v4117_v24 = vsel %vm7804_vm0, %v7939_v55, 0.0  ;;  %vm3875_vm12 = vcmp.lt.s32.totalorder %v7896_v10, 0  ;;  %v5085_v23 = vpop.f32.mrb[138].mxu0 }
 0x2fc   : > { %v7968_v35 = vadd.s32 18, %v7896_v10  ;;  %4853 = vst [vmem:[%s7395_s27 + $0x58] sm:$0xff] %v4794_v7   ;;  %v4152_v42 = vadd.f32 %v4151_v56, %v4117_v24  ;;  %v3013_v20 = vadd.f32 %v5084_v4, %v7766_v62  ;;  %vm7972_vm14 = vcmp.lt.s32.totalorder %v3979_v25, 16  ;;  %vm8002_vm15 = vmand %vm3875_vm12, %vm3839_vm1 }
 0x2fd   : > { %v9081_v3 = vmov 0  ;;  %v7977_v50 = vsub.s32 %v7594_v5, %v3771_v6  ;;  %v3792_v14 = vshrl.u32 %v7861_v58, 4  ;;  %v4118_v17 = vsel %vm7826_vm13, %v7883_v39, 0.0  ;;  %4852 = vst [vmem:[%s7395_s27 + $0x50] sm:$0xff] %v4789_v48   ;;  %v3007_v6 = vpop.f32.mrb[139].mxu0  ;;  %v2853_v58 = vpop.f32.mrb[165].mxu1 }
 0x2fe   : > { %v9082_v3 = vsel %vm7972_vm14, 4294967295, %v9081_v3  ;;  %v3005_v2 = vadd.f32 %v3004_v51, %v7650_v54  ;;  %vm3837_vm3 = vcmp.ne.s32.totalorder %v7942_v31, 0  ;;  %v3782_v62 = vmul.u32 18, %v3781_v34  ;;  %v9084_v54 = vld [vmem:[#allocation31_spill] sm:$0xff]  ;;  %v2854_v34 = vpop.f32.mrb[166].mxu1 }
 0x2ff   : > { %v4153_v25 = vadd.f32 %v4152_v42, %v4118_v17  ;;  %v7987_v59 = vadd.f32 %v3013_v20, %v9083_v18  ;;  %v3016_v5 = vadd.f32 %v5085_v23, %v7793_v29  ;;  %v4119_v30 = vsel %vm7847_vm10, %v7920_v9, 0.0  ;;  %v2856_v48 = vpop.f32.mrb[167].mxu1  ;;  %v9090_v42 = vld [vmem:[#allocation39_spill] sm:$0xff] }
 0x300   : > { %v7995_v47 = vadd.f32 %v3005_v2, %v9084_v54  ;;  %v3008_v56 = vadd.f32 %v3007_v6, %v7677_v41  ;;  %v3803_v7 = vshrl.u32 %v7880_v44, 4  ;;  %vm8010_vm8 = vcmp.lt.s32.totalorder %v3980_v49, 16 }
 0x301   : > { %v4154_v1 = vadd.f32 %v4153_v25, %v4119_v30  ;;  %v8008_v0 = vadd.f32 %v3016_v5, %v9087_v33  ;;  %v9088_v24 = vmov 0  ;;  %v3793_v41 = vmul.u32 18, %v3792_v14 }
 0x302   : > { %v9089_v24 = vsel %vm8010_vm8, 4294967295, %v9088_v24  ;;  %v4120_v4 = vsel %vm7891_vm7, %v7995_v47, 0.0  ;;  %v8018_v20 = vadd.f32 %v3008_v56, %v9090_v42  ;;  %v3945_v44 = vadd.s32 18, %v7942_v31  ;;  %v2859_v56 = vpop.f32.mrb[168].mxu1 }
 0x303   : > { %v8022_v51 = vsub.s32 %v7680_v16, %v3782_v62  ;;  %v4155_v17 = vadd.f32 %v4154_v1, %v4120_v4  ;;  %v4804_v49 = vpack.c.bf16 %v8008_v0, %v7987_v59  ;;  %vm8026_vm1 = vcmp.lt.s32.totalorder %v3982_v28, 16  ;;  %v5088_v62 = vpop.f32.mrb[140].mxu0  ;;  %v2861_v48 = vpop.f32.mrb[169].mxu1 }
 0x304   : > { %v3983_v14 = vsel %vm8002_vm15, %v7968_v35, %v7896_v10  ;;  %vm9093_vm12 = vcmp.lt.s32.totalorder %v7942_v31, 0  ;;  %vm3840_vm4 = vcmp.ne.s32.totalorder %v7977_v50, 0  ;;  %v4799_v28 = vpack.c.bf16 %v8018_v20, %v7995_v47  ;;  %v3020_v18 = vpop.f32.mrb[141].mxu0  ;;  %v2862_v42 = vpop.f32.mrb[170].mxu1 }
 0x305   : > { %vm8038_vm9 = vmand %vm9093_vm12, %vm3837_vm3  ;;  %v4121_v23 = vsel %vm7927_vm2, %v8018_v20, 0.0  ;;  %vm3876_vm15 = vcmp.lt.s32.totalorder %v7977_v50, 0  ;;  %v3804_v10 = vmul.u32 18, %v3803_v7  ;;  %4855 = vst [vmem:[%s7395_s27 + $0x68] sm:$0xff] %v4804_v49   ;;  %v3029_v25 = vadd.f32 %v5088_v62, %v2851_v32  ;;  %v5089_v54 = vpop.f32.mrb[142].mxu0  ;;  %v9096_v7 = vld [vmem:[#allocation30_spill] sm:$0xff] }
 0x306   : > { %v4156_v35 = vadd.f32 %v4155_v17, %v4121_v23  ;;  %v3948_v5 = vadd.s32 18, %v7977_v50  ;;  %v8052_v6 = vsub.s32 %v7607_v15, %v3793_v41  ;;  %v4122_v58 = vsel %vm7952_vm11, %v7987_v59, 0.0  ;;  %4854 = vst [vmem:[%s7395_s27 + $0x60] sm:$0xff] %v4799_v28   ;;  %v3023_v33 = vpop.f32.mrb[143].mxu0  ;;  %v9097_v41 = vld [vmem:[#allocation45_spill] sm:$0xff]  ;;  %v9100_v49 = vld [vmem:[#allocation48_spill] sm:$0xff] }
 0x307   : > { %v3021_v30 = vadd.f32 %v3020_v18, %v7868_v53  ;;  %v3981_v29 = vsel %vm8038_vm9, %v3945_v44, %v7942_v31  ;;  %v8064_v1 = vadd.f32 %v3029_v25, %v9096_v7  ;;  %v3032_v15 = vadd.f32 %v5089_v54, %v2854_v34  ;;  %vm8078_vm9 = vmand %vm3876_vm15, %vm3840_vm4  ;;  %v9103_v62 = vld [vmem:[#allocation46_spill] sm:$0xff] }
 0x308   : > { %v4157_v32 = vadd.f32 %v4156_v35, %v4122_v58  ;;  %v4123_v53 = vsel %vm7972_vm14, %v8008_v0, 0.0  ;;  %v3024_v31 = vadd.f32 %v3023_v33, %v7905_v52  ;;  %v3805_v44 = vsub.s32 %v7732_v22, %v3804_v10  ;;  %v2864_v52 = vpop.f32.mrb[171].mxu1 }
 0x309   : > { %v8071_v4 = vadd.f32 %v3021_v30, %v9097_v41  ;;  %v8084_v16 = vadd.f32 %v3032_v15, %v9100_v49  ;;  %vm8086_vm12 = vcmp.lt.s32.totalorder %v3981_v29, 16  ;;  %v3949_v22 = vadd.s32 18, %v8022_v51  ;;  %v9123_v15 = vld [vmem:[#allocation40_spill] sm:$0xff] }
 0x30a   : > { %v4158_v17 = vadd.f32 %v4157_v32, %v4123_v53  ;;  %v8095_v35 = vadd.f32 %v3024_v31, %v9103_v62  ;;  %v3984_v18 = vsel %vm8078_vm9, %v3948_v5, %v7977_v50  ;;  %v3950_v58 = vadd.s32 18, %v8052_v6  ;;  %v5092_v32 = vpop.f32.mrb[144].mxu0  ;;  %v9119_v62 = vld [vmem:[#allocation42_spill] sm:$0xff] }
 0x30b   : > { %v4124_v23 = vsel %vm8010_vm8, %v8071_v4, 0.0  ;;  %v4814_v25 = vpack.c.bf16 %v8084_v16, %v8064_v1  ;;  %vm9104_vm15 = vcmp.ne.s32.totalorder %v8022_v51, 0  ;;  %vm9105_vm3 = vcmp.lt.s32.totalorder %v8022_v51, 0  ;;  %v3036_v7 = vpop.f32.mrb[145].mxu0 }
 0x30c   : > { %v4159_v10 = vadd.f32 %v4158_v17, %v4124_v23  ;;  %vm8109_vm5 = vmand %vm9105_vm3, %vm9104_vm15  ;;  %v4809_v54 = vpack.c.bf16 %v8095_v35, %v8071_v4  ;;  %v4125_v29 = vsel %vm8086_vm12, %v8095_v35, 0.0  ;;  %vm3843_vm4 = vcmp.ne.s32.totalorder %v3805_v44, 0  ;;  %v5093_v53 = vpop.f32.mrb[146].mxu0 }
 0x30d   : > { %4857 = vst [vmem:[%s7395_s27 + $0x78] sm:$0xff] %v4814_v25   ;;  %vm8119_vm8 = vcmp.lt.s32.totalorder %v3983_v14, 16  ;;  %vm9110_vm3 = vcmp.ne.s32.totalorder %v8052_v6, 0  ;;  %vm9111_vm15 = vcmp.lt.s32.totalorder %v8052_v6, 0  ;;  %v4126_v33 = vsel %vm8026_vm1, %v8064_v1, 0.0  ;;  %v2867_v14 = vpop.f32.mrb[172].mxu1 }
 0x30e   : > { %v4160_v5 = vadd.f32 %v4159_v10, %v4125_v29  ;;  %vm8127_vm14 = vmand %vm9111_vm15, %vm9110_vm3  ;;  %4856 = vst [vmem:[%s7395_s27 + $0x70] sm:$0xff] %v4809_v54   ;;  %v3037_v48 = vadd.f32 %v3036_v7, %v2859_v56  ;;  %v3985_v41 = vsel %vm8109_vm5, %v3949_v22, %v8022_v51  ;;  %v3951_v31 = vadd.s32 18, %v3805_v44  ;;  %v2869_v52 = vpop.f32.mrb[173].mxu1  ;;  %v3039_v23 = vpop.f32.mrb[147].mxu0  ;;  %v9120_v54 = vld [vmem:[#allocation49_spill] sm:$0xff] }
 0x30f   : > { %vm8138_vm9 = vcmp.lt.s32.totalorder %v3984_v18, 16  ;;  %v3045_v49 = vadd.f32 %v5092_v32, %v2867_v14  ;;  %vm9116_vm3 = vcmp.lt.s32.totalorder %v3805_v44, 0  ;;  %v4127_v51 = vsel %vm8119_vm8, %v8084_v16, 0.0  ;;  %v2870_v18 = vpop.f32.mrb[174].mxu1  ;;  %v9126_v14 = vld [vmem:[#allocation38_spill] sm:$0xff] }
 0x310   : > { %v4161_v34 = vadd.f32 %v4160_v5, %v4126_v33  ;;  %vm8144_vm15 = vmand %vm9116_vm3, %vm3843_vm4  ;;  %v8152_v22 = vadd.f32 %v3037_v48, %v9119_v62  ;;  %v3986_v10 = vsel %vm8127_vm14, %v3950_v58, %v8052_v6  ;;  %v3040_v25 = vadd.f32 %v3039_v23, %v2862_v42  ;;  %v2872_v7 = vpop.f32.mrb[175].mxu1 }
 0x311   : > { %v8159_v29 = vadd.f32 %v3045_v49, %v9120_v54  ;;  %vm8161_vm5 = vcmp.lt.s32.totalorder %v3985_v41, 16  ;;  %v3048_v5 = vadd.f32 %v5093_v53, %v2870_v18  ;;  %v3987_v42 = vsel %vm8144_vm15, %v3951_v31, %v3805_v44 }
 0x312   : > { %v4162_v30 = vadd.f32 %v4161_v34, %v4127_v51  ;;  %v4128_v33 = vsel %vm8138_vm9, %v8152_v22, 0.0  ;;  %v8169_v6 = vadd.f32 %v3040_v25, %v9123_v15  ;;  %vm8174_vm14 = vcmp.lt.s32.totalorder %v3986_v10, 16 }
 0x313   : > { %v8179_v53 = vadd.f32 %v3048_v5, %v9126_v14  ;;  %vm8193_vm4 = vcmp.lt.s32.totalorder %v3987_v42, 16  ;;  %v4130_v52 = vsel %vm8174_vm14, %v8159_v29, 0.0 }
 0x314   : > { %v4163_v58 = vadd.f32 %v4162_v30, %v4128_v33  ;;  %v4819_v41 = vpack.c.bf16 %v8169_v6, %v8152_v22  ;;  %v4129_v34 = vsel %vm8161_vm5, %v8169_v6, 0.0 }
 0x315   : > { %v4824_v31 = vpack.c.bf16 %v8179_v53, %v8159_v29  ;;  %v4131_v56 = vsel %vm8193_vm4, %v8179_v53, 0.0 }
 0x316   : > { %v4164_v44 = vadd.f32 %v4163_v58, %v4129_v34  ;;  %4858 = vst [vmem:[%s7395_s27 + $0x80] sm:$0xff] %v4819_v41  }
 0x317   : > { %4859 = vst [vmem:[%s7395_s27 + $0x88] sm:$0xff] %v4824_v31  }
 0x318   : > { %v4165_v23 = vadd.f32 %v4164_v44, %v4130_v52 }
 0x319   : > { %5529 = shalt.err (!%p5526_p13)
}
 0x31a   : > { %s5530_s9 = scalar_lea.hbm %s8189_s19, 2304  ;;  %s5534_s27 = scalar_lea.hbm %s8515_s5, 4608 }
 0x31b   : > { %p5531_p0 = scmp.ne.s32.totalorder %s8189_s19, %s5530_s9  ;;  %p5535_p9 = scmp.lt.u32.totalorder %s8189_s19, %s8515_s5 }
 0x31c   : > { %p5536_p12 = scmp.lt.u32.totalorder %s5534_s27, %s5530_s9  ;;  %p5538_p4 = scmp.lt.u32.totalorder %s5530_s9, %s8189_s19 }
 0x31d   : > { %p5532_p5 = pnand %p5531_p0, %p5828_p1 }
 0x31e   : > { %p5537_p2 = por %p5536_p12, %p5535_p9 }
 0x31f   : > { %p5533_p11 = pneg %p5532_p5 }
 0x320   : > { %p5539_p6 = por %p5538_p4, %p5537_p2 }
 0x322   : > { %p5540_p8 = pnand %p5539_p6, %p5533_p11 }
 0x324   : > { %5543 = shalt.err (!%p5540_p8)
}
 0x325   : > { %s5635_s15 = smov 64   ;;  %s5636_s11 = smov 4   ;;  %v4166_v51 = vadd.f32 %v4165_v23, %v4131_v56  ;;  %v9133_v50 = vld [vmem:[#allocation54_spill] sm:$0xff]  ;;  %v9138_v32 = vld [vmem:[#allocation57_spill] sm:$0xff] }
 0x326   : > { %5204 = dma.vmem_to_hbm [thread:$0]  (%p5828_p1), %s8197_s8, 2304, %s8189_s19, %s4326_s20, %s5635_s15, %s5635_s15, %s5636_s11   ;;  %v9140_v49 = vld [vmem:[#allocation105_spill] sm:$0xff] }
 0x327   : > { %v4167_v62 = vrot.slane %v4166_v51, 4  ;;  %s4513_s26 = sshll.u32 %s5883_s14, 1  ;;  %s4625_s8 = sshll.u32 %s5694_s25, 5 }
 0x328   : > { %s8232_s30 = scalar_lea.vmem [#allocation15], %s4513_s26  ;;  %s8465_s9 = scalar_lea.hbm %s8516_s6, %s4625_s8 }
 0x329   : > { %v4168_v10 = vadd.f32 %v4167_v62, %v4166_v51  ;;  %s4360_s19 = sshll.u32 %s8232_s30, 4  ;;  %s4331_s12 = scalar_lea.sflag [#allocation16], %s5883_s14  ;;  %s8467_s19 = int_to_ptr.vmem [resolvable:$true] %s4360_s19 }
 0x32a   : > { %s5544_s7 = scalar_lea.vmem %s8467_s19, 32  ;;  %s5637_s25 = smov [#allocation15]  }
 0x32b   : > { %v4169_v25 = vrot.slane %v4168_v10, 2  ;;  %p5545_p3 = scmp.ne.s32.totalorder %s8467_s19, %s5544_s7  ;;  %s5548_s27 = sshll.u32 %s5637_s25, 4  ;;  %s5549_s27 = int_to_ptr.vmem [resolvable:$false] %s5548_s27 }
 0x32c   : > { %s5550_s29 = scalar_lea.vmem %s5549_s27, 64  ;;  %p5551_p13 = scmp.lt.s32.totalorder %s8467_s19, %s5549_s27 }
 0x32d   : > { %v4170_v18 = vadd.f32 %v4169_v25, %v4168_v10  ;;  %v9134_v10 = vld [vmem:[#allocation50_spill] sm:$0xff]  ;;  %v9136_v25 = vld [vmem:[#allocation44_spill] sm:$0xff]  ;;  %p5546_p7 = pnand %p5545_p3, %p5828_p1  ;;  %p5552_p0 = scmp.lt.s32.totalorder %s5550_s29, %s5544_s7 }
 0x32f   : > { %v4171_v30 = vrot.slane %v4170_v18, 1  ;;  %p5547_p10 = pneg %p5546_p7  ;;  %p5553_p5 = por %p5552_p0, %p5551_p13 }
 0x331   : > { %v4172_v54 = vadd.f32 %v4171_v30, %v4170_v18  ;;  %p5554_p11 = pnand %p5553_p5, %p5547_p10 }
 0x333   : > { %4246 = vst [vmem:[%s8232_s30] sm:$0x1] %v4172_v54  ;;  %v8235_v5 = vmul.f32 0.00390625, %v4172_v54 }
 0x335   : > { %v4187_v7 = vsub.f32 %v7701_v45, %v8235_v5  ;;  %v4190_v33 = vsub.f32 %v7790_v63, %v8235_v5  ;;  %v4191_v15 = vsub.f32 %v7813_v26, %v8235_v5  ;;  %v4192_v42 = vsub.f32 %v7771_v37, %v8235_v5 }
 0x336   : > { %v4193_v58 = vsub.f32 %v7797_v46, %v8235_v5  ;;  %v4194_v14 = vsub.f32 %v7902_v21, %v8235_v5  ;;  %v4195_v41 = vsub.f32 %v7939_v55, %v8235_v5  ;;  %v4196_v34 = vsub.f32 %v7883_v39, %v8235_v5 }
 0x337   : > { %v4197_v44 = vsub.f32 %v7920_v9, %v8235_v5  ;;  %v4198_v31 = vsub.f32 %v7995_v47, %v8235_v5  ;;  %v4199_v52 = vsub.f32 %v8018_v20, %v8235_v5  ;;  %v4200_v23 = vsub.f32 %v7987_v59, %v8235_v5 }
 0x338   : > { %v4201_v21 = vsub.f32 %v8008_v0, %v8235_v5  ;;  %v4202_v55 = vsub.f32 %v8071_v4, %v8235_v5  ;;  %v4203_v39 = vsub.f32 %v8095_v35, %v8235_v5  ;;  %v4204_v9 = vsub.f32 %v8064_v1, %v8235_v5  ;;  %v9129_v35 = vld [vmem:[#allocation55_spill] sm:$0xff] }
 0x339   : > { %v4205_v47 = vsub.f32 %v8084_v16, %v8235_v5  ;;  %v4206_v20 = vsub.f32 %v8152_v22, %v8235_v5  ;;  %v4207_v59 = vsub.f32 %v8169_v6, %v8235_v5  ;;  %v4208_v0 = vsub.f32 %v8159_v29, %v8235_v5  ;;  %v9130_v1 = vld [vmem:[#allocation79_spill] sm:$0xff] }
 0x33a   : > { %v4209_v4 = vsub.f32 %v8179_v53, %v8235_v5  ;;  %v4174_v56 = vsub.f32 %v9129_v35, %v8235_v5  ;;  %v4175_v51 = vsub.f32 %v9130_v1, %v8235_v5  ;;  %v8285_v16 = vsel %vm7779_vm6, %v4194_v14, 0.0  ;;  %v9139_v14 = vld [vmem:[#allocation89_spill] sm:$0xff]  ;;  %v9148_v35 = vld [vmem:[#allocation91_spill] sm:$0xff] }
 0x33b   : > { %v8289_v22 = vsel %vm7804_vm0, %v4195_v41, 0.0  ;;  %v8293_v29 = vsel %vm7826_vm13, %v4196_v34, 0.0  ;;  %v8297_v6 = vsel %vm7847_vm10, %v4197_v44, 0.0  ;;  %v8301_v53 = vsel %vm7891_vm7, %v4198_v31, 0.0  ;;  %v9142_v44 = vld [vmem:[#allocation70_spill] sm:$0xff] }
 0x33c   : > { %v8305_v19 = vsel %vm7927_vm2, %v4199_v52, 0.0  ;;  %v8309_v11 = vsel %vm7952_vm11, %v4200_v23, 0.0  ;;  %vm9131_vm6 = vnez %v9082_v3  ;;  %vm9132_vm13 = vnez %v9089_v24  ;;  %v9143_v52 = vld [vmem:[#allocation106_spill] sm:$0xff] }
 0x33d   : > { %v8313_v12 = vsel %vm9131_vm6, %v4201_v21, 0.0  ;;  %v8317_v8 = vsel %vm9132_vm13, %v4202_v55, 0.0  ;;  %v8321_v60 = vsel %vm8086_vm12, %v4203_v39, 0.0  ;;  %v8325_v36 = vsel %vm8026_vm1, %v4204_v9, 0.0  ;;  %v9145_v39 = vld [vmem:[#allocation71_spill] sm:$0xff] }
 0x33e   : > { %v8329_v61 = vsel %vm8119_vm8, %v4205_v47, 0.0  ;;  %v8333_v3 = vsel %vm8138_vm9, %v4206_v20, 0.0  ;;  %v8337_v24 = vsel %vm8161_vm5, %v4207_v59, 0.0  ;;  %v8341_v28 = vsel %vm8174_vm14, %v4208_v0, 0.0  ;;  %v9146_v47 = vld [vmem:[#allocation61_spill] sm:$0xff] }
 0x33f   : > { %v8345_v2 = vsel %vm8193_vm4, %v4209_v4, 0.0  ;;  %v4176_v62 = vsub.f32 %v9133_v50, %v8235_v5  ;;  %vm9135_vm2 = vnez %v9134_v10  ;;  %vm9137_vm10 = vnez %v9136_v25 }
 0x340   : > { %v4210_v17 = vsel %vm9135_vm2, %v4174_v56, 0.0  ;;  %v4211_v18 = vsel %vm9137_vm10, %v4175_v51, 0.0  ;;  %v4177_v30 = vsub.f32 %v9138_v32, %v8235_v5  ;;  %v4178_v41 = vsub.f32 %v9139_v14, %v8235_v5  ;;  %v9152_v32 = vld [vmem:[#allocation72_spill] sm:$0xff] }
 0x341   : > { %v4247_v54 = vmul.f32 %v4210_v17, %v4210_v17  ;;  %v4248_v48 = vmul.f32 %v4211_v18, %v4211_v18  ;;  %vm9141_vm0 = vnez %v9140_v49  ;;  %v4179_v31 = vsub.f32 %v9142_v44, %v8235_v5  ;;  %v9155_v49 = vld [vmem:[#allocation96_spill] sm:$0xff]  ;;  %v9156_v44 = vld [vmem:[#allocation78_spill] sm:$0xff] }
 0x342   : > { %v4212_v34 = vsel %vm9141_vm0, %v4176_v62, 0.0  ;;  %vm9144_vm7 = vnez %v9143_v52  ;;  %v4180_v9 = vsub.f32 %v9145_v39, %v8235_v5  ;;  %vm9147_vm11 = vnez %v9146_v47  ;;  %v9150_v62 = vld [vmem:[#allocation58_spill] sm:$0xff] }
 0x343   : > { %v4213_v23 = vsel %vm9144_vm7, %v4177_v30, 0.0  ;;  %v4249_v21 = vmul.f32 %v4212_v34, %v4212_v34  ;;  %v4283_v55 = vadd.f32 %v4248_v48, %v4247_v54  ;;  %v4214_v20 = vsel %vm9147_vm11, %v4178_v41, 0.0 }
 0x344   : > { %v4250_v59 = vmul.f32 %v4213_v23, %v4213_v23  ;;  %v4181_v4 = vsub.f32 %v7471_v27, %v8235_v5  ;;  %vm9149_vm8 = vnez %v9148_v35  ;;  %v4251_v1 = vmul.f32 %v4214_v20, %v4214_v20  ;;  %v9158_v23 = vld [vmem:[#allocation62_spill] sm:$0xff]  ;;  %v9164_v35 = vld [vmem:[#allocation76_spill] sm:$0xff] }
 0x345   : > { %v4284_v0 = vadd.f32 %v4283_v55, %v4249_v21  ;;  %v4215_v56 = vsel %vm9149_vm8, %v4179_v31, 0.0  ;;  %v4182_v50 = vsub.f32 %v7572_v38, %v8235_v5  ;;  %vm9151_vm1 = vnez %v9150_v62  ;;  %v9159_v55 = vld [vmem:[#allocation64_spill] sm:$0xff] }
 0x346   : > { %v4216_v10 = vsel %vm9151_vm1, %v4180_v9, 0.0  ;;  %v4252_v17 = vmul.f32 %v4215_v56, %v4215_v56  ;;  %v4183_v18 = vsub.f32 %v7600_v43, %v8235_v5  ;;  %vm9153_vm12 = vnez %v9152_v32  ;;  %v9169_v32 = vld [vmem:[#allocation80_spill] sm:$0xff] }
 0x347   : > { %v4285_v51 = vadd.f32 %v4284_v0, %v4250_v59  ;;  %v4217_v30 = vsel %vm9153_vm12, %v4181_v4, 0.0  ;;  %v4253_v27 = vmul.f32 %v4216_v10, %v4216_v10  ;;  %v4184_v48 = vsub.f32 %v7548_v57, %v8235_v5  ;;  %v9163_v0 = vld [vmem:[#allocation60_spill] sm:$0xff]  ;;  %v9167_v10 = vld [vmem:[#allocation87_spill] sm:$0xff] }
 0x348   : > { %vm9154_vm9 = vnez %v8926_v40  ;;  %v4254_v38 = vmul.f32 %v4217_v30, %v4217_v30  ;;  %v4185_v34 = vsub.f32 %v9155_v49, %v8235_v5  ;;  %vm9157_vm3 = vnez %v9156_v44  ;;  %v9161_v40 = vld [vmem:[#allocation59_spill] sm:$0xff]  ;;  %v9173_v49 = vld [vmem:[#allocation68_spill] sm:$0xff]  ;;  %v9175_v44 = vld [vmem:[#allocation93_spill] sm:$0xff] }
 0x349   : > { %v4286_v25 = vadd.f32 %v4285_v51, %v4251_v1  ;;  %v4218_v14 = vsel %vm9154_vm9, %v4182_v50, 0.0  ;;  %v4219_v31 = vsel %vm9157_vm3, %v4183_v18, 0.0  ;;  %v4186_v21 = vsub.f32 %v9158_v23, %v8235_v5  ;;  %v9166_v50 = vld [vmem:[#allocation63_spill] sm:$0xff]  ;;  %v9177_v23 = vld [vmem:[#allocation81_spill] sm:$0xff] }
 0x34a   : > { %v4255_v43 = vmul.f32 %v4218_v14, %v4218_v14  ;;  %vm9160_vm15 = vnez %v9159_v55  ;;  %v4256_v57 = vmul.f32 %v4219_v31, %v4219_v31  ;;  %vm9162_vm5 = vnez %v9161_v40 }
 0x34b   : > { %v4287_v54 = vadd.f32 %v4286_v25, %v4252_v17  ;;  %v4220_v39 = vsel %vm9160_vm15, %v4184_v48, 0.0  ;;  %v4221_v47 = vsel %vm9162_vm5, %v4185_v34, 0.0  ;;  %v4188_v4 = vsub.f32 %v9163_v0, %v8235_v5  ;;  %v9171_v48 = vld [vmem:[#allocation34_spill] sm:$0xff] }
 0x34c   : > { %v4257_v20 = vmul.f32 %v4220_v39, %v4220_v39  ;;  %vm9165_vm14 = vnez %v9164_v35  ;;  %v4258_v1 = vmul.f32 %v4221_v47, %v4221_v47  ;;  %v4189_v62 = vsub.f32 %v9166_v50, %v8235_v5 }
 0x34d   : > { %v4288_v41 = vadd.f32 %v4287_v54, %v4253_v27  ;;  %v4222_v56 = vsel %vm9165_vm14, %v4186_v21, 0.0  ;;  %vm9168_vm4 = vnez %v9167_v10  ;;  %vm9170_vm6 = vnez %v9169_v32 }
 0x34e   : > { %v4223_v17 = vsel %vm9168_vm4, %v4187_v7, 0.0  ;;  %v4259_v25 = vmul.f32 %v4222_v56, %v4222_v56  ;;  %v4224_v30 = vsel %vm9170_vm6, %v4188_v4, 0.0  ;;  %vm9172_vm13 = vnez %v9171_v48 }
 0x34f   : > { %v4289_v52 = vadd.f32 %v4288_v41, %v4254_v38  ;;  %v4260_v27 = vmul.f32 %v4223_v17, %v4223_v17  ;;  %v4225_v14 = vsel %vm9172_vm13, %v4189_v62, 0.0  ;;  %v4261_v38 = vmul.f32 %v4224_v30, %v4224_v30 }
 0x350   : > { %vm9174_vm2 = vnez %v9173_v49  ;;  %v4262_v34 = vmul.f32 %v4225_v14, %v4225_v14  ;;  %vm9176_vm10 = vnez %v9175_v44  ;;  %vm9178_vm0 = vnez %v9177_v23 }
 0x351   : > { %v4290_v9 = vadd.f32 %v4289_v52, %v4255_v43  ;;  %v4226_v45 = vsel %vm9174_vm2, %v4190_v33, 0.0  ;;  %v4227_v31 = vsel %vm9176_vm10, %v4191_v15, 0.0  ;;  %v4228_v21 = vsel %vm9178_vm0, %v4192_v42, 0.0 }
 0x352   : > { %v4263_v43 = vmul.f32 %v4226_v45, %v4226_v45  ;;  %v4264_v63 = vmul.f32 %v4227_v31, %v4227_v31  ;;  %vm9179_vm7 = vnez %v9021_v13  ;;  %v4265_v26 = vmul.f32 %v4228_v21, %v4228_v21 }
 0x353   : > { %v4291_v59 = vadd.f32 %v4290_v9, %v4256_v57  ;;  %v4229_v33 = vsel %vm9179_vm7, %v4193_v58, 0.0  ;;  %v4267_v9 = vmul.f32 %v8285_v16, %v8285_v16  ;;  %v4268_v37 = vmul.f32 %v8289_v22, %v8289_v22 }
 0x354   : > { %v4266_v57 = vmul.f32 %v4229_v33, %v4229_v33  ;;  %v4269_v47 = vmul.f32 %v8293_v29, %v8293_v29  ;;  %v4270_v13 = vmul.f32 %v8297_v6, %v8297_v6  ;;  %v4271_v5 = vmul.f32 %v8301_v53, %v8301_v53 }
 0x355   : > { %v4292_v51 = vadd.f32 %v4291_v59, %v4257_v20  ;;  %v4272_v16 = vmul.f32 %v8305_v19, %v8305_v19  ;;  %v4273_v22 = vmul.f32 %v8309_v11, %v8309_v11  ;;  %v4274_v29 = vmul.f32 %v8313_v12, %v8313_v12 }
 0x356   : > { %v4275_v6 = vmul.f32 %v8317_v8, %v8317_v8  ;;  %v4276_v53 = vmul.f32 %v8321_v60, %v8321_v60  ;;  %v4277_v19 = vmul.f32 %v8325_v36, %v8325_v36  ;;  %v4278_v11 = vmul.f32 %v8329_v61, %v8329_v61 }
 0x357   : > { %v4293_v18 = vadd.f32 %v4292_v51, %v4258_v1  ;;  %v4279_v12 = vmul.f32 %v8333_v3, %v8333_v3  ;;  %v4280_v8 = vmul.f32 %v8337_v24, %v8337_v24  ;;  %v4281_v60 = vmul.f32 %v8341_v28, %v8341_v28 }
 0x358   : > { %v4282_v10 = vmul.f32 %v8345_v2, %v8345_v2 }
 0x359   : > { %v4294_v54 = vadd.f32 %v4293_v18, %v4259_v25 }
 0x35b   : > { %v4295_v41 = vadd.f32 %v4294_v54, %v4260_v27 }
 0x35d   : > { %v4296_v7 = vadd.f32 %v4295_v41, %v4261_v38 }
 0x35f   : > { %v4297_v52 = vadd.f32 %v4296_v7, %v4262_v34 }
 0x361   : > { %v4298_v55 = vadd.f32 %v4297_v52, %v4263_v43 }
 0x363   : > { %v4299_v39 = vadd.f32 %v4298_v55, %v4264_v63 }
 0x365   : > { %v4300_v15 = vadd.f32 %v4299_v39, %v4265_v26 }
 0x367   : > { %v4301_v40 = vadd.f32 %v4300_v15, %v4266_v57 }
 0x369   : > { %v4302_v42 = vadd.f32 %v4301_v40, %v4267_v9 }
 0x36b   : > { %v4303_v20 = vadd.f32 %v4302_v42, %v4268_v37 }
 0x36d   : > { %v4304_v46 = vadd.f32 %v4303_v20, %v4269_v47 }
 0x36f   : > { %v4305_v58 = vadd.f32 %v4304_v46, %v4270_v13 }
 0x371   : > { %v4306_v59 = vadd.f32 %v4305_v58, %v4271_v5 }
 0x373   : > { %v4307_v0 = vadd.f32 %v4306_v59, %v4272_v16 }
 0x375   : > { %v4308_v4 = vadd.f32 %v4307_v0, %v4273_v22 }
 0x377   : > { %v4309_v35 = vadd.f32 %v4308_v4, %v4274_v29 }
 0x379   : > { %v4310_v56 = vadd.f32 %v4309_v35, %v4275_v6 }
 0x37b   : > { %v4311_v1 = vadd.f32 %v4310_v56, %v4276_v53 }
 0x37d   : > { %v4312_v51 = vadd.f32 %v4311_v1, %v4277_v19 }
 0x37f   : > { %v4313_v50 = vadd.f32 %v4312_v51, %v4278_v11 }
 0x381   : > { %v4314_v62 = vadd.f32 %v4313_v50, %v4279_v12 }
 0x383   : > { %v4315_v36 = vadd.f32 %v4314_v62, %v4280_v8 }
 0x385   : > { %v4316_v61 = vadd.f32 %v4315_v36, %v4281_v60 }
 0x387   : > { %v4317_v17 = vadd.f32 %v4316_v61, %v4282_v10 }
 0x389   : > { %v4318_v25 = vrot.slane %v4317_v17, 4 }
 0x38b   : > { %v4319_v18 = vadd.f32 %v4318_v25, %v4317_v17 }
 0x38d   : > { %v4320_v3 = vrot.slane %v4319_v18, 2 }
 0x38f   : > { %v4321_v32 = vadd.f32 %v4320_v3, %v4319_v18 }
 0x391   : > { %v4322_v24 = vrot.slane %v4321_v32, 1 }
 0x393   : > { %v4323_v30 = vadd.f32 %v4322_v24, %v4321_v32 }
 0x395   : > { %4324 = vst [vmem:[%s8232_s30 + $0x1] sm:$0x1] %v4323_v30 }
 0x396   : > { %5557 = shalt.err (!%p5554_p11)
}
 0x397   : > { %s5558_s14 = scalar_lea.hbm %s8465_s9, 32  ;;  %s5562_s11 = scalar_lea.hbm %s8516_s6, 64 }
 0x398   : > { %p5559_p9 = scmp.ne.s32.totalorder %s8465_s9, %s5558_s14  ;;  %p5563_p4 = scmp.lt.u32.totalorder %s8465_s9, %s8516_s6 }
 0x399   : > { %p5564_p6 = scmp.lt.u32.totalorder %s5562_s11, %s5558_s14  ;;  %p5566_p3 = scmp.lt.u32.totalorder %s5558_s14, %s8465_s9 }
 0x39a   : > { %p5560_p12 = pnand %p5559_p9, %p5828_p1 }
 0x39b   : > { %p5565_p8 = por %p5564_p6, %p5563_p4 }
 0x39c   : > { %p5561_p2 = pneg %p5560_p12 }
 0x39d   : > { %p5567_p7 = por %p5566_p3, %p5565_p8 }
 0x39f   : > { %p5568_p10 = pnand %p5567_p7, %p5561_p2 }
 0x3a1   : > { %5571 = shalt.err (!%p5568_p10)
}
 0x3a2   : > { %5205 = dma.vmem_to_hbm [thread:$0]  (%p5828_p1), %s8467_s19, 32, %s8465_s9, %s4331_s12  }
 0x3a3 PF: > { %s4372_s8 = sand.u32 1, %s5610_s21   ;;  %p9180_p13 = scmp.ne.s32.totalorder %s8621_s28, 0 }
 0x3a4   : > { %p9181_p0 = scmp.ge.s32.totalorder %s5622_s24, 2  ;;  %s4373_s20 = scalar_lea.sflag [#allocation7], %s4372_s8 }
 0x3a6   : > { %p5226_p5 = pnand %p9181_p0, %p9180_p13 }
 0x3a8   : > { %5601 = dma.done.wait (!%p5226_p5), %s4373_s20, 2304  }
 0x3a9   : > { %5603 = vsyncadd (!%p5226_p5), %s4373_s20, 4294964992  ;;  %s4382_s10 = scalar_lea.sflag [#allocation16], %s4372_s8 }
 0x3aa   : > { %5605 = dma.done.wait (!%p5226_p5), %s4382_s10, 32  }
 0x3ab   : > { %5607 = vsyncadd (!%p5226_p5), %s4382_s10, 4294967264  ;;  %p25_p1 = scmp.ge.s32.totalorder %s5818_s18, 4   ;;  %s9182_s21 = smov %s5614_s22 }
 0x3ac   : > { %s9183_s22 = smov %s5618_s23  ;;  %s9184_s23 = smov %s5834_s17 }
 0x3ad   : > { %s9185_s24 = smov %s5818_s18  ;;  %27 = sbr.rel (!%p25_p1) target bundleno = 9 (0x9), region = 120 }
 0x3b4   :  { %4387 = vsyncpa [#allocation6], 1 }
 0x3b5   :  { %4389 = vsyncpa [#allocation6 + $0x1], 1 }
 0x3b6   :  { %4390 = vsyncpa [#allocation9], 1 }
 0x3b7   :  { %4391 = vsyncpa [#allocation12], 1 }
 0x3b8   :  { %4392 = vsyncpa [#allocation7], 1 }
 0x3b9   :  { %4394 = vsyncpa [#allocation7 + $0x1], 1 }
 0x3ba   :  { %4395 = vsyncpa [#allocation16], 1 }
 0x3bb   :  { %4397 = vsyncpa [#allocation16 + $0x1], 1 }

</bundles_post_ra>
